<compile_context>
chip_gen: v7x
topology: tpu7x:2x2x1
jax: 0.10.0
libtpu: 0.0.40
codegen_flags: <defaults>
</compile_context>

<pallas_src>
import functools

import numpy as np
import jax
import jax.numpy as jnp
from jax.experimental import pallas as pl
from jax.experimental.pallas import tpu as pltpu

EPS = 1e-5          # InstanceNorm2d default (affine=False, biased variance)
SLOPE = 0.2         # LeakyReLU negative slope
_VMEM_LIMIT = 32 * 1024 * 1024   # explicit; actual per-step use is ~1-2 MiB


# ---------------------------------------------------------------------------
# In-kernel helpers
# ---------------------------------------------------------------------------

def _conv_s2d(xs_ref, w_ref, wh, mc):
    """Stride-2 4x4 conv (pad 1) as 4 shifted GEMMs over a space-to-depth input.

    xs_ref: (4*Cin, Lpad) bf16 -- 1-padded input, parity-split and spatially
            flattened with row stride `wh` (= Wout+1).
    w_ref : (4, Cout, 4*Cin) bf16 -- weight grouped by s2d window (a, b).
    Returns (Cout, mc) f32, column m = ho*wh + wo (columns m % wh == wh-1 are
    don't-care and get masked out of the norm statistics).
    """
    acc = None
    for idx, d in enumerate((0, 1, wh, wh + 1)):          # (a, b) in {0,1}^2
        part = jnp.dot(w_ref[idx], xs_ref[:, d:d + mc],
                       preferred_element_type=jnp.float32)
        acc = part if acc is None else acc + part
    return acc


def _inorm_lrelu(y, inv_count, mask=None):
    """InstanceNorm2d (affine=False, biased var) + LeakyReLU(0.2), one pass."""
    ym = y if mask is None else y * mask
    s1 = jnp.sum(ym, axis=1, keepdims=True)
    s2 = jnp.sum(ym * ym, axis=1, keepdims=True)          # sum & sum-of-squares together
    mean = s1 * inv_count
    var = s2 * inv_count - mean * mean
    y = (y - mean) * jax.lax.rsqrt(var + EPS)
    return jnp.where(y >= 0.0, y, SLOPE * y)


# ---------------------------------------------------------------------------
# Kernels
# ---------------------------------------------------------------------------

def _block_kernel(xs_ref, mask_ref, w_ref, o_ref, *, wh, mc, inv_count):
    """Fused [Conv(4,2,1,bias=False) -> InstanceNorm2d -> LeakyReLU], one image."""
    y = _conv_s2d(xs_ref, w_ref, wh, mc)
    y = _inorm_lrelu(y, inv_count, mask=mask_ref[...])
    o_ref[...] = y.astype(o_ref.dtype)


def _tail_kernel(xs_ref, mask_ref, w3_ref, g34_ref, w4_ref, g45_ref, w5_ref,
                 wf_ref, b_ref, o_ref, *, wh3, mc3, inv3):
    """Fused blocks 3-5 + final Conv2d(ndf*16, 1, 4, 1, 0) + bias, one image.

    Intermediates (C3,256), (C4,64), (C5,16) never leave VMEM; blocks 4-5 gather
    their conv patches via constant 0/1 matrices on the MXU.
    """
    # Block 3 (input prepared by the wrapper, same scheme as blocks 1-2).
    y3 = _inorm_lrelu(_conv_s2d(xs_ref, w3_ref, wh3, mc3), inv3,
                      mask=mask_ref[...]).astype(jnp.bfloat16)      # (C3, mc3)
    # Block 4.
    y4 = None
    for k in range(16):
        p = jnp.dot(y3, g34_ref[k],
                    preferred_element_type=jnp.float32).astype(jnp.bfloat16)
        t = jnp.dot(w4_ref[k], p, preferred_element_type=jnp.float32)
        y4 = t if y4 is None else y4 + t                            # (C4, 64)
    y4 = _inorm_lrelu(y4, 1.0 / y4.shape[1]).astype(jnp.bfloat16)
    # Block 5.
    y5 = None
    for k in range(16):
        p = jnp.dot(y4, g45_ref[k],
                    preferred_element_type=jnp.float32).astype(jnp.bfloat16)
        t = jnp.dot(w5_ref[k], p, preferred_element_type=jnp.float32)
        y5 = t if y5 is None else y5 + t                            # (C5, 16)
    y5 = _inorm_lrelu(y5, 1.0 / y5.shape[1])
    # Final 4x4 valid conv = full contraction with the (C5, 16) map, + SMEM bias.
    s = jnp.sum(y5 * wf_ref[...], axis=1, keepdims=True)
    s = jnp.sum(s, axis=0, keepdims=True)                           # (1, 1)
    o_ref[...] = s + b_ref[0, 0]


# ---------------------------------------------------------------------------
# XLA-side layout glue (activation-sized; no patch expansion) and weight prep
# ---------------------------------------------------------------------------

def _prep_s2d(x):
    """(N, C, H, W) -> flattened space-to-depth of the 1-padded input (bf16)."""
    n, c, h, w = x.shape
    ho, wo = h // 2, w // 2
    hh, wh = ho + 1, wo + 1
    xp = jnp.pad(x, ((0, 0), (0, 0), (1, 1), (1, 1)))
    xp = xp.reshape(n, c, hh, 2, wh, 2).transpose(0, 3, 5, 1, 2, 4)  # (n,i,j,c,r,s)
    xs = xp.reshape(n, 4 * c, hh * wh)
    lpad = hh * wh + wh + 2                      # room for the (1,1)-shifted window
    xs = jnp.pad(xs, ((0, 0), (0, 0), (0, lpad - hh * wh)))
    return xs.astype(jnp.bfloat16), ho, wo, wh, lpad


def _valid_mask(ho, wo):
    """(1, ho*(wo+1)) f32 mask of valid output columns."""
    wh = wo + 1
    m = np.arange(ho * wh)
    return jnp.asarray(((m % wh) != wo).astype(np.float32)[None, :])


def _gather_mats(hi, wi, row_stride, ho, wo):
    """Constant 0/1 matrices gathering 4x4/stride-2/pad-1 conv patches.

    g[kh*4+kw, (2r+kh-1)*row_stride + (2s+kw-1), r*wo+s] = 1 (zero where the
    source position falls in the implicit padding).
    """
    g = np.zeros((16, hi * row_stride, ho * wo), np.float32)
    for kh in range(4):
        for kw in range(4):
            for r in range(ho):
                hr = 2 * r + kh - 1
                if not 0 <= hr < hi:
                    continue
                for s in range(wo):
                    wr = 2 * s + kw - 1
                    if 0 <= wr < wi:
                        g[kh * 4 + kw, hr * row_stride + wr, r * wo + s] = 1.0
    return jnp.asarray(g, jnp.bfloat16)


def _s2d_weight(w):
    """(Cout, Cin, 4, 4) -> (4, Cout, 4*Cin) matching _conv_s2d's window order."""
    co, ci = w.shape[:2]
    w6 = w.reshape(co, ci, 2, 2, 2, 2)                    # [o, c, a, i, b, j]
    return w6.transpose(2, 4, 0, 3, 5, 1).reshape(4, co, 4 * ci).astype(jnp.bfloat16)


def _khkw_weight(w):
    """(Cout, Cin, 4, 4) -> (16, Cout, Cin) in (kh, kw) window order."""
    co, ci = w.shape[:2]
    return w.transpose(2, 3, 0, 1).reshape(16, co, ci).astype(jnp.bfloat16)


# ---------------------------------------------------------------------------
# pallas_call wrappers and forward pass
# ---------------------------------------------------------------------------

def _conv_block(xs, mask, w, n, co, ho, wo, wh, lpad):
    mc = ho * wh
    ci4 = xs.shape[1]
    return pl.pallas_call(
        functools.partial(_block_kernel, wh=wh, mc=mc, inv_count=1.0 / (ho * wo)),
        out_shape=jax.ShapeDtypeStruct((n, co, mc), jnp.bfloat16),
        grid=(n,),
        in_specs=[
            pl.BlockSpec((None, ci4, lpad), lambda i: (i, 0, 0)),
            pl.BlockSpec((1, mc), lambda i: (0, 0)),
            pl.BlockSpec((4, co, ci4), lambda i: (0, 0, 0)),
        ],
        out_specs=pl.BlockSpec((None, co, mc), lambda i: (i, 0, 0)),
        compiler_params=pltpu.CompilerParams(
            dimension_semantics=("parallel",), vmem_limit_bytes=_VMEM_LIMIT),
    )(xs, mask, w)


def discriminator_forward(params, x):
    n = x.shape[0]
    act = x
    # Blocks 1-2: one fused (conv -> IN -> LeakyReLU) pallas_call per block.
    for w in params["convs"][:2]:
        co = w.shape[0]
        xs, ho, wo, wh, lpad = _prep_s2d(act)
        y = _conv_block(xs, _valid_mask(ho, wo), _s2d_weight(w),
                        n, co, ho, wo, wh, lpad)
        act = y.reshape(n, co, ho, wh)[..., :wo]          # drop don't-care column
    # Blocks 3-5 + final conv + bias: one fused pallas_call per image.
    w3, w4, w5 = params["convs"][2:]
    c2, c3, c4, c5 = w3.shape[1], w3.shape[0], w4.shape[0], w5.shape[0]
    xs, s3, _, wh3, lpad3 = _prep_s2d(act)
    s4, s5 = s3 // 2, s3 // 4
    assert s5 == 4, "final Conv2d(.., 1, 4, 1, 0) expects a 4x4 map (128x128 input)"
    mc3, m4 = s3 * wh3, s4 * s4
    # Output stays (N, 1, 1) with a (1, 1) block: a (1, N) lane-dense row would
    # violate the (8,128)/full-dim BlockSpec rule at N=2 and break the per-image
    # "parallel" (megacore) grid -- the scalar store here is negligible.
    out = pl.pallas_call(
        functools.partial(_tail_kernel, wh3=wh3, mc3=mc3, inv3=1.0 / (s3 * s3)),
        out_shape=jax.ShapeDtypeStruct((n, 1, 1), jnp.float32),
        grid=(n,),
        in_specs=[
            pl.BlockSpec((None, 4 * c2, lpad3), lambda i: (i, 0, 0)),
            pl.BlockSpec((1, mc3), lambda i: (0, 0)),
            pl.BlockSpec((4, c3, 4 * c2), lambda i: (0, 0, 0)),
            pl.BlockSpec((16, mc3, m4), lambda i: (0, 0, 0)),
            pl.BlockSpec((16, c4, c3), lambda i: (0, 0, 0)),
            pl.BlockSpec((16, m4, 16), lambda i: (0, 0, 0)),
            pl.BlockSpec((16, c5, c4), lambda i: (0, 0, 0)),
            pl.BlockSpec((c5, 16), lambda i: (0, 0)),
            pl.BlockSpec(memory_space=pltpu.MemorySpace.SMEM),     # final bias
        ],
        out_specs=pl.BlockSpec((None, 1, 1), lambda i: (i, 0, 0)),
        compiler_params=pltpu.CompilerParams(
            dimension_semantics=("parallel",), vmem_limit_bytes=_VMEM_LIMIT),
    )(xs, _valid_mask(s3, s3), _s2d_weight(w3),
      _gather_mats(s3, s3, wh3, s4, s4), _khkw_weight(w4),
      _gather_mats(s4, s4, s4, s5, s5), _khkw_weight(w5),
      params["final_w"].reshape(c5, 16).astype(jnp.float32),
      params["final_b"].astype(jnp.float32))
    return out.reshape(-1)                                # .view(-1)


# ---------------------------------------------------------------------------
# Parameters and pure-JAX reference
# ---------------------------------------------------------------------------

def init_discriminator_params(key, ndf):
    ch = [3, ndf, ndf * 2, ndf * 4, ndf * 8, ndf * 16]
    convs = []
    for i in range(5):
        key, k = jax.random.split(key)
        convs.append(0.05 * jax.random.normal(k, (ch[i + 1], ch[i], 4, 4),
                                              jnp.float32))
    key, kf, kb = jax.random.split(key, 3)
    final_w = 0.05 * jax.random.normal(kf, (1, ch[5], 4, 4), jnp.float32)
    final_b = 0.05 * jax.random.normal(kb, (1, 1), jnp.float32)
    return {"convs": convs, "final_w": final_w, "final_b": final_b}


def reference_forward(params, x):
    """Pure-JAX reference, mirroring the kernel's bf16 operand/storage rounding."""
    f32 = jnp.float32
    act = x.astype(jnp.bfloat16).astype(f32)
    for i, w in enumerate(params["convs"]):
        act = jax.lax.conv_general_dilated(
            act, w.astype(jnp.bfloat16).astype(f32), window_strides=(2, 2),
            padding=((1, 1), (1, 1)), dimension_numbers=("NCHW", "OIHW", "NCHW"))
        mu = jnp.mean(act, axis=(2, 3), keepdims=True)
        var = jnp.mean((act - mu) ** 2, axis=(2, 3), keepdims=True)
        act = (act - mu) * jax.lax.rsqrt(var + EPS)
        act = jnp.where(act >= 0.0, act, SLOPE * act)
        if i < 4:                                  # blocks 1-4 activations are bf16
            act = act.astype(jnp.bfloat16).astype(f32)
    y = jax.lax.conv_general_dilated(
        act, params["final_w"], window_strides=(1, 1), padding="VALID",
        dimension_numbers=("NCHW", "OIHW", "NCHW"))
    return (y + params["final_b"].reshape(1, 1, 1, 1)).reshape(-1)


if __name__ == "__main__":
    # Scaled-down config consistent with the module (opt.ndf shrunk):
    # input (N, 3, 128, 128) -> five stride-2 blocks -> 4x4 -> final conv -> (N,)
    NDF, BATCH, IMG = 4, 2, 128
    key = jax.random.PRNGKey(0)
    key, pkey, xkey = jax.random.split(key, 3)
    params = init_discriminator_params(pkey, NDF)
    x = jax.random.normal(xkey, (BATCH, 3, IMG, IMG), jnp.float32)

    fwd = jax.jit(discriminator_forward)
    out = jax.block_until_ready(fwd(params, x))
    assert out.shape == (BATCH,), out.shape
    assert bool(jnp.all(jnp.isfinite(out)))

    ref = jax.block_until_ready(jax.jit(reference_forward)(params, x))
    assert bool(jnp.allclose(out, ref, rtol=5e-2, atol=5e-2)), (out, ref)
    print("KERNEL_OK")
</pallas_src>

<mosaic_0001>
module attributes {stable_mosaic.version = 11 : i64} {
  func.func @_block_kernel(%arg0: i32, %arg1: memref<1x12x4292xbf16, #tpu.memory_space<vmem>>, %arg2: memref<1x4160xf32, #tpu.memory_space<vmem>>, %arg3: memref<4x4x12xbf16, #tpu.memory_space<vmem>>, %arg4: memref<1x4x4160xbf16, #tpu.memory_space<vmem>>) attributes {dimension_semantics = [#tpu.dimension_semantics<parallel>], iteration_bounds = array<i64: 2>, scalar_prefetch = 0 : i64, scratch_operands = 0 : i64, tpu.core_type = #tpu.core_type<tc>, window_params = [{transform_indices = @transform_0, window_bounds = array<i64: 1, 12, 4292>}, {pipeline_mode = #tpu.pipeline_mode<synchronous>, transform_indices = @transform_1, window_bounds = array<i64: 1, 4160>}, {pipeline_mode = #tpu.pipeline_mode<synchronous>, transform_indices = @transform_2, window_bounds = array<i64: 4, 4, 12>}, {transform_indices = @transform_3, window_bounds = array<i64: 1, 4, 4160>}]} {
    %c0 = arith.constant 0 : index
    %c0_0 = arith.constant 0 : index
    %c0_1 = arith.constant 0 : index
    %0 = vector.load %arg3[%c0, %c0_0, %c0_1] : memref<4x4x12xbf16, #tpu.memory_space<vmem>>, vector<1x4x12xbf16>
    %1 = vector.shape_cast %0 : vector<1x4x12xbf16> to vector<4x12xbf16>
    %c0_2 = arith.constant 0 : index
    %c0_3 = arith.constant 0 : index
    %c0_4 = arith.constant 0 : index
    %2 = vector.load %arg1[%c0_2, %c0_3, %c0_4] : memref<1x12x4292xbf16, #tpu.memory_space<vmem>>, vector<1x12x4160xbf16>
    %3 = vector.shape_cast %2 : vector<1x12x4160xbf16> to vector<12x4160xbf16>
    %cst = arith.constant dense<0.000000e+00> : vector<4x4160xf32>
    %4 = tpu.matmul %1, %3, %cst {dimension_numbers = #tpu.dot_dimension_numbers<[1], [0], [0], [1], [0, 0, 1, 1], [], []>} : vector<4x12xbf16>, vector<12x4160xbf16>, vector<4x4160xf32> -> vector<4x4160xf32>
    %c1 = arith.constant 1 : index
    %c0_5 = arith.constant 0 : index
    %c0_6 = arith.constant 0 : index
    %5 = vector.load %arg3[%c1, %c0_5, %c0_6] : memref<4x4x12xbf16, #tpu.memory_space<vmem>>, vector<1x4x12xbf16>
    %6 = vector.shape_cast %5 : vector<1x4x12xbf16> to vector<4x12xbf16>
    %c0_7 = arith.constant 0 : index
    %c0_8 = arith.constant 0 : index
    %c1_9 = arith.constant 1 : index
    %7 = vector.load %arg1[%c0_7, %c0_8, %c1_9] : memref<1x12x4292xbf16, #tpu.memory_space<vmem>>, vector<1x12x4160xbf16>
    %8 = vector.shape_cast %7 : vector<1x12x4160xbf16> to vector<12x4160xbf16>
    %cst_10 = arith.constant dense<0.000000e+00> : vector<4x4160xf32>
    %9 = tpu.matmul %6, %8, %cst_10 {dimension_numbers = #tpu.dot_dimension_numbers<[1], [0], [0], [1], [0, 0, 1, 1], [], []>} : vector<4x12xbf16>, vector<12x4160xbf16>, vector<4x4160xf32> -> vector<4x4160xf32>
    %10 = arith.addf %4, %9 : vector<4x4160xf32>
    %c2 = arith.constant 2 : index
    %c0_11 = arith.constant 0 : index
    %c0_12 = arith.constant 0 : index
    %11 = vector.load %arg3[%c2, %c0_11, %c0_12] : memref<4x4x12xbf16, #tpu.memory_space<vmem>>, vector<1x4x12xbf16>
    %12 = vector.shape_cast %11 : vector<1x4x12xbf16> to vector<4x12xbf16>
    %c0_13 = arith.constant 0 : index
    %c0_14 = arith.constant 0 : index
    %c65 = arith.constant 65 : index
    %13 = vector.load %arg1[%c0_13, %c0_14, %c65] : memref<1x12x4292xbf16, #tpu.memory_space<vmem>>, vector<1x12x4160xbf16>
    %14 = vector.shape_cast %13 : vector<1x12x4160xbf16> to vector<12x4160xbf16>
    %cst_15 = arith.constant dense<0.000000e+00> : vector<4x4160xf32>
    %15 = tpu.matmul %12, %14, %cst_15 {dimension_numbers = #tpu.dot_dimension_numbers<[1], [0], [0], [1], [0, 0, 1, 1], [], []>} : vector<4x12xbf16>, vector<12x4160xbf16>, vector<4x4160xf32> -> vector<4x4160xf32>
    %16 = arith.addf %10, %15 : vector<4x4160xf32>
    %c3 = arith.constant 3 : index
    %c0_16 = arith.constant 0 : index
    %c0_17 = arith.constant 0 : index
    %17 = vector.load %arg3[%c3, %c0_16, %c0_17] : memref<4x4x12xbf16, #tpu.memory_space<vmem>>, vector<1x4x12xbf16>
    %18 = vector.shape_cast %17 : vector<1x4x12xbf16> to vector<4x12xbf16>
    %c0_18 = arith.constant 0 : index
    %c0_19 = arith.constant 0 : index
    %c66 = arith.constant 66 : index
    %19 = vector.load %arg1[%c0_18, %c0_19, %c66] : memref<1x12x4292xbf16, #tpu.memory_space<vmem>>, vector<1x12x4160xbf16>
    %20 = vector.shape_cast %19 : vector<1x12x4160xbf16> to vector<12x4160xbf16>
    %cst_20 = arith.constant dense<0.000000e+00> : vector<4x4160xf32>
    %21 = tpu.matmul %18, %20, %cst_20 {dimension_numbers = #tpu.dot_dimension_numbers<[1], [0], [0], [1], [0, 0, 1, 1], [], []>} : vector<4x12xbf16>, vector<12x4160xbf16>, vector<4x4160xf32> -> vector<4x4160xf32>
    %22 = arith.addf %16, %21 : vector<4x4160xf32>
    %c0_21 = arith.constant 0 : index
    %c0_22 = arith.constant 0 : index
    %23 = vector.load %arg2[%c0_21, %c0_22] : memref<1x4160xf32, #tpu.memory_space<vmem>>, vector<1x4160xf32>
    %24 = vector.broadcast %23 : vector<1x4160xf32> to vector<4x4160xf32>
    %25 = arith.mulf %22, %24 : vector<4x4160xf32>
    %cst_23 = arith.constant dense<0.000000e+00> : vector<4xf32>
    %26 = vector.multi_reduction <add>, %25, %cst_23 [1] : vector<4x4160xf32> to vector<4xf32>
    %27 = vector.shape_cast %26 : vector<4xf32> to vector<4x1xf32>
    %28 = arith.mulf %25, %25 : vector<4x4160xf32>
    %cst_24 = arith.constant dense<0.000000e+00> : vector<4xf32>
    %29 = vector.multi_reduction <add>, %28, %cst_24 [1] : vector<4x4160xf32> to vector<4xf32>
    %30 = vector.shape_cast %29 : vector<4xf32> to vector<4x1xf32>
    %cst_25 = arith.constant 2.44140625E-4 : f32
    %31 = vector.broadcast %cst_25 : f32 to vector<4x1xf32>
    %32 = arith.mulf %27, %31 : vector<4x1xf32>
    %cst_26 = arith.constant 2.44140625E-4 : f32
    %33 = vector.broadcast %cst_26 : f32 to vector<4x1xf32>
    %34 = arith.mulf %30, %33 : vector<4x1xf32>
    %35 = arith.mulf %32, %32 : vector<4x1xf32>
    %36 = arith.subf %34, %35 : vector<4x1xf32>
    %37 = vector.broadcast %32 : vector<4x1xf32> to vector<4x4160xf32>
    %38 = arith.subf %22, %37 : vector<4x4160xf32>
    %cst_27 = arith.constant 9.99999974E-6 : f32
    %39 = vector.broadcast %cst_27 : f32 to vector<4x1xf32>
    %40 = arith.addf %36, %39 : vector<4x1xf32>
    %41 = math.rsqrt %40 : vector<4x1xf32>
    %42 = vector.broadcast %41 : vector<4x1xf32> to vector<4x4160xf32>
    %43 = arith.mulf %38, %42 : vector<4x4160xf32>
    %cst_28 = arith.constant 0.000000e+00 : f32
    %44 = vector.broadcast %cst_28 : f32 to vector<4x4160xf32>
    %45 = arith.cmpf oge, %43, %44 : vector<4x4160xf32>
    %cst_29 = arith.constant 2.000000e-01 : f32
    %46 = vector.broadcast %cst_29 : f32 to vector<4x4160xf32>
    %47 = arith.mulf %46, %43 : vector<4x4160xf32>
    %48 = arith.select %45, %43, %47 : vector<4x4160xi1>, vector<4x4160xf32>
    %49 = arith.truncf %48 : vector<4x4160xf32> to vector<4x4160xbf16>
    %c0_30 = arith.constant 0 : index
    %c0_31 = arith.constant 0 : index
    %c0_32 = arith.constant 0 : index
    %50 = vector.load %arg4[%c0_30, %c0_31, %c0_32] : memref<1x4x4160xbf16, #tpu.memory_space<vmem>>, vector<1x4x4160xbf16>
    %51 = vector.shape_cast %50 : vector<1x4x4160xbf16> to vector<4x4160xbf16>
    %52 = vector.shape_cast %49 : vector<4x4160xbf16> to vector<1x4x4160xbf16>
    tpu.vector_store %arg4[%c0_30, %c0_31, %c0_32], %52 {strides = array<i32>} : memref<1x4x4160xbf16, #tpu.memory_space<vmem>>, vector<1x4x4160xbf16>,
    return
  }
  func.func @transform_0(%arg0: i32) -> (i32, i32, i32) {
    %c0_i32 = arith.constant 0 : i32
    %c0_i32_0 = arith.constant 0 : i32
    %c0_i32_1 = arith.constant 0 : i32
    return %arg0, %c0_i32, %c0_i32_0 : i32, i32, i32
  }
  func.func @transform_1(%arg0: i32) -> (i32, i32) {
    %c0_i32 = arith.constant 0 : i32
    %c0_i32_0 = arith.constant 0 : i32
    %c0_i32_1 = arith.constant 0 : i32
    return %c0_i32, %c0_i32_0 : i32, i32
  }
  func.func @transform_2(%arg0: i32) -> (i32, i32, i32) {
    %c0_i32 = arith.constant 0 : i32
    %c0_i32_0 = arith.constant 0 : i32
    %c0_i32_1 = arith.constant 0 : i32
    %c0_i32_2 = arith.constant 0 : i32
    return %c0_i32, %c0_i32_0, %c0_i32_1 : i32, i32, i32
  }
  func.func @transform_3(%arg0: i32) -> (i32, i32, i32) {
    %c0_i32 = arith.constant 0 : i32
    %c0_i32_0 = arith.constant 0 : i32
    %c0_i32_1 = arith.constant 0 : i32
    return %arg0, %c0_i32, %c0_i32_0 : i32, i32, i32
  }
}

module attributes {stable_mosaic.version = 11 : i64} {
  func.func @_block_kernel(%arg0: i32, %arg1: memref<1x16x1124xbf16, #tpu.memory_space<vmem>>, %arg2: memref<1x1056xf32, #tpu.memory_space<vmem>>, %arg3: memref<4x8x16xbf16, #tpu.memory_space<vmem>>, %arg4: memref<1x8x1056xbf16, #tpu.memory_space<vmem>>) attributes {dimension_semantics = [#tpu.dimension_semantics<parallel>], iteration_bounds = array<i64: 2>, scalar_prefetch = 0 : i64, scratch_operands = 0 : i64, tpu.core_type = #tpu.core_type<tc>, window_params = [{transform_indices = @transform_0, window_bounds = array<i64: 1, 16, 1124>}, {pipeline_mode = #tpu.pipeline_mode<synchronous>, transform_indices = @transform_1, window_bounds = array<i64: 1, 1056>}, {pipeline_mode = #tpu.pipeline_mode<synchronous>, transform_indices = @transform_2, window_bounds = array<i64: 4, 8, 16>}, {transform_indices = @transform_3, window_bounds = array<i64: 1, 8, 1056>}]} {
    %c0 = arith.constant 0 : index
    %c0_0 = arith.constant 0 : index
    %c0_1 = arith.constant 0 : index
    %0 = vector.load %arg3[%c0, %c0_0, %c0_1] : memref<4x8x16xbf16, #tpu.memory_space<vmem>>, vector<1x8x16xbf16>
    %1 = vector.shape_cast %0 : vector<1x8x16xbf16> to vector<8x16xbf16>
    %c0_2 = arith.constant 0 : index
    %c0_3 = arith.constant 0 : index
    %c0_4 = arith.constant 0 : index
    %2 = vector.load %arg1[%c0_2, %c0_3, %c0_4] : memref<1x16x1124xbf16, #tpu.memory_space<vmem>>, vector<1x16x1056xbf16>
    %3 = vector.shape_cast %2 : vector<1x16x1056xbf16> to vector<16x1056xbf16>
    %cst = arith.constant dense<0.000000e+00> : vector<8x1056xf32>
    %4 = tpu.matmul %1, %3, %cst {dimension_numbers = #tpu.dot_dimension_numbers<[1], [0], [0], [1], [0, 0, 1, 1], [], []>} : vector<8x16xbf16>, vector<16x1056xbf16>, vector<8x1056xf32> -> vector<8x1056xf32>
    %c1 = arith.constant 1 : index
    %c0_5 = arith.constant 0 : index
    %c0_6 = arith.constant 0 : index
    %5 = vector.load %arg3[%c1, %c0_5, %c0_6] : memref<4x8x16xbf16, #tpu.memory_space<vmem>>, vector<1x8x16xbf16>
    %6 = vector.shape_cast %5 : vector<1x8x16xbf16> to vector<8x16xbf16>
    %c0_7 = arith.constant 0 : index
    %c0_8 = arith.constant 0 : index
    %c1_9 = arith.constant 1 : index
    %7 = vector.load %arg1[%c0_7, %c0_8, %c1_9] : memref<1x16x1124xbf16, #tpu.memory_space<vmem>>, vector<1x16x1056xbf16>
    %8 = vector.shape_cast %7 : vector<1x16x1056xbf16> to vector<16x1056xbf16>
    %cst_10 = arith.constant dense<0.000000e+00> : vector<8x1056xf32>
    %9 = tpu.matmul %6, %8, %cst_10 {dimension_numbers = #tpu.dot_dimension_numbers<[1], [0], [0], [1], [0, 0, 1, 1], [], []>} : vector<8x16xbf16>, vector<16x1056xbf16>, vector<8x1056xf32> -> vector<8x1056xf32>
    %10 = arith.addf %4, %9 : vector<8x1056xf32>
    %c2 = arith.constant 2 : index
    %c0_11 = arith.constant 0 : index
    %c0_12 = arith.constant 0 : index
    %11 = vector.load %arg3[%c2, %c0_11, %c0_12] : memref<4x8x16xbf16, #tpu.memory_space<vmem>>, vector<1x8x16xbf16>
    %12 = vector.shape_cast %11 : vector<1x8x16xbf16> to vector<8x16xbf16>
    %c0_13 = arith.constant 0 : index
    %c0_14 = arith.constant 0 : index
    %c33 = arith.constant 33 : index
    %13 = vector.load %arg1[%c0_13, %c0_14, %c33] : memref<1x16x1124xbf16, #tpu.memory_space<vmem>>, vector<1x16x1056xbf16>
    %14 = vector.shape_cast %13 : vector<1x16x1056xbf16> to vector<16x1056xbf16>
    %cst_15 = arith.constant dense<0.000000e+00> : vector<8x1056xf32>
    %15 = tpu.matmul %12, %14, %cst_15 {dimension_numbers = #tpu.dot_dimension_numbers<[1], [0], [0], [1], [0, 0, 1, 1], [], []>} : vector<8x16xbf16>, vector<16x1056xbf16>, vector<8x1056xf32> -> vector<8x1056xf32>
    %16 = arith.addf %10, %15 : vector<8x1056xf32>
    %c3 = arith.constant 3 : index
    %c0_16 = arith.constant 0 : index
    %c0_17 = arith.constant 0 : index
    %17 = vector.load %arg3[%c3, %c0_16, %c0_17] : memref<4x8x16xbf16, #tpu.memory_space<vmem>>, vector<1x8x16xbf16>
    %18 = vector.shape_cast %17 : vector<1x8x16xbf16> to vector<8x16xbf16>
    %c0_18 = arith.constant 0 : index
    %c0_19 = arith.constant 0 : index
    %c34 = arith.constant 34 : index
    %19 = vector.load %arg1[%c0_18, %c0_19, %c34] : memref<1x16x1124xbf16, #tpu.memory_space<vmem>>, vector<1x16x1056xbf16>
    %20 = vector.shape_cast %19 : vector<1x16x1056xbf16> to vector<16x1056xbf16>
    %cst_20 = arith.constant dense<0.000000e+00> : vector<8x1056xf32>
    %21 = tpu.matmul %18, %20, %cst_20 {dimension_numbers = #tpu.dot_dimension_numbers<[1], [0], [0], [1], [0, 0, 1, 1], [], []>} : vector<8x16xbf16>, vector<16x1056xbf16>, vector<8x1056xf32> -> vector<8x1056xf32>
    %22 = arith.addf %16, %21 : vector<8x1056xf32>
    %c0_21 = arith.constant 0 : index
    %c0_22 = arith.constant 0 : index
    %23 = vector.load %arg2[%c0_21, %c0_22] : memref<1x1056xf32, #tpu.memory_space<vmem>>, vector<1x1056xf32>
    %24 = vector.broadcast %23 : vector<1x1056xf32> to vector<8x1056xf32>
    %25 = arith.mulf %22, %24 : vector<8x1056xf32>
    %cst_23 = arith.constant dense<0.000000e+00> : vector<8xf32>
    %26 = vector.multi_reduction <add>, %25, %cst_23 [1] : vector<8x1056xf32> to vector<8xf32>
    %27 = vector.shape_cast %26 : vector<8xf32> to vector<8x1xf32>
    %28 = arith.mulf %25, %25 : vector<8x1056xf32>
    %cst_24 = arith.constant dense<0.000000e+00> : vector<8xf32>
    %29 = vector.multi_reduction <add>, %28, %cst_24 [1] : vector<8x1056xf32> to vector<8xf32>
    %30 = vector.shape_cast %29 : vector<8xf32> to vector<8x1xf32>
    %cst_25 = arith.constant 9.765625E-4 : f32
    %31 = vector.broadcast %cst_25 : f32 to vector<8x1xf32>
    %32 = arith.mulf %27, %31 : vector<8x1xf32>
    %cst_26 = arith.constant 9.765625E-4 : f32
    %33 = vector.broadcast %cst_26 : f32 to vector<8x1xf32>
    %34 = arith.mulf %30, %33 : vector<8x1xf32>
    %35 = arith.mulf %32, %32 : vector<8x1xf32>
    %36 = arith.subf %34, %35 : vector<8x1xf32>
    %37 = vector.broadcast %32 : vector<8x1xf32> to vector<8x1056xf32>
    %38 = arith.subf %22, %37 : vector<8x1056xf32>
    %cst_27 = arith.constant 9.99999974E-6 : f32
    %39 = vector.broadcast %cst_27 : f32 to vector<8x1xf32>
    %40 = arith.addf %36, %39 : vector<8x1xf32>
    %41 = math.rsqrt %40 : vector<8x1xf32>
    %42 = vector.broadcast %41 : vector<8x1xf32> to vector<8x1056xf32>
    %43 = arith.mulf %38, %42 : vector<8x1056xf32>
    %cst_28 = arith.constant 0.000000e+00 : f32
    %44 = vector.broadcast %cst_28 : f32 to vector<8x1056xf32>
    %45 = arith.cmpf oge, %43, %44 : vector<8x1056xf32>
    %cst_29 = arith.constant 2.000000e-01 : f32
    %46 = vector.broadcast %cst_29 : f32 to vector<8x1056xf32>
    %47 = arith.mulf %46, %43 : vector<8x1056xf32>
    %48 = arith.select %45, %43, %47 : vector<8x1056xi1>, vector<8x1056xf32>
    %49 = arith.truncf %48 : vector<8x1056xf32> to vector<8x1056xbf16>
    %c0_30 = arith.constant 0 : index
    %c0_31 = arith.constant 0 : index
    %c0_32 = arith.constant 0 : index
    %50 = vector.load %arg4[%c0_30, %c0_31, %c0_32] : memref<1x8x1056xbf16, #tpu.memory_space<vmem>>, vector<1x8x1056xbf16>
    %51 = vector.shape_cast %50 : vector<1x8x1056xbf16> to vector<8x1056xbf16>
    %52 = vector.shape_cast %49 : vector<8x1056xbf16> to vector<1x8x1056xbf16>
    tpu.vector_store %arg4[%c0_30, %c0_31, %c0_32], %52 {strides = array<i32>} : memref<1x8x1056xbf16, #tpu.memory_space<vmem>>, vector<1x8x1056xbf16>,
    return
  }
  func.func @transform_0(%arg0: i32) -> (i32, i32, i32) {
    %c0_i32 = arith.constant 0 : i32
    %c0_i32_0 = arith.constant 0 : i32
    %c0_i32_1 = arith.constant 0 : i32
    return %arg0, %c0_i32, %c0_i32_0 : i32, i32, i32
  }
  func.func @transform_1(%arg0: i32) -> (i32, i32) {
    %c0_i32 = arith.constant 0 : i32
    %c0_i32_0 = arith.constant 0 : i32
    %c0_i32_1 = arith.constant 0 : i32
    return %c0_i32, %c0_i32_0 : i32, i32
  }
  func.func @transform_2(%arg0: i32) -> (i32, i32, i32) {
    %c0_i32 = arith.constant 0 : i32
    %c0_i32_0 = arith.constant 0 : i32
    %c0_i32_1 = arith.constant 0 : i32
    %c0_i32_2 = arith.constant 0 : i32
    return %c0_i32, %c0_i32_0, %c0_i32_1 : i32, i32, i32
  }
  func.func @transform_3(%arg0: i32) -> (i32, i32, i32) {
    %c0_i32 = arith.constant 0 : i32
    %c0_i32_0 = arith.constant 0 : i32
    %c0_i32_1 = arith.constant 0 : i32
    return %arg0, %c0_i32, %c0_i32_0 : i32, i32, i32
  }
}

module attributes {stable_mosaic.version = 11 : i64} {
  func.func @_tail_kernel(%arg0: i32, %arg1: memref<1x32x308xbf16, #tpu.memory_space<vmem>>, %arg2: memref<1x272xf32, #tpu.memory_space<vmem>>, %arg3: memref<4x16x32xbf16, #tpu.memory_space<vmem>>, %arg4: memref<16x272x64xbf16, #tpu.memory_space<vmem>>, %arg5: memref<16x32x16xbf16, #tpu.memory_space<vmem>>, %arg6: memref<16x64x16xbf16, #tpu.memory_space<vmem>>, %arg7: memref<16x64x32xbf16, #tpu.memory_space<vmem>>, %arg8: memref<64x16xf32, #tpu.memory_space<vmem>>, %arg9: memref<1x1xf32, #tpu.memory_space<smem>>, %arg10: memref<1x1x1xf32, #tpu.memory_space<vmem>>) attributes {dimension_semantics = [#tpu.dimension_semantics<parallel>], iteration_bounds = array<i64: 2>, scalar_prefetch = 0 : i64, scratch_operands = 0 : i64, tpu.core_type = #tpu.core_type<tc>, window_params = [{transform_indices = @transform_0, window_bounds = array<i64: 1, 32, 308>}, {pipeline_mode = #tpu.pipeline_mode<synchronous>, transform_indices = @transform_1, window_bounds = array<i64: 1, 272>}, {pipeline_mode = #tpu.pipeline_mode<synchronous>, transform_indices = @transform_2, window_bounds = array<i64: 4, 16, 32>}, {pipeline_mode = #tpu.pipeline_mode<synchronous>, transform_indices = @transform_3, window_bounds = array<i64: 16, 272, 64>}, {pipeline_mode = #tpu.pipeline_mode<synchronous>, transform_indices = @transform_4, window_bounds = array<i64: 16, 32, 16>}, {pipeline_mode = #tpu.pipeline_mode<synchronous>, transform_indices = @transform_5, window_bounds = array<i64: 16, 64, 16>}, {pipeline_mode = #tpu.pipeline_mode<synchronous>, transform_indices = @transform_6, window_bounds = array<i64: 16, 64, 32>}, {pipeline_mode = #tpu.pipeline_mode<synchronous>, transform_indices = @transform_7, window_bounds = array<i64: 64, 16>}, {transform_indices = @transform_8, window_bounds = array<i64: 1, 1>}, {transform_indices = @transform_9, window_bounds = array<i64: 1, 1, 1>}]} {
    %c0 = arith.constant 0 : index
    %c0_0 = arith.constant 0 : index
    %c0_1 = arith.constant 0 : index
    %0 = vector.load %arg3[%c0, %c0_0, %c0_1] : memref<4x16x32xbf16, #tpu.memory_space<vmem>>, vector<1x16x32xbf16>
    %1 = vector.shape_cast %0 : vector<1x16x32xbf16> to vector<16x32xbf16>
    %c0_2 = arith.constant 0 : index
    %c0_3 = arith.constant 0 : index
    %c0_4 = arith.constant 0 : index
    %2 = vector.load %arg1[%c0_2, %c0_3, %c0_4] : memref<1x32x308xbf16, #tpu.memory_space<vmem>>, vector<1x32x272xbf16>
    %3 = vector.shape_cast %2 : vector<1x32x272xbf16> to vector<32x272xbf16>
    %cst = arith.constant dense<0.000000e+00> : vector<16x272xf32>
    %4 = tpu.matmul %1, %3, %cst {dimension_numbers = #tpu.dot_dimension_numbers<[1], [0], [0], [1], [0, 0, 1, 1], [], []>} : vector<16x32xbf16>, vector<32x272xbf16>, vector<16x272xf32> -> vector<16x272xf32>
    %c1 = arith.constant 1 : index
    %c0_5 = arith.constant 0 : index
    %c0_6 = arith.constant 0 : index
    %5 = vector.load %arg3[%c1, %c0_5, %c0_6] : memref<4x16x32xbf16, #tpu.memory_space<vmem>>, vector<1x16x32xbf16>
    %6 = vector.shape_cast %5 : vector<1x16x32xbf16> to vector<16x32xbf16>
    %c0_7 = arith.constant 0 : index
    %c0_8 = arith.constant 0 : index
    %c1_9 = arith.constant 1 : index
    %7 = vector.load %arg1[%c0_7, %c0_8, %c1_9] : memref<1x32x308xbf16, #tpu.memory_space<vmem>>, vector<1x32x272xbf16>
    %8 = vector.shape_cast %7 : vector<1x32x272xbf16> to vector<32x272xbf16>
    %cst_10 = arith.constant dense<0.000000e+00> : vector<16x272xf32>
    %9 = tpu.matmul %6, %8, %cst_10 {dimension_numbers = #tpu.dot_dimension_numbers<[1], [0], [0], [1], [0, 0, 1, 1], [], []>} : vector<16x32xbf16>, vector<32x272xbf16>, vector<16x272xf32> -> vector<16x272xf32>
    %10 = arith.addf %4, %9 : vector<16x272xf32>
    %c2 = arith.constant 2 : index
    %c0_11 = arith.constant 0 : index
    %c0_12 = arith.constant 0 : index
    %11 = vector.load %arg3[%c2, %c0_11, %c0_12] : memref<4x16x32xbf16, #tpu.memory_space<vmem>>, vector<1x16x32xbf16>
    %12 = vector.shape_cast %11 : vector<1x16x32xbf16> to vector<16x32xbf16>
    %c0_13 = arith.constant 0 : index
    %c0_14 = arith.constant 0 : index
    %c17 = arith.constant 17 : index
    %13 = vector.load %arg1[%c0_13, %c0_14, %c17] : memref<1x32x308xbf16, #tpu.memory_space<vmem>>, vector<1x32x272xbf16>
    %14 = vector.shape_cast %13 : vector<1x32x272xbf16> to vector<32x272xbf16>
    %cst_15 = arith.constant dense<0.000000e+00> : vector<16x272xf32>
    %15 = tpu.matmul %12, %14, %cst_15 {dimension_numbers = #tpu.dot_dimension_numbers<[1], [0], [0], [1], [0, 0, 1, 1], [], []>} : vector<16x32xbf16>, vector<32x272xbf16>, vector<16x272xf32> -> vector<16x272xf32>
    %16 = arith.addf %10, %15 : vector<16x272xf32>
    %c3 = arith.constant 3 : index
    %c0_16 = arith.constant 0 : index
    %c0_17 = arith.constant 0 : index
    %17 = vector.load %arg3[%c3, %c0_16, %c0_17] : memref<4x16x32xbf16, #tpu.memory_space<vmem>>, vector<1x16x32xbf16>
    %18 = vector.shape_cast %17 : vector<1x16x32xbf16> to vector<16x32xbf16>
    %c0_18 = arith.constant 0 : index
    %c0_19 = arith.constant 0 : index
    %c18 = arith.constant 18 : index
    %19 = vector.load %arg1[%c0_18, %c0_19, %c18] : memref<1x32x308xbf16, #tpu.memory_space<vmem>>, vector<1x32x272xbf16>
    %20 = vector.shape_cast %19 : vector<1x32x272xbf16> to vector<32x272xbf16>
    %cst_20 = arith.constant dense<0.000000e+00> : vector<16x272xf32>
    %21 = tpu.matmul %18, %20, %cst_20 {dimension_numbers = #tpu.dot_dimension_numbers<[1], [0], [0], [1], [0, 0, 1, 1], [], []>} : vector<16x32xbf16>, vector<32x272xbf16>, vector<16x272xf32> -> vector<16x272xf32>
    %22 = arith.addf %16, %21 : vector<16x272xf32>
    %c0_21 = arith.constant 0 : index
    %c0_22 = arith.constant 0 : index
    %23 = vector.load %arg2[%c0_21, %c0_22] : memref<1x272xf32, #tpu.memory_space<vmem>>, vector<1x272xf32>
    %24 = vector.broadcast %23 : vector<1x272xf32> to vector<16x272xf32>
    %25 = arith.mulf %22, %24 : vector<16x272xf32>
    %cst_23 = arith.constant dense<0.000000e+00> : vector<16xf32>
    %26 = vector.multi_reduction <add>, %25, %cst_23 [1] : vector<16x272xf32> to vector<16xf32>
    %27 = vector.shape_cast %26 : vector<16xf32> to vector<16x1xf32>
    %28 = arith.mulf %25, %25 : vector<16x272xf32>
    %cst_24 = arith.constant dense<0.000000e+00> : vector<16xf32>
    %29 = vector.multi_reduction <add>, %28, %cst_24 [1] : vector<16x272xf32> to vector<16xf32>
    %30 = vector.shape_cast %29 : vector<16xf32> to vector<16x1xf32>
    %cst_25 = arith.constant 3.906250e-03 : f32
    %31 = vector.broadcast %cst_25 : f32 to vector<16x1xf32>
    %32 = arith.mulf %27, %31 : vector<16x1xf32>
    %cst_26 = arith.constant 3.906250e-03 : f32
    %33 = vector.broadcast %cst_26 : f32 to vector<16x1xf32>
    %34 = arith.mulf %30, %33 : vector<16x1xf32>
    %35 = arith.mulf %32, %32 : vector<16x1xf32>
    %36 = arith.subf %34, %35 : vector<16x1xf32>
    %37 = vector.broadcast %32 : vector<16x1xf32> to vector<16x272xf32>
    %38 = arith.subf %22, %37 : vector<16x272xf32>
    %cst_27 = arith.constant 9.99999974E-6 : f32
    %39 = vector.broadcast %cst_27 : f32 to vector<16x1xf32>
    %40 = arith.addf %36, %39 : vector<16x1xf32>
    %41 = math.rsqrt %40 : vector<16x1xf32>
    %42 = vector.broadcast %41 : vector<16x1xf32> to vector<16x272xf32>
    %43 = arith.mulf %38, %42 : vector<16x272xf32>
    %cst_28 = arith.constant 0.000000e+00 : f32
    %44 = vector.broadcast %cst_28 : f32 to vector<16x272xf32>
    %45 = arith.cmpf oge, %43, %44 : vector<16x272xf32>
    %cst_29 = arith.constant 2.000000e-01 : f32
    %46 = vector.broadcast %cst_29 : f32 to vector<16x272xf32>
    %47 = arith.mulf %46, %43 : vector<16x272xf32>
    %48 = arith.select %45, %43, %47 : vector<16x272xi1>, vector<16x272xf32>
    %49 = arith.truncf %48 : vector<16x272xf32> to vector<16x272xbf16>
    %c0_30 = arith.constant 0 : index
    %c0_31 = arith.constant 0 : index
    %c0_32 = arith.constant 0 : index
    %50 = vector.load %arg4[%c0_30, %c0_31, %c0_32] : memref<16x272x64xbf16, #tpu.memory_space<vmem>>, vector<1x272x64xbf16>
    %51 = vector.shape_cast %50 : vector<1x272x64xbf16> to vector<272x64xbf16>
    %cst_33 = arith.constant dense<0.000000e+00> : vector<16x64xf32>
    %52 = tpu.matmul %49, %51, %cst_33 {dimension_numbers = #tpu.dot_dimension_numbers<[1], [0], [0], [1], [0, 0, 1, 1], [], []>} : vector<16x272xbf16>, vector<272x64xbf16>, vector<16x64xf32> -> vector<16x64xf32>
    %53 = arith.truncf %52 : vector<16x64xf32> to vector<16x64xbf16>
    %c0_34 = arith.constant 0 : index
    %c0_35 = arith.constant 0 : index
    %c0_36 = arith.constant 0 : index
    %54 = vector.load %arg5[%c0_34, %c0_35, %c0_36] : memref<16x32x16xbf16, #tpu.memory_space<vmem>>, vector<1x32x16xbf16>
    %55 = vector.shape_cast %54 : vector<1x32x16xbf16> to vector<32x16xbf16>
    %cst_37 = arith.constant dense<0.000000e+00> : vector<32x64xf32>
    %56 = tpu.matmul %55, %53, %cst_37 {dimension_numbers = #tpu.dot_dimension_numbers<[1], [0], [0], [1], [0, 0, 1, 1], [], []>} : vector<32x16xbf16>, vector<16x64xbf16>, vector<32x64xf32> -> vector<32x64xf32>
    %c1_38 = arith.constant 1 : index
    %c0_39 = arith.constant 0 : index
    %c0_40 = arith.constant 0 : index
    %57 = vector.load %arg4[%c1_38, %c0_39, %c0_40] : memref<16x272x64xbf16, #tpu.memory_space<vmem>>, vector<1x272x64xbf16>
    %58 = vector.shape_cast %57 : vector<1x272x64xbf16> to vector<272x64xbf16>
    %cst_41 = arith.constant dense<0.000000e+00> : vector<16x64xf32>
    %59 = tpu.matmul %49, %58, %cst_41 {dimension_numbers = #tpu.dot_dimension_numbers<[1], [0], [0], [1], [0, 0, 1, 1], [], []>} : vector<16x272xbf16>, vector<272x64xbf16>, vector<16x64xf32> -> vector<16x64xf32>
    %60 = arith.truncf %59 : vector<16x64xf32> to vector<16x64xbf16>
    %c1_42 = arith.constant 1 : index
    %c0_43 = arith.constant 0 : index
    %c0_44 = arith.constant 0 : index
    %61 = vector.load %arg5[%c1_42, %c0_43, %c0_44] : memref<16x32x16xbf16, #tpu.memory_space<vmem>>, vector<1x32x16xbf16>
    %62 = vector.shape_cast %61 : vector<1x32x16xbf16> to vector<32x16xbf16>
    %cst_45 = arith.constant dense<0.000000e+00> : vector<32x64xf32>
    %63 = tpu.matmul %62, %60, %cst_45 {dimension_numbers = #tpu.dot_dimension_numbers<[1], [0], [0], [1], [0, 0, 1, 1], [], []>} : vector<32x16xbf16>, vector<16x64xbf16>, vector<32x64xf32> -> vector<32x64xf32>
    %64 = arith.addf %56, %63 : vector<32x64xf32>
    %c2_46 = arith.constant 2 : index
    %c0_47 = arith.constant 0 : index
    %c0_48 = arith.constant 0 : index
    %65 = vector.load %arg4[%c2_46, %c0_47, %c0_48] : memref<16x272x64xbf16, #tpu.memory_space<vmem>>, vector<1x272x64xbf16>
    %66 = vector.shape_cast %65 : vector<1x272x64xbf16> to vector<272x64xbf16>
    %cst_49 = arith.constant dense<0.000000e+00> : vector<16x64xf32>
    %67 = tpu.matmul %49, %66, %cst_49 {dimension_numbers = #tpu.dot_dimension_numbers<[1], [0], [0], [1], [0, 0, 1, 1], [], []>} : vector<16x272xbf16>, vector<272x64xbf16>, vector<16x64xf32> -> vector<16x64xf32>
    %68 = arith.truncf %67 : vector<16x64xf32> to vector<16x64xbf16>
    %c2_50 = arith.constant 2 : index
    %c0_51 = arith.constant 0 : index
    %c0_52 = arith.constant 0 : index
    %69 = vector.load %arg5[%c2_50, %c0_51, %c0_52] : memref<16x32x16xbf16, #tpu.memory_space<vmem>>, vector<1x32x16xbf16>
    %70 = vector.shape_cast %69 : vector<1x32x16xbf16> to vector<32x16xbf16>
    %cst_53 = arith.constant dense<0.000000e+00> : vector<32x64xf32>
    %71 = tpu.matmul %70, %68, %cst_53 {dimension_numbers = #tpu.dot_dimension_numbers<[1], [0], [0], [1], [0, 0, 1, 1], [], []>} : vector<32x16xbf16>, vector<16x64xbf16>, vector<32x64xf32> -> vector<32x64xf32>
    %72 = arith.addf %64, %71 : vector<32x64xf32>
    %c3_54 = arith.constant 3 : index
    %c0_55 = arith.constant 0 : index
    %c0_56 = arith.constant 0 : index
    %73 = vector.load %arg4[%c3_54, %c0_55, %c0_56] : memref<16x272x64xbf16, #tpu.memory_space<vmem>>, vector<1x272x64xbf16>
    %74 = vector.shape_cast %73 : vector<1x272x64xbf16> to vector<272x64xbf16>
    %cst_57 = arith.constant dense<0.000000e+00> : vector<16x64xf32>
    %75 = tpu.matmul %49, %74, %cst_57 {dimension_numbers = #tpu.dot_dimension_numbers<[1], [0], [0], [1], [0, 0, 1, 1], [], []>} : vector<16x272xbf16>, vector<272x64xbf16>, vector<16x64xf32> -> vector<16x64xf32>
    %76 = arith.truncf %75 : vector<16x64xf32> to vector<16x64xbf16>
    %c3_58 = arith.constant 3 : index
    %c0_59 = arith.constant 0 : index
    %c0_60 = arith.constant 0 : index
    %77 = vector.load %arg5[%c3_58, %c0_59, %c0_60] : memref<16x32x16xbf16, #tpu.memory_space<vmem>>, vector<1x32x16xbf16>
    %78 = vector.shape_cast %77 : vector<1x32x16xbf16> to vector<32x16xbf16>
    %cst_61 = arith.constant dense<0.000000e+00> : vector<32x64xf32>
    %79 = tpu.matmul %78, %76, %cst_61 {dimension_numbers = #tpu.dot_dimension_numbers<[1], [0], [0], [1], [0, 0, 1, 1], [], []>} : vector<32x16xbf16>, vector<16x64xbf16>, vector<32x64xf32> -> vector<32x64xf32>
    %80 = arith.addf %72, %79 : vector<32x64xf32>
    %c4 = arith.constant 4 : index
    %c0_62 = arith.constant 0 : index
    %c0_63 = arith.constant 0 : index
    %81 = vector.load %arg4[%c4, %c0_62, %c0_63] : memref<16x272x64xbf16, #tpu.memory_space<vmem>>, vector<1x272x64xbf16>
    %82 = vector.shape_cast %81 : vector<1x272x64xbf16> to vector<272x64xbf16>
    %cst_64 = arith.constant dense<0.000000e+00> : vector<16x64xf32>
    %83 = tpu.matmul %49, %82, %cst_64 {dimension_numbers = #tpu.dot_dimension_numbers<[1], [0], [0], [1], [0, 0, 1, 1], [], []>} : vector<16x272xbf16>, vector<272x64xbf16>, vector<16x64xf32> -> vector<16x64xf32>
    %84 = arith.truncf %83 : vector<16x64xf32> to vector<16x64xbf16>
    %c4_65 = arith.constant 4 : index
    %c0_66 = arith.constant 0 : index
    %c0_67 = arith.constant 0 : index
    %85 = vector.load %arg5[%c4_65, %c0_66, %c0_67] : memref<16x32x16xbf16, #tpu.memory_space<vmem>>, vector<1x32x16xbf16>
    %86 = vector.shape_cast %85 : vector<1x32x16xbf16> to vector<32x16xbf16>
    %cst_68 = arith.constant dense<0.000000e+00> : vector<32x64xf32>
    %87 = tpu.matmul %86, %84, %cst_68 {dimension_numbers = #tpu.dot_dimension_numbers<[1], [0], [0], [1], [0, 0, 1, 1], [], []>} : vector<32x16xbf16>, vector<16x64xbf16>, vector<32x64xf32> -> vector<32x64xf32>
    %88 = arith.addf %80, %87 : vector<32x64xf32>
    %c5 = arith.constant 5 : index
    %c0_69 = arith.constant 0 : index
    %c0_70 = arith.constant 0 : index
    %89 = vector.load %arg4[%c5, %c0_69, %c0_70] : memref<16x272x64xbf16, #tpu.memory_space<vmem>>, vector<1x272x64xbf16>
    %90 = vector.shape_cast %89 : vector<1x272x64xbf16> to vector<272x64xbf16>
    %cst_71 = arith.constant dense<0.000000e+00> : vector<16x64xf32>
    %91 = tpu.matmul %49, %90, %cst_71 {dimension_numbers = #tpu.dot_dimension_numbers<[1], [0], [0], [1], [0, 0, 1, 1], [], []>} : vector<16x272xbf16>, vector<272x64xbf16>, vector<16x64xf32> -> vector<16x64xf32>
    %92 = arith.truncf %91 : vector<16x64xf32> to vector<16x64xbf16>
    %c5_72 = arith.constant 5 : index
    %c0_73 = arith.constant 0 : index
    %c0_74 = arith.constant 0 : index
    %93 = vector.load %arg5[%c5_72, %c0_73, %c0_74] : memref<16x32x16xbf16, #tpu.memory_space<vmem>>, vector<1x32x16xbf16>
    %94 = vector.shape_cast %93 : vector<1x32x16xbf16> to vector<32x16xbf16>
    %cst_75 = arith.constant dense<0.000000e+00> : vector<32x64xf32>
    %95 = tpu.matmul %94, %92, %cst_75 {dimension_numbers = #tpu.dot_dimension_numbers<[1], [0], [0], [1], [0, 0, 1, 1], [], []>} : vector<32x16xbf16>, vector<16x64xbf16>, vector<32x64xf32> -> vector<32x64xf32>
    %96 = arith.addf %88, %95 : vector<32x64xf32>
    %c6 = arith.constant 6 : index
    %c0_76 = arith.constant 0 : index
    %c0_77 = arith.constant 0 : index
    %97 = vector.load %arg4[%c6, %c0_76, %c0_77] : memref<16x272x64xbf16, #tpu.memory_space<vmem>>, vector<1x272x64xbf16>
    %98 = vector.shape_cast %97 : vector<1x272x64xbf16> to vector<272x64xbf16>
    %cst_78 = arith.constant dense<0.000000e+00> : vector<16x64xf32>
    %99 = tpu.matmul %49, %98, %cst_78 {dimension_numbers = #tpu.dot_dimension_numbers<[1], [0], [0], [1], [0, 0, 1, 1], [], []>} : vector<16x272xbf16>, vector<272x64xbf16>, vector<16x64xf32> -> vector<16x64xf32>
    %100 = arith.truncf %99 : vector<16x64xf32> to vector<16x64xbf16>
    %c6_79 = arith.constant 6 : index
    %c0_80 = arith.constant 0 : index
    %c0_81 = arith.constant 0 : index
    %101 = vector.load %arg5[%c6_79, %c0_80, %c0_81] : memref<16x32x16xbf16, #tpu.memory_space<vmem>>, vector<1x32x16xbf16>
    %102 = vector.shape_cast %101 : vector<1x32x16xbf16> to vector<32x16xbf16>
    %cst_82 = arith.constant dense<0.000000e+00> : vector<32x64xf32>
    %103 = tpu.matmul %102, %100, %cst_82 {dimension_numbers = #tpu.dot_dimension_numbers<[1], [0], [0], [1], [0, 0, 1, 1], [], []>} : vector<32x16xbf16>, vector<16x64xbf16>, vector<32x64xf32> -> vector<32x64xf32>
    %104 = arith.addf %96, %103 : vector<32x64xf32>
    %c7 = arith.constant 7 : index
    %c0_83 = arith.constant 0 : index
    %c0_84 = arith.constant 0 : index
    %105 = vector.load %arg4[%c7, %c0_83, %c0_84] : memref<16x272x64xbf16, #tpu.memory_space<vmem>>, vector<1x272x64xbf16>
    %106 = vector.shape_cast %105 : vector<1x272x64xbf16> to vector<272x64xbf16>
    %cst_85 = arith.constant dense<0.000000e+00> : vector<16x64xf32>
    %107 = tpu.matmul %49, %106, %cst_85 {dimension_numbers = #tpu.dot_dimension_numbers<[1], [0], [0], [1], [0, 0, 1, 1], [], []>} : vector<16x272xbf16>, vector<272x64xbf16>, vector<16x64xf32> -> vector<16x64xf32>
    %108 = arith.truncf %107 : vector<16x64xf32> to vector<16x64xbf16>
    %c7_86 = arith.constant 7 : index
    %c0_87 = arith.constant 0 : index
    %c0_88 = arith.constant 0 : index
    %109 = vector.load %arg5[%c7_86, %c0_87, %c0_88] : memref<16x32x16xbf16, #tpu.memory_space<vmem>>, vector<1x32x16xbf16>
    %110 = vector.shape_cast %109 : vector<1x32x16xbf16> to vector<32x16xbf16>
    %cst_89 = arith.constant dense<0.000000e+00> : vector<32x64xf32>
    %111 = tpu.matmul %110, %108, %cst_89 {dimension_numbers = #tpu.dot_dimension_numbers<[1], [0], [0], [1], [0, 0, 1, 1], [], []>} : vector<32x16xbf16>, vector<16x64xbf16>, vector<32x64xf32> -> vector<32x64xf32>
    %112 = arith.addf %104, %111 : vector<32x64xf32>
    %c8 = arith.constant 8 : index
    %c0_90 = arith.constant 0 : index
    %c0_91 = arith.constant 0 : index
    %113 = vector.load %arg4[%c8, %c0_90, %c0_91] : memref<16x272x64xbf16, #tpu.memory_space<vmem>>, vector<1x272x64xbf16>
    %114 = vector.shape_cast %113 : vector<1x272x64xbf16> to vector<272x64xbf16>
    %cst_92 = arith.constant dense<0.000000e+00> : vector<16x64xf32>
    %115 = tpu.matmul %49, %114, %cst_92 {dimension_numbers = #tpu.dot_dimension_numbers<[1], [0], [0], [1], [0, 0, 1, 1], [], []>} : vector<16x272xbf16>, vector<272x64xbf16>, vector<16x64xf32> -> vector<16x64xf32>
    %116 = arith.truncf %115 : vector<16x64xf32> to vector<16x64xbf16>
    %c8_93 = arith.constant 8 : index
    %c0_94 = arith.constant 0 : index
    %c0_95 = arith.constant 0 : index
    %117 = vector.load %arg5[%c8_93, %c0_94, %c0_95] : memref<16x32x16xbf16, #tpu.memory_space<vmem>>, vector<1x32x16xbf16>
    %118 = vector.shape_cast %117 : vector<1x32x16xbf16> to vector<32x16xbf16>
    %cst_96 = arith.constant dense<0.000000e+00> : vector<32x64xf32>
    %119 = tpu.matmul %118, %116, %cst_96 {dimension_numbers = #tpu.dot_dimension_numbers<[1], [0], [0], [1], [0, 0, 1, 1], [], []>} : vector<32x16xbf16>, vector<16x64xbf16>, vector<32x64xf32> -> vector<32x64xf32>
    %120 = arith.addf %112, %119 : vector<32x64xf32>
    %c9 = arith.constant 9 : index
    %c0_97 = arith.constant 0 : index
    %c0_98 = arith.constant 0 : index
    %121 = vector.load %arg4[%c9, %c0_97, %c0_98] : memref<16x272x64xbf16, #tpu.memory_space<vmem>>, vector<1x272x64xbf16>
    %122 = vector.shape_cast %121 : vector<1x272x64xbf16> to vector<272x64xbf16>
    %cst_99 = arith.constant dense<0.000000e+00> : vector<16x64xf32>
    %123 = tpu.matmul %49, %122, %cst_99 {dimension_numbers = #tpu.dot_dimension_numbers<[1], [0], [0], [1], [0, 0, 1, 1], [], []>} : vector<16x272xbf16>, vector<272x64xbf16>, vector<16x64xf32> -> vector<16x64xf32>
    %124 = arith.truncf %123 : vector<16x64xf32> to vector<16x64xbf16>
    %c9_100 = arith.constant 9 : index
    %c0_101 = arith.constant 0 : index
    %c0_102 = arith.constant 0 : index
    %125 = vector.load %arg5[%c9_100, %c0_101, %c0_102] : memref<16x32x16xbf16, #tpu.memory_space<vmem>>, vector<1x32x16xbf16>
    %126 = vector.shape_cast %125 : vector<1x32x16xbf16> to vector<32x16xbf16>
    %cst_103 = arith.constant dense<0.000000e+00> : vector<32x64xf32>
    %127 = tpu.matmul %126, %124, %cst_103 {dimension_numbers = #tpu.dot_dimension_numbers<[1], [0], [0], [1], [0, 0, 1, 1], [], []>} : vector<32x16xbf16>, vector<16x64xbf16>, vector<32x64xf32> -> vector<32x64xf32>
    %128 = arith.addf %120, %127 : vector<32x64xf32>
    %c10 = arith.constant 10 : index
    %c0_104 = arith.constant 0 : index
    %c0_105 = arith.constant 0 : index
    %129 = vector.load %arg4[%c10, %c0_104, %c0_105] : memref<16x272x64xbf16, #tpu.memory_space<vmem>>, vector<1x272x64xbf16>
    %130 = vector.shape_cast %129 : vector<1x272x64xbf16> to vector<272x64xbf16>
    %cst_106 = arith.constant dense<0.000000e+00> : vector<16x64xf32>
    %131 = tpu.matmul %49, %130, %cst_106 {dimension_numbers = #tpu.dot_dimension_numbers<[1], [0], [0], [1], [0, 0, 1, 1], [], []>} : vector<16x272xbf16>, vector<272x64xbf16>, vector<16x64xf32> -> vector<16x64xf32>
    %132 = arith.truncf %131 : vector<16x64xf32> to vector<16x64xbf16>
    %c10_107 = arith.constant 10 : index
    %c0_108 = arith.constant 0 : index
    %c0_109 = arith.constant 0 : index
    %133 = vector.load %arg5[%c10_107, %c0_108, %c0_109] : memref<16x32x16xbf16, #tpu.memory_space<vmem>>, vector<1x32x16xbf16>
    %134 = vector.shape_cast %133 : vector<1x32x16xbf16> to vector<32x16xbf16>
    %cst_110 = arith.constant dense<0.000000e+00> : vector<32x64xf32>
    %135 = tpu.matmul %134, %132, %cst_110 {dimension_numbers = #tpu.dot_dimension_numbers<[1], [0], [0], [1], [0, 0, 1, 1], [], []>} : vector<32x16xbf16>, vector<16x64xbf16>, vector<32x64xf32> -> vector<32x64xf32>
    %136 = arith.addf %128, %135 : vector<32x64xf32>
    %c11 = arith.constant 11 : index
    %c0_111 = arith.constant 0 : index
    %c0_112 = arith.constant 0 : index
    %137 = vector.load %arg4[%c11, %c0_111, %c0_112] : memref<16x272x64xbf16, #tpu.memory_space<vmem>>, vector<1x272x64xbf16>
    %138 = vector.shape_cast %137 : vector<1x272x64xbf16> to vector<272x64xbf16>
    %cst_113 = arith.constant dense<0.000000e+00> : vector<16x64xf32>
    %139 = tpu.matmul %49, %138, %cst_113 {dimension_numbers = #tpu.dot_dimension_numbers<[1], [0], [0], [1], [0, 0, 1, 1], [], []>} : vector<16x272xbf16>, vector<272x64xbf16>, vector<16x64xf32> -> vector<16x64xf32>
    %140 = arith.truncf %139 : vector<16x64xf32> to vector<16x64xbf16>
    %c11_114 = arith.constant 11 : index
    %c0_115 = arith.constant 0 : index
    %c0_116 = arith.constant 0 : index
    %141 = vector.load %arg5[%c11_114, %c0_115, %c0_116] : memref<16x32x16xbf16, #tpu.memory_space<vmem>>, vector<1x32x16xbf16>
    %142 = vector.shape_cast %141 : vector<1x32x16xbf16> to vector<32x16xbf16>
    %cst_117 = arith.constant dense<0.000000e+00> : vector<32x64xf32>
    %143 = tpu.matmul %142, %140, %cst_117 {dimension_numbers = #tpu.dot_dimension_numbers<[1], [0], [0], [1], [0, 0, 1, 1], [], []>} : vector<32x16xbf16>, vector<16x64xbf16>, vector<32x64xf32> -> vector<32x64xf32>
    %144 = arith.addf %136, %143 : vector<32x64xf32>
    %c12 = arith.constant 12 : index
    %c0_118 = arith.constant 0 : index
    %c0_119 = arith.constant 0 : index
    %145 = vector.load %arg4[%c12, %c0_118, %c0_119] : memref<16x272x64xbf16, #tpu.memory_space<vmem>>, vector<1x272x64xbf16>
    %146 = vector.shape_cast %145 : vector<1x272x64xbf16> to vector<272x64xbf16>
    %cst_120 = arith.constant dense<0.000000e+00> : vector<16x64xf32>
    %147 = tpu.matmul %49, %146, %cst_120 {dimension_numbers = #tpu.dot_dimension_numbers<[1], [0], [0], [1], [0, 0, 1, 1], [], []>} : vector<16x272xbf16>, vector<272x64xbf16>, vector<16x64xf32> -> vector<16x64xf32>
    %148 = arith.truncf %147 : vector<16x64xf32> to vector<16x64xbf16>
    %c12_121 = arith.constant 12 : index
    %c0_122 = arith.constant 0 : index
    %c0_123 = arith.constant 0 : index
    %149 = vector.load %arg5[%c12_121, %c0_122, %c0_123] : memref<16x32x16xbf16, #tpu.memory_space<vmem>>, vector<1x32x16xbf16>
    %150 = vector.shape_cast %149 : vector<1x32x16xbf16> to vector<32x16xbf16>
    %cst_124 = arith.constant dense<0.000000e+00> : vector<32x64xf32>
    %151 = tpu.matmul %150, %148, %cst_124 {dimension_numbers = #tpu.dot_dimension_numbers<[1], [0], [0], [1], [0, 0, 1, 1], [], []>} : vector<32x16xbf16>, vector<16x64xbf16>, vector<32x64xf32> -> vector<32x64xf32>
    %152 = arith.addf %144, %151 : vector<32x64xf32>
    %c13 = arith.constant 13 : index
    %c0_125 = arith.constant 0 : index
    %c0_126 = arith.constant 0 : index
    %153 = vector.load %arg4[%c13, %c0_125, %c0_126] : memref<16x272x64xbf16, #tpu.memory_space<vmem>>, vector<1x272x64xbf16>
    %154 = vector.shape_cast %153 : vector<1x272x64xbf16> to vector<272x64xbf16>
    %cst_127 = arith.constant dense<0.000000e+00> : vector<16x64xf32>
    %155 = tpu.matmul %49, %154, %cst_127 {dimension_numbers = #tpu.dot_dimension_numbers<[1], [0], [0], [1], [0, 0, 1, 1], [], []>} : vector<16x272xbf16>, vector<272x64xbf16>, vector<16x64xf32> -> vector<16x64xf32>
    %156 = arith.truncf %155 : vector<16x64xf32> to vector<16x64xbf16>
    %c13_128 = arith.constant 13 : index
    %c0_129 = arith.constant 0 : index
    %c0_130 = arith.constant 0 : index
    %157 = vector.load %arg5[%c13_128, %c0_129, %c0_130] : memref<16x32x16xbf16, #tpu.memory_space<vmem>>, vector<1x32x16xbf16>
    %158 = vector.shape_cast %157 : vector<1x32x16xbf16> to vector<32x16xbf16>
    %cst_131 = arith.constant dense<0.000000e+00> : vector<32x64xf32>
    %159 = tpu.matmul %158, %156, %cst_131 {dimension_numbers = #tpu.dot_dimension_numbers<[1], [0], [0], [1], [0, 0, 1, 1], [], []>} : vector<32x16xbf16>, vector<16x64xbf16>, vector<32x64xf32> -> vector<32x64xf32>
    %160 = arith.addf %152, %159 : vector<32x64xf32>
    %c14 = arith.constant 14 : index
    %c0_132 = arith.constant 0 : index
    %c0_133 = arith.constant 0 : index
    %161 = vector.load %arg4[%c14, %c0_132, %c0_133] : memref<16x272x64xbf16, #tpu.memory_space<vmem>>, vector<1x272x64xbf16>
    %162 = vector.shape_cast %161 : vector<1x272x64xbf16> to vector<272x64xbf16>
    %cst_134 = arith.constant dense<0.000000e+00> : vector<16x64xf32>
    %163 = tpu.matmul %49, %162, %cst_134 {dimension_numbers = #tpu.dot_dimension_numbers<[1], [0], [0], [1], [0, 0, 1, 1], [], []>} : vector<16x272xbf16>, vector<272x64xbf16>, vector<16x64xf32> -> vector<16x64xf32>
    %164 = arith.truncf %163 : vector<16x64xf32> to vector<16x64xbf16>
    %c14_135 = arith.constant 14 : index
    %c0_136 = arith.constant 0 : index
    %c0_137 = arith.constant 0 : index
    %165 = vector.load %arg5[%c14_135, %c0_136, %c0_137] : memref<16x32x16xbf16, #tpu.memory_space<vmem>>, vector<1x32x16xbf16>
    %166 = vector.shape_cast %165 : vector<1x32x16xbf16> to vector<32x16xbf16>
    %cst_138 = arith.constant dense<0.000000e+00> : vector<32x64xf32>
    %167 = tpu.matmul %166, %164, %cst_138 {dimension_numbers = #tpu.dot_dimension_numbers<[1], [0], [0], [1], [0, 0, 1, 1], [], []>} : vector<32x16xbf16>, vector<16x64xbf16>, vector<32x64xf32> -> vector<32x64xf32>
    %168 = arith.addf %160, %167 : vector<32x64xf32>
    %c15 = arith.constant 15 : index
    %c0_139 = arith.constant 0 : index
    %c0_140 = arith.constant 0 : index
    %169 = vector.load %arg4[%c15, %c0_139, %c0_140] : memref<16x272x64xbf16, #tpu.memory_space<vmem>>, vector<1x272x64xbf16>
    %170 = vector.shape_cast %169 : vector<1x272x64xbf16> to vector<272x64xbf16>
    %cst_141 = arith.constant dense<0.000000e+00> : vector<16x64xf32>
    %171 = tpu.matmul %49, %170, %cst_141 {dimension_numbers = #tpu.dot_dimension_numbers<[1], [0], [0], [1], [0, 0, 1, 1], [], []>} : vector<16x272xbf16>, vector<272x64xbf16>, vector<16x64xf32> -> vector<16x64xf32>
    %172 = arith.truncf %171 : vector<16x64xf32> to vector<16x64xbf16>
    %c15_142 = arith.constant 15 : index
    %c0_143 = arith.constant 0 : index
    %c0_144 = arith.constant 0 : index
    %173 = vector.load %arg5[%c15_142, %c0_143, %c0_144] : memref<16x32x16xbf16, #tpu.memory_space<vmem>>, vector<1x32x16xbf16>
    %174 = vector.shape_cast %173 : vector<1x32x16xbf16> to vector<32x16xbf16>
    %cst_145 = arith.constant dense<0.000000e+00> : vector<32x64xf32>
    %175 = tpu.matmul %174, %172, %cst_145 {dimension_numbers = #tpu.dot_dimension_numbers<[1], [0], [0], [1], [0, 0, 1, 1], [], []>} : vector<32x16xbf16>, vector<16x64xbf16>, vector<32x64xf32> -> vector<32x64xf32>
    %176 = arith.addf %168, %175 : vector<32x64xf32>
    %cst_146 = arith.constant dense<0.000000e+00> : vector<32xf32>
    %177 = vector.multi_reduction <add>, %176, %cst_146 [1] : vector<32x64xf32> to vector<32xf32>
    %178 = vector.shape_cast %177 : vector<32xf32> to vector<32x1xf32>
    %179 = arith.mulf %176, %176 : vector<32x64xf32>
    %cst_147 = arith.constant dense<0.000000e+00> : vector<32xf32>
    %180 = vector.multi_reduction <add>, %179, %cst_147 [1] : vector<32x64xf32> to vector<32xf32>
    %181 = vector.shape_cast %180 : vector<32xf32> to vector<32x1xf32>
    %cst_148 = arith.constant 1.562500e-02 : f32
    %182 = vector.broadcast %cst_148 : f32 to vector<32x1xf32>
    %183 = arith.mulf %178, %182 : vector<32x1xf32>
    %cst_149 = arith.constant 1.562500e-02 : f32
    %184 = vector.broadcast %cst_149 : f32 to vector<32x1xf32>
    %185 = arith.mulf %181, %184 : vector<32x1xf32>
    %186 = arith.mulf %183, %183 : vector<32x1xf32>
    %187 = arith.subf %185, %186 : vector<32x1xf32>
    %188 = vector.broadcast %183 : vector<32x1xf32> to vector<32x64xf32>
    %189 = arith.subf %176, %188 : vector<32x64xf32>
    %cst_150 = arith.constant 9.99999974E-6 : f32
    %190 = vector.broadcast %cst_150 : f32 to vector<32x1xf32>
    %191 = arith.addf %187, %190 : vector<32x1xf32>
    %192 = math.rsqrt %191 : vector<32x1xf32>
    %193 = vector.broadcast %192 : vector<32x1xf32> to vector<32x64xf32>
    %194 = arith.mulf %189, %193 : vector<32x64xf32>
    %cst_151 = arith.constant 0.000000e+00 : f32
    %195 = vector.broadcast %cst_151 : f32 to vector<32x64xf32>
    %196 = arith.cmpf oge, %194, %195 : vector<32x64xf32>
    %cst_152 = arith.constant 2.000000e-01 : f32
    %197 = vector.broadcast %cst_152 : f32 to vector<32x64xf32>
    %198 = arith.mulf %197, %194 : vector<32x64xf32>
    %199 = arith.select %196, %194, %198 : vector<32x64xi1>, vector<32x64xf32>
    %200 = arith.truncf %199 : vector<32x64xf32> to vector<32x64xbf16>
    %c0_153 = arith.constant 0 : index
    %c0_154 = arith.constant 0 : index
    %c0_155 = arith.constant 0 : index
    %201 = vector.load %arg6[%c0_153, %c0_154, %c0_155] : memref<16x64x16xbf16, #tpu.memory_space<vmem>>, vector<1x64x16xbf16>
    %202 = vector.shape_cast %201 : vector<1x64x16xbf16> to vector<64x16xbf16>
    %cst_156 = arith.constant dense<0.000000e+00> : vector<32x16xf32>
    %203 = tpu.matmul %200, %202, %cst_156 {dimension_numbers = #tpu.dot_dimension_numbers<[1], [0], [0], [1], [0, 0, 1, 1], [], []>} : vector<32x64xbf16>, vector<64x16xbf16>, vector<32x16xf32> -> vector<32x16xf32>
    %204 = arith.truncf %203 : vector<32x16xf32> to vector<32x16xbf16>
    %c0_157 = arith.constant 0 : index
    %c0_158 = arith.constant 0 : index
    %c0_159 = arith.constant 0 : index
    %205 = vector.load %arg7[%c0_157, %c0_158, %c0_159] : memref<16x64x32xbf16, #tpu.memory_space<vmem>>, vector<1x64x32xbf16>
    %206 = vector.shape_cast %205 : vector<1x64x32xbf16> to vector<64x32xbf16>
    %cst_160 = arith.constant dense<0.000000e+00> : vector<64x16xf32>
    %207 = tpu.matmul %206, %204, %cst_160 {dimension_numbers = #tpu.dot_dimension_numbers<[1], [0], [0], [1], [0, 0, 1, 1], [], []>} : vector<64x32xbf16>, vector<32x16xbf16>, vector<64x16xf32> -> vector<64x16xf32>
    %c1_161 = arith.constant 1 : index
    %c0_162 = arith.constant 0 : index
    %c0_163 = arith.constant 0 : index
    %208 = vector.load %arg6[%c1_161, %c0_162, %c0_163] : memref<16x64x16xbf16, #tpu.memory_space<vmem>>, vector<1x64x16xbf16>
    %209 = vector.shape_cast %208 : vector<1x64x16xbf16> to vector<64x16xbf16>
    %cst_164 = arith.constant dense<0.000000e+00> : vector<32x16xf32>
    %210 = tpu.matmul %200, %209, %cst_164 {dimension_numbers = #tpu.dot_dimension_numbers<[1], [0], [0], [1], [0, 0, 1, 1], [], []>} : vector<32x64xbf16>, vector<64x16xbf16>, vector<32x16xf32> -> vector<32x16xf32>
    %211 = arith.truncf %210 : vector<32x16xf32> to vector<32x16xbf16>
    %c1_165 = arith.constant 1 : index
    %c0_166 = arith.constant 0 : index
    %c0_167 = arith.constant 0 : index
    %212 = vector.load %arg7[%c1_165, %c0_166, %c0_167] : memref<16x64x32xbf16, #tpu.memory_space<vmem>>, vector<1x64x32xbf16>
    %213 = vector.shape_cast %212 : vector<1x64x32xbf16> to vector<64x32xbf16>
    %cst_168 = arith.constant dense<0.000000e+00> : vector<64x16xf32>
    %214 = tpu.matmul %213, %211, %cst_168 {dimension_numbers = #tpu.dot_dimension_numbers<[1], [0], [0], [1], [0, 0, 1, 1], [], []>} : vector<64x32xbf16>, vector<32x16xbf16>, vector<64x16xf32> -> vector<64x16xf32>
    %215 = arith.addf %207, %214 : vector<64x16xf32>
    %c2_169 = arith.constant 2 : index
    %c0_170 = arith.constant 0 : index
    %c0_171 = arith.constant 0 : index
    %216 = vector.load %arg6[%c2_169, %c0_170, %c0_171] : memref<16x64x16xbf16, #tpu.memory_space<vmem>>, vector<1x64x16xbf16>
    %217 = vector.shape_cast %216 : vector<1x64x16xbf16> to vector<64x16xbf16>
    %cst_172 = arith.constant dense<0.000000e+00> : vector<32x16xf32>
    %218 = tpu.matmul %200, %217, %cst_172 {dimension_numbers = #tpu.dot_dimension_numbers<[1], [0], [0], [1], [0, 0, 1, 1], [], []>} : vector<32x64xbf16>, vector<64x16xbf16>, vector<32x16xf32> -> vector<32x16xf32>
    %219 = arith.truncf %218 : vector<32x16xf32> to vector<32x16xbf16>
    %c2_173 = arith.constant 2 : index
    %c0_174 = arith.constant 0 : index
    %c0_175 = arith.constant 0 : index
    %220 = vector.load %arg7[%c2_173, %c0_174, %c0_175] : memref<16x64x32xbf16, #tpu.memory_space<vmem>>, vector<1x64x32xbf16>
    %221 = vector.shape_cast %220 : vector<1x64x32xbf16> to vector<64x32xbf16>
    %cst_176 = arith.constant dense<0.000000e+00> : vector<64x16xf32>
    %222 = tpu.matmul %221, %219, %cst_176 {dimension_numbers = #tpu.dot_dimension_numbers<[1], [0], [0], [1], [0, 0, 1, 1], [], []>} : vector<64x32xbf16>, vector<32x16xbf16>, vector<64x16xf32> -> vector<64x16xf32>
    %223 = arith.addf %215, %222 : vector<64x16xf32>
    %c3_177 = arith.constant 3 : index
    %c0_178 = arith.constant 0 : index
    %c0_179 = arith.constant 0 : index
    %224 = vector.load %arg6[%c3_177, %c0_178, %c0_179] : memref<16x64x16xbf16, #tpu.memory_space<vmem>>, vector<1x64x16xbf16>
    %225 = vector.shape_cast %224 : vector<1x64x16xbf16> to vector<64x16xbf16>
    %cst_180 = arith.constant dense<0.000000e+00> : vector<32x16xf32>
    %226 = tpu.matmul %200, %225, %cst_180 {dimension_numbers = #tpu.dot_dimension_numbers<[1], [0], [0], [1], [0, 0, 1, 1], [], []>} : vector<32x64xbf16>, vector<64x16xbf16>, vector<32x16xf32> -> vector<32x16xf32>
    %227 = arith.truncf %226 : vector<32x16xf32> to vector<32x16xbf16>
    %c3_181 = arith.constant 3 : index
    %c0_182 = arith.constant 0 : index
    %c0_183 = arith.constant 0 : index
    %228 = vector.load %arg7[%c3_181, %c0_182, %c0_183] : memref<16x64x32xbf16, #tpu.memory_space<vmem>>, vector<1x64x32xbf16>
    %229 = vector.shape_cast %228 : vector<1x64x32xbf16> to vector<64x32xbf16>
    %cst_184 = arith.constant dense<0.000000e+00> : vector<64x16xf32>
    %230 = tpu.matmul %229, %227, %cst_184 {dimension_numbers = #tpu.dot_dimension_numbers<[1], [0], [0], [1], [0, 0, 1, 1], [], []>} : vector<64x32xbf16>, vector<32x16xbf16>, vector<64x16xf32> -> vector<64x16xf32>
    %231 = arith.addf %223, %230 : vector<64x16xf32>
    %c4_185 = arith.constant 4 : index
    %c0_186 = arith.constant 0 : index
    %c0_187 = arith.constant 0 : index
    %232 = vector.load %arg6[%c4_185, %c0_186, %c0_187] : memref<16x64x16xbf16, #tpu.memory_space<vmem>>, vector<1x64x16xbf16>
    %233 = vector.shape_cast %232 : vector<1x64x16xbf16> to vector<64x16xbf16>
    %cst_188 = arith.constant dense<0.000000e+00> : vector<32x16xf32>
    %234 = tpu.matmul %200, %233, %cst_188 {dimension_numbers = #tpu.dot_dimension_numbers<[1], [0], [0], [1], [0, 0, 1, 1], [], []>} : vector<32x64xbf16>, vector<64x16xbf16>, vector<32x16xf32> -> vector<32x16xf32>
    %235 = arith.truncf %234 : vector<32x16xf32> to vector<32x16xbf16>
    %c4_189 = arith.constant 4 : index
    %c0_190 = arith.constant 0 : index
    %c0_191 = arith.constant 0 : index
    %236 = vector.load %arg7[%c4_189, %c0_190, %c0_191] : memref<16x64x32xbf16, #tpu.memory_space<vmem>>, vector<1x64x32xbf16>
    %237 = vector.shape_cast %236 : vector<1x64x32xbf16> to vector<64x32xbf16>
    %cst_192 = arith.constant dense<0.000000e+00> : vector<64x16xf32>
    %238 = tpu.matmul %237, %235, %cst_192 {dimension_numbers = #tpu.dot_dimension_numbers<[1], [0], [0], [1], [0, 0, 1, 1], [], []>} : vector<64x32xbf16>, vector<32x16xbf16>, vector<64x16xf32> -> vector<64x16xf32>
    %239 = arith.addf %231, %238 : vector<64x16xf32>
    %c5_193 = arith.constant 5 : index
    %c0_194 = arith.constant 0 : index
    %c0_195 = arith.constant 0 : index
    %240 = vector.load %arg6[%c5_193, %c0_194, %c0_195] : memref<16x64x16xbf16, #tpu.memory_space<vmem>>, vector<1x64x16xbf16>
    %241 = vector.shape_cast %240 : vector<1x64x16xbf16> to vector<64x16xbf16>
    %cst_196 = arith.constant dense<0.000000e+00> : vector<32x16xf32>
    %242 = tpu.matmul %200, %241, %cst_196 {dimension_numbers = #tpu.dot_dimension_numbers<[1], [0], [0], [1], [0, 0, 1, 1], [], []>} : vector<32x64xbf16>, vector<64x16xbf16>, vector<32x16xf32> -> vector<32x16xf32>
    %243 = arith.truncf %242 : vector<32x16xf32> to vector<32x16xbf16>
    %c5_197 = arith.constant 5 : index
    %c0_198 = arith.constant 0 : index
    %c0_199 = arith.constant 0 : index
    %244 = vector.load %arg7[%c5_197, %c0_198, %c0_199] : memref<16x64x32xbf16, #tpu.memory_space<vmem>>, vector<1x64x32xbf16>
    %245 = vector.shape_cast %244 : vector<1x64x32xbf16> to vector<64x32xbf16>
    %cst_200 = arith.constant dense<0.000000e+00> : vector<64x16xf32>
    %246 = tpu.matmul %245, %243, %cst_200 {dimension_numbers = #tpu.dot_dimension_numbers<[1], [0], [0], [1], [0, 0, 1, 1], [], []>} : vector<64x32xbf16>, vector<32x16xbf16>, vector<64x16xf32> -> vector<64x16xf32>
    %247 = arith.addf %239, %246 : vector<64x16xf32>
    %c6_201 = arith.constant 6 : index
    %c0_202 = arith.constant 0 : index
    %c0_203 = arith.constant 0 : index
    %248 = vector.load %arg6[%c6_201, %c0_202, %c0_203] : memref<16x64x16xbf16, #tpu.memory_space<vmem>>, vector<1x64x16xbf16>
    %249 = vector.shape_cast %248 : vector<1x64x16xbf16> to vector<64x16xbf16>
    %cst_204 = arith.constant dense<0.000000e+00> : vector<32x16xf32>
    %250 = tpu.matmul %200, %249, %cst_204 {dimension_numbers = #tpu.dot_dimension_numbers<[1], [0], [0], [1], [0, 0, 1, 1], [], []>} : vector<32x64xbf16>, vector<64x16xbf16>, vector<32x16xf32> -> vector<32x16xf32>
    %251 = arith.truncf %250 : vector<32x16xf32> to vector<32x16xbf16>
    %c6_205 = arith.constant 6 : index
    %c0_206 = arith.constant 0 : index
    %c0_207 = arith.constant 0 : index
    %252 = vector.load %arg7[%c6_205, %c0_206, %c0_207] : memref<16x64x32xbf16, #tpu.memory_space<vmem>>, vector<1x64x32xbf16>
    %253 = vector.shape_cast %252 : vector<1x64x32xbf16> to vector<64x32xbf16>
    %cst_208 = arith.constant dense<0.000000e+00> : vector<64x16xf32>
    %254 = tpu.matmul %253, %251, %cst_208 {dimension_numbers = #tpu.dot_dimension_numbers<[1], [0], [0], [1], [0, 0, 1, 1], [], []>} : vector<64x32xbf16>, vector<32x16xbf16>, vector<64x16xf32> -> vector<64x16xf32>
    %255 = arith.addf %247, %254 : vector<64x16xf32>
    %c7_209 = arith.constant 7 : index
    %c0_210 = arith.constant 0 : index
    %c0_211 = arith.constant 0 : index
    %256 = vector.load %arg6[%c7_209, %c0_210, %c0_211] : memref<16x64x16xbf16, #tpu.memory_space<vmem>>, vector<1x64x16xbf16>
    %257 = vector.shape_cast %256 : vector<1x64x16xbf16> to vector<64x16xbf16>
    %cst_212 = arith.constant dense<0.000000e+00> : vector<32x16xf32>
    %258 = tpu.matmul %200, %257, %cst_212 {dimension_numbers = #tpu.dot_dimension_numbers<[1], [0], [0], [1], [0, 0, 1, 1], [], []>} : vector<32x64xbf16>, vector<64x16xbf16>, vector<32x16xf32> -> vector<32x16xf32>
    %259 = arith.truncf %258 : vector<32x16xf32> to vector<32x16xbf16>
    %c7_213 = arith.constant 7 : index
    %c0_214 = arith.constant 0 : index
    %c0_215 = arith.constant 0 : index
    %260 = vector.load %arg7[%c7_213, %c0_214, %c0_215] : memref<16x64x32xbf16, #tpu.memory_space<vmem>>, vector<1x64x32xbf16>
    %261 = vector.shape_cast %260 : vector<1x64x32xbf16> to vector<64x32xbf16>
    %cst_216 = arith.constant dense<0.000000e+00> : vector<64x16xf32>
    %262 = tpu.matmul %261, %259, %cst_216 {dimension_numbers = #tpu.dot_dimension_numbers<[1], [0], [0], [1], [0, 0, 1, 1], [], []>} : vector<64x32xbf16>, vector<32x16xbf16>, vector<64x16xf32> -> vector<64x16xf32>
    %263 = arith.addf %255, %262 : vector<64x16xf32>
    %c8_217 = arith.constant 8 : index
    %c0_218 = arith.constant 0 : index
    %c0_219 = arith.constant 0 : index
    %264 = vector.load %arg6[%c8_217, %c0_218, %c0_219] : memref<16x64x16xbf16, #tpu.memory_space<vmem>>, vector<1x64x16xbf16>
    %265 = vector.shape_cast %264 : vector<1x64x16xbf16> to vector<64x16xbf16>
    %cst_220 = arith.constant dense<0.000000e+00> : vector<32x16xf32>
    %266 = tpu.matmul %200, %265, %cst_220 {dimension_numbers = #tpu.dot_dimension_numbers<[1], [0], [0], [1], [0, 0, 1, 1], [], []>} : vector<32x64xbf16>, vector<64x16xbf16>, vector<32x16xf32> -> vector<32x16xf32>
    %267 = arith.truncf %266 : vector<32x16xf32> to vector<32x16xbf16>
    %c8_221 = arith.constant 8 : index
    %c0_222 = arith.constant 0 : index
    %c0_223 = arith.constant 0 : index
    %268 = vector.load %arg7[%c8_221, %c0_222, %c0_223] : memref<16x64x32xbf16, #tpu.memory_space<vmem>>, vector<1x64x32xbf16>
    %269 = vector.shape_cast %268 : vector<1x64x32xbf16> to vector<64x32xbf16>
    %cst_224 = arith.constant dense<0.000000e+00> : vector<64x16xf32>
    %270 = tpu.matmul %269, %267, %cst_224 {dimension_numbers = #tpu.dot_dimension_numbers<[1], [0], [0], [1], [0, 0, 1, 1], [], []>} : vector<64x32xbf16>, vector<32x16xbf16>, vector<64x16xf32> -> vector<64x16xf32>
    %271 = arith.addf %263, %270 : vector<64x16xf32>
    %c9_225 = arith.constant 9 : index
    %c0_226 = arith.constant 0 : index
    %c0_227 = arith.constant 0 : index
    %272 = vector.load %arg6[%c9_225, %c0_226, %c0_227] : memref<16x64x16xbf16, #tpu.memory_space<vmem>>, vector<1x64x16xbf16>
    %273 = vector.shape_cast %272 : vector<1x64x16xbf16> to vector<64x16xbf16>
    %cst_228 = arith.constant dense<0.000000e+00> : vector<32x16xf32>
    %274 = tpu.matmul %200, %273, %cst_228 {dimension_numbers = #tpu.dot_dimension_numbers<[1], [0], [0], [1], [0, 0, 1, 1], [], []>} : vector<32x64xbf16>, vector<64x16xbf16>, vector<32x16xf32> -> vector<32x16xf32>
    %275 = arith.truncf %274 : vector<32x16xf32> to vector<32x16xbf16>
    %c9_229 = arith.constant 9 : index
    %c0_230 = arith.constant 0 : index
    %c0_231 = arith.constant 0 : index
    %276 = vector.load %arg7[%c9_229, %c0_230, %c0_231] : memref<16x64x32xbf16, #tpu.memory_space<vmem>>, vector<1x64x32xbf16>
    %277 = vector.shape_cast %276 : vector<1x64x32xbf16> to vector<64x32xbf16>
    %cst_232 = arith.constant dense<0.000000e+00> : vector<64x16xf32>
    %278 = tpu.matmul %277, %275, %cst_232 {dimension_numbers = #tpu.dot_dimension_numbers<[1], [0], [0], [1], [0, 0, 1, 1], [], []>} : vector<64x32xbf16>, vector<32x16xbf16>, vector<64x16xf32> -> vector<64x16xf32>
    %279 = arith.addf %271, %278 : vector<64x16xf32>
    %c10_233 = arith.constant 10 : index
    %c0_234 = arith.constant 0 : index
    %c0_235 = arith.constant 0 : index
    %280 = vector.load %arg6[%c10_233, %c0_234, %c0_235] : memref<16x64x16xbf16, #tpu.memory_space<vmem>>, vector<1x64x16xbf16>
    %281 = vector.shape_cast %280 : vector<1x64x16xbf16> to vector<64x16xbf16>
    %cst_236 = arith.constant dense<0.000000e+00> : vector<32x16xf32>
    %282 = tpu.matmul %200, %281, %cst_236 {dimension_numbers = #tpu.dot_dimension_numbers<[1], [0], [0], [1], [0, 0, 1, 1], [], []>} : vector<32x64xbf16>, vector<64x16xbf16>, vector<32x16xf32> -> vector<32x16xf32>
    %283 = arith.truncf %282 : vector<32x16xf32> to vector<32x16xbf16>
    %c10_237 = arith.constant 10 : index
    %c0_238 = arith.constant 0 : index
    %c0_239 = arith.constant 0 : index
    %284 = vector.load %arg7[%c10_237, %c0_238, %c0_239] : memref<16x64x32xbf16, #tpu.memory_space<vmem>>, vector<1x64x32xbf16>
    %285 = vector.shape_cast %284 : vector<1x64x32xbf16> to vector<64x32xbf16>
    %cst_240 = arith.constant dense<0.000000e+00> : vector<64x16xf32>
    %286 = tpu.matmul %285, %283, %cst_240 {dimension_numbers = #tpu.dot_dimension_numbers<[1], [0], [0], [1], [0, 0, 1, 1], [], []>} : vector<64x32xbf16>, vector<32x16xbf16>, vector<64x16xf32> -> vector<64x16xf32>
    %287 = arith.addf %279, %286 : vector<64x16xf32>
    %c11_241 = arith.constant 11 : index
    %c0_242 = arith.constant 0 : index
    %c0_243 = arith.constant 0 : index
    %288 = vector.load %arg6[%c11_241, %c0_242, %c0_243] : memref<16x64x16xbf16, #tpu.memory_space<vmem>>, vector<1x64x16xbf16>
    %289 = vector.shape_cast %288 : vector<1x64x16xbf16> to vector<64x16xbf16>
    %cst_244 = arith.constant dense<0.000000e+00> : vector<32x16xf32>
    %290 = tpu.matmul %200, %289, %cst_244 {dimension_numbers = #tpu.dot_dimension_numbers<[1], [0], [0], [1], [0, 0, 1, 1], [], []>} : vector<32x64xbf16>, vector<64x16xbf16>, vector<32x16xf32> -> vector<32x16xf32>
    %291 = arith.truncf %290 : vector<32x16xf32> to vector<32x16xbf16>
    %c11_245 = arith.constant 11 : index
    %c0_246 = arith.constant 0 : index
    %c0_247 = arith.constant 0 : index
    %292 = vector.load %arg7[%c11_245, %c0_246, %c0_247] : memref<16x64x32xbf16, #tpu.memory_space<vmem>>, vector<1x64x32xbf16>
    %293 = vector.shape_cast %292 : vector<1x64x32xbf16> to vector<64x32xbf16>
    %cst_248 = arith.constant dense<0.000000e+00> : vector<64x16xf32>
    %294 = tpu.matmul %293, %291, %cst_248 {dimension_numbers = #tpu.dot_dimension_numbers<[1], [0], [0], [1], [0, 0, 1, 1], [], []>} : vector<64x32xbf16>, vector<32x16xbf16>, vector<64x16xf32> -> vector<64x16xf32>
    %295 = arith.addf %287, %294 : vector<64x16xf32>
    %c12_249 = arith.constant 12 : index
    %c0_250 = arith.constant 0 : index
    %c0_251 = arith.constant 0 : index
    %296 = vector.load %arg6[%c12_249, %c0_250, %c0_251] : memref<16x64x16xbf16, #tpu.memory_space<vmem>>, vector<1x64x16xbf16>
    %297 = vector.shape_cast %296 : vector<1x64x16xbf16> to vector<64x16xbf16>
    %cst_252 = arith.constant dense<0.000000e+00> : vector<32x16xf32>
    %298 = tpu.matmul %200, %297, %cst_252 {dimension_numbers = #tpu.dot_dimension_numbers<[1], [0], [0], [1], [0, 0, 1, 1], [], []>} : vector<32x64xbf16>, vector<64x16xbf16>, vector<32x16xf32> -> vector<32x16xf32>
    %299 = arith.truncf %298 : vector<32x16xf32> to vector<32x16xbf16>
    %c12_253 = arith.constant 12 : index
    %c0_254 = arith.constant 0 : index
    %c0_255 = arith.constant 0 : index
    %300 = vector.load %arg7[%c12_253, %c0_254, %c0_255] : memref<16x64x32xbf16, #tpu.memory_space<vmem>>, vector<1x64x32xbf16>
    %301 = vector.shape_cast %300 : vector<1x64x32xbf16> to vector<64x32xbf16>
    %cst_256 = arith.constant dense<0.000000e+00> : vector<64x16xf32>
    %302 = tpu.matmul %301, %299, %cst_256 {dimension_numbers = #tpu.dot_dimension_numbers<[1], [0], [0], [1], [0, 0, 1, 1], [], []>} : vector<64x32xbf16>, vector<32x16xbf16>, vector<64x16xf32> -> vector<64x16xf32>
    %303 = arith.addf %295, %302 : vector<64x16xf32>
    %c13_257 = arith.constant 13 : index
    %c0_258 = arith.constant 0 : index
    %c0_259 = arith.constant 0 : index
    %304 = vector.load %arg6[%c13_257, %c0_258, %c0_259] : memref<16x64x16xbf16, #tpu.memory_space<vmem>>, vector<1x64x16xbf16>
    %305 = vector.shape_cast %304 : vector<1x64x16xbf16> to vector<64x16xbf16>
    %cst_260 = arith.constant dense<0.000000e+00> : vector<32x16xf32>
    %306 = tpu.matmul %200, %305, %cst_260 {dimension_numbers = #tpu.dot_dimension_numbers<[1], [0], [0], [1], [0, 0, 1, 1], [], []>} : vector<32x64xbf16>, vector<64x16xbf16>, vector<32x16xf32> -> vector<32x16xf32>
    %307 = arith.truncf %306 : vector<32x16xf32> to vector<32x16xbf16>
    %c13_261 = arith.constant 13 : index
    %c0_262 = arith.constant 0 : index
    %c0_263 = arith.constant 0 : index
    %308 = vector.load %arg7[%c13_261, %c0_262, %c0_263] : memref<16x64x32xbf16, #tpu.memory_space<vmem>>, vector<1x64x32xbf16>
    %309 = vector.shape_cast %308 : vector<1x64x32xbf16> to vector<64x32xbf16>
    %cst_264 = arith.constant dense<0.000000e+00> : vector<64x16xf32>
    %310 = tpu.matmul %309, %307, %cst_264 {dimension_numbers = #tpu.dot_dimension_numbers<[1], [0], [0], [1], [0, 0, 1, 1], [], []>} : vector<64x32xbf16>, vector<32x16xbf16>, vector<64x16xf32> -> vector<64x16xf32>
    %311 = arith.addf %303, %310 : vector<64x16xf32>
    %c14_265 = arith.constant 14 : index
    %c0_266 = arith.constant 0 : index
    %c0_267 = arith.constant 0 : index
    %312 = vector.load %arg6[%c14_265, %c0_266, %c0_267] : memref<16x64x16xbf16, #tpu.memory_space<vmem>>, vector<1x64x16xbf16>
    %313 = vector.shape_cast %312 : vector<1x64x16xbf16> to vector<64x16xbf16>
    %cst_268 = arith.constant dense<0.000000e+00> : vector<32x16xf32>
    %314 = tpu.matmul %200, %313, %cst_268 {dimension_numbers = #tpu.dot_dimension_numbers<[1], [0], [0], [1], [0, 0, 1, 1], [], []>} : vector<32x64xbf16>, vector<64x16xbf16>, vector<32x16xf32> -> vector<32x16xf32>
    %315 = arith.truncf %314 : vector<32x16xf32> to vector<32x16xbf16>
    %c14_269 = arith.constant 14 : index
    %c0_270 = arith.constant 0 : index
    %c0_271 = arith.constant 0 : index
    %316 = vector.load %arg7[%c14_269, %c0_270, %c0_271] : memref<16x64x32xbf16, #tpu.memory_space<vmem>>, vector<1x64x32xbf16>
    %317 = vector.shape_cast %316 : vector<1x64x32xbf16> to vector<64x32xbf16>
    %cst_272 = arith.constant dense<0.000000e+00> : vector<64x16xf32>
    %318 = tpu.matmul %317, %315, %cst_272 {dimension_numbers = #tpu.dot_dimension_numbers<[1], [0], [0], [1], [0, 0, 1, 1], [], []>} : vector<64x32xbf16>, vector<32x16xbf16>, vector<64x16xf32> -> vector<64x16xf32>
    %319 = arith.addf %311, %318 : vector<64x16xf32>
    %c15_273 = arith.constant 15 : index
    %c0_274 = arith.constant 0 : index
    %c0_275 = arith.constant 0 : index
    %320 = vector.load %arg6[%c15_273, %c0_274, %c0_275] : memref<16x64x16xbf16, #tpu.memory_space<vmem>>, vector<1x64x16xbf16>
    %321 = vector.shape_cast %320 : vector<1x64x16xbf16> to vector<64x16xbf16>
    %cst_276 = arith.constant dense<0.000000e+00> : vector<32x16xf32>
    %322 = tpu.matmul %200, %321, %cst_276 {dimension_numbers = #tpu.dot_dimension_numbers<[1], [0], [0], [1], [0, 0, 1, 1], [], []>} : vector<32x64xbf16>, vector<64x16xbf16>, vector<32x16xf32> -> vector<32x16xf32>
    %323 = arith.truncf %322 : vector<32x16xf32> to vector<32x16xbf16>
    %c15_277 = arith.constant 15 : index
    %c0_278 = arith.constant 0 : index
    %c0_279 = arith.constant 0 : index
    %324 = vector.load %arg7[%c15_277, %c0_278, %c0_279] : memref<16x64x32xbf16, #tpu.memory_space<vmem>>, vector<1x64x32xbf16>
    %325 = vector.shape_cast %324 : vector<1x64x32xbf16> to vector<64x32xbf16>
    %cst_280 = arith.constant dense<0.000000e+00> : vector<64x16xf32>
    %326 = tpu.matmul %325, %323, %cst_280 {dimension_numbers = #tpu.dot_dimension_numbers<[1], [0], [0], [1], [0, 0, 1, 1], [], []>} : vector<64x32xbf16>, vector<32x16xbf16>, vector<64x16xf32> -> vector<64x16xf32>
    %327 = arith.addf %319, %326 : vector<64x16xf32>
    %cst_281 = arith.constant dense<0.000000e+00> : vector<64xf32>
    %328 = vector.multi_reduction <add>, %327, %cst_281 [1] : vector<64x16xf32> to vector<64xf32>
    %329 = vector.shape_cast %328 : vector<64xf32> to vector<64x1xf32>
    %330 = arith.mulf %327, %327 : vector<64x16xf32>
    %cst_282 = arith.constant dense<0.000000e+00> : vector<64xf32>
    %331 = vector.multi_reduction <add>, %330, %cst_282 [1] : vector<64x16xf32> to vector<64xf32>
    %332 = vector.shape_cast %331 : vector<64xf32> to vector<64x1xf32>
    %cst_283 = arith.constant 6.250000e-02 : f32
    %333 = vector.broadcast %cst_283 : f32 to vector<64x1xf32>
    %334 = arith.mulf %329, %333 : vector<64x1xf32>
    %cst_284 = arith.constant 6.250000e-02 : f32
    %335 = vector.broadcast %cst_284 : f32 to vector<64x1xf32>
    %336 = arith.mulf %332, %335 : vector<64x1xf32>
    %337 = arith.mulf %334, %334 : vector<64x1xf32>
    %338 = arith.subf %336, %337 : vector<64x1xf32>
    %339 = vector.broadcast %334 : vector<64x1xf32> to vector<64x16xf32>
    %340 = arith.subf %327, %339 : vector<64x16xf32>
    %cst_285 = arith.constant 9.99999974E-6 : f32
    %341 = vector.broadcast %cst_285 : f32 to vector<64x1xf32>
    %342 = arith.addf %338, %341 : vector<64x1xf32>
    %343 = math.rsqrt %342 : vector<64x1xf32>
    %344 = vector.broadcast %343 : vector<64x1xf32> to vector<64x16xf32>
    %345 = arith.mulf %340, %344 : vector<64x16xf32>
    %cst_286 = arith.constant 0.000000e+00 : f32
    %346 = vector.broadcast %cst_286 : f32 to vector<64x16xf32>
    %347 = arith.cmpf oge, %345, %346 : vector<64x16xf32>
    %cst_287 = arith.constant 2.000000e-01 : f32
    %348 = vector.broadcast %cst_287 : f32 to vector<64x16xf32>
    %349 = arith.mulf %348, %345 : vector<64x16xf32>
    %350 = arith.select %347, %345, %349 : vector<64x16xi1>, vector<64x16xf32>
    %c0_288 = arith.constant 0 : index
    %c0_289 = arith.constant 0 : index
    %351 = vector.load %arg8[%c0_288, %c0_289] : memref<64x16xf32, #tpu.memory_space<vmem>>, vector<64x16xf32>
    %352 = arith.mulf %350, %351 : vector<64x16xf32>
    %cst_290 = arith.constant dense<0.000000e+00> : vector<64xf32>
    %353 = vector.multi_reduction <add>, %352, %cst_290 [1] : vector<64x16xf32> to vector<64xf32>
    %354 = vector.shape_cast %353 : vector<64xf32> to vector<64x1xf32>
    %cst_291 = arith.constant dense<0.000000e+00> : vector<1xf32>
    %355 = vector.multi_reduction <add>, %354, %cst_291 [0] : vector<64x1xf32> to vector<1xf32>
    %356 = vector.shape_cast %355 : vector<1xf32> to vector<1x1xf32>
    %c0_292 = arith.constant 0 : index
    %c0_293 = arith.constant 0 : index
    %357 = memref.load %arg9[%c0_292, %c0_293] : memref<1x1xf32, #tpu.memory_space<smem>>
    %358 = vector.broadcast %357 : f32 to vector<1x1xf32>
    %359 = arith.addf %356, %358 : vector<1x1xf32>
    %c0_294 = arith.constant 0 : index
    %c0_295 = arith.constant 0 : index
    %c0_296 = arith.constant 0 : index
    %360 = vector.load %arg10[%c0_294, %c0_295, %c0_296] : memref<1x1x1xf32, #tpu.memory_space<vmem>>, vector<1x1x1xf32>
    %361 = vector.shape_cast %360 : vector<1x1x1xf32> to vector<1x1xf32>
    %362 = vector.shape_cast %359 : vector<1x1xf32> to vector<1x1x1xf32>
    tpu.vector_store %arg10[%c0_294, %c0_295, %c0_296], %362 {strides = array<i32>} : memref<1x1x1xf32, #tpu.memory_space<vmem>>, vector<1x1x1xf32>,
    return
  }
  func.func @transform_0(%arg0: i32) -> (i32, i32, i32) {
    %c0_i32 = arith.constant 0 : i32
    %c0_i32_0 = arith.constant 0 : i32
    %c0_i32_1 = arith.constant 0 : i32
    return %arg0, %c0_i32, %c0_i32_0 : i32, i32, i32
  }
  func.func @transform_1(%arg0: i32) -> (i32, i32) {
    %c0_i32 = arith.constant 0 : i32
    %c0_i32_0 = arith.constant 0 : i32
    %c0_i32_1 = arith.constant 0 : i32
    return %c0_i32, %c0_i32_0 : i32, i32
  }
  func.func @transform_2(%arg0: i32) -> (i32, i32, i32) {
    %c0_i32 = arith.constant 0 : i32
    %c0_i32_0 = arith.constant 0 : i32
    %c0_i32_1 = arith.constant 0 : i32
    %c0_i32_2 = arith.constant 0 : i32
    return %c0_i32, %c0_i32_0, %c0_i32_1 : i32, i32, i32
  }
  func.func @transform_3(%arg0: i32) -> (i32, i32, i32) {
    %c0_i32 = arith.constant 0 : i32
    %c0_i32_0 = arith.constant 0 : i32
    %c0_i32_1 = arith.constant 0 : i32
    %c0_i32_2 = arith.constant 0 : i32
    return %c0_i32, %c0_i32_0, %c0_i32_1 : i32, i32, i32
  }
  func.func @transform_4(%arg0: i32) -> (i32, i32, i32) {
    %c0_i32 = arith.constant 0 : i32
    %c0_i32_0 = arith.constant 0 : i32
    %c0_i32_1 = arith.constant 0 : i32
    %c0_i32_2 = arith.constant 0 : i32
    return %c0_i32, %c0_i32_0, %c0_i32_1 : i32, i32, i32
  }
  func.func @transform_5(%arg0: i32) -> (i32, i32, i32) {
    %c0_i32 = arith.constant 0 : i32
    %c0_i32_0 = arith.constant 0 : i32
    %c0_i32_1 = arith.constant 0 : i32
    %c0_i32_2 = arith.constant 0 : i32
    return %c0_i32, %c0_i32_0, %c0_i32_1 : i32, i32, i32
  }
  func.func @transform_6(%arg0: i32) -> (i32, i32, i32) {
    %c0_i32 = arith.constant 0 : i32
    %c0_i32_0 = arith.constant 0 : i32
    %c0_i32_1 = arith.constant 0 : i32
    %c0_i32_2 = arith.constant 0 : i32
    return %c0_i32, %c0_i32_0, %c0_i32_1 : i32, i32, i32
  }
  func.func @transform_7(%arg0: i32) -> (i32, i32) {
    %c0_i32 = arith.constant 0 : i32
    %c0_i32_0 = arith.constant 0 : i32
    %c0_i32_1 = arith.constant 0 : i32
    return %c0_i32, %c0_i32_0 : i32, i32
  }
  func.func @transform_8(%arg0: i32) -> (i32, i32) {
    %c0_i32 = arith.constant 0 : i32
    %c0_i32_0 = arith.constant 0 : i32
    %c0_i32_1 = arith.constant 0 : i32
    return %c0_i32, %c0_i32_0 : i32, i32
  }
  func.func @transform_9(%arg0: i32) -> (i32, i32, i32) {
    %c0_i32 = arith.constant 0 : i32
    %c0_i32_0 = arith.constant 0 : i32
    %c0_i32_1 = arith.constant 0 : i32
    return %arg0, %c0_i32, %c0_i32_0 : i32, i32, i32
  }
}

</mosaic_0001>

<bundles_post_ra>
// kernel: discriminator_forward.3
= control target key start
LH: loop header
LB: loop body
LE: loop exit
PB: predicated region body
PF: predicated region fallthrough
CT: control target
= control target key end

     0   :  { %s5492_s12 = smov 0   ;;  %s7346_s0 = inlined_call_operand.vmem [shape: bf16[2,12,4292], index: 0, kind: input, shape index: {}]   ;;  %s7347_s1 = inlined_call_operand.vmem [shape: f32[1,4160], index: 1, kind: input, shape index: {}]   ;;  %s7348_s2 = inlined_call_operand.vmem [shape: bf16[4,4,12], index: 2, kind: input, shape index: {}]   ;;  %s7349_s3 = inlined_call_operand.vmem [shape: bf16[2,4,4160], index: 3, kind: output, shape index: {}]  }
   0x1 LB: > { %s4910_s13 = sadd.s32 4294967295, %s5463_s12   ;;  %p4914_p0 = scmp.ge.s32.totalorder %s5463_s12, 1  ;;  %s5463_s12 = sphi %s5492_s12, %s13_s12  }
   0x2   : > { %p137_p1 = scmp.lt.s32.totalorder %s5463_s12, 3 }
   0x4   : > { %p138_p2 = pnand %p4914_p0, %p137_p1 }
   0x6   : > { %141 = sbr.rel (%p138_p2) target bundleno = 847 (0x34f), region = 32 }
   0xd   : > { %p161_p3 = scmp.lt.s32.totalorder %s4910_s13, 1  ;;  %v7350_v8 = vmov 0   ;;  %s5466_s18 = smov 127   ;;  %vm408_vm0 = vcmask 1039360   ;;  %vm445_vm1 = vcmask 1045504   ;;  %vm441_vm2 = vcmask 97280  }
   0xe   : > { %577 = vmatprep.mubr.bf16.mxu1 %v7350_v8  ;;  %741 = vmatprep.mubr.bf16.mxu0 %v7350_v8  ;;  %s5467_s19 = smov 63   ;;  %s5468_s22 = smov 62   ;;  %vm5470_vm3 = vmmov 0   ;;  %vm2279_vm4 = vcmask 515072   ;;  %vm3214_vm5 = vcmask 506880   ;;  %vm4287_vm6 = vcmask 1043456  }
   0xf   : > { %s7422_s13 = smov (!%p161_p3, %s4910_s13), 1  ;;  %vm4351_vm7 = vcmask 519168  }
  0x10   : > { %s5370_s14 = smul.u32 272, %s7422_s13 }
  0x12   : > { %s5506_s17 = scalar_lea.vmem %s7346_s0, %s5370_s14  ;;  %s5371_s14 = smul.u32 66, %s7422_s13 }
  0x13   : > { %v5509_v0 = vld [vmem:[%s5506_s17 + $0x8] sm:$0xff]  ;;  %v191_v1 = vld [vmem:[%s5506_s17 + $0x90] sm:$0x33]  ;;  %v5513_v2 = vld [vmem:[%s5506_s17] sm:$0xff] }
  0x14   : > { %v5516_v3 = vcombine.low %v5509_v0, %v191_v1  ;;  %v190_v4 = vld [vmem:[%s5506_s17 + $0x88] sm:$0x33]  ;;  %v5520_v5 = vld [vmem:[%s5506_s17 + $0x20] sm:$0xff]  ;;  %v195_v12 = vld [vmem:[%s5506_s17 + $0xb0] sm:$0x33]  ;;  %v5562_v18 = vcombine.high %v5509_v0, %v191_v1  ;;  %s7321_s16 = scalar_lea.vmem %s7349_s3, %s5371_s14 }
  0x15   : > { %v194_v6 = vld [vmem:[%s5506_s17 + $0xa8] sm:$0x33]  ;;  %v5524_v7 = vcombine.low %v5513_v2, %v190_v4  ;;  %v5534_v10 = vcombine.high %v5513_v2, %v190_v4  ;;  %v5553_v15 = vld [vmem:[%s5506_s17 + $0x10] sm:$0xff]  ;;  %v192_v16 = vld [vmem:[%s5506_s17 + $0x98] sm:$0x33] }
  0x16   : > { %346 = vrot.lane.b32.xlu1 %v5516_v3, %s5466_s18  ;;  %v5530_v9 = vcombine.low %v5520_v5, %v194_v6  ;;  %v5539_v11 = vld [vmem:[%s5506_s17 + $0x28] sm:$0xff]  ;;  %v5550_v14 = vcombine.high %v5520_v5, %v194_v6  ;;  %v5559_v17 = vcombine.low %v5553_v15, %v192_v16  ;;  %v5567_v19 = vld [vmem:[%s5506_s17 + $0x30] sm:$0xff]  ;;  %v196_v20 = vld [vmem:[%s5506_s17 + $0xb8] sm:$0x33]  ;;  %v5587_v25 = vcombine.high %v5553_v15, %v192_v16 }
  0x17   : > { %342 = vrot.lane.b32.xlu0 %v5524_v7, %s5466_s18  ;;  %v5545_v13 = vcombine.low %v5539_v11, %v195_v12  ;;  %v5573_v21 = vcombine.high %v5567_v19, %v196_v20  ;;  %v5578_v22 = vcombine.low %v5567_v19, %v196_v20  ;;  %v5581_v23 = vld [vmem:[%s5506_s17 + $0x38] sm:$0xff]  ;;  %v197_v24 = vld [vmem:[%s5506_s17 + $0xc0] sm:$0x33]  ;;  %v198_v28 = vld [vmem:[%s5506_s17 + $0xc8] sm:$0x33]  ;;  %v5666_v48 = vcombine.high %v5539_v11, %v195_v12 }
  0x18   : > { %v5592_v26 = vcombine.low %v5581_v23, %v197_v24  ;;  %v5595_v27 = vld [vmem:[%s5506_s17 + $0x40] sm:$0xff]  ;;  %v5599_v29 = vld [vmem:[%s5506_s17 + $0x18] sm:$0xff]  ;;  %v5613_v33 = vld [vmem:[%s5506_s17 + $0x48] sm:$0xff]  ;;  %v5694_v56 = vcombine.high %v5581_v23, %v197_v24 }
  0x19   : > { %7370 = vst [vmem:[#allocation2_spill] sm:$0xff] %v5545_v13  ;;  %v193_v30 = vld [vmem:[%s5506_s17 + $0xa0] sm:$0x33]  ;;  %v5605_v31 = vcombine.low %v5595_v27, %v198_v28  ;;  %v199_v34 = vld [vmem:[%s5506_s17 + $0xd0] sm:$0x33]  ;;  %v5624_v36 = vcombine.high %v5595_v27, %v198_v28  ;;  %v5641_v41 = vld [vmem:[%s5506_s17 + $0x58] sm:$0xff] }
  0x1a   : > { %358 = vrot.lane.b32.xlu1 %v5530_v9, %s5466_s18  ;;  %7371 = vst [vmem:[#allocation3_spill] sm:$0xff] %v5592_v26  ;;  %v5610_v32 = vcombine.low %v5599_v29, %v193_v30  ;;  %v5619_v35 = vcombine.low %v5613_v33, %v199_v34  ;;  %v5627_v37 = vld [vmem:[%s5506_s17 + $0x50] sm:$0xff]  ;;  %v200_v38 = vld [vmem:[%s5506_s17 + $0xd8] sm:$0x33]  ;;  %v5638_v40 = vcombine.high %v5599_v29, %v193_v30  ;;  %v201_v42 = vld [vmem:[%s5506_s17 + $0xe0] sm:$0x33] }
  0x1b   : > { %344 = vrot.lane.b32.xlu0 %v5534_v10, %s5466_s18  ;;  %v5633_v39 = vcombine.low %v5627_v37, %v200_v38  ;;  %v5647_v43 = vcombine.low %v5641_v41, %v201_v42  ;;  %v5652_v44 = vcombine.high %v5627_v37, %v200_v38  ;;  %v5655_v45 = vld [vmem:[%s5506_s17 + $0x60] sm:$0xff]  ;;  %v202_v46 = vld [vmem:[%s5506_s17 + $0xe8] sm:$0x33]  ;;  %v203_v50 = vld [vmem:[%s5506_s17 + $0xf0] sm:$0x33]  ;;  %7380 = vst [vmem:[#allocation12_spill] sm:$0xff] %v5694_v56 }
  0x1c   : > { %7372 = vst [vmem:[#allocation4_spill] sm:$0xff] %v5619_v35  ;;  %v5661_v47 = vcombine.low %v5655_v45, %v202_v46  ;;  %v5669_v49 = vld [vmem:[%s5506_s17 + $0x68] sm:$0xff]  ;;  %v5680_v52 = vcombine.high %v5655_v45, %v202_v46  ;;  %v5683_v53 = vld [vmem:[%s5506_s17 + $0x70] sm:$0xff]  ;;  %v204_v54 = vld [vmem:[%s5506_s17 + $0xf8] sm:$0x33]  ;;  %v5718_v62 = vcombine.high %v5613_v33, %v199_v34  ;;  %v5728_v1 = vcombine.high %v5641_v41, %v201_v42 }
  0x1d   : > { %7373 = vst [vmem:[#allocation5_spill] sm:$0xff] %v5633_v39  ;;  %7374 = vst [vmem:[#allocation6_spill] sm:$0xff] %v5647_v43  ;;  %v5675_v51 = vcombine.low %v5669_v49, %v203_v50  ;;  %v5689_v55 = vcombine.low %v5683_v53, %v204_v54  ;;  %v5697_v57 = vld [vmem:[%s5506_s17 + $0x78] sm:$0xff]  ;;  %v205_v58 = vld [vmem:[%s5506_s17 + $0x100] sm:$0x33]  ;;  %v5708_v60 = vcombine.high %v5683_v53, %v204_v54 }
  0x1e   : > { %362 = vrot.lane.b32.xlu1 %v5545_v13, %s5466_s18  ;;  %7375 = vst [vmem:[#allocation7_spill] sm:$0xff] %v5652_v44  ;;  %7376 = vst [vmem:[#allocation8_spill] sm:$0xff] %v5661_v47  ;;  %v5703_v59 = vcombine.low %v5697_v57, %v205_v58  ;;  %v5713_v61 = vld [vmem:[%s5506_s17 + $0x80] ss:$136 sps:$4 sm:$0x3f]   ;;  %v5723_v63 = vcombine.high %v5669_v49, %v203_v50  ;;  %v5739_v12 = vcombine.high %v5697_v57, %v205_v58 }
  0x1f   : > { %360 = vrot.lane.b32.xlu0 %v5550_v14, %s5466_s18  ;;  %7377 = vst [vmem:[#allocation9_spill] sm:$0xff] %v5675_v51  ;;  %7378 = vst [vmem:[#allocation10_spill] sm:$0xff] %v5680_v52  ;;  %v2058_v4 = vld [vmem:[%s5506_s17 + $0x88] sm:$0x33]  ;;  %v2059_v16 = vld [vmem:[%s5506_s17 + $0x90] sm:$0x33] }
  0x20   : > { %7379 = vst [vmem:[#allocation11_spill] sm:$0xff] %v5689_v55  ;;  %7381 = vst [vmem:[#allocation13_spill] sm:$0xff] %v5703_v59  ;;  %v5734_v6 = vcombine.low %v5513_v2, %v2058_v4  ;;  %v5745_v20 = vcombine.low %v5509_v0, %v2059_v16  ;;  %v5750_v24 = vcombine.high %v5513_v2, %v2058_v4  ;;  %v2060_v28 = vld [vmem:[%s5506_s17 + $0x98] sm:$0x33]  ;;  %v2061_v38 = vld [vmem:[%s5506_s17 + $0xa0] sm:$0x33] }
  0x21   : > { %7382 = vst [vmem:[#allocation14_spill] sm:$0xff] %v5708_v60  ;;  %7383 = vst [vmem:[#allocation15_spill] sm:$0xff] %v5713_v61  ;;  %v5756_v30 = vcombine.high %v5553_v15, %v2060_v28  ;;  %v5761_v34 = vcombine.low %v5553_v15, %v2060_v28  ;;  %v5767_v2 = vcombine.high %v5509_v0, %v2059_v16  ;;  %v2062_v46 = vld [vmem:[%s5506_s17 + $0xa8] sm:$0x33]  ;;  %v2063_v50 = vld [vmem:[%s5506_s17 + $0xb0] sm:$0x33] }
  0x22   : > { %350 = vrot.lane.b32.xlu1 %v5559_v17, %s5466_s18  ;;  %7384 = vst [vmem:[#allocation16_spill] sm:$0xff] %v5718_v62  ;;  %7385 = vst [vmem:[#allocation17_spill] sm:$0xff] %v5723_v63  ;;  %v5772_v42 = vcombine.low %v5599_v29, %v2061_v38  ;;  %v5778_v15 = vcombine.high %v5520_v5, %v2062_v46  ;;  %v5783_v0 = vcombine.low %v5520_v5, %v2062_v46  ;;  %v2064_v4 = vld [vmem:[%s5506_s17 + $0xb8] sm:$0x33]  ;;  %v2065_v16 = vld [vmem:[%s5506_s17 + $0xc0] sm:$0x33] }
  0x23   : > { %348 = vrot.lane.b32.xlu0 %v5562_v18, %s5466_s18  ;;  %7386 = vst [vmem:[#allocation18_spill] sm:$0xff] %v5728_v1  ;;  %7387 = vst [vmem:[#allocation19_spill] sm:$0xff] %v5739_v12  ;;  %v5789_v54 = vcombine.high %v5599_v29, %v2061_v38  ;;  %v5794_v58 = vcombine.low %v5539_v11, %v2063_v50  ;;  %v5800_v5 = vcombine.high %v5567_v19, %v2064_v4  ;;  %v2066_v46 = vld [vmem:[%s5506_s17 + $0xc8] sm:$0x33] }
  0x24   : > { %v5805_v29 = vcombine.low %v5567_v19, %v2064_v4  ;;  %v5811_v28 = vcombine.high %v5539_v11, %v2063_v50  ;;  %v5816_v38 = vcombine.low %v5581_v23, %v2065_v16  ;;  %v5822_v19 = vcombine.high %v5595_v27, %v2066_v46  ;;  %v2067_v50 = vld [vmem:[%s5506_s17 + $0xd0] sm:$0x33] }
  0x25   : > { %v5827_v11 = vcombine.low %v5595_v27, %v2066_v46  ;;  %v5833_v4 = vcombine.high %v5581_v23, %v2065_v16  ;;  %v5838_v8 = vcombine.low %v5613_v33, %v2067_v50  ;;  %v2069_v16 = vld [vmem:[%s5506_s17 + $0xe0] sm:$0x33]  ;;  %v5855_v46 = vcombine.high %v5613_v33, %v2067_v50  ;;  %v2071_v33 = vld [vmem:[%s5506_s17 + $0xf0] sm:$0x33] }
  0x26   : > { %368 = vrot.lane.b32.xlu1 %v5573_v21, %s5466_s18  ;;  %v5877_v50 = vcombine.high %v5641_v41, %v2069_v16 }
  0x27   : > { %366 = vrot.lane.b32.xlu0 %v5578_v22, %s5466_s18 }
  0x2a   : > { %352 = vrot.lane.b32.xlu1 %v5587_v25, %s5466_s18 }
  0x2b   : > { %370 = vrot.lane.b32.xlu0 %v5592_v26, %s5466_s18 }
  0x2e   : > { %374 = vrot.lane.b32.xlu1 %v5605_v31, %s5466_s18 }
  0x2f   : > { %354 = vrot.lane.b32.xlu0 %v5610_v32, %s5466_s18 }
  0x32   : > { %378 = vrot.lane.b32.xlu1 %v5619_v35, %s5466_s18  ;;  %v5902_v35 = vcombine.high %v5669_v49, %v2071_v33 }
  0x33   : > { %376 = vrot.lane.b32.xlu0 %v5624_v36, %s5466_s18 }
  0x36   : > { %382 = vrot.lane.b32.xlu1 %v5633_v39, %s5466_s18 }
  0x37   : > { %356 = vrot.lane.b32.xlu0 %v5638_v40, %s5466_s18 }
  0x3a   : > { %386 = vrot.lane.b32.xlu1 %v5647_v43, %s5466_s18 }
  0x3b   : > { %384 = vrot.lane.b32.xlu0 %v5652_v44, %s5466_s18 }
  0x3e   : > { %390 = vrot.lane.b32.xlu1 %v5661_v47, %s5466_s18 }
  0x3f   : > { %364 = vrot.lane.b32.xlu0 %v5666_v48, %s5466_s18 }
  0x42   : > { %394 = vrot.lane.b32.xlu1 %v5675_v51, %s5466_s18  ;;  %v2070_v51 = vld [vmem:[%s5506_s17 + $0xe8] sm:$0x33] }
  0x43   : > { %392 = vrot.lane.b32.xlu0 %v5680_v52, %s5466_s18  ;;  %v7388_v52 = vmov 0  }
  0x46   : > { %398 = vrot.lane.b32.xlu1 %v5689_v55, %s5466_s18 }
  0x47   : > { %372 = vrot.lane.b32.xlu0 %v5694_v56, %s5466_s18 }
  0x4a   : > { %402 = vrot.lane.b32.xlu1 %v5703_v59, %s5466_s18  ;;  %v2068_v59 = vld [vmem:[%s5506_s17 + $0xd8] sm:$0x33] }
  0x4b   : > { %400 = vrot.lane.b32.xlu0 %v5708_v60, %s5466_s18  ;;  %v5844_v27 = vcombine.high %v5627_v37, %v2068_v59  ;;  %v5849_v23 = vcombine.low %v5627_v37, %v2068_v59  ;;  %v5866_v37 = vcombine.high %v5655_v45, %v2070_v51  ;;  %v5871_v59 = vcombine.low %v5655_v45, %v2070_v51 }
  0x4e   : > { %406 = vrot.lane.b32.xlu1 %v5713_v61, %s5466_s18  ;;  %v2072_v61 = vld [vmem:[%s5506_s17 + $0xf8] sm:$0x33] }
  0x4f   : > { %380 = vrot.lane.b32.xlu0 %v5718_v62, %s5466_s18  ;;  %v5888_v45 = vcombine.high %v5683_v53, %v2072_v61  ;;  %v2073_v62 = vld [vmem:[%s5506_s17 + $0x100] sm:$0x33] }
  0x52   : > { %396 = vrot.lane.b32.xlu1 %v5723_v63, %s5466_s18  ;;  %v5882_v63 = vcombine.low %v5669_v49, %v2071_v33  ;;  %v5917_v33 = vcombine.low %v5697_v57, %v2073_v62 }
  0x53   : > { %388 = vrot.lane.b32.xlu0 %v5728_v1, %s5466_s18 }
  0x56   : > { %2211 = vrot.lane.b32.xlu1 %v5734_v6, %s5467_s19 }
  0x57   : > { %404 = vrot.lane.b32.xlu0 %v5739_v12, %s5466_s18  ;;  %v5860_v12 = vcombine.low %v5641_v41, %v2069_v16  ;;  %v5893_v41 = vcombine.low %v5683_v53, %v2072_v61 }
  0x5a   : > { %2215 = vrot.lane.b32.xlu1 %v5745_v20, %s5467_s19 }
  0x5b   : > { %2213 = vrot.lane.b32.xlu0 %v5750_v24, %s5467_s19 }
  0x5e   : > { %2221 = vrot.lane.b32.xlu1 %v5756_v30, %s5467_s19 }
  0x5f   : > { %2219 = vrot.lane.b32.xlu0 %v5761_v34, %s5467_s19 }
  0x62   : > { %2217 = vrot.lane.b32.xlu1 %v5767_v2, %s5467_s19 }
  0x63   : > { %2223 = vrot.lane.b32.xlu0 %v5772_v42, %s5467_s19 }
  0x66   : > { %2229 = vrot.lane.b32.xlu1 %v5778_v15, %s5467_s19 }
  0x67   : > { %2227 = vrot.lane.b32.xlu0 %v5783_v0, %s5467_s19 }
  0x6a   : > { %2225 = vrot.lane.b32.xlu1 %v5789_v54, %s5467_s19 }
  0x6b   : > { %2231 = vrot.lane.b32.xlu0 %v5794_v58, %s5467_s19 }
  0x6e   : > { %2237 = vrot.lane.b32.xlu1 %v5800_v5, %s5467_s19 }
  0x6f   : > { %2235 = vrot.lane.b32.xlu0 %v5805_v29, %s5467_s19 }
  0x72   : > { %2233 = vrot.lane.b32.xlu1 %v5811_v28, %s5467_s19 }
  0x73   : > { %2239 = vrot.lane.b32.xlu0 %v5816_v38, %s5467_s19 }
  0x76   : > { %2245 = vrot.lane.b32.xlu1 %v5822_v19, %s5467_s19 }
  0x77   : > { %2243 = vrot.lane.b32.xlu0 %v5827_v11, %s5467_s19 }
  0x7a   : > { %2241 = vrot.lane.b32.xlu1 %v5833_v4, %s5467_s19 }
  0x7b   : > { %2247 = vrot.lane.b32.xlu0 %v5838_v8, %s5467_s19 }
  0x7e   : > { %2253 = vrot.lane.b32.xlu1 %v5844_v27, %s5467_s19 }
  0x7f   : > { %2251 = vrot.lane.b32.xlu0 %v5849_v23, %s5467_s19 }
  0x82   : > { %2249 = vrot.lane.b32.xlu1 %v5855_v46, %s5467_s19 }
  0x83   : > { %2255 = vrot.lane.b32.xlu0 %v5860_v12, %s5467_s19 }
  0x86   : > { %2261 = vrot.lane.b32.xlu1 %v5866_v37, %s5467_s19 }
  0x87   : > { %2259 = vrot.lane.b32.xlu0 %v5871_v59, %s5467_s19 }
  0x88   : > { %v347_v43 = vpop.permute.xlu1 %346 }
  0x89   : > { %v343_v1 = vpop.permute.xlu0 %342 }
  0x8a   : > { %2257 = vrot.lane.b32.xlu1 %v5877_v50, %s5467_s19 }
  0x8b   : > { %2263 = vrot.lane.b32.xlu0 %v5882_v63, %s5467_s19 }
  0x8c   : > { %v5895_v51 = vpop.permute.xlu1 %358 }
  0x8d   : > { %v345_v16 = vpop.permute.xlu0 %344 }
  0x8e   : > { %v410_v55 = vsel %vm408_vm0, %v345_v16, %v347_v43  ;;  %v409_v60 = vsel %vm408_vm0, %v343_v1, %v345_v16  ;;  %2269 = vrot.lane.b32.xlu1 %v5888_v45, %s5467_s19  ;;  %v5914_v1 = vld [vmem:[%s7348_s2 + $0x2] sm:$0x3]  ;;  %v5926_v16 = vld [vmem:[%s5506_s17 + $0x84] ss:$136 sps:$4 sm:$0x3f]  }
  0x8f   : > { %4951 = vmatprep.subr.msk.bf16.mxu1 %vm445_vm1, %v410_v55  ;;  %v447_v53 = vsel %vm445_vm1, %v409_v60, 0  ;;  %2267 = vrot.lane.b32.xlu0 %v5893_v41, %s5467_s19 }
  0x90   : > { %546 = vmatpush1.bf16.msra.mxu1 %v447_v53  ;;  %v5909_v61 = vpop.permute.xlu1 %362 }
  0x91   : > { %v361_v49 = vpop.permute.xlu0 %360 }
  0x92   : > { %v418_v55 = vsel %vm408_vm0, %v361_v49, %v5909_v61  ;;  %v417_v60 = vsel %vm408_vm0, %v5895_v51, %v361_v49  ;;  %2265 = vrot.lane.b32.xlu1 %v5902_v35, %s5467_s19  ;;  %v5936_v49 = vld [vmem:[%s5506_s17 + $0x80] ss:$136 sps:$4 sm:$0x3f]  }
  0x93   : > { %4959 = vmatprep.subr.msk.bf16.mxu0 %vm445_vm1, %v418_v55  ;;  %v471_v53 = vsel %vm445_vm1, %v417_v60, 0  ;;  %4952 = vmatmul.mubr.msk.bf16.vlgmr.msra.gmra.mrb[0].mxu1 %vm441_vm2, %v5914_v1 }
  0x94   : > { %710 = vmatpush1.bf16.msra.mxu0 %v471_v53  ;;  %v351_v47 = vpop.permute.xlu1 %350  ;;  %618 = vmatprep.mubr.bf16.mxu1 %v7388_v52 }
  0x95   : > { %v349_v26 = vpop.permute.xlu0 %348  ;;  %2271 = vrot.lane.b32.xlu0 %v5917_v33, %s5467_s19 }
  0x96   : > { %v411_v56 = vsel %vm408_vm0, %v347_v43, %v349_v26  ;;  %v412_v39 = vsel %vm408_vm0, %v349_v26, %v351_v47  ;;  %2277 = vrot.lane.b32.xlu1 %v5926_v16, %s5467_s19  ;;  %v5952_v26 = vcombine.high %v5697_v57, %v2073_v62 }
  0x97   : > { %v453_v55 = vsel %vm445_vm1, %v411_v56, 0  ;;  %4953 = vmatprep.subr.msk.bf16.mxu1 %vm445_vm1, %v412_v39  ;;  %4960 = vmatmul.mubr.msk.bf16.vlgmr.msra.gmra.mrb[0].mxu0 %vm441_vm2, %v5914_v1 }
  0x98   : > { %587 = vmatpush1.bf16.msra.mxu1 %v453_v55  ;;  %v369_v60 = vpop.permute.xlu1 %368  ;;  %823 = vmatprep.mubr.bf16.mxu0 %v7388_v52 }
  0x99   : > { %v5947_v53 = vpop.permute.xlu0 %366  ;;  %2275 = vrot.lane.b32.xlu0 %v5936_v49, %s5467_s19 }
  0x9a   : > { %3146 = vrot.lane.b32.xlu1 %v5734_v6, %s5468_s22  ;;  %v421_v39 = vsel %vm408_vm0, %v5947_v53, %v369_v60 }
  0x9b   : > { %4954 = vmatmul.mubr.msk.bf16.vlgmr.msra.gmra.mrb[4].mxu1 %vm441_vm2, %v5914_v1  ;;  %v483_v62 = vsel %vm445_vm1, %v421_v39, 0 }
  0x9c   : > { %v353_v43 = vpop.permute.xlu1 %352  ;;  %659 = vmatprep.mubr.bf16.mxu1 %v7388_v52 }
  0x9d   : > { %v5961_v56 = vpop.permute.xlu0 %370  ;;  %2273 = vrot.lane.b32.xlu0 %v5952_v26, %s5467_s19  ;;  %v413_v6 = vsel %vm408_vm0, %v351_v47, %v353_v43 }
  0x9e   : > { %v422_v57 = vsel %vm408_vm0, %v369_v60, %v5961_v56  ;;  %3150 = vrot.lane.b32.xlu1 %v5745_v20, %s5468_s22  ;;  %v459_v20 = vsel %vm445_vm1, %v413_v6, 0 }
  0x9f   : > { %4963 = vmatprep.subr.msk.bf16.mxu0 %vm445_vm1, %v422_v57 }
  0xa0   : > { %792 = vmatpush1.bf16.msra.mxu0 %v483_v62  ;;  %v5972_v55 = vpop.permute.xlu1 %374 }
  0xa1   : > { %v355_v44 = vpop.permute.xlu0 %354  ;;  %3148 = vrot.lane.b32.xlu0 %v5750_v24, %s5468_s22 }
  0xa2   : > { %v414_v13 = vsel %vm408_vm0, %v353_v43, %v355_v44  ;;  %3154 = vrot.lane.b32.xlu1 %v5761_v34, %s5468_s22 }
  0xa3   : > { %4955 = vmatprep.subr.msk.bf16.mxu1 %vm445_vm1, %v414_v13  ;;  %4964 = vmatmul.mubr.msk.bf16.vlgmr.msra.gmra.mrb[4].mxu0 %vm441_vm2, %v5914_v1 }
  0xa4   : > { %628 = vmatpush1.bf16.msra.mxu1 %v459_v20  ;;  %v5983_v47 = vpop.permute.xlu1 %378  ;;  %905 = vmatprep.mubr.bf16.mxu0 %v7388_v52 }
  0xa5   : > { %v377_v60 = vpop.permute.xlu0 %376  ;;  %3152 = vrot.lane.b32.xlu0 %v5767_v2, %s5468_s22 }
  0xa6   : > { %v425_v24 = vsel %vm408_vm0, %v5972_v55, %v377_v60  ;;  %v426_v34 = vsel %vm408_vm0, %v377_v60, %v5983_v47  ;;  %3158 = vrot.lane.b32.xlu1 %v5772_v42, %s5468_s22 }
  0xa7   : > { %v495_v13 = vsel %vm445_vm1, %v425_v24, 0  ;;  %4956 = vmatmul.mubr.msk.bf16.vlgmr.msra.gmra.mrb[8].mxu1 %vm441_vm2, %v5914_v1  ;;  %4967 = vmatprep.subr.msk.bf16.mxu0 %vm445_vm1, %v426_v34 }
  0xa8   : > { %874 = vmatpush1.bf16.msra.mxu0 %v495_v13  ;;  %v5998_v39 = vpop.permute.xlu1 %382  ;;  %700 = vmatprep.mubr.bf16.mxu1 %v7388_v52 }
  0xa9   : > { %v357_v2 = vpop.permute.xlu0 %356  ;;  %3156 = vrot.lane.b32.xlu0 %v5756_v30, %s5468_s22 }
  0xaa   : > { %v415_v43 = vsel %vm408_vm0, %v355_v44, %v357_v2  ;;  %v416_v42 = vsel %vm408_vm0, %v357_v2, %v5895_v51  ;;  %3162 = vrot.lane.b32.xlu1 %v5783_v0, %s5468_s22 }
  0xab   : > { %v465_v57 = vsel %vm445_vm1, %v415_v43, 0  ;;  %4957 = vmatprep.subr.msk.bf16.mxu1 %vm445_vm1, %v416_v42  ;;  %4968 = vmatmul.mubr.msk.bf16.vlgmr.msra.gmra.mrb[8].mxu0 %vm441_vm2, %v5914_v1 }
  0xac   : > { %669 = vmatpush1.bf16.msra.mxu1 %v465_v57  ;;  %v6012_v62 = vpop.permute.xlu1 %386  ;;  %987 = vmatprep.mubr.bf16.mxu0 %v7388_v52 }
  0xad   : > { %v385_v30 = vpop.permute.xlu0 %384  ;;  %3160 = vrot.lane.b32.xlu0 %v5789_v54, %s5468_s22 }
  0xae   : > { %v429_v44 = vsel %vm408_vm0, %v5998_v39, %v385_v30  ;;  %v430_v0 = vsel %vm408_vm0, %v385_v30, %v6012_v62  ;;  %3166 = vrot.lane.b32.xlu1 %v5794_v58, %s5468_s22  ;;  %v5469_v30 = vmov 0.0  }
  0xaf   : > { %v507_v51 = vsel %vm445_vm1, %v429_v44, 0  ;;  %4958 = vmatmul.mubr.msk.bf16.vlgmr.msra.gmra.mrb[12].mxu1 %vm441_vm2, %v5914_v1  ;;  %4971 = vmatprep.subr.msk.bf16.mxu0 %vm445_vm1, %v430_v0 }
  0xb0   : > { %956 = vmatpush1.bf16.msra.mxu0 %v507_v51  ;;  %v6027_v6 = vpop.permute.xlu1 %390  ;;  %782 = vmatprep.mubr.bf16.mxu1 %v7388_v52 }
  0xb1   : > { %v365_v54 = vpop.permute.xlu0 %364  ;;  %3164 = vrot.lane.b32.xlu0 %v5778_v15, %s5468_s22 }
  0xb2   : > { %v419_v20 = vsel %vm408_vm0, %v5909_v61, %v365_v54  ;;  %v420_v58 = vsel %vm408_vm0, %v365_v54, %v5947_v53  ;;  %3170 = vrot.lane.b32.xlu1 %v5805_v29, %s5468_s22 }
  0xb3   : > { %v477_v60 = vsel %vm445_vm1, %v419_v20, 0  ;;  %4961 = vmatprep.subr.msk.bf16.mxu1 %vm445_vm1, %v420_v58  ;;  %4972 = vmatmul.mubr.msk.bf16.vlgmr.msra.gmra.mrb[12].mxu0 %vm441_vm2, %v5914_v1 }
  0xb4   : > { %751 = vmatpush1.bf16.msra.mxu1 %v477_v60  ;;  %v6042_v24 = vpop.permute.xlu1 %394  ;;  %1069 = vmatprep.mubr.bf16.mxu0 %v7388_v52 }
  0xb5   : > { %v393_v15 = vpop.permute.xlu0 %392  ;;  %3168 = vrot.lane.b32.xlu0 %v5811_v28, %s5468_s22 }
  0xb6   : > { %v433_v61 = vsel %vm408_vm0, %v6027_v6, %v393_v15  ;;  %v434_v29 = vsel %vm408_vm0, %v393_v15, %v6042_v24  ;;  %3174 = vrot.lane.b32.xlu1 %v5816_v38, %s5468_s22 }
  0xb7   : > { %v519_v53 = vsel %vm445_vm1, %v433_v61, 0  ;;  %4962 = vmatmul.mubr.msk.bf16.vlgmr.msra.gmra.mrb[16].mxu1 %vm441_vm2, %v5914_v1  ;;  %4975 = vmatprep.subr.msk.bf16.mxu0 %vm445_vm1, %v434_v29  ;;  %v7394_v61 = vld [vmem:[#allocation10_spill] sm:$0xff] }
  0xb8   : > { %1038 = vmatpush1.bf16.msra.mxu0 %v519_v53  ;;  %v399_v34 = vpop.permute.xlu1 %398  ;;  %864 = vmatprep.mubr.bf16.mxu1 %v7388_v52  ;;  %v7395_v53 = vld [vmem:[#allocation8_spill] sm:$0xff] }
  0xb9   : > { %v373_v28 = vpop.permute.xlu0 %372  ;;  %3172 = vrot.lane.b32.xlu0 %v5800_v5, %s5468_s22 }
  0xba   : > { %v423_v13 = vsel %vm408_vm0, %v5961_v56, %v373_v28  ;;  %v424_v38 = vsel %vm408_vm0, %v373_v28, %v5972_v55  ;;  %3178 = vrot.lane.b32.xlu1 %v5827_v11, %s5468_s22  ;;  %v7396_v28 = vld [vmem:[#allocation16_spill] sm:$0xff] }
  0xbb   : > { %v489_v2 = vsel %vm445_vm1, %v423_v13, 0  ;;  %4965 = vmatprep.subr.msk.bf16.mxu1 %vm445_vm1, %v424_v38  ;;  %4976 = vmatmul.mubr.msk.bf16.vlgmr.msra.gmra.mrb[16].mxu0 %vm441_vm2, %v5914_v1  ;;  %v7397_v38 = vld [vmem:[#allocation4_spill] sm:$0xff] }
  0xbc   : > { %833 = vmatpush1.bf16.msra.mxu1 %v489_v2  ;;  %v6070_v43 = vpop.permute.xlu1 %402  ;;  %1151 = vmatprep.mubr.bf16.mxu0 %v7388_v52  ;;  %v1299_v2 = vsel %vm445_vm1, %v7397_v38, 0 }
  0xbd   : > { %v401_v5 = vpop.permute.xlu0 %400  ;;  %3176 = vrot.lane.b32.xlu0 %v5833_v4, %s5468_s22 }
  0xbe   : > { %v437_v56 = vsel %vm408_vm0, %v399_v34, %v401_v5  ;;  %v438_v11 = vsel %vm408_vm0, %v401_v5, %v6070_v43  ;;  %3182 = vrot.lane.b32.xlu1 %v5838_v8, %s5468_s22 }
  0xbf   : > { %v531_v55 = vsel %vm445_vm1, %v437_v56, 0  ;;  %4966 = vmatmul.mubr.msk.bf16.vlgmr.msra.gmra.mrb[20].mxu1 %vm441_vm2, %v5914_v1  ;;  %4979 = vmatprep.subr.msk.bf16.mxu0 %vm445_vm1, %v438_v11  ;;  %v7399_v11 = vld [vmem:[#allocation11_spill] sm:$0xff] }
  0xc0   : > { %1120 = vmatpush1.bf16.msra.mxu0 %v531_v55  ;;  %v407_v42 = vpop.permute.xlu1 %406  ;;  %946 = vmatprep.mubr.bf16.mxu1 %v7388_v52  ;;  %v1329_v55 = vsel %vm445_vm1, %v7399_v11, 0 }
  0xc1   : > { %v543_v4 = vsel %vm445_vm1, %v407_v42, 0  ;;  %v381_v57 = vpop.permute.xlu0 %380  ;;  %5146 = vmatprep.subr.bf16.mxu0 %v5469_v30  ;;  %3180 = vrot.lane.b32.xlu0 %v5822_v19, %s5468_s22 }
  0xc2   : > { %v427_v8 = vsel %vm408_vm0, %v5983_v47, %v381_v57  ;;  %v428_v44 = vsel %vm408_vm0, %v381_v57, %v5998_v39  ;;  %3186 = vrot.lane.b32.xlu1 %v5849_v23, %s5468_s22  ;;  %v7401_v57 = vld [vmem:[#allocation6_spill] sm:$0xff] }
  0xc3   : > { %v501_v0 = vsel %vm445_vm1, %v427_v8, 0  ;;  %4969 = vmatprep.subr.msk.bf16.mxu1 %vm445_vm1, %v428_v44  ;;  %4980 = vmatmul.mubr.msk.bf16.vlgmr.msra.gmra.mrb[20].mxu0 %vm441_vm2, %v5914_v1  ;;  %v1311_v8 = vsel %vm445_vm1, %v7401_v57, 0 }
  0xc4   : > { %915 = vmatpush1.bf16.msra.mxu1 %v501_v0  ;;  %v397_v51 = vpop.permute.xlu1 %396  ;;  %5147 = vmatpush3.bf16.msra.mxu0 %v543_v4  ;;  %v7402_v0 = vld [vmem:[#allocation15_spill] sm:$0xff] }
  0xc5   : > { %v389_v19 = vpop.permute.xlu0 %388  ;;  %5148 = vmatprep.mubr.msk.bf16.mxu0 %vm5470_vm3, %v5469_v30  ;;  %4984 = vmatprep.subr.msk.bf16.mxu0 %vm445_vm1, %v5534_v10  ;;  %v436_v10 = vsel %vm408_vm0, %v397_v51, %v399_v34  ;;  %v1317_v34 = vsel %vm445_vm1, %v7395_v53, 0 }
  0xc6   : > { %v431_v23 = vsel %vm408_vm0, %v6012_v62, %v389_v19  ;;  %v432_v47 = vsel %vm408_vm0, %v389_v19, %v6027_v6  ;;  %3184 = vrot.lane.b32.xlu0 %v5855_v46, %s5468_s22  ;;  %3190 = vrot.lane.b32.xlu1 %v5860_v12, %s5468_s22  ;;  %v1245_v46 = vsel %vm445_vm1, %v5524_v7, 0  ;;  %v435_v6 = vsel %vm408_vm0, %v6042_v24, %v397_v51  ;;  %v7393_v24 = vld [vmem:[#allocation3_spill] sm:$0xff]  ;;  %v7403_v19 = vld [vmem:[#allocation17_spill] sm:$0xff] }
  0xc7   : > { %v513_v39 = vsel %vm445_vm1, %v431_v23, 0  ;;  %4970 = vmatmul.mubr.msk.bf16.vlgmr.msra.gmra.mrb[24].mxu1 %vm441_vm2, %v5914_v1  ;;  %4973 = vmatprep.subr.msk.bf16.mxu1 %vm445_vm1, %v432_v47  ;;  %v1287_v15 = vsel %vm445_vm1, %v7393_v24, 0  ;;  %v1341_v51 = vsel %vm445_vm1, %v7402_v0, 0 }
  0xc8   : > { %997 = vmatpush1.bf16.msra.mxu1 %v513_v39  ;;  %1028 = vmatprep.mubr.bf16.mxu1 %v7388_v52  ;;  %v6117_v62 = vpop.permute.xlu1 %2211 }
  0xc9   : > { %4977 = vmatprep.subr.msk.bf16.mxu1 %vm445_vm1, %v436_v10  ;;  %v405_v12 = vpop.permute.xlu0 %404  ;;  %v7404_v10 = vld [vmem:[#allocation9_spill] sm:$0xff] }
  0xca   : > { %3188 = vrot.lane.b32.xlu0 %v5844_v27, %s5468_s22  ;;  %3194 = vrot.lane.b32.xlu1 %v5871_v59, %s5468_s22  ;;  %v525_v27 = vsel %vm445_vm1, %v435_v6, 0  ;;  %v440_v54 = vsel %vm408_vm0, %v405_v12, %v407_v42  ;;  %v7400_v42 = vld [vmem:[#allocation18_spill] sm:$0xff] }
  0xcb   : > { %5149 = vmatmul.mubr.msk.bf16.vlgmr.msra.gmra.mrb[24].mxu0 %vm441_vm2, %v5914_v1 }
  0xcc   : > { %1344 = vmatpush1.bf16.msra.mxu0 %v1245_v46  ;;  %1375 = vmatprep.mubr.bf16.mxu0 %v7388_v52  ;;  %v6133_v7 = vpop.permute.xlu1 %2215  ;;  %v1323_v46 = vsel %vm445_vm1, %v7404_v10, 0 }
  0xcd   : > { %4988 = vmatprep.subr.msk.bf16.mxu0 %vm445_vm1, %v5587_v25  ;;  %v6142_v59 = vpop.permute.xlu0 %2213  ;;  %v6148_v25 = vld [vmem:[%s7348_s2] sm:$0x3] }
  0xce   : > { %3192 = vrot.lane.b32.xlu0 %v5877_v50, %s5468_s22  ;;  %3198 = vrot.lane.b32.xlu1 %v5882_v63, %s5468_s22  ;;  %v1257_v63 = vsel %vm445_vm1, %v5559_v17, 0  ;;  %v439_v50 = vsel %vm408_vm0, %v6070_v43, %v405_v12  ;;  %v7398_v43 = vld [vmem:[#allocation14_spill] sm:$0xff]  ;;  %v2281_v23 = vsel %vm2279_vm4, %v6142_v59, %v6133_v7  ;;  %v2280_v12 = vsel %vm2279_vm4, %v6117_v62, %v6142_v59  ;;  %v7406_v62 = vld [vmem:[#allocation13_spill] sm:$0xff] }
  0xcf   : > { %4974 = vmatmul.mubr.msk.bf16.vlgmr.msra.gmra.mrb[28].mxu1 %vm441_vm2, %v5914_v1  ;;  %v1335_v59 = vsel %vm445_vm1, %v7406_v62, 0 }
  0xd0   : > { %1079 = vmatpush1.bf16.msra.mxu1 %v525_v27  ;;  %1110 = vmatprep.mubr.bf16.mxu1 %v7388_v52  ;;  %v6163_v20 = vpop.permute.xlu1 %2221  ;;  %v2317_v27 = vsel %vm445_vm1, %v2280_v12, 0 }
  0xd1   : > { %4981 = vmatprep.subr.msk.bf16.mxu1 %vm445_vm1, %v440_v54  ;;  %v6167_v17 = vpop.permute.xlu0 %2219  ;;  %v7405_v54 = vld [vmem:[#allocation19_spill] sm:$0xff] }
  0xd2   : > { %3196 = vrot.lane.b32.xlu0 %v5866_v37, %s5468_s22  ;;  %3202 = vrot.lane.b32.xlu1 %v5893_v41, %s5468_s22  ;;  %v537_v37 = vsel %vm445_vm1, %v439_v50, 0  ;;  %v1269_v41 = vsel %vm445_vm1, %v5530_v9, 0  ;;  %v1251_v9 = vsel %vm445_vm1, %v5516_v3, 0 }
  0xd3   : > { %4985 = vmatmul.mubr.msk.bf16.vlgmr.msra.gmra.mrb[28].mxu0 %vm441_vm2, %v6148_v25 }
  0xd4   : > { %1426 = vmatpush1.bf16.msra.mxu0 %v1257_v63  ;;  %1457 = vmatprep.mubr.bf16.mxu0 %v7388_v52 }
  0xd5   : > { %4992 = vmatprep.subr.msk.bf16.mxu0 %vm445_vm1, %v5550_v14  ;;  %v6181_v14 = vpop.permute.xlu1 %2217 }
  0xd6   : > { %3200 = vrot.lane.b32.xlu0 %v5902_v35, %s5468_s22  ;;  %3206 = vrot.lane.b32.xlu1 %v5917_v33, %s5468_s22  ;;  %v6189_v35 = vpop.permute.xlu0 %2223 }
  0xd7   : > { %4978 = vmatmul.mubr.msk.bf16.vlgmr.msra.gmra.mrb[32].mxu1 %vm441_vm2, %v5914_v1  ;;  %v2285_v50 = vsel %vm2279_vm4, %v6163_v20, %v6189_v35 }
  0xd8   : > { %1161 = vmatpush1.bf16.msra.mxu1 %v537_v37  ;;  %1192 = vmatprep.mubr.bf16.mxu1 %v7388_v52  ;;  %v2284_v37 = vsel %vm2279_vm4, %v6167_v17, %v6163_v20 }
  0xd9   : > { %4986 = vmatprep.subr.msk.bf16.mxu1 %vm445_vm1, %v5562_v18  ;;  %v6201_v18 = vpop.permute.xlu1 %2229  ;;  %v2329_v20 = vsel %vm445_vm1, %v2284_v37, 0 }
  0xda   : > { %3204 = vrot.lane.b32.xlu0 %v5888_v45, %s5468_s22  ;;  %3210 = vrot.lane.b32.xlu1 %v5936_v49, %s5468_s22  ;;  %v1281_v45 = vsel %vm445_vm1, %v5578_v22, 0  ;;  %v6207_v3 = vpop.permute.xlu0 %2227 }
  0xdb   : > { %4989 = vmatmul.mubr.msk.bf16.vlgmr.msra.gmra.mrb[32].mxu0 %vm441_vm2, %v6148_v25 }
  0xdc   : > { %1508 = vmatpush1.bf16.msra.mxu0 %v1269_v41  ;;  %1539 = vmatprep.mubr.bf16.mxu0 %v7388_v52  ;;  %v2283_v41 = vsel %vm2279_vm4, %v6181_v14, %v6167_v17 }
  0xdd   : > { %4996 = vmatprep.subr.msk.bf16.mxu0 %vm445_vm1, %v5573_v21  ;;  %v1263_v21 = vsel %vm445_vm1, %v5610_v32, 0  ;;  %v6218_v22 = vpop.permute.xlu1 %2225 }
  0xde   : > { %3208 = vrot.lane.b32.xlu0 %v5952_v26, %s5468_s22  ;;  %v7392_v26 = vld [vmem:[#allocation12_spill] sm:$0xff] }
  0xdf   : > { %4982 = vmatmul.mubr.msk.bf16.vlgmr.msra.gmra.mrb[36].mxu1 %vm441_vm2, %v5914_v1  ;;  %v1293_v1 = vsel %vm445_vm1, %v5605_v31, 0  ;;  %v7391_v31 = vld [vmem:[#allocation5_spill] sm:$0xff] }
  0xe0   : > { %1385 = vmatpush1.bf16.msra.mxu1 %v1251_v9  ;;  %1416 = vmatprep.mubr.bf16.mxu1 %v7388_v52 }
  0xe1   : > { %4990 = vmatprep.subr.msk.bf16.mxu1 %vm445_vm1, %v5638_v40  ;;  %v6222_v40 = vpop.permute.xlu0 %2231  ;;  %v6232_v32 = vpop.permute.xlu1 %2237 }
  0xe2   : > { %3212 = vrot.lane.b32.xlu0 %v5926_v16, %s5468_s22  ;;  %v7390_v16 = vld [vmem:[#allocation7_spill] sm:$0xff]  ;;  %v2289_v17 = vsel %vm2279_vm4, %v6201_v18, %v6222_v40 }
  0xe3   : > { %4993 = vmatmul.mubr.msk.bf16.vlgmr.msra.gmra.mrb[0].mxu0 %vm441_vm2, %v6148_v25 }
  0xe4   : > { %1590 = vmatpush1.bf16.msra.mxu0 %v1281_v45  ;;  %1621 = vmatprep.mubr.bf16.mxu0 %v7388_v52 }
  0xe5   : > { %5000 = vmatprep.subr.msk.bf16.mxu0 %vm445_vm1, %v5624_v36  ;;  %v7389_v36 = vld [vmem:[#allocation2_spill] sm:$0xff]  ;;  %v6238_v49 = vpop.permute.xlu0 %2235  ;;  %v6247_v58 = vpop.permute.xlu1 %2233 }
  0xe6   : > { %v1275_v33 = vsel %vm445_vm1, %v7389_v36, 0  ;;  %v2291_v24 = vsel %vm2279_vm4, %v6247_v58, %v6238_v49 }
  0xe7   : > { %4987 = vmatmul.mubr.msk.bf16.vlgmr.msra.gmra.mrb[4].mxu1 %vm441_vm2, %v6148_v25 }
  0xe8   : > { %1467 = vmatpush1.bf16.msra.mxu1 %v1263_v21  ;;  %1498 = vmatprep.mubr.bf16.mxu1 %v7388_v52  ;;  %v6355_v21 = vld [vmem:[%s7348_s2 + $0x4] sm:$0x3] }
  0xe9   : > { %4994 = vmatprep.subr.msk.bf16.mxu1 %vm445_vm1, %v5666_v48  ;;  %v1305_v48 = vsel %vm445_vm1, %v7391_v31, 0  ;;  %v6251_v60 = vpop.permute.xlu0 %2239  ;;  %v6261_v29 = vpop.permute.xlu1 %2245  ;;  %v2287_v31 = vsel %vm2279_vm4, %v6218_v22, %v6207_v3 }
  0xeb   : > { %4997 = vmatmul.mubr.msk.bf16.vlgmr.msra.gmra.mrb[4].mxu0 %vm441_vm2, %v6148_v25 }
  0xec   : > { %1672 = vmatpush1.bf16.msra.mxu0 %v1293_v1  ;;  %1703 = vmatprep.mubr.bf16.mxu0 %v7388_v52  ;;  %v2282_v1 = vsel %vm2279_vm4, %v6133_v7, %v6181_v14  ;;  %v2293_v14 = vsel %vm2279_vm4, %v6232_v32, %v6251_v60 }
  0xed   : > { %5004 = vmatprep.subr.msk.bf16.mxu0 %vm445_vm1, %v7390_v16  ;;  %v6267_v13 = vpop.permute.xlu0 %2243  ;;  %v6276_v5 = vpop.permute.xlu1 %2241  ;;  %v2288_v16 = vsel %vm2279_vm4, %v6207_v3, %v6201_v18 }
  0xee   : > { %v2341_v7 = vsel %vm445_vm1, %v2288_v16, 0 }
  0xef   : > { %4991 = vmatmul.mubr.msk.bf16.vlgmr.msra.gmra.mrb[12].mxu1 %vm441_vm2, %v6148_v25 }
  0xf0   : > { %1549 = vmatpush1.bf16.msra.mxu1 %v1275_v33  ;;  %1580 = vmatprep.mubr.bf16.mxu1 %v7388_v52 }
  0xf1   : > { %4998 = vmatprep.subr.msk.bf16.mxu1 %vm445_vm1, %v7392_v26  ;;  %v6280_v56 = vpop.permute.xlu0 %2247  ;;  %v6290_v4 = vpop.permute.xlu1 %2253  ;;  %v2292_v26 = vsel %vm2279_vm4, %v6238_v49, %v6232_v32  ;;  %v2290_v49 = vsel %vm2279_vm4, %v6222_v40, %v6247_v58 }
  0xf2   : > { %v2297_v32 = vsel %vm2279_vm4, %v6261_v29, %v6280_v56  ;;  %v2347_v38 = vsel %vm445_vm1, %v2290_v49, 0 }
  0xf3   : > { %5001 = vmatmul.mubr.msk.bf16.vlgmr.msra.gmra.mrb[8].mxu0 %vm441_vm2, %v6148_v25 }
  0xf4   : > { %1754 = vmatpush1.bf16.msra.mxu0 %v1305_v48  ;;  %1785 = vmatprep.mubr.bf16.mxu0 %v7388_v52  ;;  %v2323_v48 = vsel %vm445_vm1, %v2282_v1, 0 }
  0xf5   : > { %5008 = vmatprep.subr.msk.bf16.mxu0 %vm445_vm1, %v7394_v61  ;;  %v6295_v44 = vpop.permute.xlu0 %2251  ;;  %v6307_v47 = vpop.permute.xlu1 %2249 }
  0xf6   : > { %v2300_v11 = vsel %vm2279_vm4, %v6295_v44, %v6290_v4 }
  0xf7   : > { %4995 = vmatmul.mubr.msk.bf16.vlgmr.msra.gmra.mrb[16].mxu1 %vm441_vm2, %v6148_v25 }
  0xf8   : > { %1631 = vmatpush1.bf16.msra.mxu1 %v1287_v15  ;;  %1662 = vmatprep.mubr.bf16.mxu1 %v7388_v52 }
  0xf9   : > { %5002 = vmatprep.subr.msk.bf16.mxu1 %vm445_vm1, %v7396_v28  ;;  %v6311_v39 = vpop.permute.xlu0 %2255  ;;  %v6324_v6 = vpop.permute.xlu1 %2261  ;;  %v2295_v28 = vsel %vm2279_vm4, %v6276_v5, %v6267_v13 }
  0xfb   : > { %5005 = vmatmul.mubr.msk.bf16.vlgmr.msra.gmra.mrb[12].mxu0 %vm441_vm2, %v6148_v25 }
  0xfc   : > { %1836 = vmatpush1.bf16.msra.mxu0 %v1317_v34  ;;  %1867 = vmatprep.mubr.bf16.mxu0 %v7388_v52  ;;  %v2296_v34 = vsel %vm2279_vm4, %v6267_v13, %v6261_v29  ;;  %v2301_v29 = vsel %vm2279_vm4, %v6290_v4, %v6311_v39 }
  0xfd   : > { %5012 = vmatprep.subr.msk.bf16.mxu0 %vm445_vm1, %v7398_v43  ;;  %v6329_v63 = vpop.permute.xlu0 %2259  ;;  %v6346_v9 = vpop.permute.xlu1 %2257  ;;  %v2365_v58 = vsel %vm445_vm1, %v2296_v34, 0  ;;  %v2294_v43 = vsel %vm2279_vm4, %v6251_v60, %v6276_v5  ;;  %v2377_v5 = vsel %vm445_vm1, %v2300_v11, 0 }
  0xfe   : > { %v2303_v0 = vsel %vm2279_vm4, %v6346_v9, %v6329_v63  ;;  %v2302_v10 = vsel %vm2279_vm4, %v6311_v39, %v6346_v9 }
  0xff   : > { %4999 = vmatmul.mubr.msk.bf16.vlgmr.msra.gmra.mrb[20].mxu1 %vm441_vm2, %v6148_v25 }
 0x100   : > { %1713 = vmatpush1.bf16.msra.mxu1 %v1299_v2  ;;  %1744 = vmatprep.mubr.bf16.mxu1 %v7388_v52 }
 0x101   : > { %5006 = vmatprep.subr.msk.bf16.mxu1 %vm445_vm1, %v7400_v42  ;;  %v6350_v45 = vpop.permute.xlu0 %2263  ;;  %v6369_v36 = vpop.permute.xlu1 %2269  ;;  %v2359_v42 = vsel %vm445_vm1, %v2294_v43, 0 }
 0x102   : > { %v2305_v4 = vsel %vm2279_vm4, %v6324_v6, %v6350_v45 }
 0x103   : > { %5009 = vmatmul.mubr.msk.bf16.vlgmr.msra.gmra.mrb[16].mxu0 %vm441_vm2, %v6148_v25 }
 0x104   : > { %1918 = vmatpush1.bf16.msra.mxu0 %v1329_v55  ;;  %1949 = vmatprep.mubr.bf16.mxu0 %v7388_v52  ;;  %v2299_v55 = vsel %vm2279_vm4, %v6307_v47, %v6295_v44  ;;  %v2304_v44 = vsel %vm2279_vm4, %v6329_v63, %v6324_v6 }
 0x105   : > { %5152 = vmatprep.subr.bf16.mxu0 %v5469_v30  ;;  %v6372_v33 = vpop.permute.xlu0 %2267  ;;  %v6389_v18 = vpop.permute.xlu1 %2265 }
 0x106   : > { %v2308_v6 = vsel %vm2279_vm4, %v6372_v33, %v6369_v36  ;;  %v2306_v62 = vsel %vm2279_vm4, %v6350_v45, %v6389_v18 }
 0x107   : > { %5003 = vmatmul.mubr.msk.bf16.vlgmr.msra.gmra.mrb[24].mxu1 %vm441_vm2, %v6148_v25  ;;  %v2401_v63 = vsel %vm445_vm1, %v2308_v6, 0  ;;  %v2395_v9 = vsel %vm445_vm1, %v2306_v62, 0 }
 0x108   : > { %1795 = vmatpush1.bf16.msra.mxu1 %v1311_v8  ;;  %1826 = vmatprep.mubr.bf16.mxu1 %v7388_v52  ;;  %v2298_v8 = vsel %vm2279_vm4, %v6280_v56, %v6307_v47 }
 0x109   : > { %5010 = vmatprep.subr.msk.bf16.mxu1 %vm445_vm1, %v7403_v19  ;;  %v6393_v3 = vpop.permute.xlu0 %2271  ;;  %v6406_v15 = vpop.permute.xlu1 %2277  ;;  %v2371_v19 = vsel %vm445_vm1, %v2298_v8, 0 }
 0x10a   : > { %v2309_v47 = vsel %vm2279_vm4, %v6369_v36, %v6393_v3 }
 0x10b   : > { %5013 = vmatmul.mubr.msk.bf16.vlgmr.msra.gmra.mrb[20].mxu0 %vm441_vm2, %v6148_v25 }
 0x10c   : > { %5153 = vmatpush3.bf16.msra.mxu0 %v1341_v51  ;;  %5154 = vmatprep.mubr.msk.bf16.mxu0 %vm5470_vm3, %v5469_v30 }
 0x10d   : > { %5052 = vmatprep.subr.msk.bf16.mxu0 %vm445_vm1, %v2281_v23  ;;  %v6425_v53 = vpop.permute.xlu1 %3146  ;;  %v2389_v23 = vsel %vm445_vm1, %v2304_v44, 0 }
 0x10f   : > { %5007 = vmatmul.mubr.msk.bf16.vlgmr.msra.gmra.mrb[28].mxu1 %vm441_vm2, %v6148_v25 }
 0x110   : > { %1877 = vmatpush1.bf16.msra.mxu1 %v1323_v46  ;;  %1908 = vmatprep.mubr.bf16.mxu1 %v7388_v52 }
 0x111   : > { %5014 = vmatprep.subr.msk.bf16.mxu1 %vm445_vm1, %v7405_v54  ;;  %v6445_v2 = vpop.permute.xlu1 %3150  ;;  %v2383_v54 = vsel %vm445_vm1, %v2302_v10, 0 }
 0x113   : > { %5155 = vmatmul.mubr.msk.bf16.vlgmr.msra.gmra.mrb[24].mxu0 %vm441_vm2, %v6148_v25 }
 0x114   : > { %2416 = vmatpush1.bf16.msra.mxu0 %v2317_v27  ;;  %2447 = vmatprep.mubr.bf16.mxu0 %v7388_v52  ;;  %v2307_v27 = vsel %vm2279_vm4, %v6389_v18, %v6372_v33 }
 0x115   : > { %5056 = vmatprep.subr.msk.bf16.mxu0 %vm445_vm1, %v2285_v50  ;;  %v6466_v60 = vpop.permute.xlu1 %3154 }
 0x117   : > { %5011 = vmatmul.mubr.msk.bf16.vlgmr.msra.gmra.mrb[32].mxu1 %vm441_vm2, %v6148_v25 }
 0x118   : > { %1959 = vmatpush1.bf16.msra.mxu1 %v1335_v59  ;;  %1990 = vmatprep.mubr.bf16.mxu1 %v7388_v52 }
 0x119   : > { %5054 = vmatprep.subr.msk.bf16.mxu1 %vm445_vm1, %v2283_v41  ;;  %v6488_v51 = vpop.permute.xlu1 %3158 }
 0x11b   : > { %5053 = vmatmul.mubr.msk.bf16.vlgmr.msra.gmra.mrb[28].mxu0 %vm441_vm2, %v6355_v21 }
 0x11c   : > { %2498 = vmatpush1.bf16.msra.mxu0 %v2329_v20  ;;  %2529 = vmatprep.mubr.bf16.mxu0 %v7388_v52 }
 0x11d   : > { %5060 = vmatprep.subr.msk.bf16.mxu0 %vm445_vm1, %v2289_v17  ;;  %v6507_v46 = vpop.permute.xlu1 %3162 }
 0x11f   : > { %5015 = vmatmul.mubr.msk.bf16.vlgmr.msra.gmra.mrb[36].mxu1 %vm441_vm2, %v6148_v25  ;;  %v2286_v25 = vsel %vm2279_vm4, %v6189_v35, %v6218_v22  ;;  %v2353_v35 = vsel %vm445_vm1, %v2292_v26, 0  ;;  %v6414_v22 = vpop.permute.xlu0 %2275 }
 0x120   : > { %2457 = vmatpush1.bf16.msra.mxu1 %v2323_v48  ;;  %2488 = vmatprep.mubr.bf16.mxu1 %v7388_v52  ;;  %v2335_v61 = vsel %vm445_vm1, %v2286_v25, 0  ;;  %v2312_v37 = vsel %vm2279_vm4, %v6414_v22, %v6406_v15 }
 0x121   : > { %5058 = vmatprep.subr.msk.bf16.mxu1 %vm445_vm1, %v2287_v31  ;;  %v6522_v39 = vpop.permute.xlu1 %3166  ;;  %v2413_v20 = vsel %vm445_vm1, %v2312_v37, 0 }
 0x123   : > { %5057 = vmatmul.mubr.msk.bf16.vlgmr.msra.gmra.mrb[32].mxu0 %vm441_vm2, %v6355_v21  ;;  %v6437_v40 = vpop.permute.xlu0 %2273 }
 0x124   : > { %2580 = vmatpush1.bf16.msra.mxu0 %v2341_v7  ;;  %2611 = vmatprep.mubr.bf16.mxu0 %v7388_v52  ;;  %v2311_v59 = vsel %vm2279_vm4, %v6437_v40, %v6414_v22  ;;  %v2310_v1 = vsel %vm2279_vm4, %v6393_v3, %v6437_v40 }
 0x125   : > { %5064 = vmatprep.subr.msk.bf16.mxu0 %vm445_vm1, %v2293_v14  ;;  %v6539_v41 = vpop.permute.xlu1 %3170  ;;  %v2407_v48 = vsel %vm445_vm1, %v2310_v1, 0 }
 0x127   : > { %5055 = vmatmul.mubr.msk.bf16.vlgmr.msra.gmra.mrb[4].mxu1 %vm441_vm2, %v6355_v21  ;;  %v6449_v13 = vpop.permute.xlu0 %3148 }
 0x128   : > { %2539 = vmatpush1.bf16.msra.mxu1 %v2335_v61  ;;  %2570 = vmatprep.mubr.bf16.mxu1 %v7388_v52  ;;  %v3216_v17 = vsel %vm3214_vm5, %v6449_v13, %v6445_v2  ;;  %v3215_v16 = vsel %vm3214_vm5, %v6425_v53, %v6449_v13  ;;  %v6596_v61 = vld [vmem:[%s7348_s2 + $0x6] sm:$0x3] }
 0x129   : > { %5062 = vmatprep.subr.msk.bf16.mxu1 %vm445_vm1, %v2291_v24  ;;  %v6557_v36 = vpop.permute.xlu1 %3174  ;;  %v3252_v7 = vsel %vm445_vm1, %v3215_v16, 0 }
 0x12b   : > { %5061 = vmatmul.mubr.msk.bf16.vlgmr.msra.gmra.mrb[0].mxu0 %vm441_vm2, %v6355_v21  ;;  %v6470_v57 = vpop.permute.xlu0 %3152 }
 0x12c   : > { %2662 = vmatpush1.bf16.msra.mxu0 %v2353_v35  ;;  %2693 = vmatprep.mubr.bf16.mxu0 %v7388_v52  ;;  %v3218_v31 = vsel %vm3214_vm5, %v6470_v57, %v6466_v60  ;;  %v3217_v14 = vsel %vm3214_vm5, %v6445_v2, %v6470_v57 }
 0x12d   : > { %5068 = vmatprep.subr.msk.bf16.mxu0 %vm445_vm1, %v2297_v32  ;;  %v6578_v3 = vpop.permute.xlu1 %3178  ;;  %v3258_v26 = vsel %vm445_vm1, %v3217_v14, 0 }
 0x12f   : > { %5059 = vmatmul.mubr.msk.bf16.vlgmr.msra.gmra.mrb[12].mxu1 %vm441_vm2, %v6355_v21  ;;  %v6493_v56 = vpop.permute.xlu0 %3156 }
 0x130   : > { %2621 = vmatpush1.bf16.msra.mxu1 %v2347_v38  ;;  %2652 = vmatprep.mubr.bf16.mxu1 %v7388_v52  ;;  %v3220_v18 = vsel %vm3214_vm5, %v6493_v56, %v6488_v51  ;;  %v3219_v24 = vsel %vm3214_vm5, %v6466_v60, %v6493_v56 }
 0x131   : > { %5066 = vmatprep.subr.msk.bf16.mxu1 %vm445_vm1, %v2295_v28  ;;  %v3183_v35 = vpop.permute.xlu1 %3182  ;;  %v3264_v22 = vsel %vm445_vm1, %v3219_v24, 0 }
 0x133   : > { %5065 = vmatmul.mubr.msk.bf16.vlgmr.msra.gmra.mrb[4].mxu0 %vm441_vm2, %v6355_v21  ;;  %v6510_v12 = vpop.permute.xlu0 %3160 }
 0x134   : > { %2744 = vmatpush1.bf16.msra.mxu0 %v2365_v58  ;;  %2775 = vmatprep.mubr.bf16.mxu0 %v7388_v52  ;;  %v3222_v15 = vsel %vm3214_vm5, %v6510_v12, %v6507_v46  ;;  %v3221_v49 = vsel %vm3214_vm5, %v6488_v51, %v6510_v12 }
 0x135   : > { %5072 = vmatprep.subr.msk.bf16.mxu0 %vm445_vm1, %v2301_v29  ;;  %v3270_v53 = vsel %vm445_vm1, %v3221_v49, 0  ;;  %v3187_v40 = vpop.permute.xlu1 %3186 }
 0x137   : > { %5063 = vmatmul.mubr.msk.bf16.vlgmr.msra.gmra.mrb[16].mxu1 %vm441_vm2, %v6355_v21  ;;  %v3165_v50 = vpop.permute.xlu0 %3164 }
 0x138   : > { %2703 = vmatpush1.bf16.msra.mxu1 %v2359_v42  ;;  %2734 = vmatprep.mubr.bf16.mxu1 %v7388_v52  ;;  %v3223_v34 = vsel %vm3214_vm5, %v6507_v46, %v3165_v50 }
 0x139   : > { %5070 = vmatprep.subr.msk.bf16.mxu1 %vm445_vm1, %v2299_v55  ;;  %v3276_v13 = vsel %vm445_vm1, %v3223_v34, 0  ;;  %v3191_v60 = vpop.permute.xlu1 %3190 }
 0x13b   : > { %5069 = vmatmul.mubr.msk.bf16.vlgmr.msra.gmra.mrb[8].mxu0 %vm441_vm2, %v6355_v21  ;;  %v3169_v45 = vpop.permute.xlu0 %3168 }
 0x13c   : > { %2826 = vmatpush1.bf16.msra.mxu0 %v2377_v5  ;;  %2857 = vmatprep.mubr.bf16.mxu0 %v7388_v52  ;;  %v3226_v38 = vsel %vm3214_vm5, %v3169_v45, %v6539_v41  ;;  %v3225_v11 = vsel %vm3214_vm5, %v6522_v39, %v3169_v45 }
 0x13d   : > { %5076 = vmatprep.subr.msk.bf16.mxu0 %vm445_vm1, %v2305_v4  ;;  %v3282_v42 = vsel %vm445_vm1, %v3225_v11, 0  ;;  %v3195_v51 = vpop.permute.xlu1 %3194 }
 0x13f   : > { %5067 = vmatmul.mubr.msk.bf16.vlgmr.msra.gmra.mrb[20].mxu1 %vm441_vm2, %v6355_v21  ;;  %v3173_v33 = vpop.permute.xlu0 %3172 }
 0x140   : > { %2785 = vmatpush1.bf16.msra.mxu1 %v2371_v19  ;;  %2816 = vmatprep.mubr.bf16.mxu1 %v7388_v52  ;;  %v3228_v55 = vsel %vm3214_vm5, %v3173_v33, %v6557_v36  ;;  %v3227_v57 = vsel %vm3214_vm5, %v6539_v41, %v3173_v33 }
 0x141   : > { %5074 = vmatprep.subr.msk.bf16.mxu1 %vm445_vm1, %v2303_v0  ;;  %v3288_v8 = vsel %vm445_vm1, %v3227_v57, 0  ;;  %v3199_v46 = vpop.permute.xlu1 %3198 }
 0x143   : > { %5073 = vmatmul.mubr.msk.bf16.vlgmr.msra.gmra.mrb[12].mxu0 %vm441_vm2, %v6355_v21  ;;  %v3177_v25 = vpop.permute.xlu0 %3176 }
 0x144   : > { %2908 = vmatpush1.bf16.msra.mxu0 %v2389_v23  ;;  %2939 = vmatprep.mubr.bf16.mxu0 %v7388_v52  ;;  %v3230_v4 = vsel %vm3214_vm5, %v3177_v25, %v6578_v3  ;;  %v3229_v44 = vsel %vm3214_vm5, %v6557_v36, %v3177_v25 }
 0x145   : > { %5080 = vmatprep.subr.msk.bf16.mxu0 %vm445_vm1, %v2309_v47  ;;  %v3294_v56 = vsel %vm445_vm1, %v3229_v44, 0  ;;  %v3203_v41 = vpop.permute.xlu1 %3202 }
 0x147   : > { %5071 = vmatmul.mubr.msk.bf16.vlgmr.msra.gmra.mrb[24].mxu1 %vm441_vm2, %v6355_v21  ;;  %v3181_v32 = vpop.permute.xlu0 %3180 }
 0x148   : > { %2867 = vmatpush1.bf16.msra.mxu1 %v2383_v54  ;;  %2898 = vmatprep.mubr.bf16.mxu1 %v7388_v52  ;;  %v3232_v0 = vsel %vm3214_vm5, %v3181_v32, %v3183_v35  ;;  %v3231_v23 = vsel %vm3214_vm5, %v6578_v3, %v3181_v32 }
 0x149   : > { %5078 = vmatprep.subr.msk.bf16.mxu1 %vm445_vm1, %v2307_v27  ;;  %v3300_v10 = vsel %vm445_vm1, %v3231_v23, 0  ;;  %v3207_v36 = vpop.permute.xlu1 %3206 }
 0x14b   : > { %5077 = vmatmul.mubr.msk.bf16.vlgmr.msra.gmra.mrb[16].mxu0 %vm441_vm2, %v6355_v21  ;;  %v3185_v29 = vpop.permute.xlu0 %3184 }
 0x14c   : > { %2990 = vmatpush1.bf16.msra.mxu0 %v2401_v63  ;;  %3021 = vmatprep.mubr.bf16.mxu0 %v7388_v52  ;;  %v3234_v47 = vsel %vm3214_vm5, %v3185_v29, %v3187_v40  ;;  %v3233_v27 = vsel %vm3214_vm5, %v3183_v35, %v3185_v29 }
 0x14d   : > { %5158 = vmatprep.subr.bf16.mxu0 %v5469_v30 }
 0x14f   : > { %5075 = vmatmul.mubr.msk.bf16.vlgmr.msra.gmra.mrb[28].mxu1 %vm441_vm2, %v6355_v21  ;;  %v3189_v5 = vpop.permute.xlu0 %3188 }
 0x150   : > { %2949 = vmatpush1.bf16.msra.mxu1 %v2395_v9  ;;  %2980 = vmatprep.mubr.bf16.mxu1 %v7388_v52  ;;  %v3236_v54 = vsel %vm3214_vm5, %v3189_v5, %v3191_v60 }
 0x151   : > { %5082 = vmatprep.subr.msk.bf16.mxu1 %vm445_vm1, %v2311_v59  ;;  %v3235_v59 = vsel %vm3214_vm5, %v3187_v40, %v3189_v5 }
 0x152   : > { %v3312_v45 = vsel %vm445_vm1, %v3235_v59, 0 }
 0x153   : > { %5081 = vmatmul.mubr.msk.bf16.vlgmr.msra.gmra.mrb[20].mxu0 %vm441_vm2, %v6355_v21  ;;  %v3193_v19 = vpop.permute.xlu0 %3192 }
 0x154   : > { %5159 = vmatpush3.bf16.msra.mxu0 %v2413_v20  ;;  %5160 = vmatprep.mubr.msk.bf16.mxu0 %vm5470_vm3, %v5469_v30  ;;  %v3238_v37 = vsel %vm3214_vm5, %v3193_v19, %v3195_v51  ;;  %v3237_v20 = vsel %vm3214_vm5, %v3191_v60, %v3193_v19 }
 0x155   : > { %5086 = vmatprep.subr.msk.bf16.mxu0 %vm445_vm1, %v3216_v17  ;;  %v3318_v1 = vsel %vm445_vm1, %v3237_v20, 0 }
 0x157   : > { %5079 = vmatmul.mubr.msk.bf16.vlgmr.msra.gmra.mrb[32].mxu1 %vm441_vm2, %v6355_v21  ;;  %v3197_v12 = vpop.permute.xlu0 %3196 }
 0x158   : > { %3031 = vmatpush1.bf16.msra.mxu1 %v2407_v48  ;;  %3062 = vmatprep.mubr.bf16.mxu1 %v7388_v52  ;;  %v3240_v17 = vsel %vm3214_vm5, %v3197_v12, %v3199_v46  ;;  %v3239_v16 = vsel %vm3214_vm5, %v3195_v51, %v3197_v12 }
 0x159   : > { %5088 = vmatprep.subr.msk.bf16.mxu1 %vm445_vm1, %v3218_v31  ;;  %v3324_v48 = vsel %vm445_vm1, %v3239_v16, 0 }
 0x15b   : > { %5161 = vmatmul.mubr.msk.bf16.vlgmr.msra.gmra.mrb[24].mxu0 %vm441_vm2, %v6355_v21  ;;  %v3201_v9 = vpop.permute.xlu0 %3200 }
 0x15c   : > { %3351 = vmatpush1.bf16.msra.mxu0 %v3252_v7  ;;  %3382 = vmatprep.mubr.bf16.mxu0 %v7388_v52  ;;  %v3242_v31 = vsel %vm3214_vm5, %v3201_v9, %v3203_v41  ;;  %v3241_v7 = vsel %vm3214_vm5, %v3199_v46, %v3201_v9 }
 0x15d   : > { %5090 = vmatprep.subr.msk.bf16.mxu0 %vm445_vm1, %v3220_v18  ;;  %v3211_v18 = vpop.permute.xlu1 %3210  ;;  %v3330_v25 = vsel %vm445_vm1, %v3241_v7, 0 }
 0x15f   : > { %5083 = vmatmul.mubr.msk.bf16.vlgmr.msra.gmra.mrb[36].mxu1 %vm441_vm2, %v6355_v21  ;;  %v3224_v21 = vsel %vm3214_vm5, %v3165_v50, %v6522_v39  ;;  %v3306_v50 = vsel %vm445_vm1, %v3233_v27, 0  ;;  %v3205_v33 = vpop.permute.xlu0 %3204 }
 0x160   : > { %3392 = vmatpush1.bf16.msra.mxu1 %v3258_v26  ;;  %3423 = vmatprep.mubr.bf16.mxu1 %v7388_v52  ;;  %v3244_v14 = vsel %vm3214_vm5, %v3205_v33, %v3207_v36  ;;  %v3243_v26 = vsel %vm3214_vm5, %v3203_v41, %v3205_v33 }
 0x161   : > { %5092 = vmatprep.subr.msk.bf16.mxu1 %vm445_vm1, %v3222_v15  ;;  %v3336_v15 = vsel %vm445_vm1, %v3243_v26, 0 }
 0x163   : > { %5087 = vmatmul.mubr.msk.bf16.vlgmr.msra.gmra.mrb[28].mxu0 %vm441_vm2, %v6596_v61  ;;  %v3209_v3 = vpop.permute.xlu0 %3208 }
 0x164   : > { %3433 = vmatpush1.bf16.msra.mxu0 %v3264_v22  ;;  %3464 = vmatprep.mubr.bf16.mxu0 %v7388_v52  ;;  %v3246_v24 = vsel %vm3214_vm5, %v3209_v3, %v3211_v18  ;;  %v3245_v35 = vsel %vm3214_vm5, %v3207_v36, %v3209_v3 }
 0x165   : > { %5094 = vmatprep.subr.msk.bf16.mxu0 %vm445_vm1, %v3224_v21  ;;  %v3342_v32 = vsel %vm445_vm1, %v3245_v35, 0 }
 0x166   : > { %v6613_v28 = vpop.f32.mrb[0].mxu1 }
 0x167   : > { %5089 = vmatmul.mubr.msk.bf16.vlgmr.msra.gmra.mrb[4].mxu1 %vm441_vm2, %v6596_v61  ;;  %v6619_v58 = vpop.f32.mrb[1].mxu1  ;;  %v3213_v22 = vpop.permute.xlu0 %3212 }
 0x168   : > { %3474 = vmatpush1.bf16.msra.mxu1 %v3270_v53  ;;  %3505 = vmatprep.mubr.bf16.mxu1 %v7388_v52  ;;  %v583_v2 = vpop.f32.mrb[2].mxu1  ;;  %v3247_v49 = vsel %vm3214_vm5, %v3211_v18, %v3213_v22  ;;  %v4089_v53 = vlaneseq }
 0x169   : > { %v584_v43 = vpop.f32.mrb[3].mxu1  ;;  %5096 = vmatprep.subr.msk.bf16.mxu1 %vm445_vm1, %v3226_v38  ;;  %v3348_v21 = vsel %vm445_vm1, %v3247_v49, 0  ;;  %v6731_v38 = vld [vmem:[%s7347_s1] sm:$0xff] }
 0x16a   : > { %v6723_v34 = vshrl.u32 %v4089_v53, 7 }
 0x16b   : > { %5091 = vmatmul.mubr.msk.bf16.vlgmr.msra.gmra.mrb[32].mxu0 %vm441_vm2, %v6596_v61 }
 0x16c   : > { %3515 = vmatpush1.bf16.msra.mxu0 %v3276_v13  ;;  %3546 = vmatprep.mubr.bf16.mxu0 %v7388_v52  ;;  %v6734_v40 = vsub.s32 1, %v6723_v34  ;;  %v6740_v29 = vsub.s32 3, %v6723_v34  ;;  %v6767_v51 = vsub.s32 6, %v6723_v34 }
 0x16d   : > { %5098 = vmatprep.subr.msk.bf16.mxu0 %vm445_vm1, %v3228_v55 }
 0x16e   : > { %v4096_v13 = vrot.slane %v6731_v38, %v6734_v40  ;;  %v4104_v57 = vrot.slane %v6731_v38, %v6740_v29 }
 0x16f   : > { %5093 = vmatmul.mubr.msk.bf16.vlgmr.msra.gmra.mrb[12].mxu1 %vm441_vm2, %v6596_v61 }
 0x170   : > { %3556 = vmatpush1.bf16.msra.mxu1 %v3282_v42  ;;  %3587 = vmatprep.mubr.bf16.mxu1 %v7388_v52  ;;  %v6752_v42 = vsub.s32 4, %v6723_v34 }
 0x171   : > { %5100 = vmatprep.subr.msk.bf16.mxu1 %vm445_vm1, %v3230_v4 }
 0x173   : > { %5095 = vmatmul.mubr.msk.bf16.vlgmr.msra.gmra.mrb[0].mxu0 %vm441_vm2, %v6596_v61 }
 0x174   : > { %3597 = vmatpush1.bf16.msra.mxu0 %v3288_v8  ;;  %3628 = vmatprep.mubr.bf16.mxu0 %v7388_v52 }
 0x175   : > { %5102 = vmatprep.subr.msk.bf16.mxu0 %vm445_vm1, %v3232_v0  ;;  %v6764_v0 = vsub.s32 5, %v6723_v34 }
 0x177   : > { %5097 = vmatmul.mubr.msk.bf16.vlgmr.msra.gmra.mrb[16].mxu1 %vm441_vm2, %v6596_v61  ;;  %v4112_v20 = vrot.slane %v6731_v38, %v6764_v0 }
 0x178   : > { %3638 = vmatpush1.bf16.msra.mxu1 %v3294_v56  ;;  %3669 = vmatprep.mubr.bf16.mxu1 %v7388_v52 }
 0x179   : > { %5104 = vmatprep.subr.msk.bf16.mxu1 %vm445_vm1, %v3234_v47  ;;  %v4108_v47 = vrot.slane %v6731_v38, %v6752_v42 }
 0x17a   : > { %v6658_v6 = vpop.f32.mrb[8].mxu1 }
 0x17b   : > { %5099 = vmatmul.mubr.msk.bf16.vlgmr.msra.gmra.mrb[4].mxu0 %vm441_vm2, %v6596_v61  ;;  %v6664_v39 = vpop.f32.mrb[9].mxu1 }
 0x17c   : > { %3679 = vmatpush1.bf16.msra.mxu0 %v3300_v10  ;;  %v665_v63 = vpop.f32.mrb[10].mxu1  ;;  %3710 = vmatprep.mubr.bf16.mxu0 %v7388_v52 }
 0x17d   : > { %v666_v62 = vpop.f32.mrb[11].mxu1  ;;  %5106 = vmatprep.subr.msk.bf16.mxu0 %vm445_vm1, %v3236_v54  ;;  %v6778_v54 = vsub.s32 7, %v6723_v34 }
 0x17f   : > { %5101 = vmatmul.mubr.msk.bf16.vlgmr.msra.gmra.mrb[20].mxu1 %vm441_vm2, %v6596_v61  ;;  %v4120_v3 = vrot.slane %v6731_v38, %v6778_v54 }
 0x180   : > { %3720 = vmatpush1.bf16.msra.mxu1 %v3306_v50  ;;  %3751 = vmatprep.mubr.bf16.mxu1 %v7388_v52 }
 0x181   : > { %5108 = vmatprep.subr.msk.bf16.mxu1 %vm445_vm1, %v3238_v37 }
 0x183   : > { %5103 = vmatmul.mubr.msk.bf16.vlgmr.msra.gmra.mrb[8].mxu0 %vm441_vm2, %v6596_v61 }
 0x184   : > { %3761 = vmatpush1.bf16.msra.mxu0 %v3312_v45  ;;  %3792 = vmatprep.mubr.bf16.mxu0 %v7388_v52 }
 0x185   : > { %5110 = vmatprep.subr.msk.bf16.mxu0 %vm445_vm1, %v3240_v17  ;;  %v4116_v17 = vrot.slane %v6731_v38, %v6767_v51 }
 0x187   : > { %5105 = vmatmul.mubr.msk.bf16.vlgmr.msra.gmra.mrb[24].mxu1 %vm441_vm2, %v6596_v61 }
 0x188   : > { %3802 = vmatpush1.bf16.msra.mxu1 %v3318_v1  ;;  %3833 = vmatprep.mubr.bf16.mxu1 %v7388_v52 }
 0x189   : > { %5112 = vmatprep.subr.msk.bf16.mxu1 %vm445_vm1, %v3242_v31 }
 0x18b   : > { %5107 = vmatmul.mubr.msk.bf16.vlgmr.msra.gmra.mrb[12].mxu0 %vm441_vm2, %v6596_v61 }
 0x18c   : > { %3843 = vmatpush1.bf16.msra.mxu0 %v3324_v48  ;;  %3874 = vmatprep.mubr.bf16.mxu0 %v7388_v52  ;;  %v6794_v48 = vld [vmem:[%s7347_s1 + $0x8] sm:$0xff] }
 0x18d   : > { %5114 = vmatprep.subr.msk.bf16.mxu0 %vm445_vm1, %v3244_v14 }
 0x18f   : > { %5109 = vmatmul.mubr.msk.bf16.vlgmr.msra.gmra.mrb[28].mxu1 %vm441_vm2, %v6596_v61 }
 0x190   : > { %3884 = vmatpush1.bf16.msra.mxu1 %v3330_v25  ;;  %3915 = vmatprep.mubr.bf16.mxu1 %v7388_v52 }
 0x191   : > { %5116 = vmatprep.subr.msk.bf16.mxu1 %vm445_vm1, %v3246_v24 }
 0x193   : > { %5111 = vmatmul.mubr.msk.bf16.vlgmr.msra.gmra.mrb[16].mxu0 %vm441_vm2, %v6596_v61 }
 0x194   : > { %3925 = vmatpush1.bf16.msra.mxu0 %v3336_v15  ;;  %3956 = vmatprep.mubr.bf16.mxu0 %v7388_v52 }
 0x195   : > { %5164 = vmatprep.subr.bf16.mxu0 %v5469_v30 }
 0x197   : > { %5113 = vmatmul.mubr.msk.bf16.vlgmr.msra.gmra.mrb[32].mxu1 %vm441_vm2, %v6596_v61 }
 0x198   : > { %3966 = vmatpush1.bf16.msra.mxu1 %v3342_v32  ;;  %3997 = vmatprep.mubr.bf16.mxu1 %v7388_v52  ;;  %v6726_v52 = vsub.s32 0, %v6723_v34 }
 0x19a   : > { %v4124_v32 = vrot.slane %v6794_v48, %v6726_v52 }
 0x19b   : > { %5115 = vmatmul.mubr.msk.bf16.vlgmr.msra.gmra.mrb[20].mxu0 %vm441_vm2, %v6596_v61 }
 0x19c   : > { %5165 = vmatpush3.bf16.msra.mxu0 %v3348_v21  ;;  %5166 = vmatprep.mubr.msk.bf16.mxu0 %vm5470_vm3, %v5469_v30  ;;  %v6737_v30 = vsub.s32 2, %v6723_v34 }
 0x19e   : > { %v4100_v55 = vrot.slane %v6731_v38, %v6737_v30 }
 0x19f   : > { %5117 = vmatmul.mubr.msk.bf16.vlgmr.msra.gmra.mrb[36].mxu1 %vm441_vm2, %v6596_v61 }
 0x1a3   : > { %5167 = vmatmul.mubr.msk.bf16.vlgmr.msra.gmra.mrb[24].mxu0 %vm441_vm2, %v6596_v61  ;;  %v4092_v61 = vrot.slane %v6731_v38, %v6726_v52 }
 0x236   : > { %v3384_v2 = vpop.f32.mrb[28].mxu0 }
 0x237   : > { %v6747_v43 = vadd.f32 %v3384_v2, %v6613_v28  ;;  %v3386_v11 = vpop.f32.mrb[29].mxu0 }
 0x238   : > { %v6755_v60 = vadd.f32 %v3386_v11, %v6619_v58  ;;  %v3388_v5 = vpop.f32.mrb[30].mxu0 }
 0x239   : > { %v4254_v4 = vmul.f32 %v6747_v43, %v4092_v61  ;;  %v3389_v8 = vpop.f32.mrb[31].mxu0 }
 0x23a   : > { %v4255_v28 = vmul.f32 %v6755_v60, %v4096_v13  ;;  %v6761_v44 = vpop.f32.mrb[4].mxu1 }
 0x23b   : > { %v4288_v58 = vsel %vm4287_vm6, %v4254_v4, 0.0  ;;  %v4356_v19 = vmul.f32 %v4254_v4, %v4254_v4  ;;  %v4256_v56 = vmul.f32 %v4100_v55, %v6761_v44  ;;  %v6771_v23 = vpop.f32.mrb[5].mxu1 }
 0x23c   : > { %v4289_v10 = vsel %vm4287_vm6, %v4255_v28, 0.0  ;;  %v4357_v46 = vmul.f32 %v4255_v28, %v4255_v28  ;;  %v4257_v12 = vmul.f32 %v4104_v57, %v6771_v23  ;;  %v3429_v27 = vpop.f32.mrb[6].mxu1 }
 0x23d   : > { %v4389_v63 = vsel %vm4287_vm6, %v4356_v19, 0.0  ;;  %v4290_v50 = vadd.f32 %v4289_v10, %v4288_v58  ;;  %v4291_v62 = vsel %vm4287_vm6, %v4256_v56, 0.0  ;;  %v4358_v59 = vmul.f32 %v4256_v56, %v4256_v56  ;;  %v3430_v37 = vpop.f32.mrb[7].mxu1 }
 0x23e   : > { %v4390_v41 = vsel %vm4287_vm6, %v4357_v46, 0.0  ;;  %v4359_v9 = vmul.f32 %v4257_v12, %v4257_v12  ;;  %v3466_v45 = vpop.f32.mrb[32].mxu0  ;;  %v4293_v7 = vsel %vm4287_vm6, %v4257_v12, 0.0  ;;  %v4132_v27 = vrot.slane %v6794_v48, %v6737_v30 }
 0x23f   : > { %v4391_v1 = vadd.f32 %v4390_v41, %v4389_v63  ;;  %v4292_v36 = vadd.f32 %v4291_v62, %v4290_v50  ;;  %v4392_v33 = vsel %vm4287_vm6, %v4358_v59, 0.0  ;;  %v6789_v16 = vadd.f32 %v3466_v45, %v6658_v6  ;;  %v3468_v31 = vpop.f32.mrb[33].mxu0 }
 0x240   : > { %v6798_v14 = vadd.f32 %v3468_v31, %v6664_v39  ;;  %v3470_v18 = vpop.f32.mrb[34].mxu0  ;;  %v4394_v15 = vsel %vm4287_vm6, %v4359_v9, 0.0  ;;  %v4128_v39 = vrot.slane %v6794_v48, %v6734_v40  ;;  %v4136_v37 = vrot.slane %v6794_v48, %v6740_v29 }
 0x241   : > { %v4393_v25 = vadd.f32 %v4392_v33, %v4391_v1  ;;  %v4294_v26 = vadd.f32 %v4293_v7, %v4292_v36  ;;  %v4258_v6 = vmul.f32 %v6789_v16, %v4108_v47  ;;  %v3471_v24 = vpop.f32.mrb[35].mxu0  ;;  %v4140_v33 = vrot.slane %v6794_v48, %v6752_v42 }
 0x242   : > { %v4259_v35 = vmul.f32 %v6798_v14, %v4112_v20  ;;  %v6805_v22 = vpop.f32.mrb[12].mxu1 }
 0x243   : > { %v4395_v49 = vadd.f32 %v4394_v15, %v4393_v25  ;;  %v4295_v21 = vsel %vm4287_vm6, %v4258_v6, 0.0  ;;  %v4360_v53 = vmul.f32 %v4258_v6, %v4258_v6  ;;  %v4260_v38 = vmul.f32 %v4116_v17, %v6805_v22  ;;  %v6813_v61 = vpop.f32.mrb[13].mxu1 }
 0x244   : > { %v4296_v2 = vadd.f32 %v4295_v21, %v4294_v26  ;;  %v4297_v13 = vsel %vm4287_vm6, %v4259_v35, 0.0  ;;  %v4361_v11 = vmul.f32 %v4259_v35, %v4259_v35  ;;  %v4261_v55 = vmul.f32 %v4120_v3, %v6813_v61  ;;  %v3511_v5 = vpop.f32.mrb[14].mxu1 }
 0x245   : > { %v4396_v57 = vsel %vm4287_vm6, %v4360_v53, 0.0  ;;  %v4362_v4 = vmul.f32 %v4260_v38, %v4260_v38  ;;  %v3512_v8 = vpop.f32.mrb[15].mxu1  ;;  %v4299_v47 = vsel %vm4287_vm6, %v4260_v38, 0.0  ;;  %v4144_v35 = vrot.slane %v6794_v48, %v6764_v0 }
 0x246   : > { %v4397_v28 = vadd.f32 %v4396_v57, %v4395_v49  ;;  %v4298_v58 = vadd.f32 %v4297_v13, %v4296_v2  ;;  %v4398_v19 = vsel %vm4287_vm6, %v4361_v11, 0.0  ;;  %v6819_v56 = vpop.f32.mrb[0].mxu0  ;;  %v4363_v10 = vmul.f32 %v4261_v55, %v4261_v55  ;;  %v6858_v8 = vld [vmem:[%s7347_s1 + $0x10] sm:$0xff] }
 0x247   : > { %v4262_v46 = vmul.f32 %v4124_v32, %v6819_v56  ;;  %v6823_v12 = vpop.f32.mrb[1].mxu0  ;;  %v4400_v41 = vsel %vm4287_vm6, %v4362_v4, 0.0  ;;  %v4301_v9 = vsel %vm4287_vm6, %v4261_v55, 0.0  ;;  %v4148_v13 = vrot.slane %v6794_v48, %v6767_v51 }
 0x248   : > { %v4399_v63 = vadd.f32 %v4398_v19, %v4397_v28  ;;  %v4300_v50 = vadd.f32 %v4299_v47, %v4298_v58  ;;  %v4263_v62 = vmul.f32 %v4128_v39, %v6823_v12  ;;  %v3552_v59 = vpop.f32.mrb[2].mxu0  ;;  %v4402_v31 = vsel %vm4287_vm6, %v4363_v10, 0.0 }
 0x249   : > { %v4364_v45 = vmul.f32 %v4262_v46, %v4262_v46  ;;  %v3553_v20 = vpop.f32.mrb[3].mxu0  ;;  %v4303_v7 = vsel %vm4287_vm6, %v4262_v46, 0.0  ;;  %v4152_v10 = vrot.slane %v6794_v48, %v6778_v54 }
 0x24a   : > { %v4401_v17 = vadd.f32 %v4400_v41, %v4399_v63  ;;  %v4302_v1 = vadd.f32 %v4301_v9, %v4300_v50  ;;  %v6832_v36 = vpop.f32.mrb[16].mxu1  ;;  %v4365_v18 = vmul.f32 %v4263_v62, %v4263_v62  ;;  %v4305_v39 = vsel %vm4287_vm6, %v4263_v62, 0.0 }
 0x24b   : > { %v4264_v3 = vmul.f32 %v4132_v27, %v6832_v36  ;;  %v6839_v25 = vpop.f32.mrb[17].mxu1  ;;  %v4404_v32 = vsel %vm4287_vm6, %v4364_v45, 0.0  ;;  %v4156_v41 = vrot.slane %v6858_v8, %v6726_v52 }
 0x24c   : > { %v4403_v26 = vadd.f32 %v4402_v31, %v4401_v17  ;;  %v4304_v6 = vadd.f32 %v4303_v7, %v4302_v1  ;;  %v4265_v24 = vmul.f32 %v4136_v37, %v6839_v25  ;;  %v3593_v15 = vpop.f32.mrb[18].mxu1  ;;  %v4406_v11 = vsel %vm4287_vm6, %v4365_v18, 0.0 }
 0x24d   : > { %v4366_v49 = vmul.f32 %v4264_v3, %v4264_v3  ;;  %v3594_v21 = vpop.f32.mrb[19].mxu1  ;;  %v4307_v55 = vsel %vm4287_vm6, %v4264_v3, 0.0  ;;  %v4160_v18 = vrot.slane %v6858_v8, %v6734_v40 }
 0x24e   : > { %v4405_v53 = vadd.f32 %v4404_v32, %v4403_v26  ;;  %v4306_v38 = vadd.f32 %v4305_v39, %v4304_v6  ;;  %v6846_v2 = vpop.f32.mrb[4].mxu0  ;;  %v4367_v5 = vmul.f32 %v4265_v24, %v4265_v24  ;;  %v4309_v27 = vsel %vm4287_vm6, %v4265_v24, 0.0 }
 0x24f   : > { %v4266_v57 = vmul.f32 %v4140_v33, %v6846_v2  ;;  %v6853_v4 = vpop.f32.mrb[5].mxu0  ;;  %v4408_v46 = vsel %vm4287_vm6, %v4366_v49, 0.0  ;;  %v4164_v39 = vrot.slane %v6858_v8, %v6737_v30 }
 0x250   : > { %v4407_v28 = vadd.f32 %v4406_v11, %v4405_v53  ;;  %v4308_v58 = vadd.f32 %v4307_v55, %v4306_v38  ;;  %v4267_v19 = vmul.f32 %v4144_v35, %v6853_v4  ;;  %v3634_v47 = vpop.f32.mrb[6].mxu0  ;;  %v4410_v9 = vsel %vm4287_vm6, %v4367_v5, 0.0 }
 0x251   : > { %v4368_v63 = vmul.f32 %v4266_v57, %v4266_v57  ;;  %v3635_v50 = vpop.f32.mrb[7].mxu0  ;;  %v4311_v45 = vsel %vm4287_vm6, %v4266_v57, 0.0 }
 0x252   : > { %v4409_v62 = vadd.f32 %v4408_v46, %v4407_v28  ;;  %v4310_v59 = vadd.f32 %v4309_v27, %v4308_v58  ;;  %v6865_v37 = vpop.f32.mrb[20].mxu1  ;;  %v4369_v20 = vmul.f32 %v4267_v19, %v4267_v19  ;;  %v4313_v26 = vsel %vm4287_vm6, %v4267_v19, 0.0 }
 0x253   : > { %v4268_v48 = vmul.f32 %v4148_v13, %v6865_v37  ;;  %v6872_v17 = vpop.f32.mrb[21].mxu1  ;;  %v4412_v3 = vsel %vm4287_vm6, %v4368_v63, 0.0  ;;  %v4168_v28 = vrot.slane %v6858_v8, %v6740_v29  ;;  %v4172_v50 = vrot.slane %v6858_v8, %v6752_v42 }
 0x254   : > { %v4411_v1 = vadd.f32 %v4410_v9, %v4409_v62  ;;  %v4312_v33 = vadd.f32 %v4311_v45, %v4310_v59  ;;  %v4269_v31 = vmul.f32 %v4152_v10, %v6872_v17  ;;  %v3675_v7 = vpop.f32.mrb[22].mxu1  ;;  %v4414_v49 = vsel %vm4287_vm6, %v4369_v20, 0.0 }
 0x255   : > { %v4370_v6 = vmul.f32 %v4268_v48, %v4268_v48  ;;  %v3676_v24 = vpop.f32.mrb[23].mxu1  ;;  %v4315_v21 = vsel %vm4287_vm6, %v4268_v48, 0.0 }
 0x256   : > { %v4413_v15 = vadd.f32 %v4412_v3, %v4411_v1  ;;  %v4314_v35 = vadd.f32 %v4313_v26, %v4312_v33  ;;  %v6879_v32 = vpop.f32.mrb[8].mxu0  ;;  %v4371_v53 = vmul.f32 %v4269_v31, %v4269_v31  ;;  %v4317_v19 = vsel %vm4287_vm6, %v4269_v31, 0.0 }
 0x257   : > { %v4270_v38 = vmul.f32 %v4156_v41, %v6879_v32  ;;  %v6886_v13 = vpop.f32.mrb[9].mxu0  ;;  %v4416_v58 = vsel %vm4287_vm6, %v4370_v6, 0.0  ;;  %v4176_v31 = vrot.slane %v6858_v8, %v6764_v0 }
 0x258   : > { %v4415_v11 = vadd.f32 %v4414_v49, %v4413_v15  ;;  %v4316_v55 = vadd.f32 %v4315_v21, %v4314_v35  ;;  %v4271_v5 = vmul.f32 %v4160_v18, %v6886_v13  ;;  %v3716_v57 = vpop.f32.mrb[10].mxu0  ;;  %v4418_v62 = vsel %vm4287_vm6, %v4371_v53, 0.0 }
 0x259   : > { %v4372_v47 = vmul.f32 %v4270_v38, %v4270_v38  ;;  %v3717_v10 = vpop.f32.mrb[11].mxu0  ;;  %v4319_v59 = vsel %vm4287_vm6, %v4270_v38, 0.0  ;;  %v4180_v35 = vrot.slane %v6858_v8, %v6767_v51 }
 0x25a   : > { %v4417_v46 = vadd.f32 %v4416_v58, %v4415_v11  ;;  %v4318_v27 = vadd.f32 %v4317_v19, %v4316_v55  ;;  %v6893_v63 = vpop.f32.mrb[24].mxu1  ;;  %v4373_v41 = vmul.f32 %v4271_v5, %v4271_v5  ;;  %v4321_v18 = vsel %vm4287_vm6, %v4271_v5, 0.0  ;;  %v6919_v11 = vld [vmem:[%s7347_s1 + $0x18] sm:$0xff] }
 0x25b   : > { %v4272_v9 = vmul.f32 %v4164_v39, %v6893_v63  ;;  %v6900_v45 = vpop.f32.mrb[25].mxu1  ;;  %v4420_v7 = vsel %vm4287_vm6, %v4372_v47, 0.0  ;;  %v4184_v58 = vrot.slane %v6858_v8, %v6778_v54 }
 0x25c   : > { %v4419_v20 = vadd.f32 %v4418_v62, %v4417_v46  ;;  %v4320_v48 = vadd.f32 %v4319_v59, %v4318_v27  ;;  %v4273_v1 = vmul.f32 %v4168_v28, %v6900_v45  ;;  %v3757_v33 = vpop.f32.mrb[26].mxu1  ;;  %v4422_v39 = vsel %vm4287_vm6, %v4373_v41, 0.0 }
 0x25d   : > { %v4374_v3 = vmul.f32 %v4272_v9, %v4272_v9  ;;  %v3758_v26 = vpop.f32.mrb[27].mxu1  ;;  %v4323_v49 = vsel %vm4287_vm6, %v4272_v9, 0.0  ;;  %v4188_v59 = vrot.slane %v6919_v11, %v6726_v52 }
 0x25e   : > { %v4421_v6 = vadd.f32 %v4420_v7, %v4419_v20  ;;  %v4322_v24 = vadd.f32 %v4321_v18, %v4320_v48  ;;  %v6907_v15 = vpop.f32.mrb[12].mxu0  ;;  %v4375_v21 = vmul.f32 %v4273_v1, %v4273_v1  ;;  %v4325_v47 = vsel %vm4287_vm6, %v4273_v1, 0.0 }
 0x25f   : > { %v4274_v53 = vmul.f32 %v4172_v50, %v6907_v15  ;;  %v6914_v38 = vpop.f32.mrb[13].mxu0  ;;  %v4424_v19 = vsel %vm4287_vm6, %v4374_v3, 0.0  ;;  %v4192_v18 = vrot.slane %v6919_v11, %v6734_v40 }
 0x260   : > { %v4423_v55 = vadd.f32 %v4422_v39, %v4421_v6  ;;  %v4324_v5 = vadd.f32 %v4323_v49, %v4322_v24  ;;  %v4275_v57 = vmul.f32 %v4176_v31, %v6914_v38  ;;  %v3798_v28 = vpop.f32.mrb[14].mxu0  ;;  %v4426_v41 = vsel %vm4287_vm6, %v4375_v21, 0.0 }
 0x261   : > { %v4376_v10 = vmul.f32 %v4274_v53, %v4274_v53  ;;  %v3799_v46 = vpop.f32.mrb[15].mxu0  ;;  %v4327_v9 = vsel %vm4287_vm6, %v4274_v53, 0.0 }
 0x262   : > { %v4425_v27 = vadd.f32 %v4424_v19, %v4423_v55  ;;  %v4326_v50 = vadd.f32 %v4325_v47, %v4324_v5  ;;  %v6926_v62 = vpop.f32.mrb[28].mxu1  ;;  %v4377_v20 = vmul.f32 %v4275_v57, %v4275_v57  ;;  %v4329_v52 = vsel %vm4287_vm6, %v4275_v57, 0.0 }
 0x263   : > { %v4276_v8 = vmul.f32 %v4180_v35, %v6926_v62  ;;  %v6933_v48 = vpop.f32.mrb[29].mxu1  ;;  %v4428_v3 = vsel %vm4287_vm6, %v4376_v10, 0.0  ;;  %v4196_v35 = vrot.slane %v6919_v11, %v6737_v30  ;;  %v4200_v47 = vrot.slane %v6919_v11, %v6740_v29 }
 0x264   : > { %v4427_v33 = vadd.f32 %v4426_v41, %v4425_v27  ;;  %v4328_v1 = vadd.f32 %v4327_v9, %v4326_v50  ;;  %v4277_v31 = vmul.f32 %v4184_v58, %v6933_v48  ;;  %v3839_v7 = vpop.f32.mrb[30].mxu1  ;;  %v4430_v21 = vsel %vm4287_vm6, %v4377_v20, 0.0 }
 0x265   : > { %v4378_v26 = vmul.f32 %v4276_v8, %v4276_v8  ;;  %v3840_v6 = vpop.f32.mrb[31].mxu1  ;;  %v4331_v53 = vsel %vm4287_vm6, %v4276_v8, 0.0 }
 0x266   : > { %v4429_v24 = vadd.f32 %v4428_v3, %v4427_v33  ;;  %v4330_v39 = vadd.f32 %v4329_v52, %v4328_v1  ;;  %v6940_v49 = vpop.f32.mrb[16].mxu0  ;;  %v4379_v55 = vmul.f32 %v4277_v31, %v4277_v31  ;;  %v4333_v30 = vsel %vm4287_vm6, %v4277_v31, 0.0 }
 0x267   : > { %v4278_v40 = vmul.f32 %v4188_v59, %v6940_v49  ;;  %v6947_v5 = vpop.f32.mrb[17].mxu0  ;;  %v4432_v10 = vsel %vm4287_vm6, %v4378_v26, 0.0  ;;  %v4204_v59 = vrot.slane %v6919_v11, %v6752_v42  ;;  %v4208_v52 = vrot.slane %v6919_v11, %v6764_v0 }
 0x268   : > { %v4431_v28 = vadd.f32 %v4430_v21, %v4429_v24  ;;  %v4332_v57 = vadd.f32 %v4331_v53, %v4330_v39  ;;  %v4279_v58 = vmul.f32 %v4192_v18, %v6947_v5  ;;  %v3880_v19 = vpop.f32.mrb[18].mxu0  ;;  %v4434_v20 = vsel %vm4287_vm6, %v4379_v55, 0.0 }
 0x269   : > { %v4380_v46 = vmul.f32 %v4278_v40, %v4278_v40  ;;  %v3881_v27 = vpop.f32.mrb[19].mxu0  ;;  %v4335_v8 = vsel %vm4287_vm6, %v4278_v40, 0.0 }
 0x26a   : > { %v4433_v50 = vadd.f32 %v4432_v10, %v4431_v28  ;;  %v4334_v41 = vadd.f32 %v4333_v30, %v4332_v57  ;;  %v6954_v9 = vpop.f32.mrb[32].mxu1  ;;  %v4381_v33 = vmul.f32 %v4279_v58, %v4279_v58  ;;  %v4337_v42 = vsel %vm4287_vm6, %v4279_v58, 0.0 }
 0x26b   : > { %v4280_v29 = vmul.f32 %v4196_v35, %v6954_v9  ;;  %v6961_v1 = vpop.f32.mrb[33].mxu1  ;;  %v4436_v26 = vsel %vm4287_vm6, %v4380_v46, 0.0  ;;  %v4212_v35 = vrot.slane %v6919_v11, %v6767_v51  ;;  %v4216_v30 = vrot.slane %v6919_v11, %v6778_v54 }
 0x26c   : > { %v4435_v7 = vadd.f32 %v4434_v20, %v4433_v50  ;;  %v4336_v31 = vadd.f32 %v4335_v8, %v4334_v41  ;;  %v4281_v18 = vmul.f32 %v4200_v47, %v6961_v1  ;;  %v3921_v3 = vpop.f32.mrb[34].mxu1  ;;  %v4438_v55 = vsel %vm4287_vm6, %v4381_v33, 0.0 }
 0x26d   : > { %v4382_v6 = vmul.f32 %v4280_v29, %v4280_v29  ;;  %v3922_v24 = vpop.f32.mrb[35].mxu1  ;;  %v4339_v40 = vsel %vm4287_vm6, %v4280_v29, 0.0 }
 0x26e   : > { %v4437_v39 = vadd.f32 %v4436_v26, %v4435_v7  ;;  %v4338_v21 = vadd.f32 %v4337_v42, %v4336_v31  ;;  %v6968_v53 = vpop.f32.mrb[20].mxu0  ;;  %v4383_v28 = vmul.f32 %v4281_v18, %v4281_v18  ;;  %v4341_v51 = vsel %vm4287_vm6, %v4281_v18, 0.0 }
 0x26f   : > { %v4282_v0 = vmul.f32 %v4204_v59, %v6968_v53  ;;  %v6975_v57 = vpop.f32.mrb[21].mxu0  ;;  %v4440_v46 = vsel %vm4287_vm6, %v4382_v6, 0.0 }
 0x270   : > { %v4439_v19 = vadd.f32 %v4438_v55, %v4437_v39  ;;  %v4340_v58 = vadd.f32 %v4339_v40, %v4338_v21  ;;  %v4283_v47 = vmul.f32 %v4208_v52, %v6975_v57  ;;  %v3962_v10 = vpop.f32.mrb[22].mxu0  ;;  %v4442_v59 = vsel %vm4287_vm6, %v4383_v28, 0.0  ;;  %v5119_v52 = vld [vmem:[%s7347_s1 + $0x20] ss:$0 sm:$0xff] }
 0x271   : > { %v4384_v27 = vmul.f32 %v4282_v0, %v4282_v0  ;;  %v3963_v50 = vpop.f32.mrb[23].mxu0  ;;  %v4343_v33 = vsel %vm4287_vm6, %v4282_v0, 0.0 }
 0x272   : > { %v4441_v41 = vadd.f32 %v4440_v46, %v4439_v19  ;;  %v4342_v20 = vadd.f32 %v4341_v51, %v4340_v58  ;;  %v6982_v8 = vpop.f32.mrb[36].mxu1  ;;  %v4385_v29 = vmul.f32 %v4283_v47, %v4283_v47  ;;  %v4345_v42 = vsel %vm4287_vm6, %v4283_v47, 0.0 }
 0x273   : > { %v4284_v7 = vmul.f32 %v4212_v35, %v6982_v8  ;;  %v6987_v31 = vpop.f32.mrb[37].mxu1  ;;  %v4444_v26 = vsel %vm4287_vm6, %v4384_v27, 0.0 }
 0x274   : > { %v4443_v54 = vadd.f32 %v4442_v59, %v4441_v41  ;;  %v4344_v11 = vadd.f32 %v4343_v33, %v4342_v20  ;;  %v4285_v3 = vmul.f32 %v4216_v30, %v6987_v31  ;;  %v4003_v18 = vpop.f32.mrb[38].mxu1  ;;  %v4446_v55 = vsel %vm4287_vm6, %v4385_v29, 0.0 }
 0x275   : > { %v4386_v6 = vmul.f32 %v4284_v7, %v4284_v7  ;;  %v4004_v24 = vpop.f32.mrb[39].mxu1  ;;  %v4347_v40 = vsel %vm4287_vm6, %v4284_v7, 0.0 }
 0x276   : > { %v4445_v39 = vadd.f32 %v4444_v26, %v4443_v54  ;;  %v4346_v21 = vadd.f32 %v4345_v42, %v4344_v11  ;;  %v6995_v35 = vpop.f32.mrb[24].mxu0  ;;  %v4387_v28 = vmul.f32 %v4285_v3, %v4285_v3  ;;  %v4349_v46 = vsel %vm4287_vm6, %v4285_v3, 0.0 }
 0x277   : > { %v4286_v0 = vmul.f32 %v5119_v52, %v6995_v35  ;;  %v5168_v19 = vpop.f32.mrb[25].mxu0  ;;  %v4448_v47 = vsel %vm4287_vm6, %v4386_v6, 0.0  ;;  %v5471_v24 = vmov 1983009808  }
 0x278   : > { %v4447_v58 = vadd.f32 %v4446_v55, %v4445_v39  ;;  %v4348_v10 = vadd.f32 %v4347_v40, %v4346_v21  ;;  %v4043_v30 = vpop.f32.mrb[26].mxu0  ;;  %v4450_v20 = vsel %vm4287_vm6, %v4387_v28, 0.0  ;;  %v4696_v39 = vunpack.c.l.s4 %v5471_v24 }
 0x279   : > { %v4388_v51 = vmul.f32 %v4286_v0, %v4286_v0  ;;  %v5169_v27 = vpop.f32.mrb[27].mxu0  ;;  %v4352_v59 = vsel %vm4351_vm7, %v4286_v0, 0.0 }
 0x27a   : > { %v4449_v50 = vadd.f32 %v4448_v47, %v4447_v58  ;;  %v4350_v41 = vadd.f32 %v4349_v46, %v4348_v10  ;;  %v4697_v21 = vunpack.c.0.s8 %v4696_v39 }
 0x27b   : > { %v4452_v7 = vsel %vm4351_vm7, %v4388_v51, 0.0 }
 0x27c   : > { %v4353_v33 = vadd.f32 %v4352_v59, %v4350_v41  ;;  %v4451_v29 = vadd.f32 %v4450_v20, %v4449_v50  ;;  %v7012_v28 = vsub.s32 %v4697_v21, %v6723_v34 }
 0x27e   : > { %4354 = vadd.xlane.f32.xlu1 %v4353_v33  ;;  %v4453_v54 = vadd.f32 %v4452_v7, %v4451_v29 }
 0x280   : > { %4454 = vadd.xlane.f32.xlu0 %v4453_v54 }
 0x30b   : > { %v4355_v11 = vpop.xlane.xlu1 %4354 }
 0x30c   : > { %v7003_v18 = vmul.f32 0.00024414063, %v4355_v11 }
 0x30d   : > { %v4455_v52 = vpop.xlane.xlu0 %4454 }
 0x30e   : > { %v4457_v26 = vmul.f32 0.00024414063, %v4455_v52  ;;  %v4458_v3 = vmul.f32 %v7003_v18, %v7003_v18  ;;  %v4460_v55 = vsub.f32 %v6747_v43, %v7003_v18  ;;  %v4461_v40 = vsub.f32 %v6755_v60, %v7003_v18 }
 0x30f   : > { %v4462_v0 = vsub.f32 %v6761_v44, %v7003_v18  ;;  %v4463_v19 = vsub.f32 %v6771_v23, %v7003_v18  ;;  %v4464_v58 = vsub.f32 %v6789_v16, %v7003_v18  ;;  %v4465_v10 = vsub.f32 %v6798_v14, %v7003_v18 }
 0x310   : > { %v4459_v42 = vsub.f32 %v4457_v26, %v4458_v3  ;;  %v4466_v43 = vsub.f32 %v6805_v22, %v7003_v18  ;;  %v4467_v60 = vsub.f32 %v6813_v61, %v7003_v18  ;;  %v4468_v34 = vsub.f32 %v6819_v56, %v7003_v18 }
 0x311   : > { %v4469_v44 = vsub.f32 %v6823_v12, %v7003_v18  ;;  %v4470_v23 = vsub.f32 %v6832_v36, %v7003_v18  ;;  %v4471_v16 = vsub.f32 %v6839_v25, %v7003_v18  ;;  %v4472_v14 = vsub.f32 %v6846_v2, %v7003_v18 }
 0x312   : > { %v4493_v6 = vadd.f32 1e-05, %v4459_v42  ;;  %v4473_v22 = vsub.f32 %v6853_v4, %v7003_v18  ;;  %v4474_v61 = vsub.f32 %v6865_v37, %v7003_v18  ;;  %v4475_v56 = vsub.f32 %v6872_v17, %v7003_v18 }
 0x313   : > { %v4476_v12 = vsub.f32 %v6879_v32, %v7003_v18  ;;  %v4477_v36 = vsub.f32 %v6886_v13, %v7003_v18  ;;  %v4478_v25 = vsub.f32 %v6893_v63, %v7003_v18  ;;  %v4479_v2 = vsub.f32 %v6900_v45, %v7003_v18 }
 0x314   : > { %5455 = vrsqrt.f32 %v4493_v6  ;;  %v4480_v4 = vsub.f32 %v6907_v15, %v7003_v18  ;;  %v4481_v37 = vsub.f32 %v6914_v38, %v7003_v18  ;;  %v4482_v17 = vsub.f32 %v6926_v62, %v7003_v18 }
 0x315   : > { %v4483_v32 = vsub.f32 %v6933_v48, %v7003_v18  ;;  %v4484_v13 = vsub.f32 %v6940_v49, %v7003_v18  ;;  %v4485_v63 = vsub.f32 %v6947_v5, %v7003_v18  ;;  %v4486_v45 = vsub.f32 %v6954_v9, %v7003_v18 }
 0x316   : > { %v4487_v15 = vsub.f32 %v6961_v1, %v7003_v18  ;;  %v4488_v38 = vsub.f32 %v6968_v53, %v7003_v18  ;;  %v4489_v62 = vsub.f32 %v6975_v57, %v7003_v18  ;;  %v4490_v48 = vsub.f32 %v6982_v8, %v7003_v18 }
 0x317   : > { %v4491_v49 = vsub.f32 %v6987_v31, %v7003_v18  ;;  %v4492_v5 = vsub.f32 %v6995_v35, %v7003_v18 }
 0x31e   : > { %v5456_v30 = vpop.eup %5455 }
 0x31f   : > { %v4495_v47 = vmul.f32 %v5456_v30, %v4460_v55  ;;  %v7076_v9 = vmul.f32 %v5456_v30, %v4461_v40  ;;  %v7078_v46 = vmul.f32 %v5456_v30, %v4462_v0  ;;  %v7080_v1 = vmul.f32 %v5456_v30, %v4463_v19 }
 0x320   : > { %v7082_v53 = vmul.f32 %v5456_v30, %v4464_v58  ;;  %v7084_v51 = vmul.f32 %v5456_v30, %v4465_v10  ;;  %v7086_v57 = vmul.f32 %v5456_v30, %v4466_v43  ;;  %v7088_v8 = vmul.f32 %v5456_v30, %v4467_v60 }
 0x321   : > { %v7090_v27 = vmul.f32 %v5456_v30, %v4468_v34  ;;  %v7092_v31 = vmul.f32 %v5456_v30, %v4469_v44  ;;  %v7094_v35 = vmul.f32 %v5456_v30, %v4470_v23  ;;  %v7096_v50 = vmul.f32 %v5456_v30, %v4471_v16 }
 0x322   : > { %v7098_v41 = vmul.f32 %v5456_v30, %v4472_v14  ;;  %v7100_v20 = vmul.f32 %v5456_v30, %v4473_v22  ;;  %v7102_v59 = vmul.f32 %v5456_v30, %v4474_v61  ;;  %v7104_v33 = vmul.f32 %v5456_v30, %v4475_v56 }
 0x323   : > { %v7106_v29 = vmul.f32 %v5456_v30, %v4476_v12  ;;  %v7108_v7 = vmul.f32 %v5456_v30, %v4477_v36  ;;  %v7110_v54 = vmul.f32 %v5456_v30, %v4478_v25  ;;  %v7112_v11 = vmul.f32 %v5456_v30, %v4479_v2 }
 0x324   : > { %v7114_v18 = vmul.f32 %v5456_v30, %v4480_v4  ;;  %v7116_v52 = vmul.f32 %v5456_v30, %v4481_v37  ;;  %v7118_v26 = vmul.f32 %v5456_v30, %v4482_v17  ;;  %v7120_v3 = vmul.f32 %v5456_v30, %v4483_v32 }
 0x325   : > { %v7122_v42 = vmul.f32 %v5456_v30, %v4484_v13  ;;  %v7124_v6 = vmul.f32 %v5456_v30, %v4485_v63  ;;  %v7126_v24 = vmul.f32 %v5456_v30, %v4486_v45  ;;  %v7128_v39 = vmul.f32 %v5456_v30, %v4487_v15 }
 0x326   : > { %v7130_v21 = vmul.f32 %v5456_v30, %v4488_v38  ;;  %v7132_v55 = vmul.f32 %v5456_v30, %v4489_v62  ;;  %v7134_v40 = vmul.f32 %v5456_v30, %v4490_v48  ;;  %v7136_v0 = vmul.f32 %v5456_v30, %v4491_v49 }
 0x327   : > { %vm4528_vm8 = vcmp.ge.f32.partialorder %v4495_v47, 0.0  ;;  %vm4529_vm9 = vcmp.ge.f32.partialorder %v7076_v9, 0.0  ;;  %vm4530_vm10 = vcmp.ge.f32.partialorder %v7078_v46, 0.0  ;;  %vm4531_vm11 = vcmp.ge.f32.partialorder %v7080_v1, 0.0 }
 0x328   : > { %vm4532_vm12 = vcmp.ge.f32.partialorder %v7082_v53, 0.0  ;;  %vm4533_vm13 = vcmp.ge.f32.partialorder %v7084_v51, 0.0  ;;  %vm4534_vm14 = vcmp.ge.f32.partialorder %v7086_v57, 0.0  ;;  %vm4535_vm15 = vcmp.ge.f32.partialorder %v7088_v8, 0.0 }
 0x329   : > { %vm4536_vm0 = vcmp.ge.f32.partialorder %v7090_v27, 0.0  ;;  %v4561_v19 = vmul.f32 0.2, %v4495_v47  ;;  %v4562_v58 = vmul.f32 0.2, %v7076_v9  ;;  %v7150_v10 = vmul.f32 %v5456_v30, %v4492_v5 }
 0x32a   : > { %vm4541_vm5 = vcmp.ge.f32.partialorder %v7100_v20, 0.0  ;;  %v4563_v43 = vmul.f32 0.2, %v7078_v46  ;;  %v4564_v60 = vmul.f32 0.2, %v7080_v1  ;;  %vm4546_vm1 = vcmp.ge.f32.partialorder %v7110_v54, 0.0 }
 0x32b   : > { %v4565_v34 = vmul.f32 0.2, %v7082_v53  ;;  %vm4547_vm4 = vcmp.ge.f32.partialorder %v7112_v11, 0.0  ;;  %v4566_v44 = vmul.f32 0.2, %v7084_v51  ;;  %v7167_v14 = vsel %vm4528_vm8, %v4495_v47, %v4561_v19 }
 0x32c   : > { %v4567_v23 = vmul.f32 0.2, %v7086_v57  ;;  %v4568_v16 = vmul.f32 0.2, %v7088_v8  ;;  %vm4551_vm2 = vcmp.ge.f32.partialorder %v7120_v3, 0.0  ;;  %v7179_v12 = vsel %vm4529_vm9, %v7076_v9, %v4562_v58 }
 0x32d   : > { %v4569_v22 = vmul.f32 0.2, %v7090_v27  ;;  %v4570_v61 = vmul.f32 0.2, %v7092_v31  ;;  %v4571_v56 = vmul.f32 0.2, %v7094_v35  ;;  %v7191_v2 = vsel %vm4530_vm10, %v7078_v46, %v4563_v43 }
 0x32e   : > { %vm4555_vm3 = vcmp.ge.f32.partialorder %v7128_v39, 0.0  ;;  %v4572_v36 = vmul.f32 0.2, %v7096_v50  ;;  %v4573_v30 = vmul.f32 0.2, %v7098_v41  ;;  %vm4556_vm9 = vcmp.ge.f32.partialorder %v7130_v21, 0.0 }
 0x32f   : > { %v4574_v25 = vmul.f32 0.2, %v7100_v20  ;;  %vm4557_vm8 = vcmp.ge.f32.partialorder %v7132_v55, 0.0  ;;  %vm4558_vm7 = vcmp.ge.f32.partialorder %v7134_v40, 0.0  ;;  %vm4559_vm6 = vcmp.ge.f32.partialorder %v7136_v0, 0.0 }
 0x330   : > { %v4575_v4 = vmul.f32 0.2, %v7102_v59  ;;  %v4576_v37 = vmul.f32 0.2, %v7104_v33  ;;  %v4577_v17 = vmul.f32 0.2, %v7106_v29  ;;  %v4597_v32 = vsel %vm4531_vm11, %v7080_v1, %v4564_v60 }
 0x331   : > { %vm4560_vm10 = vcmp.ge.f32.partialorder %v7150_v10, 0.0  ;;  %v4578_v13 = vmul.f32 0.2, %v7108_v7  ;;  %v4579_v63 = vmul.f32 0.2, %v7110_v54  ;;  %v4598_v15 = vsel %vm4532_vm12, %v7082_v53, %v4565_v34 }
 0x332   : > { %v4580_v45 = vmul.f32 0.2, %v7112_v11  ;;  %v4581_v38 = vmul.f32 0.2, %v7114_v18  ;;  %v4582_v62 = vmul.f32 0.2, %v7116_v52  ;;  %v4599_v49 = vsel %vm4533_vm13, %v7084_v51, %v4566_v44 }
 0x333   : > { %v4583_v48 = vmul.f32 0.2, %v7118_v26  ;;  %v4584_v5 = vmul.f32 0.2, %v7120_v3  ;;  %v4585_v47 = vmul.f32 0.2, %v7122_v42  ;;  %v4600_v46 = vsel %vm4534_vm14, %v7086_v57, %v4567_v23 }
 0x334   : > { %v4586_v9 = vmul.f32 0.2, %v7124_v6  ;;  %v4587_v1 = vmul.f32 0.2, %v7126_v24  ;;  %v4588_v53 = vmul.f32 0.2, %v7128_v39  ;;  %v4601_v51 = vsel %vm4535_vm15, %v7088_v8, %v4568_v16 }
 0x335   : > { %v4589_v19 = vmul.f32 0.2, %v7130_v21  ;;  %v4590_v58 = vmul.f32 0.2, %v7132_v55  ;;  %v4591_v43 = vmul.f32 0.2, %v7134_v40  ;;  %v4602_v57 = vsel %vm4536_vm0, %v7090_v27, %v4569_v22 }
 0x336   : > { %v4592_v60 = vmul.f32 0.2, %v7136_v0  ;;  %v4593_v34 = vmul.f32 0.2, %v7150_v10  ;;  %vm7407_vm11 = vcmp.ge.f32.partialorder %v7092_v31, 0.0  ;;  %vm7408_vm12 = vcmp.ge.f32.partialorder %v7094_v35, 0.0 }
 0x337   : > { %v4603_v44 = vsel %vm7407_vm11, %v7092_v31, %v4570_v61  ;;  %v4604_v8 = vsel %vm7408_vm12, %v7094_v35, %v4571_v56  ;;  %vm7409_vm13 = vcmp.ge.f32.partialorder %v7096_v50, 0.0  ;;  %vm7410_vm14 = vcmp.ge.f32.partialorder %v7098_v41, 0.0 }
 0x338   : > { %v4605_v23 = vsel %vm7409_vm13, %v7096_v50, %v4572_v36  ;;  %v4606_v16 = vsel %vm7410_vm14, %v7098_v41, %v4573_v30  ;;  %v4607_v27 = vsel %vm4541_vm5, %v7100_v20, %v4574_v25  ;;  %vm7411_vm15 = vcmp.ge.f32.partialorder %v7102_v59, 0.0 }
 0x339   : > { %v4608_v31 = vsel %vm7411_vm15, %v7102_v59, %v4575_v4  ;;  %vm7412_vm0 = vcmp.ge.f32.partialorder %v7104_v33, 0.0  ;;  %vm7413_vm11 = vcmp.ge.f32.partialorder %v7106_v29, 0.0  ;;  %vm7414_vm12 = vcmp.ge.f32.partialorder %v7108_v7, 0.0 }
 0x33a   : > { %v4609_v35 = vsel %vm7412_vm0, %v7104_v33, %v4576_v37  ;;  %v4610_v50 = vsel %vm7413_vm11, %v7106_v29, %v4577_v17  ;;  %v4611_v41 = vsel %vm7414_vm12, %v7108_v7, %v4578_v13  ;;  %v4612_v20 = vsel %vm4546_vm1, %v7110_v54, %v4579_v63 }
 0x33b   : > { %v4613_v59 = vsel %vm4547_vm4, %v7112_v11, %v4580_v45  ;;  %vm7415_vm5 = vcmp.ge.f32.partialorder %v7114_v18, 0.0  ;;  %vm7416_vm13 = vcmp.ge.f32.partialorder %v7116_v52, 0.0  ;;  %vm7417_vm14 = vcmp.ge.f32.partialorder %v7118_v26, 0.0 }
 0x33c   : > { %v4614_v33 = vsel %vm7415_vm5, %v7114_v18, %v4581_v38  ;;  %v4615_v29 = vsel %vm7416_vm13, %v7116_v52, %v4582_v62  ;;  %v4616_v7 = vsel %vm7417_vm14, %v7118_v26, %v4583_v48  ;;  %v4617_v54 = vsel %vm4551_vm2, %v7120_v3, %v4584_v5 }
 0x33d   : > { %vm7418_vm1 = vcmp.ge.f32.partialorder %v7122_v42, 0.0  ;;  %vm7419_vm4 = vcmp.ge.f32.partialorder %v7124_v6, 0.0  ;;  %vm7420_vm15 = vcmp.ge.f32.partialorder %v7126_v24, 0.0  ;;  %v4621_v26 = vsel %vm4555_vm3, %v7128_v39, %v4588_v53 }
 0x33e   : > { %v4618_v11 = vsel %vm7418_vm1, %v7122_v42, %v4585_v47  ;;  %v4619_v18 = vsel %vm7419_vm4, %v7124_v6, %v4586_v9  ;;  %v4620_v52 = vsel %vm7420_vm15, %v7126_v24, %v4587_v1  ;;  %v4622_v3 = vsel %vm4556_vm9, %v7130_v21, %v4589_v19 }
 0x33f   : > { %v4623_v42 = vsel %vm4557_vm8, %v7132_v55, %v4590_v58  ;;  %v4624_v6 = vsel %vm4558_vm7, %v7134_v40, %v4591_v43  ;;  %v4625_v24 = vsel %vm4559_vm6, %v7136_v0, %v4592_v60  ;;  %vm4853_vm2 = vcmask 517120  }
 0x340   : > { %v4626_v39 = vsel %vm4560_vm10, %v7150_v10, %v4593_v34  ;;  %v5120_v21 = vpack.c.bf16 %v7179_v12, %v7167_v14  ;;  %v5121_v22 = vpack.c.bf16 %v4597_v32, %v7191_v2  ;;  %v5122_v61 = vpack.c.bf16 %v4599_v49, %v4598_v15 }
 0x341   : > { %v4659_v55 = vpack.c.bf16 %v4626_v39, %v4626_v39  ;;  %v5123_v56 = vpack.c.bf16 %v4601_v51, %v4600_v46  ;;  %v5124_v36 = vpack.c.bf16 %v4603_v44, %v4602_v57  ;;  %v5125_v40 = vpack.c.bf16 %v4605_v23, %v4604_v8 }
 0x342   : > { %v4701_v30 = vrot.slane %v5120_v21, %v7012_v28  ;;  %v4708_v0 = vrot.slane %v5121_v22, %v7012_v28  ;;  %v4718_v25 = vrot.slane %v5122_v61, %v7012_v28  ;;  %v5126_v4 = vpack.c.bf16 %v4607_v27, %v4606_v16 }
 0x343   : > { %v4725_v10 = vrot.slane %v5123_v56, %v7012_v28  ;;  %v4735_v37 = vrot.slane %v5124_v36, %v7012_v28  ;;  %v4742_v14 = vrot.slane %v5125_v40, %v7012_v28  ;;  %v5127_v12 = vpack.c.bf16 %v4609_v35, %v4608_v31 }
 0x344   : > { %v4709_v2 = vcombine.low %v4701_v30, %v4708_v0  ;;  %v4752_v17 = vrot.slane %v5126_v4, %v7012_v28  ;;  %v5128_v32 = vpack.c.bf16 %v4611_v41, %v4610_v50  ;;  %v5129_v13 = vpack.c.bf16 %v4613_v59, %v4612_v20 }
 0x345   : > { %v4726_v63 = vcombine.low %v4718_v25, %v4725_v10  ;;  %v4743_v45 = vcombine.low %v4735_v37, %v4742_v14  ;;  %v4759_v15 = vrot.slane %v5127_v12, %v7012_v28  ;;  %v5130_v38 = vpack.c.bf16 %v4615_v29, %v4614_v33 }
 0x346   : > { %v4769_v62 = vrot.slane %v5128_v32, %v7012_v28  ;;  %v4776_v48 = vrot.slane %v5129_v13, %v7012_v28  ;;  %v5131_v49 = vpack.c.bf16 %v4617_v54, %v4616_v7  ;;  %v5132_v5 = vpack.c.bf16 %v4619_v18, %v4618_v11  ;;  %4845 = vst [vmem:[%s7321_s16] sm:$0xff] %v4709_v2 }
 0x347   : > { %v4760_v47 = vcombine.low %v4752_v17, %v4759_v15  ;;  %v4786_v9 = vrot.slane %v5130_v38, %v7012_v28  ;;  %v5133_v46 = vpack.c.bf16 %v4621_v26, %v4620_v52  ;;  %v5134_v1 = vpack.c.bf16 %v4623_v42, %v4622_v3  ;;  %4846 = vst [vmem:[%s7321_s16 + $0x8] sm:$0xff] %v4726_v63 }
 0x348   : > { %4847 = vst [vmem:[%s7321_s16 + $0x10] sm:$0xff] %v4743_v45  ;;  %v4777_v53 = vcombine.low %v4769_v62, %v4776_v48  ;;  %v4793_v19 = vrot.slane %v5131_v49, %v7012_v28  ;;  %v4803_v51 = vrot.slane %v5132_v5, %v7012_v28  ;;  %v5135_v58 = vpack.c.bf16 %v4625_v24, %v4624_v6 }
 0x349   : > { %v4810_v43 = vrot.slane %v5133_v46, %v7012_v28  ;;  %v4820_v60 = vrot.slane %v5134_v1, %v7012_v28  ;;  %v4835_v57 = vrot.slane %v4659_v55, %v7012_v28  ;;  %4848 = vst [vmem:[%s7321_s16 + $0x18] sm:$0xff] %v4760_v47 }
 0x34a   : > { %v4794_v34 = vcombine.low %v4786_v9, %v4793_v19  ;;  %v4827_v44 = vrot.slane %v5135_v58, %v7012_v28  ;;  %4849 = vst [vmem:[%s7321_s16 + $0x20] sm:$0xff] %v4777_v53 }
 0x34b   : > { %v4811_v8 = vcombine.low %v4803_v51, %v4810_v43  ;;  %4854 = vst.msk [vmem:[%s7321_s16 + $0x40] sm:$0x3] %vm4853_vm2, %v4835_v57 }
 0x34c   : > { %v4828_v23 = vcombine.low %v4820_v60, %v4827_v44  ;;  %4850 = vst [vmem:[%s7321_s16 + $0x28] sm:$0xff] %v4794_v34 }
 0x34d   : > { %4851 = vst [vmem:[%s7321_s16 + $0x30] sm:$0xff] %v4811_v8 }
 0x34e   : > { %4852 = vst [vmem:[%s7321_s16 + $0x38] sm:$0xff] %v4828_v23 }
 0x34f PF: > { %s13_s12 = sadd.s32 1, %s5463_s12  }
 0x350   : > { %p10_p4 = scmp.ge.s32.totalorder %s13_s12, 4  }
 0x352   :  { %12 = sbr.rel (!%p10_p4) target bundleno = 1 (0x1), region = 65 }

// kernel: discriminator_forward.4
= control target key start
LH: loop header
LB: loop body
LE: loop exit
PB: predicated region body
PF: predicated region fallthrough
CT: control target
= control target key end

     0   :  { %s1634_s12 = smov 0   ;;  %s1822_s0 = inlined_call_operand.vmem [shape: bf16[2,16,1124], index: 0, kind: input, shape index: {}]   ;;  %s1823_s1 = inlined_call_operand.vmem [shape: f32[1,1056], index: 1, kind: input, shape index: {}]   ;;  %s1824_s2 = inlined_call_operand.vmem [shape: bf16[4,8,16], index: 2, kind: input, shape index: {}]   ;;  %s1825_s3 = inlined_call_operand.vmem [shape: bf16[2,8,1056], index: 3, kind: output, shape index: {}]  }
   0x1 LB: > { %s1429_s13 = sadd.s32 4294967295, %s1606_s12   ;;  %p1433_p0 = scmp.ge.s32.totalorder %s1606_s12, 1  ;;  %s1606_s12 = sphi %s1634_s12, %s13_s12  }
   0x2   : > { %p137_p1 = scmp.lt.s32.totalorder %s1606_s12, 3 }
   0x4   : > { %p138_p2 = pnand %p1433_p0, %p137_p1 }
   0x5   : > { %p161_p3 = scmp.lt.s32.totalorder (!%p138_p2), %s1429_s13, 1  ;;  %v1608_v0 = vmov (!%p138_p2), 0.0   ;;  %vm1609_vm0 = vmmov (!%p138_p2), 0   ;;  %v1610_v1 = vmov (!%p138_p2), 0   ;;  %s1611_s18 = smov (!%p138_p2), 127   ;;  %vm240_vm1 = vcmask (!%p138_p2), 1039360  }
   0x6   : > { %141 = sbr.rel (%p138_p2) target bundleno = 609 (0x261), region = 32  ;;  %1489 = vmatprep.subr.bf16.mxu0 (!%p138_p2), %v1608_v0  ;;  %1491 = vmatprep.mubr.msk.bf16.mxu0 (!%p138_p2), %vm1609_vm0, %v1608_v0  ;;  %s1612_s19 = smov (!%p138_p2), 95   ;;  %v1436_v17 = vld [vmem:[%s1824_s2 + $0x4] sm:$0xf] (!%p138_p2)  ;;  %vm258_vm2 = vcmask (!%p138_p2), 130048   ;;  %vm702_vm3 = vcmask (!%p138_p2), 777216  }
   0x7   : > { %294 = vmatprep.mubr.bf16.mxu1 (!%p138_p2), %v1610_v1  ;;  %s1613_s20 = smov (!%p138_p2), 94   ;;  %v1696_v24 = vld [vmem:[%s1824_s2] sm:$0xf] (!%p138_p2)  ;;  %v1456_v42 = vld [vmem:[%s1824_s2 + $0x8] sm:$0xf] (!%p138_p2)  ;;  %vm956_vm4 = vcmask (!%p138_p2), 769024  }
   0x8   : > { %v1462_v59 = vld [vmem:[%s1824_s2 + $0xc] sm:$0xf] (!%p138_p2)  ;;  %vm1255_vm5 = vcmask (!%p138_p2), 261120   ;;  %vm1372_vm6 = vcmask (!%p138_p2), 257024  }
   0xd   : > { %s1827_s13 = smov (!%p161_p3, %s1429_s13), 1 }
   0xe   : > { %s1569_s14 = smul.u32 72, %s1827_s13 }
   0xf   : > { %s1570_s6 = smul.u32 36, %s1827_s13 }
  0x10   : > { %s165_s17 = scalar_lea.vmem %s1822_s0, %s1569_s14 }
  0x11   : > { %v1585_v2 = vld [vmem:[%s165_s17 + $0x4] ss:$36 sps:$4 sm:$0xff]   ;;  %v1657_v6 = vld [vmem:[%s165_s17 + $0xc] ss:$36 sps:$4 sm:$0xff]   ;;  %v1594_v8 = vld [vmem:[%s165_s17 + $0x14] ss:$36 sps:$4 sm:$0xff]   ;;  %s170_s9 = scalar_lea.vmem %s1825_s3, %s1570_s6 }
  0x12   : > { %v1587_v3 = vld [vmem:[%s165_s17] ss:$36 sps:$4 sm:$0xff]   ;;  %224 = vrot.lane.b32.xlu0 %v1585_v2, %s1611_s18  ;;  %v1652_v4 = vld [vmem:[%s165_s17 + $0x8] ss:$36 sps:$4 sm:$0xff]   ;;  %v1660_v7 = vld [vmem:[%s165_s17 + $0x10] ss:$36 sps:$4 sm:$0xff]  }
  0x13   : > { %222 = vrot.lane.b32.xlu1 %v1587_v3, %s1611_s18  ;;  %v1654_v5 = vld [vmem:[%s165_s17 + $0x20] ss:$36 sps:$4 sm:$0xff]   ;;  %v1664_v9 = vld [vmem:[%s165_s17 + $0x18] ss:$36 sps:$4 sm:$0xff]  }
  0x14   : > { %v1666_v10 = vld [vmem:[%s165_s17 + $0x1c] ss:$36 sps:$4 sm:$0xff]  }
  0x16   : > { %226 = vrot.lane.b32.xlu0 %v1652_v4, %s1611_s18 }
  0x17   : > { %238 = vrot.lane.b32.xlu1 %v1654_v5, %s1611_s18 }
  0x1a   : > { %228 = vrot.lane.b32.xlu0 %v1657_v6, %s1611_s18 }
  0x1b   : > { %230 = vrot.lane.b32.xlu1 %v1660_v7, %s1611_s18 }
  0x1e   : > { %232 = vrot.lane.b32.xlu0 %v1594_v8, %s1611_s18 }
  0x1f   : > { %234 = vrot.lane.b32.xlu1 %v1664_v9, %s1611_s18 }
  0x22   : > { %236 = vrot.lane.b32.xlu0 %v1666_v10, %s1611_s18 }
  0x23   : > { %686 = vrot.lane.b32.xlu1 %v1585_v2, %s1612_s19 }
  0x26   : > { %688 = vrot.lane.b32.xlu0 %v1652_v4, %s1612_s19 }
  0x27   : > { %684 = vrot.lane.b32.xlu1 %v1587_v3, %s1612_s19 }
  0x2a   : > { %694 = vrot.lane.b32.xlu0 %v1594_v8, %s1612_s19 }
  0x2b   : > { %696 = vrot.lane.b32.xlu1 %v1664_v9, %s1612_s19 }
  0x2e   : > { %692 = vrot.lane.b32.xlu0 %v1660_v7, %s1612_s19 }
  0x2f   : > { %690 = vrot.lane.b32.xlu1 %v1657_v6, %s1612_s19 }
  0x32   : > { %700 = vrot.lane.b32.xlu0 %v1654_v5, %s1612_s19 }
  0x33   : > { %698 = vrot.lane.b32.xlu1 %v1666_v10, %s1612_s19 }
  0x36   : > { %940 = vrot.lane.b32.xlu0 %v1585_v2, %s1613_s20 }
  0x37   : > { %942 = vrot.lane.b32.xlu1 %v1652_v4, %s1613_s20 }
  0x3a   : > { %938 = vrot.lane.b32.xlu0 %v1587_v3, %s1613_s20 }
  0x3b   : > { %944 = vrot.lane.b32.xlu1 %v1657_v6, %s1613_s20 }
  0x3e   : > { %946 = vrot.lane.b32.xlu0 %v1660_v7, %s1613_s20 }
  0x3f   : > { %948 = vrot.lane.b32.xlu1 %v1594_v8, %s1613_s20 }
  0x42   : > { %950 = vrot.lane.b32.xlu0 %v1664_v9, %s1613_s20 }
  0x43   : > { %952 = vrot.lane.b32.xlu1 %v1666_v10, %s1613_s20 }
  0x46   : > { %954 = vrot.lane.b32.xlu0 %v1654_v5, %s1613_s20 }
  0x84   : > { %v225_v11 = vpop.permute.xlu0 %224 }
  0x85   : > { %v223_v12 = vpop.permute.xlu1 %222 }
  0x86   : > { %v241_v16 = vsel %vm240_vm1, %v223_v12, %v225_v11  ;;  %v1194_v12 = vlaneseq }
  0x88   : > { %v227_v13 = vpop.permute.xlu0 %226 }
  0x89   : > { %v239_v14 = vpop.permute.xlu1 %238  ;;  %v242_v15 = vsel %vm240_vm1, %v225_v11, %v227_v13 }
  0x8a   : > { %1490 = vmatpush3.bf16.msra.mxu0 %v239_v14  ;;  %262 = vmatprep.subr.bf16.mxu1 %v242_v15 }
  0x8b   : > { %263 = vmatpush1.bf16.msra.mxu1 %v241_v16  ;;  %478 = vmatprep.subr.bf16.mxu0 %v1585_v2 }
  0x8c   : > { %v229_v18 = vpop.permute.xlu0 %228 }
  0x8d   : > { %v243_v19 = vsel %vm240_vm1, %v227_v13, %v229_v18  ;;  %1492 = vmatmul.mubr.msk.bf16.vlgmr.msra.gmra.mrb[0].mxu0 %vm258_vm2, %v1436_v17  ;;  %v231_v20 = vpop.permute.xlu1 %230  ;;  %v1195_v13 = vshrl.u32 %v1194_v12, 7 }
  0x8e   : > { %1446 = vmatmul.mubr.msk.bf16.vlgmr.msra.gmra.mrb[0].mxu1 %vm258_vm2, %v1436_v17  ;;  %v244_v21 = vsel %vm240_vm1, %v229_v18, %v231_v20  ;;  %479 = vmatpush1.bf16.msra.mxu0 %v1587_v3 }
  0x8f   : > { %303 = vmatprep.subr.bf16.mxu1 %v244_v21  ;;  %510 = vmatprep.mubr.bf16.mxu0 %v1610_v1  ;;  %v1200_v15 = vsub.s32 1, %v1195_v13 }
  0x90   : > { %304 = vmatpush1.bf16.msra.mxu1 %v243_v19  ;;  %v233_v22 = vpop.permute.xlu0 %232  ;;  %335 = vmatprep.mubr.bf16.mxu1 %v1610_v1 }
  0x91   : > { %v235_v23 = vpop.permute.xlu1 %234  ;;  %560 = vmatprep.subr.bf16.mxu0 %v1594_v8  ;;  %v245_v29 = vsel %vm240_vm1, %v231_v20, %v233_v22 }
  0x92   : > { %v246_v25 = vsel %vm240_vm1, %v233_v22, %v235_v23  ;;  %v1204_v22 = vsub.s32 2, %v1195_v13 }
  0x93   : > { %344 = vmatprep.subr.bf16.mxu1 %v246_v25 }
  0x94   : > { %v237_v26 = vpop.permute.xlu0 %236 }
  0x95   : > { %1451 = vmatmul.mubr.msk.bf16.vlgmr.msra.gmra.mrb[4].mxu0 %vm258_vm2, %v1696_v24  ;;  %v248_v27 = vsel %vm240_vm1, %v237_v26, %v239_v14  ;;  %v687_v28 = vpop.permute.xlu1 %686  ;;  %v247_v34 = vsel %vm240_vm1, %v235_v23, %v237_v26  ;;  %v1196_v14 = vsub.s32 0, %v1195_v13 }
  0x96   : > { %1447 = vmatmul.mubr.msk.bf16.vlgmr.msra.gmra.mrb[4].mxu1 %vm258_vm2, %v1436_v17  ;;  %561 = vmatpush1.bf16.msra.mxu0 %v1660_v7 }
  0x97   : > { %345 = vmatpush1.bf16.msra.mxu1 %v245_v29  ;;  %592 = vmatprep.mubr.bf16.mxu0 %v1610_v1 }
  0x98   : > { %385 = vmatprep.subr.bf16.mxu1 %v248_v27  ;;  %376 = vmatprep.mubr.bf16.mxu1 %v1610_v1  ;;  %v689_v30 = vpop.permute.xlu0 %688  ;;  %v1212_v27 = vsub.s32 4, %v1195_v13 }
  0x99   : > { %1495 = vmatprep.subr.bf16.mxu0 %v1608_v0  ;;  %v685_v31 = vpop.permute.xlu1 %684  ;;  %v704_v33 = vsel %vm702_vm3, %v687_v28, %v689_v30 }
  0x9a   : > { %v703_v37 = vsel %vm702_vm3, %v685_v31, %v687_v28  ;;  %v1216_v28 = vsub.s32 5, %v1195_v13 }
  0x9c   : > { %v695_v32 = vpop.permute.xlu0 %694 }
  0x9d   : > { %1453 = vmatmul.mubr.msk.bf16.vlgmr.msra.gmra.mrb[8].mxu0 %vm258_vm2, %v1696_v24  ;;  %v697_v35 = vpop.permute.xlu1 %696 }
  0x9e   : > { %1448 = vmatmul.mubr.msk.bf16.vlgmr.msra.gmra.mrb[8].mxu1 %vm258_vm2, %v1436_v17  ;;  %1496 = vmatpush3.bf16.msra.mxu0 %v1654_v5  ;;  %v708_v39 = vsel %vm702_vm3, %v695_v32, %v697_v35 }
  0x9f   : > { %386 = vmatpush1.bf16.msra.mxu1 %v247_v34  ;;  %1497 = vmatprep.mubr.msk.bf16.mxu0 %vm1609_vm0, %v1608_v0 }
  0xa0   : > { %723 = vmatprep.subr.bf16.mxu0 %v704_v33  ;;  %417 = vmatprep.mubr.bf16.mxu1 %v1610_v1  ;;  %v693_v36 = vpop.permute.xlu0 %692 }
  0xa1   : > { %519 = vmatprep.subr.bf16.mxu1 %v1657_v6  ;;  %v691_v40 = vpop.permute.xlu1 %690  ;;  %v707_v44 = vsel %vm702_vm3, %v693_v36, %v695_v32 }
  0xa2   : > { %v706_v45 = vsel %vm702_vm3, %v691_v40, %v693_v36  ;;  %v705_v52 = vsel %vm702_vm3, %v689_v30, %v691_v40 }
  0xa4   : > { %v701_v38 = vpop.permute.xlu0 %700 }
  0xa5   : > { %1498 = vmatmul.mubr.msk.bf16.vlgmr.msra.gmra.mrb[0].mxu0 %vm258_vm2, %v1696_v24  ;;  %v699_v43 = vpop.permute.xlu1 %698 }
  0xa6   : > { %724 = vmatpush1.bf16.msra.mxu0 %v703_v37  ;;  %1449 = vmatmul.mubr.msk.bf16.vlgmr.msra.gmra.mrb[12].mxu1 %vm258_vm2, %v1436_v17  ;;  %v710_v50 = vsel %vm702_vm3, %v699_v43, %v701_v38  ;;  %v709_v58 = vsel %vm702_vm3, %v697_v35, %v699_v43 }
  0xa7   : > { %520 = vmatpush1.bf16.msra.mxu1 %v1652_v4  ;;  %755 = vmatprep.mubr.bf16.mxu0 %v1610_v1 }
  0xa8   : > { %805 = vmatprep.subr.bf16.mxu0 %v708_v39  ;;  %551 = vmatprep.mubr.bf16.mxu1 %v1610_v1  ;;  %v941_v41 = vpop.permute.xlu0 %940 }
  0xa9   : > { %601 = vmatprep.subr.bf16.mxu1 %v1666_v10  ;;  %v943_v47 = vpop.permute.xlu1 %942 }
  0xaa   : > { %v958_v51 = vsel %vm956_vm4, %v941_v41, %v943_v47 }
  0xac   : > { %v939_v46 = vpop.permute.xlu0 %938 }
  0xad   : > { %1457 = vmatmul.mubr.msk.bf16.vlgmr.msra.gmra.mrb[4].mxu0 %vm258_vm2, %v1456_v42  ;;  %v945_v49 = vpop.permute.xlu1 %944  ;;  %v957_v55 = vsel %vm956_vm4, %v939_v46, %v941_v41 }
  0xae   : > { %806 = vmatpush1.bf16.msra.mxu0 %v707_v44  ;;  %1452 = vmatmul.mubr.msk.bf16.vlgmr.msra.gmra.mrb[4].mxu1 %vm258_vm2, %v1696_v24  ;;  %v959_v63 = vsel %vm956_vm4, %v943_v47, %v945_v49  ;;  %v1220_v44 = vsub.s32 6, %v1195_v13 }
  0xaf   : > { %602 = vmatpush1.bf16.msra.mxu1 %v1664_v9  ;;  %837 = vmatprep.mubr.bf16.mxu0 %v1610_v1 }
  0xb0   : > { %764 = vmatprep.subr.bf16.mxu1 %v706_v45  ;;  %633 = vmatprep.mubr.bf16.mxu1 %v1610_v1  ;;  %v947_v48 = vpop.permute.xlu0 %946 }
  0xb1   : > { %1501 = vmatprep.subr.bf16.mxu0 %v1608_v0  ;;  %v949_v54 = vpop.permute.xlu1 %948  ;;  %v960_v57 = vsel %vm956_vm4, %v945_v49, %v947_v48 }
  0xb2   : > { %v961_v60 = vsel %vm956_vm4, %v947_v48, %v949_v54  ;;  %v1224_v48 = vsub.s32 7, %v1195_v13 }
  0xb4   : > { %v951_v53 = vpop.permute.xlu0 %950 }
  0xb5   : > { %1459 = vmatmul.mubr.msk.bf16.vlgmr.msra.gmra.mrb[8].mxu0 %vm258_vm2, %v1456_v42  ;;  %v962_v56 = vsel %vm956_vm4, %v949_v54, %v951_v53  ;;  %v953_v61 = vpop.permute.xlu1 %952 }
  0xb6   : > { %1454 = vmatmul.mubr.msk.bf16.vlgmr.msra.gmra.mrb[12].mxu1 %vm258_vm2, %v1696_v24  ;;  %1502 = vmatpush3.bf16.msra.mxu0 %v701_v38  ;;  %v963_v3 = vsel %vm956_vm4, %v951_v53, %v953_v61  ;;  %v1208_v24 = vsub.s32 3, %v1195_v13 }
  0xb7   : > { %765 = vmatpush1.bf16.msra.mxu1 %v705_v52  ;;  %1503 = vmatprep.mubr.msk.bf16.mxu0 %vm1609_vm0, %v1608_v0 }
  0xb8   : > { %846 = vmatprep.subr.bf16.mxu1 %v710_v50  ;;  %977 = vmatprep.subr.bf16.mxu0 %v958_v51  ;;  %v955_v62 = vpop.permute.xlu0 %954 }
  0xb9   : > { %796 = vmatprep.mubr.bf16.mxu1 %v1610_v1  ;;  %v964_v2 = vsel %vm956_vm4, %v953_v61, %v955_v62 }
  0xbd   : > { %1504 = vmatmul.mubr.msk.bf16.vlgmr.msra.gmra.mrb[0].mxu0 %vm258_vm2, %v1456_v42 }
  0xbe   : > { %978 = vmatpush1.bf16.msra.mxu0 %v957_v55  ;;  %1458 = vmatmul.mubr.msk.bf16.vlgmr.msra.gmra.mrb[4].mxu1 %vm258_vm2, %v1456_v42 }
  0xbf   : > { %847 = vmatpush1.bf16.msra.mxu1 %v709_v58  ;;  %1009 = vmatprep.mubr.bf16.mxu0 %v1610_v1  ;;  %v1468_v58 = vld [vmem:[%s1823_s1 + $0x8] ss:$0 sm:$0xff] }
  0xc0   : > { %1059 = vmatprep.subr.bf16.mxu0 %v962_v56  ;;  %1018 = vmatprep.subr.bf16.mxu1 %v960_v57 }
  0xc1   : > { %878 = vmatprep.mubr.bf16.mxu1 %v1610_v1 }
  0xc5   : > { %1463 = vmatmul.mubr.msk.bf16.vlgmr.msra.gmra.mrb[4].mxu0 %vm258_vm2, %v1462_v59 }
  0xc6   : > { %1060 = vmatpush1.bf16.msra.mxu0 %v961_v60  ;;  %1460 = vmatmul.mubr.msk.bf16.vlgmr.msra.gmra.mrb[12].mxu1 %vm258_vm2, %v1456_v42 }
  0xc7   : > { %1019 = vmatpush1.bf16.msra.mxu1 %v959_v63  ;;  %1091 = vmatprep.mubr.bf16.mxu0 %v1610_v1 }
  0xc8   : > { %1507 = vmatprep.subr.bf16.mxu0 %v1608_v0  ;;  %1050 = vmatprep.mubr.bf16.mxu1 %v1610_v1 }
  0xc9   : > { %1100 = vmatprep.subr.bf16.mxu1 %v964_v2 }
  0xcd   : > { %1465 = vmatmul.mubr.msk.bf16.vlgmr.msra.gmra.mrb[8].mxu0 %vm258_vm2, %v1462_v59 }
  0xce   : > { %1508 = vmatpush3.bf16.msra.mxu0 %v955_v62  ;;  %1464 = vmatmul.mubr.msk.bf16.vlgmr.msra.gmra.mrb[4].mxu1 %vm258_vm2, %v1462_v59 }
  0xcf   : > { %1101 = vmatpush1.bf16.msra.mxu1 %v963_v3  ;;  %1509 = vmatprep.mubr.msk.bf16.mxu0 %vm1609_vm0, %v1608_v0  ;;  %v1190_v0 = vld [vmem:[%s1823_s1] sm:$0xff] }
  0xd0   : > { %1132 = vmatprep.mubr.bf16.mxu1 %v1610_v1  ;;  %v1197_v16 = vrot.slane %v1190_v0, %v1196_v14  ;;  %v1201_v17 = vrot.slane %v1190_v0, %v1200_v15  ;;  %v1205_v29 = vrot.slane %v1190_v0, %v1204_v22  ;;  %v1209_v30 = vrot.slane %v1190_v0, %v1208_v24 }
  0xd1   : > { %v1213_v34 = vrot.slane %v1190_v0, %v1212_v27  ;;  %v1217_v37 = vrot.slane %v1190_v0, %v1216_v28  ;;  %v1225_v60 = vrot.slane %v1190_v0, %v1224_v48 }
  0xd5   : > { %1510 = vmatmul.mubr.msk.bf16.vlgmr.msra.gmra.mrb[0].mxu0 %vm258_vm2, %v1462_v59 }
  0xd6   : > { %1466 = vmatmul.mubr.msk.bf16.vlgmr.msra.gmra.mrb[12].mxu1 %vm258_vm2, %v1462_v59  ;;  %v1221_v59 = vrot.slane %v1190_v0, %v1220_v44 }
 0x161   : > { %v296_v4 = vpop.f32.mrb[0].mxu1 }
 0x162   : > { %v298_v5 = vpop.f32.mrb[1].mxu1 }
 0x163   : > { %v300_v6 = vpop.f32.mrb[2].mxu1 }
 0x164   : > { %v301_v7 = vpop.f32.mrb[3].mxu1 }
 0x171   : > { %v378_v8 = vpop.f32.mrb[8].mxu1 }
 0x172   : > { %v380_v9 = vpop.f32.mrb[9].mxu1 }
 0x173   : > { %v382_v10 = vpop.f32.mrb[10].mxu1 }
 0x174   : > { %v383_v11 = vpop.f32.mrb[11].mxu1 }
 0x198   : > { %v1011_v1 = vpop.f32.mrb[4].mxu0 }
 0x199   : > { %v1778_v18 = vadd.f32 %v1011_v1, %v296_v4  ;;  %v1013_v19 = vpop.f32.mrb[5].mxu0 }
 0x19a   : > { %v1780_v20 = vadd.f32 %v1013_v19, %v298_v5  ;;  %v1015_v21 = vpop.f32.mrb[6].mxu0 }
 0x19b   : > { %v1016_v23 = vpop.f32.mrb[7].mxu0  ;;  %v1239_v25 = vmul.f32 %v1778_v18, %v1197_v16 }
 0x19c   : > { %v1240_v26 = vmul.f32 %v1780_v20, %v1201_v17 }
 0x19d   : > { %v1260_v31 = vmul.f32 %v1239_v25, %v1239_v25 }
 0x19e   : > { %v1261_v32 = vmul.f32 %v1240_v26, %v1240_v26  ;;  %v1248_v39 = vadd.f32 %v1240_v26, %v1239_v25 }
 0x1a0   : > { %v1093_v33 = vpop.f32.mrb[8].mxu0  ;;  %v1269_v49 = vadd.f32 %v1261_v32, %v1260_v31 }
 0x1a1   : > { %v1784_v35 = vadd.f32 %v1093_v33, %v378_v8  ;;  %v1095_v36 = vpop.f32.mrb[9].mxu0  ;;  %v1786_v38 = vpop.f32.mrb[4].mxu1 }
 0x1a2   : > { %v1788_v40 = vadd.f32 %v1095_v36, %v380_v9  ;;  %v1241_v41 = vmul.f32 %v1205_v29, %v1786_v38  ;;  %v1097_v42 = vpop.f32.mrb[10].mxu0  ;;  %v1791_v43 = vpop.f32.mrb[5].mxu1 }
 0x1a3   : > { %v1242_v45 = vmul.f32 %v1209_v30, %v1791_v43  ;;  %v1098_v46 = vpop.f32.mrb[11].mxu0  ;;  %v1056_v47 = vpop.f32.mrb[6].mxu1  ;;  %v1243_v50 = vmul.f32 %v1784_v35, %v1213_v34 }
 0x1a4   : > { %v1249_v51 = vadd.f32 %v1248_v39, %v1241_v41  ;;  %v1262_v52 = vmul.f32 %v1241_v41, %v1241_v41  ;;  %v1057_v53 = vpop.f32.mrb[7].mxu1  ;;  %v1244_v55 = vmul.f32 %v1788_v40, %v1217_v37 }
 0x1a5   : > { %v1263_v54 = vmul.f32 %v1242_v45, %v1242_v45  ;;  %v1264_v61 = vmul.f32 %v1243_v50, %v1243_v50 }
 0x1a6   : > { %v1270_v56 = vadd.f32 %v1269_v49, %v1262_v52  ;;  %v1250_v57 = vadd.f32 %v1249_v51, %v1242_v45  ;;  %v1265_v6 = vmul.f32 %v1244_v55, %v1244_v55 }
 0x1a8   : > { %v1251_v62 = vadd.f32 %v1250_v57, %v1243_v50  ;;  %v1271_v63 = vadd.f32 %v1270_v56, %v1263_v54  ;;  %v1175_v2 = vpop.f32.mrb[0].mxu0 }
 0x1a9   : > { %v1247_v3 = vmul.f32 %v1468_v58, %v1175_v2  ;;  %v1511_v4 = vpop.f32.mrb[1].mxu0  ;;  %v1134_v5 = vpop.f32.mrb[12].mxu1 }
 0x1aa   : > { %v1272_v7 = vadd.f32 %v1271_v63, %v1264_v61  ;;  %v1245_v8 = vmul.f32 %v1221_v59, %v1134_v5  ;;  %v1252_v9 = vadd.f32 %v1251_v62, %v1244_v55  ;;  %v1178_v10 = vpop.f32.mrb[2].mxu0  ;;  %v1136_v11 = vpop.f32.mrb[13].mxu1 }
 0x1ab   : > { %v1246_v12 = vmul.f32 %v1225_v60, %v1136_v11  ;;  %v1512_v13 = vpop.f32.mrb[3].mxu0  ;;  %v1138_v14 = vpop.f32.mrb[14].mxu1  ;;  %v1268_v17 = vmul.f32 %v1247_v3, %v1247_v3  ;;  %v1256_v23 = vsel %vm1255_vm5, %v1247_v3, 0.0 }
 0x1ac   : > { %v1253_v15 = vadd.f32 %v1252_v9, %v1245_v8  ;;  %v1266_v1 = vmul.f32 %v1245_v8, %v1245_v8  ;;  %v1139_v16 = vpop.f32.mrb[15].mxu1  ;;  %v1273_v0 = vadd.f32 %v1272_v7, %v1265_v6 }
 0x1ad   : > { %v1267_v19 = vmul.f32 %v1246_v12, %v1246_v12  ;;  %v1276_v26 = vsel %vm1255_vm5, %v1268_v17, 0.0 }
 0x1ae   : > { %v1254_v21 = vadd.f32 %v1253_v15, %v1246_v12  ;;  %v1274_v22 = vadd.f32 %v1273_v0, %v1266_v1 }
 0x1b0   : > { %v1257_v24 = vadd.f32 %v1256_v23, %v1254_v21  ;;  %v1275_v25 = vadd.f32 %v1274_v22, %v1267_v19 }
 0x1b2   : > { %1258 = vadd.xlane.f32.xlu1 %v1257_v24  ;;  %v1277_v27 = vadd.f32 %v1276_v26, %v1275_v25 }
 0x1b4   : > { %1278 = vadd.xlane.f32.xlu0 %v1277_v27 }
 0x23f   : > { %v1259_v28 = vpop.xlane.xlu1 %1258 }
 0x240   : > { %v1280_v29 = vmul.f32 0.0009765625, %v1259_v28 }
 0x241   : > { %v1279_v30 = vpop.xlane.xlu0 %1278 }
 0x242   : > { %v1281_v31 = vmul.f32 0.0009765625, %v1279_v30  ;;  %v1282_v32 = vmul.f32 %v1280_v29, %v1280_v29  ;;  %v1284_v36 = vsub.f32 %v1778_v18, %v1280_v29  ;;  %v1285_v37 = vsub.f32 %v1780_v20, %v1280_v29 }
 0x243   : > { %v1286_v39 = vsub.f32 %v1786_v38, %v1280_v29  ;;  %v1287_v41 = vsub.f32 %v1791_v43, %v1280_v29  ;;  %v1288_v42 = vsub.f32 %v1784_v35, %v1280_v29  ;;  %v1289_v45 = vsub.f32 %v1788_v40, %v1280_v29 }
 0x244   : > { %v1283_v33 = vsub.f32 %v1281_v31, %v1282_v32  ;;  %v1290_v46 = vsub.f32 %v1134_v5, %v1280_v29  ;;  %v1291_v47 = vsub.f32 %v1136_v11, %v1280_v29  ;;  %v1292_v48 = vsub.f32 %v1175_v2, %v1280_v29 }
 0x246   : > { %v1293_v34 = vadd.f32 1e-05, %v1283_v33 }
 0x248   : > { %1598 = vrsqrt.f32 %v1293_v34 }
 0x252   : > { %v1599_v44 = vpop.eup %1598 }
 0x253   : > { %v1295_v49 = vmul.f32 %v1599_v44, %v1284_v36  ;;  %v1296_v50 = vmul.f32 %v1599_v44, %v1285_v37  ;;  %v1297_v51 = vmul.f32 %v1599_v44, %v1286_v39  ;;  %v1298_v52 = vmul.f32 %v1599_v44, %v1287_v41 }
 0x254   : > { %v1299_v18 = vmul.f32 %v1599_v44, %v1288_v42  ;;  %v1300_v20 = vmul.f32 %v1599_v44, %v1289_v45  ;;  %v1301_v53 = vmul.f32 %v1599_v44, %v1290_v46  ;;  %v1302_v38 = vmul.f32 %v1599_v44, %v1291_v47 }
 0x255   : > { %v1303_v54 = vmul.f32 %v1599_v44, %v1292_v48  ;;  %vm1304_vm7 = vcmp.ge.f32.partialorder %v1295_v49, 0.0  ;;  %vm1305_vm8 = vcmp.ge.f32.partialorder %v1296_v50, 0.0  ;;  %vm1306_vm9 = vcmp.ge.f32.partialorder %v1297_v51, 0.0 }
 0x256   : > { %vm1307_vm10 = vcmp.ge.f32.partialorder %v1298_v52, 0.0  ;;  %vm1308_vm11 = vcmp.ge.f32.partialorder %v1299_v18, 0.0  ;;  %vm1309_vm12 = vcmp.ge.f32.partialorder %v1300_v20, 0.0  ;;  %vm1310_vm13 = vcmp.ge.f32.partialorder %v1301_v53, 0.0 }
 0x257   : > { %vm1311_vm14 = vcmp.ge.f32.partialorder %v1302_v38, 0.0  ;;  %vm1312_vm15 = vcmp.ge.f32.partialorder %v1303_v54, 0.0  ;;  %v1313_v35 = vmul.f32 0.2, %v1295_v49  ;;  %v1314_v40 = vmul.f32 0.2, %v1296_v50 }
 0x258   : > { %v1315_v43 = vmul.f32 0.2, %v1297_v51  ;;  %v1316_v55 = vmul.f32 0.2, %v1298_v52  ;;  %v1317_v56 = vmul.f32 0.2, %v1299_v18 }
 0x259   : > { %v1318_v57 = vmul.f32 0.2, %v1300_v20  ;;  %v1319_v58 = vmul.f32 0.2, %v1301_v53  ;;  %v1320_v59 = vmul.f32 0.2, %v1302_v38  ;;  %v1322_v60 = vsel %vm1304_vm7, %v1295_v49, %v1313_v35 }
 0x25a   : > { %v1321_v61 = vmul.f32 0.2, %v1303_v54  ;;  %v1323_v62 = vsel %vm1305_vm8, %v1296_v50, %v1314_v40  ;;  %v1324_v63 = vsel %vm1306_vm9, %v1297_v51, %v1315_v43  ;;  %v1325_v2 = vsel %vm1307_vm10, %v1298_v52, %v1316_v55 }
 0x25b   : > { %v1326_v3 = vsel %vm1308_vm11, %v1299_v18, %v1317_v56  ;;  %v1327_v4 = vsel %vm1309_vm12, %v1300_v20, %v1318_v57  ;;  %v1328_v5 = vsel %vm1310_vm13, %v1301_v53, %v1319_v58  ;;  %v1329_v6 = vsel %vm1311_vm14, %v1302_v38, %v1320_v59 }
 0x25c   : > { %v1330_v7 = vsel %vm1312_vm15, %v1303_v54, %v1321_v61  ;;  %v1476_v8 = vpack.c.bf16 %v1323_v62, %v1322_v60  ;;  %v1477_v9 = vpack.c.bf16 %v1325_v2, %v1324_v63  ;;  %v1478_v10 = vpack.c.bf16 %v1327_v4, %v1326_v3 }
 0x25d   : > { %v1479_v11 = vpack.c.bf16 %v1329_v6, %v1328_v5  ;;  %v1480_v12 = vpack.c.bf16 %v1330_v7, %v1330_v7 }
 0x25e   : > { %1368 = vst [vmem:[%s170_s9] sm:$0xff] %v1476_v8  ;;  %1369 = vst [vmem:[%s170_s9 + $0x8] sm:$0xff] %v1477_v9 }
 0x25f   : > { %1370 = vst [vmem:[%s170_s9 + $0x10] sm:$0xff] %v1478_v10  ;;  %1371 = vst [vmem:[%s170_s9 + $0x18] sm:$0xff] %v1479_v11 }
 0x260   : > { %1373 = vst.msk [vmem:[%s170_s9 + $0x20] sm:$0xf] %vm1372_vm6, %v1480_v12 }
 0x261 PF: > { %s13_s12 = sadd.s32 1, %s1606_s12  }
 0x262   : > { %p10_p4 = scmp.ge.s32.totalorder %s13_s12, 4  }
 0x264   :  { %12 = sbr.rel (!%p10_p4) target bundleno = 1 (0x1), region = 65 }

// kernel: discriminator_forward.5
= control target key start
LH: loop header
LB: loop body
LE: loop exit
PB: predicated region body
PF: predicated region fallthrough
CT: control target
= control target key end

     0   :  { %s12524_s11 = smov 0   ;;  %s14471_s0 = inlined_call_operand.vmem [shape: bf16[2,32,308], index: 0, kind: input, shape index: {}]   ;;  %s14472_s1 = inlined_call_operand.vmem [shape: f32[1,272], index: 1, kind: input, shape index: {}]   ;;  %s14473_s2 = inlined_call_operand.vmem [shape: bf16[4,16,32], index: 2, kind: input, shape index: {}]   ;;  %s14474_s3 = inlined_call_operand.vmem [shape: bf16[16,272,64], index: 3, kind: input, shape index: {}]   ;;  %s14475_s4 = inlined_call_operand.vmem [shape: bf16[16,32,16], index: 4, kind: input, shape index: {}]   ;;  %s14476_s5 = inlined_call_operand.vmem [shape: bf16[16,64,16], index: 5, kind: input, shape index: {}]   ;;  %s14477_s6 = inlined_call_operand.vmem [shape: bf16[16,64,32], index: 6, kind: input, shape index: {}]   ;;  %s14478_s7 = inlined_call_operand.vmem [shape: f32[64,16], index: 7, kind: input, shape index: {}]   ;;  %s14479_s8 = inlined_call_operand.<no memory space> [shape: f32[1,1], index: 8, kind: input, shape index: {}]   ;;  %s14480_s9 = inlined_call_operand.vmem [shape: f32[2,1,1], index: 9, kind: output, shape index: {}]  }
   0x1   :  { %14 = sst [smem:[#allocation2]] %s14479_s8 }
   0x2 LB: > { %s9104_s12 = sadd.s32 4294967295, %s12463_s11   ;;  %p9108_p0 = scmp.ge.s32.totalorder %s12463_s11, 1  ;;  %s12463_s11 = sphi %s12524_s11, %s20_s11  }
   0x3   : > { %p288_p1 = scmp.lt.s32.totalorder %s12463_s11, 3 }
   0x5   : > { %p289_p2 = pnand %p9108_p0, %p288_p1 }
   0x6   : > { %p322_p3 = scmp.lt.s32.totalorder (!%p289_p2), %s9104_s12, 1  ;;  %v12465_v0 = vmov (!%p289_p2), 0.0   ;;  %vm12466_vm0 = vmmov (!%p289_p2), 0   ;;  %v12467_v3 = vmov (!%p289_p2), 0   ;;  %s12468_s16 = smov (!%p289_p2), 127   ;;  %vm387_vm1 = vcmask (!%p289_p2), 1039360  }
   0x7   : > { %292 = sbr.rel (%p289_p2) target bundleno = 5855 (0x16df), region = 56  ;;  %11158 = vmatprep.subr.bf16.mxu1 (!%p289_p2), %v12465_v0  ;;  %11162 = vmatprep.mubr.msk.bf16.mxu1 (!%p289_p2), %vm12466_vm0, %v12465_v0  ;;  %s12469_s17 = smov (!%p289_p2), 111   ;;  %vm398_vm2 = vcmask (!%p289_p2), 261120   ;;  %v11993_v14 = vld [vmem:[%s14473_s2 + $0x8] sm:$0xff] (!%p289_p2)   ;;  %vm604_vm3 = vcmask (!%p289_p2), 908288   ;;  %v11994_v24 = vld [vmem:[%s14473_s2] sm:$0xff] (!%p289_p2)   ;;  %v834_v42 = vlaneseq (!%p289_p2) }
   0x8   : > { %434 = vmatprep.mubr.bf16.mxu0 (!%p289_p2), %v12467_v3  ;;  %s12470_s18 = smov (!%p289_p2), 110   ;;  %vm728_vm4 = vcmask (!%p289_p2), 900096   ;;  %v11995_v34 = vld [vmem:[%s14473_s2 + $0x10] sm:$0xff] (!%p289_p2)   ;;  %v11996_v41 = vld [vmem:[%s14473_s2 + $0x18] sm:$0xff] (!%p289_p2)   ;;  %v832_v45 = vld [vmem:[%s14472_s1] sm:$0x7] (!%p289_p2) }
   0x9   : > { %v835_v43 = vshrl.u32 (!%p289_p2), %v834_v42, 7  ;;  %vm856_vm5 = vcmask (!%p289_p2), 130048   ;;  %vm5624_vm12 = vcmask (!%p289_p2), 523264   ;;  %s9052_s29 = sld [smem:[#allocation2]] (!%p289_p2) }
   0xb   : > { %v844_v44 = vsub.s32 (!%p289_p2), 2, %v835_v43  ;;  %v836_v46 = vsub.s32 (!%p289_p2), 0, %v835_v43  ;;  %v840_v47 = vsub.s32 (!%p289_p2), 1, %v835_v43 }
   0xd   : > { %v845_v48 = vrot.slane (!%p289_p2), %v832_v45, %v844_v44  ;;  %v837_v49 = vrot.slane (!%p289_p2), %v832_v45, %v836_v46  ;;  %v841_v51 = vrot.slane (!%p289_p2), %v832_v45, %v840_v47 }
   0xe   : > { %s14482_s12 = smov (!%p322_p3, %s9104_s12), 1 }
   0xf   : > { %s11970_s8 = smul.u32 48, %s14482_s12 }
  0x11   : > { %s326_s15 = scalar_lea.vmem %s14471_s0, %s11970_s8  ;;  %s329_s8 = scalar_lea.vmem %s14480_s9, %s14482_s12 }
  0x12   : > { %v11985_v1 = vld [vmem:[%s326_s15 + $0x4] ss:$12 sps:$4 sm:$0xff]   ;;  %v11987_v2 = vld [vmem:[%s326_s15] ss:$12 sps:$4 sm:$0xff]   ;;  %v11988_v4 = vld [vmem:[%s326_s15 + $0x8] ss:$12 sps:$4 sm:$0xff]  }
  0x13   : > { %377 = vrot.lane.b32.xlu0 %v11985_v1, %s12468_s16  ;;  %375 = vrot.lane.b32.xlu1 %v11987_v2, %s12468_s16  ;;  %v11989_v5 = vld [vmem:[%s326_s15 + $0x1c] ss:$12 sps:$4 sm:$0xff]   ;;  %v11991_v6 = vld [vmem:[%s326_s15 + $0x20] ss:$12 sps:$4 sm:$0xff]  }
  0x14   : > { %v11992_v7 = vld [vmem:[%s326_s15 + $0x18] ss:$12 sps:$4 sm:$0xff]  }
  0x17   : > { %379 = vrot.lane.b32.xlu0 %v11988_v4, %s12468_s16  ;;  %383 = vrot.lane.b32.xlu1 %v11989_v5, %s12468_s16 }
  0x1b   : > { %385 = vrot.lane.b32.xlu0 %v11991_v6, %s12468_s16  ;;  %381 = vrot.lane.b32.xlu1 %v11992_v7, %s12468_s16 }
  0x1f   : > { %594 = vrot.lane.b32.xlu0 %v11985_v1, %s12469_s17  ;;  %596 = vrot.lane.b32.xlu1 %v11988_v4, %s12469_s17 }
  0x23   : > { %592 = vrot.lane.b32.xlu0 %v11987_v2, %s12469_s17  ;;  %600 = vrot.lane.b32.xlu1 %v11989_v5, %s12469_s17 }
  0x27   : > { %602 = vrot.lane.b32.xlu0 %v11991_v6, %s12469_s17  ;;  %598 = vrot.lane.b32.xlu1 %v11992_v7, %s12469_s17 }
  0x2b   : > { %718 = vrot.lane.b32.xlu0 %v11985_v1, %s12470_s18  ;;  %720 = vrot.lane.b32.xlu1 %v11988_v4, %s12470_s18 }
  0x2f   : > { %716 = vrot.lane.b32.xlu0 %v11987_v2, %s12470_s18  ;;  %724 = vrot.lane.b32.xlu1 %v11989_v5, %s12470_s18 }
  0x33   : > { %726 = vrot.lane.b32.xlu0 %v11991_v6, %s12470_s18  ;;  %722 = vrot.lane.b32.xlu1 %v11992_v7, %s12470_s18 }
  0x85   : > { %v378_v8 = vpop.permute.xlu0 %377  ;;  %v376_v9 = vpop.permute.xlu1 %375 }
  0x86   : > { %v388_v13 = vsel %vm387_vm1, %v376_v9, %v378_v8 }
  0x89   : > { %v380_v10 = vpop.permute.xlu0 %379  ;;  %v384_v11 = vpop.permute.xlu1 %383 }
  0x8a   : > { %11159 = vmatpush3.bf16.msra.mxu1 %v380_v10  ;;  %v389_v12 = vsel %vm387_vm1, %v378_v8, %v380_v10 }
  0x8b   : > { %402 = vmatprep.subr.bf16.mxu0 %v389_v12  ;;  %11160 = vmatprep.subr.bf16.mxu1 %v12465_v0 }
  0x8c   : > { %403 = vmatpush1.bf16.msra.mxu0 %v388_v13 }
  0x8d   : > { %v386_v15 = vpop.permute.xlu0 %385  ;;  %v382_v16 = vpop.permute.xlu1 %381 }
  0x8e   : > { %11161 = vmatpush3.bf16.msra.mxu1 %v386_v15  ;;  %v391_v17 = vsel %vm387_vm1, %v384_v11, %v386_v15  ;;  %v390_v18 = vsel %vm387_vm1, %v382_v16, %v384_v11 }
  0x8f   : > { %404 = vmatprep.subr.bf16.mxu0 %v391_v17  ;;  %11166 = vmatprep.subr.bf16.mxu1 %v12465_v0 }
  0x90   : > { %405 = vmatpush1.bf16.msra.mxu0 %v390_v18 }
  0x91   : > { %11163 = vmatmul.mubr.msk.bf16.vlgmr.msra.gmra.mrb[0].mxu1 %vm398_vm2, %v11993_v14  ;;  %500 = vmatprep.subr.bf16.mxu0 %v11985_v1  ;;  %v595_v19 = vpop.permute.xlu0 %594  ;;  %v597_v20 = vpop.permute.xlu1 %596 }
  0x92   : > { %11167 = vmatpush3.bf16.msra.mxu1 %v11988_v4  ;;  %11170 = vmatprep.mubr.msk.bf16.mxu1 %vm12466_vm0, %v12465_v0  ;;  %v606_v22 = vsel %vm604_vm3, %v595_v19, %v597_v20 }
  0x93   : > { %9119 = vmatmul.mubr.msk.bf16.vlgmr.msra.gmra.mrb[0].mxu0 %vm398_vm2, %v11993_v14  ;;  %11168 = vmatprep.subr.bf16.mxu1 %v12465_v0 }
  0x94   : > { %501 = vmatpush1.bf16.msra.mxu0 %v11987_v2  ;;  %532 = vmatprep.mubr.bf16.mxu0 %v12467_v3 }
  0x95   : > { %502 = vmatprep.subr.bf16.mxu0 %v11989_v5  ;;  %v593_v21 = vpop.permute.xlu0 %592  ;;  %v601_v23 = vpop.permute.xlu1 %600 }
  0x96   : > { %11169 = vmatpush3.bf16.msra.mxu1 %v11991_v6  ;;  %v605_v27 = vsel %vm604_vm3, %v593_v21, %v595_v19  ;;  %v11998_v21 = vld [vmem:[%s14474_s3] sm:$0xff]  }
  0x97   : > { %11174 = vmatprep.subr.bf16.mxu1 %v12465_v0 }
  0x98   : > { %503 = vmatpush1.bf16.msra.mxu0 %v11992_v7 }
  0x99   : > { %618 = vmatprep.subr.bf16.mxu0 %v606_v22  ;;  %v603_v25 = vpop.permute.xlu0 %602  ;;  %v599_v26 = vpop.permute.xlu1 %598  ;;  %v11999_v22 = vld [vmem:[%s14474_s3 + $0x48] sm:$0xff]  }
  0x9a   : > { %v608_v29 = vsel %vm604_vm3, %v601_v23, %v603_v25  ;;  %v607_v31 = vsel %vm604_vm3, %v599_v26, %v601_v23  ;;  %v12000_v23 = vld [vmem:[%s14474_s3 + $0x8] sm:$0xff]   ;;  %v12003_v26 = vld [vmem:[%s14474_s3 + $0x58] sm:$0xff]  }
  0x9d   : > { %11171 = vmatmul.mubr.msk.bf16.vlgmr.msra.gmra.mrb[0].mxu1 %vm398_vm2, %v11994_v24  ;;  %v719_v28 = vpop.permute.xlu0 %718  ;;  %v721_v30 = vpop.permute.xlu1 %720 }
  0x9e   : > { %11175 = vmatpush3.bf16.msra.mxu1 %v597_v20  ;;  %11178 = vmatprep.mubr.msk.bf16.mxu1 %vm12466_vm0, %v12465_v0  ;;  %v730_v33 = vsel %vm728_vm4, %v719_v28, %v721_v30  ;;  %v11997_v20 = vld [vmem:[%s14474_s3 + $0x40] sm:$0xff]  }
  0x9f   : > { %9122 = vmatmul.mubr.msk.bf16.vlgmr.msra.gmra.mrb[0].mxu0 %vm398_vm2, %v11994_v24  ;;  %11176 = vmatprep.subr.bf16.mxu1 %v12465_v0  ;;  %v12001_v24 = vld [vmem:[%s14474_s3 + $0x50] sm:$0xff]  }
  0xa0   : > { %619 = vmatpush1.bf16.msra.mxu0 %v605_v27  ;;  %650 = vmatprep.mubr.bf16.mxu0 %v12467_v3  ;;  %v12004_v27 = vld [vmem:[%s14474_s3 + $0x18] sm:$0xff]  }
  0xa1   : > { %620 = vmatprep.subr.bf16.mxu0 %v608_v29  ;;  %v717_v32 = vpop.permute.xlu0 %716  ;;  %v725_v35 = vpop.permute.xlu1 %724  ;;  %v12006_v29 = vld [vmem:[%s14474_s3 + $0x20] sm:$0xff]  }
  0xa2   : > { %11177 = vmatpush3.bf16.msra.mxu1 %v603_v25  ;;  %v729_v37 = vsel %vm728_vm4, %v717_v32, %v719_v28  ;;  %v12002_v25 = vld [vmem:[%s14474_s3 + $0x10] sm:$0xff]   ;;  %v12005_v28 = vld [vmem:[%s14474_s3 + $0x60] sm:$0xff]  }
  0xa3   : > { %11182 = vmatprep.subr.bf16.mxu1 %v12465_v0  ;;  %v12009_v32 = vld [vmem:[%s14474_s3 + $0x70] sm:$0xff]  }
  0xa4   : > { %621 = vmatpush1.bf16.msra.mxu0 %v607_v31  ;;  %v12008_v31 = vld [vmem:[%s14474_s3 + $0x28] sm:$0xff]  }
  0xa5   : > { %742 = vmatprep.subr.bf16.mxu0 %v730_v33  ;;  %v727_v36 = vpop.permute.xlu0 %726  ;;  %v723_v38 = vpop.permute.xlu1 %722  ;;  %v12010_v33 = vld [vmem:[%s14474_s3 + $0x30] sm:$0xff]  }
  0xa6   : > { %v732_v39 = vsel %vm728_vm4, %v725_v35, %v727_v36  ;;  %v731_v40 = vsel %vm728_vm4, %v723_v38, %v725_v35  ;;  %v12012_v35 = vld [vmem:[%s14474_s3 + $0x78] sm:$0xff]  }
  0xa9   : > { %11179 = vmatmul.mubr.msk.bf16.vlgmr.msra.gmra.mrb[0].mxu1 %vm398_vm2, %v11995_v34 }
  0xaa   : > { %11183 = vmatpush3.bf16.msra.mxu1 %v721_v30  ;;  %11186 = vmatprep.mubr.msk.bf16.mxu1 %vm12466_vm0, %v12465_v0  ;;  %v12007_v30 = vld [vmem:[%s14474_s3 + $0x68] sm:$0xff]  }
  0xab   : > { %9127 = vmatmul.mubr.msk.bf16.vlgmr.msra.gmra.mrb[0].mxu0 %vm398_vm2, %v11995_v34  ;;  %11184 = vmatprep.subr.bf16.mxu1 %v12465_v0  ;;  %v12011_v34 = vld [vmem:[%s14474_s3 + $0x80] sm:$0xff]  }
  0xac   : > { %743 = vmatpush1.bf16.msra.mxu0 %v729_v37  ;;  %774 = vmatprep.mubr.bf16.mxu0 %v12467_v3  ;;  %v12014_v37 = vld [vmem:[%s14474_s3 + $0xc8] sm:$0xff]  }
  0xad   : > { %744 = vmatprep.subr.bf16.mxu0 %v732_v39 }
  0xae   : > { %11185 = vmatpush3.bf16.msra.mxu1 %v727_v36  ;;  %v12013_v36 = vld [vmem:[%s14474_s3 + $0x38] sm:$0xff]  }
  0xaf   : > { %11190 = vmatprep.subr.bf16.mxu1 %v12465_v0 }
  0xb0   : > { %745 = vmatpush1.bf16.msra.mxu0 %v731_v40 }
  0xb1   : > { %10534 = vmatprep.subr.bf16.mxu0 %v11997_v20  ;;  %v12018_v20 = vld [vmem:[%s14474_s3 + $0x108] sm:$0xff]  }
  0xb5   : > { %11187 = vmatmul.mubr.msk.bf16.vlgmr.msra.gmra.mrb[0].mxu1 %vm398_vm2, %v11996_v41 }
  0xb6   : > { %11192 = vmatprep.mubr.msk.bf16.mxu1 %vm12466_vm0, %v12465_v0  ;;  %11191 = vmatpush3.bf16.msra.mxu1 %v12011_v34  ;;  %v12031_v34 = vld [vmem:[%s14474_s3 + $0x150] sm:$0xff]  }
  0xb7   : > { %9132 = vmatmul.mubr.msk.bf16.vlgmr.msra.gmra.mrb[0].mxu0 %vm398_vm2, %v11996_v41  ;;  %10558 = vmatprep.subr.bf16.mxu1 %v12014_v37  ;;  %v12034_v37 = vld [vmem:[%s14474_s3 + $0x118] sm:$0xff]  }
  0xb8   : > { %10535 = vmatpush3.bf16.msra.mxu0 %v11998_v21  ;;  %v12017_v21 = vld [vmem:[%s14474_s3 + $0x90] sm:$0xff]  }
  0xb9   : > { %10536 = vmatprep.subr.bf16.mxu0 %v11999_v22  ;;  %v12019_v22 = vld [vmem:[%s14474_s3 + $0xd8] sm:$0xff]  }
  0xbc   : > { %10537 = vmatpush3.bf16.msra.mxu0 %v12000_v23  ;;  %v12020_v23 = vld [vmem:[%s14474_s3 + $0x98] sm:$0xff]  }
  0xbd   : > { %10538 = vmatprep.subr.bf16.mxu0 %v12001_v24  ;;  %v12021_v24 = vld [vmem:[%s14474_s3 + $0xe0] sm:$0xff]  }
  0xc0   : > { %10539 = vmatpush3.bf16.msra.mxu0 %v12002_v25  ;;  %v12022_v25 = vld [vmem:[%s14474_s3 + $0xa0] sm:$0xff]  }
  0xc1   : > { %10540 = vmatprep.subr.bf16.mxu0 %v12003_v26  ;;  %v12023_v26 = vld [vmem:[%s14474_s3 + $0xe8] sm:$0xff]  }
  0xc4   : > { %10541 = vmatpush3.bf16.msra.mxu0 %v12004_v27  ;;  %v12024_v27 = vld [vmem:[%s14474_s3 + $0xa8] sm:$0xff]  }
  0xc5   : > { %10542 = vmatprep.subr.bf16.mxu0 %v12005_v28  ;;  %v12025_v28 = vld [vmem:[%s14474_s3 + $0xf0] sm:$0xff]  }
  0xc8   : > { %10543 = vmatpush3.bf16.msra.mxu0 %v12006_v29  ;;  %v12026_v29 = vld [vmem:[%s14474_s3 + $0xb0] sm:$0xff]  }
  0xc9   : > { %10544 = vmatprep.subr.bf16.mxu0 %v12007_v30  ;;  %v12027_v30 = vld [vmem:[%s14474_s3 + $0xf8] sm:$0xff]  }
  0xcc   : > { %10545 = vmatpush3.bf16.msra.mxu0 %v12008_v31  ;;  %v12028_v31 = vld [vmem:[%s14474_s3 + $0xb8] sm:$0xff]  }
  0xcd   : > { %10546 = vmatprep.subr.bf16.mxu0 %v12009_v32  ;;  %v12029_v32 = vld [vmem:[%s14474_s3 + $0x100] sm:$0xff]  }
  0xd0   : > { %10547 = vmatpush3.bf16.msra.mxu0 %v12010_v33  ;;  %v12030_v33 = vld [vmem:[%s14474_s3 + $0xc0] sm:$0xff]  }
  0xd1   : > { %10548 = vmatprep.subr.bf16.mxu0 %v12012_v35  ;;  %v12032_v35 = vld [vmem:[%s14474_s3 + $0x110] sm:$0xff]  }
  0xd4   : > { %10549 = vmatpush3.bf16.msra.mxu0 %v12013_v36  ;;  %v12033_v36 = vld [vmem:[%s14474_s3 + $0x158] sm:$0xff]  }
  0xd5   : > { %11196 = vmatprep.subr.bf16.mxu0 %v12465_v0 }
 0x188   : > { %v12596_v50 = vpop.f32.mrb[0].mxu1 }
 0x189   : > { %v851_v52 = vmul.f32 %v845_v48, %v12596_v50  ;;  %v11188_v53 = vpop.f32.mrb[1].mxu1 }
 0x18a   : > { %v12599_v54 = vpop.f32.mrb[0].mxu0  ;;  %v12601_v55 = vpop.f32.mrb[2].mxu1 }
 0x18b   : > { %v849_v56 = vmul.f32 %v837_v49, %v12599_v54  ;;  %v854_v57 = vmul.f32 %v845_v48, %v12601_v55  ;;  %v12605_v58 = vpop.f32.mrb[1].mxu0  ;;  %v11189_v59 = vpop.f32.mrb[3].mxu1  ;;  %v868_v62 = vmul.f32 %v851_v52, %v851_v52  ;;  %v857_v8 = vsel %vm856_vm5, %v851_v52, 0.0 }
 0x18c   : > { %v850_v60 = vmul.f32 %v841_v51, %v12605_v58  ;;  %v12608_v61 = vpop.f32.mrb[2].mxu0 }
 0x18d   : > { %v866_v63 = vmul.f32 %v849_v56, %v849_v56  ;;  %v852_v1 = vmul.f32 %v837_v49, %v12608_v61  ;;  %v12611_v2 = vpop.f32.mrb[3].mxu0  ;;  %v871_v6 = vmul.f32 %v854_v57, %v854_v57  ;;  %v862_v13 = vsel %vm856_vm5, %v854_v57, 0.0 }
 0x18e   : > { %v867_v3 = vmul.f32 %v850_v60, %v850_v60  ;;  %v853_v4 = vmul.f32 %v841_v51, %v12611_v2  ;;  %v855_v5 = vadd.f32 %v850_v60, %v849_v56  ;;  %v873_v14 = vsel %vm856_vm5, %v868_v62, 0.0 }
 0x18f   : > { %v869_v7 = vmul.f32 %v852_v1, %v852_v1  ;;  %v878_v18 = vsel %vm856_vm5, %v871_v6, 0.0 }
 0x190   : > { %v870_v9 = vmul.f32 %v853_v4, %v853_v4  ;;  %v858_v10 = vadd.f32 %v857_v8, %v855_v5  ;;  %v861_v11 = vadd.f32 %v853_v4, %v852_v1  ;;  %v872_v12 = vadd.f32 %v867_v3, %v866_v63 }
 0x192   : > { %859 = vadd.xlane.f32.xlu0 %v858_v10  ;;  %v863_v15 = vadd.f32 %v862_v13, %v861_v11  ;;  %v874_v16 = vadd.f32 %v873_v14, %v872_v12  ;;  %v877_v17 = vadd.f32 %v870_v9, %v869_v7 }
 0x194   : > { %864 = vadd.xlane.f32.xlu1 %v863_v15  ;;  %v879_v19 = vadd.f32 %v878_v18, %v877_v17 }
 0x196   : > { %875 = vadd.xlane.f32.xlu0 %v874_v16  ;;  %v12015_v16 = vld [vmem:[%s14474_s3 + $0x88] sm:$0xff]  }
 0x19a   : > { %880 = vadd.xlane.f32.xlu0 %v879_v19  ;;  %v12016_v19 = vld [vmem:[%s14474_s3 + $0xd0] sm:$0xff]  }
 0x21f   : > { %v860_v38 = vpop.xlane.xlu0 %859 }
 0x220   : > { %v882_v39 = vmul.f32 0.00390625, %v860_v38  ;;  %v12035_v38 = vld [vmem:[%s14474_s3 + $0x160] sm:$0xff]  }
 0x221   : > { %v865_v40 = vpop.xlane.xlu1 %864 }
 0x222   : > { %v883_v42 = vmul.f32 0.00390625, %v865_v40  ;;  %v886_v43 = vmul.f32 %v882_v39, %v882_v39  ;;  %v890_v53 = vsub.f32 %v12599_v54, %v882_v39  ;;  %v891_v56 = vsub.f32 %v12605_v58, %v882_v39  ;;  %v12037_v40 = vld [vmem:[%s14474_s3 + $0x168] sm:$0xff]  }
 0x223   : > { %v876_v41 = vpop.xlane.xlu0 %875  ;;  %v892_v59 = vsub.f32 %v12596_v50, %v882_v39  ;;  %v12036_v39 = vld [vmem:[%s14474_s3 + $0x120] sm:$0xff]  }
 0x224   : > { %v884_v44 = vmul.f32 0.00390625, %v876_v41  ;;  %v887_v49 = vmul.f32 %v883_v42, %v883_v42  ;;  %v893_v1 = vsub.f32 %v12608_v61, %v883_v42  ;;  %v894_v3 = vsub.f32 %v12611_v2, %v883_v42  ;;  %v12038_v41 = vld [vmem:[%s14474_s3 + $0x128] sm:$0xff]  }
 0x225   : > { %v895_v4 = vsub.f32 %v12601_v55, %v883_v42  ;;  %v12039_v42 = vld [vmem:[%s14474_s3 + $0x170] sm:$0xff]  }
 0x226   : > { %v888_v45 = vsub.f32 %v884_v44, %v886_v43  ;;  %v12040_v43 = vld [vmem:[%s14474_s3 + $0x130] sm:$0xff]   ;;  %v12041_v44 = vld [vmem:[%s14474_s3 + $0x178] sm:$0xff]  }
 0x227   : > { %v881_v46 = vpop.xlane.xlu0 %880 }
 0x228   : > { %v896_v47 = vadd.f32 1e-05, %v888_v45  ;;  %v885_v48 = vmul.f32 0.00390625, %v881_v46  ;;  %v12042_v45 = vld [vmem:[%s14474_s3 + $0x138] sm:$0xff]   ;;  %v12043_v46 = vld [vmem:[%s14474_s3 + $0x180] sm:$0xff]  }
 0x22a   : > { %12429 = vrsqrt.f32 %v896_v47  ;;  %v889_v51 = vsub.f32 %v885_v48, %v887_v49  ;;  %v12044_v47 = vld [vmem:[%s14474_s3 + $0x140] sm:$0xff]   ;;  %v12045_v48 = vld [vmem:[%s14474_s3 + $0x188] sm:$0xff]  }
 0x22b   : > { %v12046_v49 = vld [vmem:[%s14474_s3 + $0x148] sm:$0xff]  }
 0x22c   : > { %v897_v52 = vadd.f32 1e-05, %v889_v51  ;;  %v12047_v51 = vld [vmem:[%s14474_s3 + $0x218] sm:$0xff]  }
 0x22e   : > { %12431 = vrsqrt.f32 %v897_v52  ;;  %v12048_v52 = vld [vmem:[%s14474_s3 + $0x260] sm:$0xff]  }
 0x234   : > { %v12430_v57 = vpop.eup %12429 }
 0x235   : > { %v900_v60 = vmul.f32 %v12430_v57, %v890_v53  ;;  %v901_v62 = vmul.f32 %v12430_v57, %v891_v56  ;;  %v902_v63 = vmul.f32 %v12430_v57, %v892_v59  ;;  %v12049_v53 = vld [vmem:[%s14474_s3 + $0x220] sm:$0xff]   ;;  %v12050_v56 = vld [vmem:[%s14474_s3 + $0x268] sm:$0xff]   ;;  %v12052_v59 = vld [vmem:[%s14474_s3 + $0x270] sm:$0xff]  }
 0x236   : > { %v12051_v57 = vld [vmem:[%s14474_s3 + $0x228] sm:$0xff]  }
 0x237   : > { %v912_v6 = vmul.f32 0.2, %v900_v60  ;;  %v913_v7 = vmul.f32 0.2, %v901_v62  ;;  %vm906_vm6 = vcmp.ge.f32.partialorder %v900_v60, 0.0  ;;  %vm907_vm7 = vcmp.ge.f32.partialorder %v901_v62, 0.0 }
 0x238   : > { %v12432_v5 = vpop.eup %12431  ;;  %vm908_vm8 = vcmp.ge.f32.partialorder %v902_v63, 0.0  ;;  %v914_v58 = vmul.f32 0.2, %v902_v63 }
 0x239   : > { %v903_v8 = vmul.f32 %v12432_v5, %v893_v1  ;;  %v904_v9 = vmul.f32 %v12432_v5, %v894_v3  ;;  %v905_v54 = vmul.f32 %v12432_v5, %v895_v4  ;;  %v918_v11 = vsel %vm906_vm6, %v900_v60, %v912_v6  ;;  %v12053_v60 = vld [vmem:[%s14474_s3 + $0x230] sm:$0xff]   ;;  %v12056_v1 = vld [vmem:[%s14474_s3 + $0x280] sm:$0xff]   ;;  %v12058_v4 = vld [vmem:[%s14474_s3 + $0x288] sm:$0xff]  }
 0x23a   : > { %v919_v2 = vsel %vm907_vm7, %v901_v62, %v913_v7  ;;  %v920_v55 = vsel %vm908_vm8, %v902_v63, %v914_v58  ;;  %v12054_v62 = vld [vmem:[%s14474_s3 + $0x278] sm:$0xff]   ;;  %v12057_v3 = vld [vmem:[%s14474_s3 + $0x240] sm:$0xff]   ;;  %v12059_v5 = vld [vmem:[%s14474_s3 + $0x248] sm:$0xff]  }
 0x23b   : > { %vm909_vm9 = vcmp.ge.f32.partialorder %v903_v8, 0.0  ;;  %vm910_vm10 = vcmp.ge.f32.partialorder %v904_v9, 0.0  ;;  %vm911_vm11 = vcmp.ge.f32.partialorder %v905_v54, 0.0  ;;  %v915_v50 = vmul.f32 0.2, %v903_v8  ;;  %v12055_v63 = vld [vmem:[%s14474_s3 + $0x238] sm:$0xff]  }
 0x23c   : > { %v916_v10 = vmul.f32 0.2, %v904_v9  ;;  %v917_v61 = vmul.f32 0.2, %v905_v54  ;;  %v12060_v6 = vld [vmem:[%s14474_s3 + $0x290] sm:$0xff]   ;;  %v12065_v58 = vld [vmem:[%s14474_s3 + $0x2a8] sm:$0xff]  }
 0x23d   : > { %v921_v12 = vsel %vm909_vm9, %v903_v8, %v915_v50  ;;  %v12061_v7 = vld [vmem:[%s14474_s3 + $0x250] sm:$0xff]   ;;  %v12062_v8 = vld [vmem:[%s14474_s3 + $0x298] sm:$0xff]  }
 0x23e   : > { %v922_v13 = vsel %vm910_vm10, %v904_v9, %v916_v10  ;;  %v923_v14 = vsel %vm911_vm11, %v905_v54, %v917_v61  ;;  %v12679_v15 = vpack.c.bf16 %v921_v12, %v918_v11  ;;  %v12063_v9 = vld [vmem:[%s14474_s3 + $0x258] sm:$0xff]   ;;  %v12064_v54 = vld [vmem:[%s14474_s3 + $0x2e8] sm:$0xff]   ;;  %v12066_v50 = vld [vmem:[%s14474_s3 + $0x2f0] sm:$0xff]  }
 0x23f   : > { %v12684_v17 = vpack.c.bf16 %v922_v13, %v919_v2  ;;  %v12686_v18 = vpack.c.bf16 %v923_v14, %v920_v55  ;;  %v12067_v10 = vld [vmem:[%s14474_s3 + $0x2b0] sm:$0xff]   ;;  %v12068_v61 = vld [vmem:[%s14474_s3 + $0x2f8] sm:$0xff]   ;;  %v12070_v2 = vld [vmem:[%s14474_s3 + $0x300] sm:$0xff]  }
 0x240   : > { %v12069_v11 = vld [vmem:[%s14474_s3 + $0x2b8] sm:$0xff]   ;;  %v12071_v12 = vld [vmem:[%s14474_s3 + $0x2c0] sm:$0xff]   ;;  %v12072_v55 = vld [vmem:[%s14474_s3 + $0x308] sm:$0xff]  }
 0x241   : > { %1098 = vmatprep.mubr.bf16.mxu0 %v12684_v17  ;;  %11193 = vmatmul.mubr.msk.bf16.vlgmr.msra.gmra.mrb[4].mxu1 %vm856_vm5, %v12686_v18  ;;  %v12073_v13 = vld [vmem:[%s14474_s3 + $0x2c8] sm:$0xff]   ;;  %v12074_v14 = vld [vmem:[%s14474_s3 + $0x310] sm:$0xff]  }
 0x242   : > { %10559 = vmatpush3.bf16.msra.mxu1 %v12015_v16  ;;  %1099 = vmatmul.mubr.bf16.vlgmr.msra.gmra.mrb[4].mxu0 %v12679_v15  ;;  %v12075_v16 = vld [vmem:[%s14474_s3 + $0x2d0] sm:$0xff]  }
 0x243   : > { %1322 = vmatprep.mubr.bf16.mxu1 %v12684_v17  ;;  %10560 = vmatprep.subr.bf16.mxu1 %v12016_v19  ;;  %v12076_v19 = vld [vmem:[%s14474_s3 + $0x318] sm:$0xff]  }
 0x244   : > { %11197 = vmatpush3.bf16.msra.mxu0 %v12018_v20  ;;  %11198 = vmatprep.mubr.msk.bf16.mxu0 %vm12466_vm0, %v12465_v0  ;;  %v12077_v20 = vld [vmem:[%s14474_s3 + $0x2d8] sm:$0xff]  }
 0x246   : > { %10561 = vmatpush3.bf16.msra.mxu1 %v12017_v21  ;;  %v12078_v21 = vld [vmem:[%s14474_s3 + $0x320] sm:$0xff]  }
 0x247   : > { %10562 = vmatprep.subr.bf16.mxu1 %v12019_v22  ;;  %v12079_v22 = vld [vmem:[%s14474_s3 + $0x2e0] sm:$0xff]  }
 0x24a   : > { %10563 = vmatpush3.bf16.msra.mxu1 %v12020_v23  ;;  %11199 = vmatmul.mubr.msk.bf16.vlgmr.msra.gmra.mrb[8].mxu0 %vm856_vm5, %v12686_v18  ;;  %v12136_v23 = vld [vmem:[%s14475_s4 + $0x10] sm:$0xff]  }
 0x24b   : > { %10564 = vmatprep.subr.bf16.mxu1 %v12021_v24  ;;  %11204 = vmatprep.mubr.msk.bf16.mxu0 %vm856_vm5, %v12136_v23  ;;  %v12080_v24 = vld [vmem:[%s14474_s3 + $0x3b0] sm:$0xff]  }
 0x24c   : > { %v12122_v23 = vld [vmem:[%s14474_s3 + $0x5b0] sm:$0xff]  }
 0x24e   : > { %10565 = vmatpush3.bf16.msra.mxu1 %v12022_v25  ;;  %v12081_v25 = vld [vmem:[%s14474_s3 + $0x3f8] sm:$0xff]  }
 0x24f   : > { %10566 = vmatprep.subr.bf16.mxu1 %v12023_v26  ;;  %v12082_v26 = vld [vmem:[%s14474_s3 + $0x3b8] sm:$0xff]  }
 0x252   : > { %10567 = vmatpush3.bf16.msra.mxu1 %v12024_v27  ;;  %v12083_v27 = vld [vmem:[%s14474_s3 + $0x400] sm:$0xff]  }
 0x253   : > { %10568 = vmatprep.subr.bf16.mxu1 %v12025_v28  ;;  %v12084_v28 = vld [vmem:[%s14474_s3 + $0x3c0] sm:$0xff]  }
 0x256   : > { %10569 = vmatpush3.bf16.msra.mxu1 %v12026_v29  ;;  %v12085_v29 = vld [vmem:[%s14474_s3 + $0x408] sm:$0xff]  }
 0x257   : > { %10570 = vmatprep.subr.bf16.mxu1 %v12027_v30  ;;  %v12086_v30 = vld [vmem:[%s14474_s3 + $0x3c8] sm:$0xff]  }
 0x25a   : > { %10571 = vmatpush3.bf16.msra.mxu1 %v12028_v31  ;;  %v12087_v31 = vld [vmem:[%s14474_s3 + $0x410] sm:$0xff]  }
 0x25b   : > { %10572 = vmatprep.subr.bf16.mxu1 %v12029_v32  ;;  %v12088_v32 = vld [vmem:[%s14474_s3 + $0x3d0] sm:$0xff]  }
 0x25e   : > { %10573 = vmatpush3.bf16.msra.mxu1 %v12030_v33  ;;  %v12089_v33 = vld [vmem:[%s14474_s3 + $0x418] sm:$0xff]  }
 0x25f   : > { %10588 = vmatprep.subr.bf16.mxu1 %v12031_v34  ;;  %v12090_v34 = vld [vmem:[%s14474_s3 + $0x3d8] sm:$0xff]  }
 0x261   : > { %1323 = vmatmul.mubr.bf16.vlgmr.msra.gmra.mrb[8].mxu1 %v12679_v15 }
 0x262   : > { %10589 = vmatpush3.bf16.msra.mxu1 %v12032_v35  ;;  %1677 = vmatprep.mubr.bf16.mxu1 %v12684_v17  ;;  %v12091_v35 = vld [vmem:[%s14474_s3 + $0x420] sm:$0xff]  }
 0x263   : > { %10590 = vmatprep.subr.bf16.mxu1 %v12033_v36  ;;  %v12092_v36 = vld [vmem:[%s14474_s3 + $0x3e0] sm:$0xff]  }
 0x266   : > { %10591 = vmatpush3.bf16.msra.mxu1 %v12034_v37  ;;  %v12093_v37 = vld [vmem:[%s14474_s3 + $0x428] sm:$0xff]  }
 0x267   : > { %10592 = vmatprep.subr.bf16.mxu1 %v12035_v38  ;;  %v12094_v38 = vld [vmem:[%s14474_s3 + $0x3e8] sm:$0xff]  }
 0x26a   : > { %10593 = vmatpush3.bf16.msra.mxu1 %v12036_v39  ;;  %v12095_v39 = vld [vmem:[%s14474_s3 + $0x430] sm:$0xff]  }
 0x26b   : > { %10594 = vmatprep.subr.bf16.mxu1 %v12037_v40  ;;  %v12096_v40 = vld [vmem:[%s14474_s3 + $0x3f0] sm:$0xff]  }
 0x26e   : > { %10595 = vmatpush3.bf16.msra.mxu1 %v12038_v41  ;;  %v12097_v41 = vld [vmem:[%s14474_s3 + $0x480] sm:$0xff]  }
 0x26f   : > { %10596 = vmatprep.subr.bf16.mxu1 %v12039_v42  ;;  %v12098_v42 = vld [vmem:[%s14474_s3 + $0x440] sm:$0xff]  }
 0x272   : > { %10597 = vmatpush3.bf16.msra.mxu1 %v12040_v43  ;;  %v12099_v43 = vld [vmem:[%s14474_s3 + $0x488] sm:$0xff]  }
 0x273   : > { %10598 = vmatprep.subr.bf16.mxu1 %v12041_v44  ;;  %v12100_v44 = vld [vmem:[%s14474_s3 + $0x448] sm:$0xff]  }
 0x276   : > { %10599 = vmatpush3.bf16.msra.mxu1 %v12042_v45  ;;  %v12101_v45 = vld [vmem:[%s14474_s3 + $0x490] sm:$0xff]  }
 0x277   : > { %10600 = vmatprep.subr.bf16.mxu1 %v12043_v46  ;;  %v12102_v46 = vld [vmem:[%s14474_s3 + $0x450] sm:$0xff]  }
 0x27a   : > { %10601 = vmatpush3.bf16.msra.mxu1 %v12044_v47  ;;  %v12103_v47 = vld [vmem:[%s14474_s3 + $0x498] sm:$0xff]  }
 0x27b   : > { %10602 = vmatprep.subr.bf16.mxu1 %v12045_v48  ;;  %v12104_v48 = vld [vmem:[%s14474_s3 + $0x458] sm:$0xff]  }
 0x27e   : > { %10603 = vmatpush3.bf16.msra.mxu1 %v12046_v49  ;;  %v12105_v49 = vld [vmem:[%s14474_s3 + $0x4a0] sm:$0xff]  }
 0x27f   : > { %11226 = vmatprep.subr.bf16.mxu1 %v12465_v0 }
 0x281   : > { %1678 = vmatmul.mubr.bf16.vlgmr.msra.gmra.mrb[12].mxu1 %v12679_v15 }
 0x282   : > { %11227 = vmatpush3.bf16.msra.mxu1 %v12047_v51  ;;  %11228 = vmatprep.mubr.msk.bf16.mxu1 %vm12466_vm0, %v12465_v0  ;;  %v12106_v51 = vld [vmem:[%s14474_s3 + $0x460] sm:$0xff]  }
 0x283   : > { %10642 = vmatprep.subr.bf16.mxu1 %v12048_v52  ;;  %v12107_v52 = vld [vmem:[%s14474_s3 + $0x4a8] sm:$0xff]  }
 0x289   : > { %11229 = vmatmul.mubr.msk.bf16.vlgmr.msra.gmra.mrb[16].mxu1 %vm856_vm5, %v12686_v18 }
 0x28a   : > { %10643 = vmatpush3.bf16.msra.mxu1 %v12049_v53  ;;  %2265 = vmatprep.mubr.bf16.mxu1 %v12684_v17  ;;  %v12108_v53 = vld [vmem:[%s14474_s3 + $0x468] sm:$0xff]  }
 0x28b   : > { %10644 = vmatprep.subr.bf16.mxu1 %v12050_v56  ;;  %v12109_v56 = vld [vmem:[%s14474_s3 + $0x4b0] sm:$0xff]  }
 0x28e   : > { %10645 = vmatpush3.bf16.msra.mxu1 %v12051_v57  ;;  %v12110_v57 = vld [vmem:[%s14474_s3 + $0x470] sm:$0xff]  }
 0x28f   : > { %10646 = vmatprep.subr.bf16.mxu1 %v12052_v59  ;;  %v12111_v59 = vld [vmem:[%s14474_s3 + $0x4b8] sm:$0xff]  }
 0x292   : > { %10647 = vmatpush3.bf16.msra.mxu1 %v12053_v60  ;;  %v12112_v60 = vld [vmem:[%s14474_s3 + $0x478] sm:$0xff]  }
 0x293   : > { %10648 = vmatprep.subr.bf16.mxu1 %v12054_v62  ;;  %v12113_v62 = vld [vmem:[%s14474_s3 + $0x548] sm:$0xff]  }
 0x296   : > { %10649 = vmatpush3.bf16.msra.mxu1 %v12055_v63  ;;  %v12114_v63 = vld [vmem:[%s14474_s3 + $0x590] sm:$0xff]  }
 0x297   : > { %10650 = vmatprep.subr.bf16.mxu1 %v12056_v1 }
 0x29a   : > { %10651 = vmatpush3.bf16.msra.mxu1 %v12057_v3 }
 0x29b   : > { %10652 = vmatprep.subr.bf16.mxu1 %v12058_v4 }
 0x29e   : > { %10653 = vmatpush3.bf16.msra.mxu1 %v12059_v5 }
 0x29f   : > { %10654 = vmatprep.subr.bf16.mxu1 %v12060_v6 }
 0x2a2   : > { %10655 = vmatpush3.bf16.msra.mxu1 %v12061_v7  ;;  %v12115_v7 = vld [vmem:[%s14474_s3 + $0x550] sm:$0xff]  }
 0x2a3   : > { %10656 = vmatprep.subr.bf16.mxu1 %v12062_v8 }
 0x2a6   : > { %10657 = vmatpush3.bf16.msra.mxu1 %v12063_v9 }
 0x2a7   : > { %10669 = vmatprep.subr.bf16.mxu1 %v12064_v54 }
 0x2a9   : > { %2266 = vmatmul.mubr.bf16.vlgmr.msra.gmra.mrb[20].mxu1 %v12679_v15 }
 0x2aa   : > { %10670 = vmatpush3.bf16.msra.mxu1 %v12065_v58  ;;  %2559 = vmatprep.mubr.bf16.mxu1 %v12684_v17  ;;  %v12116_v58 = vld [vmem:[%s14474_s3 + $0x598] sm:$0xff]  }
 0x2ab   : > { %10671 = vmatprep.subr.bf16.mxu1 %v12066_v50 }
 0x2ae   : > { %10672 = vmatpush3.bf16.msra.mxu1 %v12067_v10 }
 0x2af   : > { %10673 = vmatprep.subr.bf16.mxu1 %v12068_v61 }
 0x2b2   : > { %10674 = vmatpush3.bf16.msra.mxu1 %v12069_v11  ;;  %v12117_v11 = vld [vmem:[%s14474_s3 + $0x558] sm:$0xff]  }
 0x2b3   : > { %10675 = vmatprep.subr.bf16.mxu1 %v12070_v2 }
 0x2b6   : > { %10676 = vmatpush3.bf16.msra.mxu1 %v12071_v12  ;;  %v12118_v12 = vld [vmem:[%s14474_s3 + $0x5a0] sm:$0xff]  }
 0x2b7   : > { %10677 = vmatprep.subr.bf16.mxu1 %v12072_v55 }
 0x2ba   : > { %10678 = vmatpush3.bf16.msra.mxu1 %v12073_v13 }
 0x2bb   : > { %10679 = vmatprep.subr.bf16.mxu1 %v12074_v14 }
 0x2be   : > { %10680 = vmatpush3.bf16.msra.mxu1 %v12075_v16  ;;  %v12119_v16 = vld [vmem:[%s14474_s3 + $0x560] sm:$0xff]  }
 0x2bf   : > { %10681 = vmatprep.subr.bf16.mxu1 %v12076_v19 }
 0x2c2   : > { %10682 = vmatpush3.bf16.msra.mxu1 %v12077_v20  ;;  %v12120_v20 = vld [vmem:[%s14474_s3 + $0x5a8] sm:$0xff]  }
 0x2c3   : > { %10683 = vmatprep.subr.bf16.mxu1 %v12078_v21 }
 0x2c6   : > { %10684 = vmatpush3.bf16.msra.mxu1 %v12079_v22  ;;  %v12121_v22 = vld [vmem:[%s14474_s3 + $0x568] sm:$0xff]  }
 0x2c7   : > { %11262 = vmatprep.subr.bf16.mxu1 %v12465_v0 }
 0x2c9   : > { %2560 = vmatmul.mubr.bf16.vlgmr.msra.gmra.mrb[24].mxu1 %v12679_v15 }
 0x2ca   : > { %11263 = vmatpush3.bf16.msra.mxu1 %v12080_v24  ;;  %11264 = vmatprep.mubr.msk.bf16.mxu1 %vm12466_vm0, %v12465_v0  ;;  %v12123_v24 = vld [vmem:[%s14474_s3 + $0x570] sm:$0xff]  }
 0x2cb   : > { %10723 = vmatprep.subr.bf16.mxu1 %v12081_v25  ;;  %v12124_v25 = vld [vmem:[%s14474_s3 + $0x5b8] sm:$0xff]  }
 0x2d1   : > { %11265 = vmatmul.mubr.msk.bf16.vlgmr.msra.gmra.mrb[28].mxu1 %vm856_vm5, %v12686_v18 }
 0x2d2   : > { %10724 = vmatpush3.bf16.msra.mxu1 %v12082_v26  ;;  %3147 = vmatprep.mubr.bf16.mxu1 %v12684_v17  ;;  %v12125_v26 = vld [vmem:[%s14474_s3 + $0x578] sm:$0xff]  }
 0x2d3   : > { %10725 = vmatprep.subr.bf16.mxu1 %v12083_v27  ;;  %v12126_v27 = vld [vmem:[%s14474_s3 + $0x5c0] sm:$0xff]  }
 0x2d6   : > { %10726 = vmatpush3.bf16.msra.mxu1 %v12084_v28  ;;  %v12127_v28 = vld [vmem:[%s14474_s3 + $0x580] sm:$0xff]  }
 0x2d7   : > { %10727 = vmatprep.subr.bf16.mxu1 %v12085_v29  ;;  %v12128_v29 = vld [vmem:[%s14474_s3 + $0x5c8] sm:$0xff]  }
 0x2da   : > { %10728 = vmatpush3.bf16.msra.mxu1 %v12086_v30  ;;  %v12129_v30 = vld [vmem:[%s14474_s3 + $0x588] sm:$0xff]  }
 0x2db   : > { %10729 = vmatprep.subr.bf16.mxu1 %v12087_v31  ;;  %v12130_v31 = vld [vmem:[%s14474_s3 + $0x618] sm:$0xff]  }
 0x2de   : > { %10730 = vmatpush3.bf16.msra.mxu1 %v12088_v32 }
 0x2df   : > { %10731 = vmatprep.subr.bf16.mxu1 %v12089_v33 }
 0x2e2   : > { %10732 = vmatpush3.bf16.msra.mxu1 %v12090_v34 }
 0x2e3   : > { %10733 = vmatprep.subr.bf16.mxu1 %v12091_v35 }
 0x2e6   : > { %10734 = vmatpush3.bf16.msra.mxu1 %v12092_v36  ;;  %v12131_v36 = vld [vmem:[%s14474_s3 + $0x5d8] sm:$0xff]  }
 0x2e7   : > { %10735 = vmatprep.subr.bf16.mxu1 %v12093_v37 }
 0x2ea   : > { %10736 = vmatpush3.bf16.msra.mxu1 %v12094_v38  ;;  %v12132_v38 = vld [vmem:[%s14474_s3 + $0x620] sm:$0xff]  }
 0x2eb   : > { %10737 = vmatprep.subr.bf16.mxu1 %v12095_v39 }
 0x2ee   : > { %10738 = vmatpush3.bf16.msra.mxu1 %v12096_v40 }
 0x2ef   : > { %10750 = vmatprep.subr.bf16.mxu1 %v12097_v41 }
 0x2f1   : > { %3148 = vmatmul.mubr.bf16.vlgmr.msra.gmra.mrb[32].mxu1 %v12679_v15 }
 0x2f2   : > { %10751 = vmatpush3.bf16.msra.mxu1 %v12098_v42  ;;  %3441 = vmatprep.mubr.bf16.mxu1 %v12684_v17  ;;  %v12133_v42 = vld [vmem:[%s14474_s3 + $0x5e0] sm:$0xff]  }
 0x2f3   : > { %10752 = vmatprep.subr.bf16.mxu1 %v12099_v43  ;;  %v12134_v43 = vld [vmem:[%s14474_s3 + $0x628] sm:$0xff]  }
 0x2f6   : > { %10753 = vmatpush3.bf16.msra.mxu1 %v12100_v44 }
 0x2f7   : > { %10754 = vmatprep.subr.bf16.mxu1 %v12101_v45  ;;  %v12135_v45 = vld [vmem:[%s14474_s3 + $0x5e8] sm:$0xff]  }
 0x2fa   : > { %10755 = vmatpush3.bf16.msra.mxu1 %v12102_v46  ;;  %v12137_v46 = vld [vmem:[%s14475_s4 + $0x18] sm:$0xff]  }
 0x2fb   : > { %10756 = vmatprep.subr.bf16.mxu1 %v12103_v47  ;;  %v12138_v47 = vld [vmem:[%s14474_s3 + $0x630] sm:$0xff]  }
 0x2fe   : > { %10757 = vmatpush3.bf16.msra.mxu1 %v12104_v48  ;;  %v12144_v48 = vld [vmem:[%s14475_s4] sm:$0xff]  }
 0x2ff   : > { %10758 = vmatprep.subr.bf16.mxu1 %v12105_v49  ;;  %v12139_v49 = vld [vmem:[%s14474_s3 + $0x5f0] sm:$0xff]  }
 0x302   : > { %10759 = vmatpush3.bf16.msra.mxu1 %v12106_v51  ;;  %v12140_v51 = vld [vmem:[%s14474_s3 + $0x638] sm:$0xff]  }
 0x303   : > { %10760 = vmatprep.subr.bf16.mxu1 %v12107_v52  ;;  %v12141_v52 = vld [vmem:[%s14474_s3 + $0x5f8] sm:$0xff]  }
 0x306   : > { %10761 = vmatpush3.bf16.msra.mxu1 %v12108_v53  ;;  %v12142_v53 = vld [vmem:[%s14474_s3 + $0x640] sm:$0xff]  }
 0x307   : > { %10762 = vmatprep.subr.bf16.mxu1 %v12109_v56  ;;  %v12143_v56 = vld [vmem:[%s14474_s3 + $0x600] sm:$0xff]  }
 0x30a   : > { %10763 = vmatpush3.bf16.msra.mxu1 %v12110_v57  ;;  %v12145_v57 = vld [vmem:[%s14475_s4 + $0x8] sm:$0xff]  }
 0x30b   : > { %10764 = vmatprep.subr.bf16.mxu1 %v12111_v59  ;;  %v12146_v59 = vld [vmem:[%s14474_s3 + $0x648] sm:$0xff]  }
 0x30e   : > { %10765 = vmatpush3.bf16.msra.mxu1 %v12112_v60  ;;  %v12149_v60 = vld [vmem:[%s14474_s3 + $0x190] sm:$0xff]  }
 0x30f   : > { %11298 = vmatprep.subr.bf16.mxu1 %v12465_v0 }
 0x311   : > { %3442 = vmatmul.mubr.bf16.vlgmr.msra.gmra.mrb[36].mxu1 %v12679_v15 }
 0x312   : > { %11299 = vmatpush3.bf16.msra.mxu1 %v12113_v62  ;;  %11300 = vmatprep.mubr.msk.bf16.mxu1 %vm12466_vm0, %v12465_v0  ;;  %v12147_v62 = vld [vmem:[%s14474_s3 + $0x608] sm:$0xff]  }
 0x313   : > { %10804 = vmatprep.subr.bf16.mxu1 %v12114_v63  ;;  %v12148_v63 = vld [vmem:[%s14474_s3 + $0x650] sm:$0xff]  }
 0x314   : > { %v1141_v1 = vpop.f32.mrb[4].mxu1 }
 0x315   : > { %v10550_v3 = vpop.f32.mrb[4].mxu0  ;;  %v11194_v4 = vpop.f32.mrb[5].mxu1 }
 0x316   : > { %v10551_v5 = vpop.f32.mrb[5].mxu0  ;;  %v1144_v6 = vpop.f32.mrb[6].mxu1 }
 0x317   : > { %v10552_v8 = vadd.f32 %v10551_v5, %v10550_v3  ;;  %v10553_v9 = vpop.f32.mrb[6].mxu0  ;;  %v11195_v54 = vpop.f32.mrb[7].mxu1 }
 0x318   : > { %v10554_v50 = vpop.f32.mrb[7].mxu0 }
 0x319   : > { %v1142_v10 = vadd.f32 %v10552_v8, %v1141_v1  ;;  %11301 = vmatmul.mubr.msk.bf16.vlgmr.msra.gmra.mrb[40].mxu1 %vm856_vm5, %v12686_v18  ;;  %v10555_v61 = vadd.f32 %v10554_v50, %v10553_v9  ;;  %v12150_v1 = vld [vmem:[%s14474_s3 + $0x610] sm:$0xff]   ;;  %v12152_v9 = vld [vmem:[%s14474_s3 + $0x728] sm:$0xff]  }
 0x31a   : > { %10805 = vmatpush3.bf16.msra.mxu1 %v12115_v7  ;;  %4029 = vmatprep.mubr.bf16.mxu1 %v12684_v17  ;;  %v12151_v7 = vld [vmem:[%s14474_s3 + $0x6e0] sm:$0xff]  }
 0x31b   : > { %v1145_v2 = vadd.f32 %v10555_v61, %v1144_v6  ;;  %10806 = vmatprep.subr.bf16.mxu1 %v12116_v58  ;;  %v12153_v61 = vld [vmem:[%s14474_s3 + $0x6e8] sm:$0xff]  }
 0x31d   : > { %v1365_v55 = vpop.f32.mrb[8].mxu0  ;;  %v1148_v13 = vpack.c.bf16 %v1145_v2, %v1142_v10  ;;  %v12154_v2 = vld [vmem:[%s14474_s3 + $0x730] sm:$0xff]  }
 0x31e   : > { %10807 = vmatpush3.bf16.msra.mxu1 %v12117_v11  ;;  %v11200_v14 = vpop.f32.mrb[9].mxu0 }
 0x31f   : > { %10808 = vmatprep.subr.bf16.mxu1 %v12118_v12  ;;  %v1368_v19 = vpop.f32.mrb[10].mxu0  ;;  %v12155_v12 = vld [vmem:[%s14474_s3 + $0x6f0] sm:$0xff]   ;;  %v12158_v14 = vld [vmem:[%s14474_s3 + $0x740] sm:$0xff]  }
 0x320   : > { %v11201_v21 = vpop.f32.mrb[11].mxu0 }
 0x321   : > { %v12162_v21 = vld [vmem:[%s14474_s3 + $0x750] sm:$0xff]  }
 0x322   : > { %10809 = vmatpush3.bf16.msra.mxu1 %v12119_v16  ;;  %v12159_v16 = vld [vmem:[%s14474_s3 + $0x700] sm:$0xff]  }
 0x323   : > { %10810 = vmatprep.subr.bf16.mxu1 %v12120_v20  ;;  %v12161_v20 = vld [vmem:[%s14474_s3 + $0x708] sm:$0xff]  }
 0x326   : > { %10811 = vmatpush3.bf16.msra.mxu1 %v12121_v22  ;;  %v12163_v22 = vld [vmem:[%s14474_s3 + $0x710] sm:$0xff]  }
 0x327   : > { %10812 = vmatprep.subr.bf16.mxu1 %v12122_v23  ;;  %v12164_v23 = vld [vmem:[%s14474_s3 + $0x758] sm:$0xff]  }
 0x32a   : > { %10813 = vmatpush3.bf16.msra.mxu1 %v12123_v24  ;;  %v12165_v24 = vld [vmem:[%s14474_s3 + $0x718] sm:$0xff]  }
 0x32b   : > { %10814 = vmatprep.subr.bf16.mxu1 %v12124_v25  ;;  %v12166_v25 = vld [vmem:[%s14474_s3 + $0x760] sm:$0xff]  }
 0x32e   : > { %10815 = vmatpush3.bf16.msra.mxu1 %v12125_v26  ;;  %v12167_v26 = vld [vmem:[%s14474_s3 + $0x720] sm:$0xff]  }
 0x32f   : > { %10816 = vmatprep.subr.bf16.mxu1 %v12126_v27  ;;  %v12168_v27 = vld [vmem:[%s14474_s3 + $0x7b0] sm:$0xff]  }
 0x332   : > { %10817 = vmatpush3.bf16.msra.mxu1 %v12127_v28 }
 0x333   : > { %10818 = vmatprep.subr.bf16.mxu1 %v12128_v29 }
 0x334   : > { %v10574_v32 = vpop.f32.mrb[8].mxu1 }
 0x335   : > { %v10575_v33 = vpop.f32.mrb[9].mxu1 }
 0x336   : > { %10819 = vmatpush3.bf16.msra.mxu1 %v12129_v30  ;;  %v10576_v34 = vadd.f32 %v10575_v33, %v10574_v32  ;;  %v10577_v35 = vpop.f32.mrb[10].mxu1  ;;  %v12169_v32 = vld [vmem:[%s14474_s3 + $0x770] sm:$0xff]  }
 0x337   : > { %10831 = vmatprep.subr.bf16.mxu1 %v12130_v31  ;;  %v10578_v37 = vpop.f32.mrb[11].mxu1 }
 0x338   : > { %v1366_v39 = vadd.f32 %v10576_v34, %v1365_v55  ;;  %v10579_v40 = vadd.f32 %v10578_v37, %v10577_v35  ;;  %v12156_v55 = vld [vmem:[%s14474_s3 + $0x738] sm:$0xff]   ;;  %v12172_v37 = vld [vmem:[%s14474_s3 + $0x7c0] sm:$0xff]  }
 0x339   : > { %4030 = vmatmul.mubr.bf16.vlgmr.msra.gmra.mrb[44].mxu1 %v12679_v15  ;;  %v12170_v34 = vld [vmem:[%s14474_s3 + $0x7b8] sm:$0xff]  }
 0x33a   : > { %v1369_v41 = vadd.f32 %v10579_v40, %v1368_v19  ;;  %10832 = vmatpush3.bf16.msra.mxu1 %v12131_v36  ;;  %4323 = vmatprep.mubr.bf16.mxu1 %v12684_v17  ;;  %v12160_v19 = vld [vmem:[%s14474_s3 + $0x748] sm:$0xff]   ;;  %v12171_v36 = vld [vmem:[%s14474_s3 + $0x778] sm:$0xff]  }
 0x33b   : > { %10833 = vmatprep.subr.bf16.mxu1 %v12132_v38  ;;  %v12173_v38 = vld [vmem:[%s14474_s3 + $0x780] sm:$0xff]   ;;  %v12175_v40 = vld [vmem:[%s14474_s3 + $0x788] sm:$0xff]  }
 0x33c   : > { %v1372_v44 = vpack.c.bf16 %v1369_v41, %v1366_v39  ;;  %v12174_v39 = vld [vmem:[%s14474_s3 + $0x7c8] sm:$0xff]   ;;  %v12176_v41 = vld [vmem:[%s14474_s3 + $0x7d0] sm:$0xff]  }
 0x33e   : > { %10834 = vmatpush3.bf16.msra.mxu1 %v12133_v42  ;;  %11202 = vmatprep.subr.bf16.mxu0 %v1372_v44  ;;  %v12177_v42 = vld [vmem:[%s14474_s3 + $0x790] sm:$0xff]  }
 0x33f   : > { %10835 = vmatprep.subr.bf16.mxu1 %v12134_v43  ;;  %11203 = vmatpush3.bf16.msra.mxu0 %v1372_v44  ;;  %v12178_v43 = vld [vmem:[%s14474_s3 + $0x7d8] sm:$0xff]  }
 0x340   : > { %11208 = vmatprep.subr.bf16.mxu0 %v1148_v13  ;;  %v12179_v44 = vld [vmem:[%s14474_s3 + $0x798] sm:$0xff]  }
 0x342   : > { %10836 = vmatpush3.bf16.msra.mxu1 %v12135_v45  ;;  %11205 = vmatmul.mubr.msk.bf16.vlgmr.msra.gmra.mrb[12].mxu0 %vm856_vm5, %v12137_v46  ;;  %v12180_v45 = vld [vmem:[%s14474_s3 + $0x7e0] sm:$0xff]  }
 0x343   : > { %10837 = vmatprep.subr.bf16.mxu1 %v12138_v47  ;;  %11209 = vmatpush3.bf16.msra.mxu0 %v1148_v13  ;;  %v12157_v13 = vld [vmem:[%s14474_s3 + $0x6f8] sm:$0xff]   ;;  %v12181_v46 = vld [vmem:[%s14474_s3 + $0x7a0] sm:$0xff]   ;;  %v12182_v47 = vld [vmem:[%s14474_s3 + $0x7e8] sm:$0xff]  }
 0x344   : > { %11210 = vmatprep.mubr.msk.bf16.mxu0 %vm856_vm5, %v12144_v48  ;;  %11214 = vmatprep.subr.bf16.mxu0 %v12465_v0  ;;  %v12183_v48 = vld [vmem:[%s14474_s3 + $0x7a8] sm:$0xff]  }
 0x346   : > { %10838 = vmatpush3.bf16.msra.mxu1 %v12139_v49 }
 0x347   : > { %10839 = vmatprep.subr.bf16.mxu1 %v12140_v51 }
 0x34a   : > { %10840 = vmatpush3.bf16.msra.mxu1 %v12141_v52 }
 0x34b   : > { %10841 = vmatprep.subr.bf16.mxu1 %v12142_v53 }
 0x34e   : > { %10842 = vmatpush3.bf16.msra.mxu1 %v12143_v56  ;;  %11211 = vmatmul.mubr.msk.bf16.vlgmr.msra.gmra.mrb[12].mxu0 %vm856_vm5, %v12145_v57  ;;  %v12184_v56 = vld [vmem:[%s14474_s3 + $0x878] sm:$0xff]  }
 0x34f   : > { %10843 = vmatprep.subr.bf16.mxu1 %v12146_v59  ;;  %11215 = vmatpush3.bf16.msra.mxu0 %v12149_v60 }
 0x350   : > { %11216 = vmatprep.mubr.msk.bf16.mxu0 %vm12466_vm0, %v12465_v0 }
 0x352   : > { %10844 = vmatpush3.bf16.msra.mxu1 %v12147_v62 }
 0x353   : > { %10845 = vmatprep.subr.bf16.mxu1 %v12148_v63 }
 0x354   : > { %v10604_v3 = vpop.f32.mrb[12].mxu1 }
 0x355   : > { %v10605_v4 = vpop.f32.mrb[13].mxu1 }
 0x356   : > { %10846 = vmatpush3.bf16.msra.mxu1 %v12150_v1  ;;  %v13138_v5 = vadd.f32 %v10605_v4, %v10604_v3  ;;  %v10607_v6 = vpop.f32.mrb[14].mxu1  ;;  %11217 = vmatmul.mubr.msk.bf16.vlgmr.msra.gmra.mrb[16].mxu0 %vm856_vm5, %v12686_v18  ;;  %v12185_v3 = vld [vmem:[%s14475_s4 + $0x20] sm:$0xff]  }
 0x357   : > { %v10608_v8 = vpop.f32.mrb[15].mxu1  ;;  %11334 = vmatprep.subr.bf16.mxu1 %v12465_v0  ;;  %11222 = vmatprep.mubr.msk.bf16.mxu0 %vm856_vm5, %v12185_v3  ;;  %v12198_v3 = vld [vmem:[%s14474_s3 + $0x1c0] sm:$0xff]  }
 0x358   : > { %v13149_v54 = vadd.f32 %v10608_v8, %v10607_v6 }
 0x359   : > { %4324 = vmatmul.mubr.bf16.vlgmr.msra.gmra.mrb[48].mxu1 %v12679_v15 }
 0x35a   : > { %11335 = vmatpush3.bf16.msra.mxu1 %v12151_v7  ;;  %11336 = vmatprep.mubr.msk.bf16.mxu1 %vm12466_vm0, %v12465_v0 }
 0x35b   : > { %10885 = vmatprep.subr.bf16.mxu1 %v12152_v9 }
 0x35c   : > { %v13154_v58 = vpop.f32.mrb[16].mxu1 }
 0x35d   : > { %v11230_v50 = vpop.f32.mrb[17].mxu1 }
 0x35e   : > { %v13156_v10 = vpop.f32.mrb[18].mxu1 }
 0x35f   : > { %v11231_v11 = vpop.f32.mrb[19].mxu1 }
 0x361   : > { %11337 = vmatmul.mubr.msk.bf16.vlgmr.msra.gmra.mrb[52].mxu1 %vm856_vm5, %v12686_v18 }
 0x362   : > { %10886 = vmatpush3.bf16.msra.mxu1 %v12153_v61  ;;  %4911 = vmatprep.mubr.bf16.mxu1 %v12684_v17 }
 0x363   : > { %10887 = vmatprep.subr.bf16.mxu1 %v12154_v2 }
 0x366   : > { %10888 = vmatpush3.bf16.msra.mxu1 %v12155_v12 }
 0x367   : > { %10889 = vmatprep.subr.bf16.mxu1 %v12156_v55 }
 0x36a   : > { %10890 = vmatpush3.bf16.msra.mxu1 %v12157_v13 }
 0x36b   : > { %10891 = vmatprep.subr.bf16.mxu1 %v12158_v14 }
 0x36e   : > { %10892 = vmatpush3.bf16.msra.mxu1 %v12159_v16 }
 0x36f   : > { %10893 = vmatprep.subr.bf16.mxu1 %v12160_v19 }
 0x372   : > { %10894 = vmatpush3.bf16.msra.mxu1 %v12161_v20 }
 0x373   : > { %10895 = vmatprep.subr.bf16.mxu1 %v12162_v21 }
 0x376   : > { %10896 = vmatpush3.bf16.msra.mxu1 %v12163_v22 }
 0x377   : > { %10897 = vmatprep.subr.bf16.mxu1 %v12164_v23 }
 0x37a   : > { %10898 = vmatpush3.bf16.msra.mxu1 %v12165_v24 }
 0x37b   : > { %10899 = vmatprep.subr.bf16.mxu1 %v12166_v25 }
 0x37c   : > { %v10658_v28 = vpop.f32.mrb[20].mxu1 }
 0x37d   : > { %v10659_v29 = vpop.f32.mrb[21].mxu1 }
 0x37e   : > { %10900 = vmatpush3.bf16.msra.mxu1 %v12167_v26  ;;  %v13209_v30 = vadd.f32 %v10659_v29, %v10658_v28  ;;  %v10661_v31 = vpop.f32.mrb[22].mxu1 }
 0x37f   : > { %10912 = vmatprep.subr.bf16.mxu1 %v12168_v27  ;;  %v10662_v33 = vpop.f32.mrb[23].mxu1 }
 0x380   : > { %v13217_v35 = vadd.f32 %v10662_v33, %v10661_v31 }
 0x381   : > { %4912 = vmatmul.mubr.bf16.vlgmr.msra.gmra.mrb[56].mxu1 %v12679_v15 }
 0x382   : > { %10913 = vmatpush3.bf16.msra.mxu1 %v12169_v32  ;;  %5205 = vmatprep.mubr.bf16.mxu1 %v12684_v17 }
 0x383   : > { %10914 = vmatprep.subr.bf16.mxu1 %v12170_v34 }
 0x386   : > { %10915 = vmatpush3.bf16.msra.mxu1 %v12171_v36 }
 0x387   : > { %10916 = vmatprep.subr.bf16.mxu1 %v12172_v37 }
 0x38a   : > { %10917 = vmatpush3.bf16.msra.mxu1 %v12173_v38 }
 0x38b   : > { %10918 = vmatprep.subr.bf16.mxu1 %v12174_v39 }
 0x38e   : > { %10919 = vmatpush3.bf16.msra.mxu1 %v12175_v40  ;;  %v12187_v40 = vld [vmem:[%s14474_s3 + $0x1d8] sm:$0xff]  }
 0x38f   : > { %10920 = vmatprep.subr.bf16.mxu1 %v12176_v41 }
 0x392   : > { %10921 = vmatpush3.bf16.msra.mxu1 %v12177_v42 }
 0x393   : > { %10922 = vmatprep.subr.bf16.mxu1 %v12178_v43  ;;  %v12189_v43 = vld [vmem:[%s14474_s3 + $0x1e0] sm:$0xff]  }
 0x396   : > { %10923 = vmatpush3.bf16.msra.mxu1 %v12179_v44 }
 0x397   : > { %10924 = vmatprep.subr.bf16.mxu1 %v12180_v45 }
 0x39a   : > { %10925 = vmatpush3.bf16.msra.mxu1 %v12181_v46  ;;  %v12190_v46 = vld [vmem:[%s14474_s3 + $0x1a0] sm:$0xff]  }
 0x39b   : > { %10926 = vmatprep.subr.bf16.mxu1 %v12182_v47 }
 0x39c   : > { %v10685_v49 = vpop.f32.mrb[24].mxu1 }
 0x39d   : > { %v10686_v51 = vpop.f32.mrb[25].mxu1 }
 0x39e   : > { %10927 = vmatpush3.bf16.msra.mxu1 %v12183_v48  ;;  %v13260_v52 = vadd.f32 %v10686_v51, %v10685_v49  ;;  %v10688_v53 = vpop.f32.mrb[26].mxu1  ;;  %v12191_v48 = vld [vmem:[%s14474_s3 + $0x1e8] sm:$0xff]  }
 0x39f   : > { %v10689_v57 = vpop.f32.mrb[27].mxu1  ;;  %11370 = vmatprep.subr.bf16.mxu1 %v12465_v0  ;;  %v12192_v51 = vld [vmem:[%s14474_s3 + $0x1a8] sm:$0xff]  }
 0x3a0   : > { %v13266_v59 = vadd.f32 %v10689_v57, %v10688_v53  ;;  %v12193_v53 = vld [vmem:[%s14474_s3 + $0x1f0] sm:$0xff]   ;;  %v12195_v57 = vld [vmem:[%s14474_s3 + $0x1f8] sm:$0xff]  }
 0x3a1   : > { %5206 = vmatmul.mubr.bf16.vlgmr.msra.gmra.mrb[60].mxu1 %v12679_v15 }
 0x3a2   : > { %11371 = vmatpush3.bf16.msra.mxu1 %v12184_v56  ;;  %11372 = vmatprep.mubr.msk.bf16.mxu1 %vm12466_vm0, %v12465_v0  ;;  %v12194_v56 = vld [vmem:[%s14474_s3 + $0x1b0] sm:$0xff]  }
 0x3a4   : > { %v13271_v60 = vpop.f32.mrb[28].mxu1 }
 0x3a5   : > { %v11266_v62 = vpop.f32.mrb[29].mxu1 }
 0x3a6   : > { %v13273_v63 = vpop.f32.mrb[30].mxu1  ;;  %v12196_v62 = vld [vmem:[%s14474_s3 + $0x1b8] sm:$0xff]  }
 0x3a7   : > { %v11267_v1 = vpop.f32.mrb[31].mxu1 }
 0x3a8   : > { %v12197_v1 = vld [vmem:[%s14474_s3 + $0x200] sm:$0xff]  }
 0x3a9   : > { %11373 = vmatmul.mubr.msk.bf16.vlgmr.msra.gmra.mrb[64].mxu1 %vm856_vm5, %v12686_v18 }
 0x3c4   : > { %v10739_v4 = vpop.f32.mrb[32].mxu1 }
 0x3c5   : > { %v10740_v6 = vpop.f32.mrb[33].mxu1 }
 0x3c6   : > { %v13281_v7 = vadd.f32 %v10740_v6, %v10739_v4  ;;  %v10742_v8 = vpop.f32.mrb[34].mxu1  ;;  %v12199_v4 = vld [vmem:[%s14474_s3 + $0x208] sm:$0xff]  }
 0x3c7   : > { %v10743_v9 = vpop.f32.mrb[35].mxu1  ;;  %v12200_v6 = vld [vmem:[%s14474_s3 + $0x1c8] sm:$0xff]  }
 0x3c8   : > { %v13283_v50 = vadd.f32 %v10743_v9, %v10742_v8  ;;  %v12201_v8 = vld [vmem:[%s14474_s3 + $0x210] sm:$0xff]  }
 0x3c9   : > { %v12202_v9 = vld [vmem:[%s14474_s3 + $0x1d0] sm:$0xff]  }
 0x3e4   : > { %v10766_v61 = vpop.f32.mrb[36].mxu1 }
 0x3e5   : > { %v10767_v11 = vpop.f32.mrb[37].mxu1 }
 0x3e6   : > { %v13285_v2 = vadd.f32 %v10767_v11, %v10766_v61  ;;  %v10769_v12 = vpop.f32.mrb[38].mxu1 }
 0x3e7   : > { %v10770_v55 = vpop.f32.mrb[39].mxu1 }
 0x3e8   : > { %v13287_v13 = vadd.f32 %v10770_v55, %v10769_v12 }
 0x3ec   : > { %v13289_v14 = vpop.f32.mrb[40].mxu1 }
 0x3ed   : > { %v11302_v16 = vpop.f32.mrb[41].mxu1 }
 0x3ee   : > { %v13291_v19 = vpop.f32.mrb[42].mxu1 }
 0x3ef   : > { %v11303_v20 = vpop.f32.mrb[43].mxu1 }
 0x40c   : > { %v10820_v21 = vpop.f32.mrb[44].mxu1 }
 0x40d   : > { %v10821_v22 = vpop.f32.mrb[45].mxu1 }
 0x40e   : > { %v13293_v23 = vadd.f32 %v10821_v22, %v10820_v21  ;;  %v10823_v24 = vpop.f32.mrb[46].mxu1 }
 0x40f   : > { %v10824_v25 = vpop.f32.mrb[47].mxu1 }
 0x410   : > { %v13295_v26 = vadd.f32 %v10824_v25, %v10823_v24 }
 0x429   : > { %v1720_v27 = vpop.f32.mrb[16].mxu0 }
 0x42a   : > { %v1721_v28 = vadd.f32 %v13138_v5, %v1720_v27  ;;  %v11218_v29 = vpop.f32.mrb[17].mxu0  ;;  %v12186_v5 = vld [vmem:[%s14475_s4 + $0x28] sm:$0xff]  }
 0x42b   : > { %v1723_v31 = vpop.f32.mrb[18].mxu0 }
 0x42c   : > { %v10847_v32 = vpop.f32.mrb[48].mxu1  ;;  %v1724_v33 = vadd.f32 %v13149_v54, %v1723_v31  ;;  %v11219_v34 = vpop.f32.mrb[19].mxu0  ;;  %v12188_v54 = vld [vmem:[%s14474_s3 + $0x198] sm:$0xff]  }
 0x42d   : > { %v10848_v36 = vpop.f32.mrb[49].mxu1  ;;  %v12203_v34 = vld [vmem:[%s14475_s4 + $0x30] sm:$0xff]  }
 0x42e   : > { %v13299_v37 = vadd.f32 %v10848_v36, %v10847_v32  ;;  %v1727_v38 = vpack.c.bf16 %v1724_v33, %v1721_v28  ;;  %v10850_v39 = vpop.f32.mrb[50].mxu1 }
 0x42f   : > { %v10851_v41 = vpop.f32.mrb[51].mxu1 }
 0x430   : > { %v13304_v42 = vadd.f32 %v10851_v41, %v10850_v39  ;;  %11220 = vmatprep.subr.bf16.mxu0 %v1727_v38 }
 0x431   : > { %11221 = vmatpush3.bf16.msra.mxu0 %v1727_v38 }
 0x432   : > { %10615 = vmatprep.subr.bf16.mxu0 %v12187_v40 }
 0x434   : > { %v13315_v44 = vpop.f32.mrb[52].mxu1  ;;  %11223 = vmatmul.mubr.msk.bf16.vlgmr.msra.gmra.mrb[12].mxu0 %vm856_vm5, %v12186_v5 }
 0x435   : > { %v11338_v45 = vpop.f32.mrb[53].mxu1  ;;  %10616 = vmatpush3.bf16.msra.mxu0 %v12188_v54  ;;  %1971 = vmatprep.mubr.bf16.mxu0 %v12684_v17 }
 0x436   : > { %v13322_v47 = vpop.f32.mrb[54].mxu1  ;;  %10617 = vmatprep.subr.bf16.mxu0 %v12189_v43 }
 0x437   : > { %v11339_v49 = vpop.f32.mrb[55].mxu1 }
 0x439   : > { %10618 = vmatpush3.bf16.msra.mxu0 %v12190_v46  ;;  %v12204_v46 = vld [vmem:[%s14475_s4 + $0x38] sm:$0xff]  }
 0x43a   : > { %10619 = vmatprep.subr.bf16.mxu0 %v12191_v48  ;;  %v12205_v48 = vld [vmem:[%s14474_s3 + $0x2a0] sm:$0xff]  }
 0x43d   : > { %10620 = vmatpush3.bf16.msra.mxu0 %v12192_v51 }
 0x43e   : > { %10621 = vmatprep.subr.bf16.mxu0 %v12193_v53 }
 0x441   : > { %10622 = vmatpush3.bf16.msra.mxu0 %v12194_v56 }
 0x442   : > { %10623 = vmatprep.subr.bf16.mxu0 %v12195_v57 }
 0x445   : > { %10624 = vmatpush3.bf16.msra.mxu0 %v12196_v62 }
 0x446   : > { %10625 = vmatprep.subr.bf16.mxu0 %v12197_v1  ;;  %v12207_v1 = vld [vmem:[%s14475_s4 + $0x48] sm:$0xff]  }
 0x449   : > { %10626 = vmatpush3.bf16.msra.mxu0 %v12198_v3  ;;  %v12208_v3 = vld [vmem:[%s14474_s3 + $0x328] sm:$0xff]  }
 0x44a   : > { %10627 = vmatprep.subr.bf16.mxu0 %v12199_v4 }
 0x44d   : > { %10628 = vmatpush3.bf16.msra.mxu0 %v12200_v6 }
 0x44e   : > { %10629 = vmatprep.subr.bf16.mxu0 %v12201_v8 }
 0x451   : > { %10630 = vmatpush3.bf16.msra.mxu0 %v12202_v9 }
 0x454   : > { %v10901_v61 = vpop.f32.mrb[56].mxu1  ;;  %1972 = vmatmul.mubr.bf16.vlgmr.msra.gmra.mrb[20].mxu0 %v12679_v15 }
 0x455   : > { %v10902_v11 = vpop.f32.mrb[57].mxu1  ;;  %11234 = vmatprep.mubr.msk.bf16.mxu0 %vm856_vm5, %v12203_v34  ;;  %v12220_v34 = vld [vmem:[%s14474_s3 + $0x350] sm:$0xff]  }
 0x456   : > { %v13361_v12 = vadd.f32 %v10902_v11, %v10901_v61  ;;  %v10904_v55 = vpop.f32.mrb[58].mxu1 }
 0x457   : > { %v10905_v16 = vpop.f32.mrb[59].mxu1 }
 0x458   : > { %v13363_v20 = vadd.f32 %v10905_v16, %v10904_v55  ;;  %v12211_v55 = vld [vmem:[%s14474_s3 + $0x370] sm:$0xff]   ;;  %v12210_v16 = vld [vmem:[%s14475_s4 + $0x58] sm:$0xff]  }
 0x474   : > { %v10928_v21 = vpop.f32.mrb[60].mxu1 }
 0x475   : > { %v10929_v22 = vpop.f32.mrb[61].mxu1 }
 0x476   : > { %v13365_v24 = vadd.f32 %v10929_v22, %v10928_v21  ;;  %v10931_v25 = vpop.f32.mrb[62].mxu1  ;;  %v12214_v21 = vld [vmem:[%s14474_s3 + $0x338] sm:$0xff]   ;;  %v12215_v22 = vld [vmem:[%s14474_s3 + $0x380] sm:$0xff]  }
 0x477   : > { %v10932_v27 = vpop.f32.mrb[63].mxu1 }
 0x478   : > { %v13367_v28 = vadd.f32 %v10932_v27, %v10931_v25  ;;  %v12216_v25 = vld [vmem:[%s14474_s3 + $0x340] sm:$0xff]   ;;  %v12217_v27 = vld [vmem:[%s14474_s3 + $0x388] sm:$0xff]  }
 0x47c   : > { %v13369_v29 = vpop.f32.mrb[64].mxu1 }
 0x47d   : > { %v11374_v31 = vpop.f32.mrb[65].mxu1 }
 0x47e   : > { %v13371_v32 = vpop.f32.mrb[66].mxu1  ;;  %v12218_v31 = vld [vmem:[%s14474_s3 + $0x348] sm:$0xff]  }
 0x47f   : > { %v11375_v33 = vpop.f32.mrb[67].mxu1 }
 0x480   : > { %v12219_v33 = vld [vmem:[%s14474_s3 + $0x390] sm:$0xff]  }
 0x527   : > { %v10631_v36 = vpop.f32.mrb[20].mxu0 }
 0x528   : > { %v10632_v38 = vpop.f32.mrb[21].mxu0 }
 0x529   : > { %v10633_v39 = vadd.f32 %v10632_v38, %v10631_v36  ;;  %v10634_v40 = vpop.f32.mrb[22].mxu0  ;;  %v12221_v36 = vld [vmem:[%s14474_s3 + $0x398] sm:$0xff]  }
 0x52a   : > { %v10635_v41 = vpop.f32.mrb[23].mxu0  ;;  %v12222_v38 = vld [vmem:[%s14474_s3 + $0x358] sm:$0xff]  }
 0x52b   : > { %v2015_v5 = vadd.f32 %v10633_v39, %v13154_v58  ;;  %v10636_v54 = vadd.f32 %v10635_v41, %v10634_v40  ;;  %v12206_v58 = vld [vmem:[%s14475_s4 + $0x40] sm:$0xff]   ;;  %v12225_v41 = vld [vmem:[%s14474_s3 + $0x3a8] sm:$0xff]  }
 0x52c   : > { %v12223_v39 = vld [vmem:[%s14474_s3 + $0x3a0] sm:$0xff]  }
 0x52d   : > { %v2018_v43 = vadd.f32 %v10636_v54, %v13156_v10  ;;  %v12224_v40 = vld [vmem:[%s14474_s3 + $0x360] sm:$0xff]  }
 0x52e   : > { %v12227_v54 = vld [vmem:[%s14475_s4 + $0x60] sm:$0xff]  }
 0x52f   : > { %v2021_v45 = vpack.c.bf16 %v2018_v43, %v2015_v5  ;;  %v12226_v5 = vld [vmem:[%s14474_s3 + $0x368] sm:$0xff]  }
 0x531   : > { %11232 = vmatprep.subr.bf16.mxu0 %v2021_v45 }
 0x532   : > { %11233 = vmatpush3.bf16.msra.mxu0 %v2021_v45 }
 0x533   : > { %11238 = vmatprep.subr.bf16.mxu0 %v12465_v0 }
 0x535   : > { %11235 = vmatmul.mubr.msk.bf16.vlgmr.msra.gmra.mrb[12].mxu0 %vm856_vm5, %v12204_v46 }
 0x536   : > { %11239 = vmatpush3.bf16.msra.mxu0 %v12205_v48  ;;  %11240 = vmatprep.mubr.msk.bf16.mxu0 %vm12466_vm0, %v12465_v0 }
 0x53d   : > { %11241 = vmatmul.mubr.msk.bf16.vlgmr.msra.gmra.mrb[24].mxu0 %vm856_vm5, %v12686_v18 }
 0x53e   : > { %11246 = vmatprep.mubr.msk.bf16.mxu0 %vm856_vm5, %v12206_v58 }
 0x610   : > { %v2308_v10 = vpop.f32.mrb[24].mxu0 }
 0x611   : > { %v2309_v49 = vadd.f32 %v13209_v30, %v2308_v10  ;;  %v11242_v51 = vpop.f32.mrb[25].mxu0  ;;  %v12209_v30 = vld [vmem:[%s14475_s4 + $0x50] sm:$0xff]  }
 0x612   : > { %v2311_v53 = vpop.f32.mrb[26].mxu0 }
 0x613   : > { %v2312_v56 = vadd.f32 %v13217_v35, %v2311_v53  ;;  %v11243_v57 = vpop.f32.mrb[27].mxu0 }
 0x614   : > { %v12229_v57 = vld [vmem:[%s14474_s3 + $0x438] sm:$0xff]  }
 0x615   : > { %v2315_v62 = vpack.c.bf16 %v2312_v56, %v2309_v49  ;;  %v12228_v56 = vld [vmem:[%s14475_s4 + $0x68] sm:$0xff]  }
 0x617   : > { %11244 = vmatprep.subr.bf16.mxu0 %v2315_v62 }
 0x618   : > { %11245 = vmatpush3.bf16.msra.mxu0 %v2315_v62 }
 0x619   : > { %11250 = vmatprep.subr.bf16.mxu0 %v12465_v0 }
 0x61b   : > { %11247 = vmatmul.mubr.msk.bf16.vlgmr.msra.gmra.mrb[12].mxu0 %vm856_vm5, %v12207_v1 }
 0x61c   : > { %11251 = vmatpush3.bf16.msra.mxu0 %v12208_v3  ;;  %11252 = vmatprep.mubr.msk.bf16.mxu0 %vm12466_vm0, %v12465_v0 }
 0x623   : > { %11253 = vmatmul.mubr.msk.bf16.vlgmr.msra.gmra.mrb[28].mxu0 %vm856_vm5, %v12686_v18 }
 0x624   : > { %11258 = vmatprep.mubr.msk.bf16.mxu0 %vm856_vm5, %v12209_v30 }
 0x6f6   : > { %v2602_v35 = vpop.f32.mrb[28].mxu0 }
 0x6f7   : > { %v2603_v4 = vadd.f32 %v13260_v52, %v2602_v35  ;;  %v11254_v6 = vpop.f32.mrb[29].mxu0  ;;  %v12212_v52 = vld [vmem:[%s14474_s3 + $0x330] sm:$0xff]  }
 0x6f8   : > { %v2605_v8 = vpop.f32.mrb[30].mxu0  ;;  %v12231_v6 = vld [vmem:[%s14475_s4 + $0x78] sm:$0xff]  }
 0x6f9   : > { %v2606_v9 = vadd.f32 %v13266_v59, %v2605_v8  ;;  %v11255_v61 = vpop.f32.mrb[31].mxu0  ;;  %v12213_v59 = vld [vmem:[%s14474_s3 + $0x378] sm:$0xff]   ;;  %v12232_v8 = vld [vmem:[%s14474_s3 + $0x4c0] sm:$0xff]  }
 0x6fb   : > { %v2609_v11 = vpack.c.bf16 %v2606_v9, %v2603_v4 }
 0x6fd   : > { %11256 = vmatprep.subr.bf16.mxu0 %v2609_v11 }
 0x6fe   : > { %11257 = vmatpush3.bf16.msra.mxu0 %v2609_v11 }
 0x6ff   : > { %10696 = vmatprep.subr.bf16.mxu0 %v12211_v55 }
 0x701   : > { %11259 = vmatmul.mubr.msk.bf16.vlgmr.msra.gmra.mrb[12].mxu0 %vm856_vm5, %v12210_v16 }
 0x702   : > { %10697 = vmatpush3.bf16.msra.mxu0 %v12212_v52  ;;  %2853 = vmatprep.mubr.bf16.mxu0 %v12684_v17 }
 0x703   : > { %10698 = vmatprep.subr.bf16.mxu0 %v12213_v59  ;;  %v12235_v59 = vld [vmem:[%s14474_s3 + $0x508] sm:$0xff]  }
 0x706   : > { %10699 = vmatpush3.bf16.msra.mxu0 %v12214_v21  ;;  %v12234_v21 = vld [vmem:[%s14475_s4 + $0x88] sm:$0xff]  }
 0x707   : > { %10700 = vmatprep.subr.bf16.mxu0 %v12215_v22  ;;  %v12238_v22 = vld [vmem:[%s14474_s3 + $0x4d0] sm:$0xff]  }
 0x70a   : > { %10701 = vmatpush3.bf16.msra.mxu0 %v12216_v25  ;;  %v12239_v25 = vld [vmem:[%s14474_s3 + $0x518] sm:$0xff]  }
 0x70b   : > { %10702 = vmatprep.subr.bf16.mxu0 %v12217_v27  ;;  %v12240_v27 = vld [vmem:[%s14474_s3 + $0x4d8] sm:$0xff]  }
 0x70e   : > { %10703 = vmatpush3.bf16.msra.mxu0 %v12218_v31  ;;  %v12241_v31 = vld [vmem:[%s14474_s3 + $0x520] sm:$0xff]  }
 0x70f   : > { %10704 = vmatprep.subr.bf16.mxu0 %v12219_v33  ;;  %v12242_v33 = vld [vmem:[%s14474_s3 + $0x4e0] sm:$0xff]  }
 0x712   : > { %10705 = vmatpush3.bf16.msra.mxu0 %v12220_v34  ;;  %v12243_v34 = vld [vmem:[%s14474_s3 + $0x528] sm:$0xff]  }
 0x713   : > { %10706 = vmatprep.subr.bf16.mxu0 %v12221_v36  ;;  %v12244_v36 = vld [vmem:[%s14474_s3 + $0x4e8] sm:$0xff]  }
 0x716   : > { %10707 = vmatpush3.bf16.msra.mxu0 %v12222_v38  ;;  %v12245_v38 = vld [vmem:[%s14474_s3 + $0x530] sm:$0xff]  }
 0x717   : > { %10708 = vmatprep.subr.bf16.mxu0 %v12223_v39  ;;  %v12246_v39 = vld [vmem:[%s14474_s3 + $0x4f0] sm:$0xff]  }
 0x71a   : > { %10709 = vmatpush3.bf16.msra.mxu0 %v12224_v40  ;;  %v12247_v40 = vld [vmem:[%s14474_s3 + $0x538] sm:$0xff]  }
 0x71b   : > { %10710 = vmatprep.subr.bf16.mxu0 %v12225_v41  ;;  %v12248_v41 = vld [vmem:[%s14474_s3 + $0x4f8] sm:$0xff]  }
 0x71e   : > { %10711 = vmatpush3.bf16.msra.mxu0 %v12226_v5  ;;  %v12249_v5 = vld [vmem:[%s14474_s3 + $0x540] sm:$0xff]  }
 0x721   : > { %2854 = vmatmul.mubr.bf16.vlgmr.msra.gmra.mrb[32].mxu0 %v12679_v15 }
 0x722   : > { %11270 = vmatprep.mubr.msk.bf16.mxu0 %vm856_vm5, %v12227_v54  ;;  %v12250_v54 = vld [vmem:[%s14474_s3 + $0x500] sm:$0xff]  }
 0x7f4   : > { %v10712_v43 = vpop.f32.mrb[32].mxu0 }
 0x7f5   : > { %v10713_v45 = vpop.f32.mrb[33].mxu0 }
 0x7f6   : > { %v10714_v46 = vadd.f32 %v10713_v45, %v10712_v43  ;;  %v10715_v48 = vpop.f32.mrb[34].mxu0  ;;  %v12251_v43 = vld [vmem:[%s14475_s4 + $0x90] sm:$0xff]  }
 0x7f7   : > { %v10716_v58 = vpop.f32.mrb[35].mxu0 }
 0x7f8   : > { %v2897_v10 = vadd.f32 %v10714_v46, %v13271_v60  ;;  %v10717_v49 = vadd.f32 %v10716_v58, %v10715_v48  ;;  %v12230_v60 = vld [vmem:[%s14475_s4 + $0x70] sm:$0xff]  }
 0x7fa   : > { %v2900_v51 = vadd.f32 %v10717_v49, %v13273_v63 }
 0x7fc   : > { %v2903_v53 = vpack.c.bf16 %v2900_v51, %v2897_v10 }
 0x7fe   : > { %11268 = vmatprep.subr.bf16.mxu0 %v2903_v53 }
 0x7ff   : > { %11269 = vmatpush3.bf16.msra.mxu0 %v2903_v53 }
 0x800   : > { %11274 = vmatprep.subr.bf16.mxu0 %v12465_v0 }
 0x802   : > { %11271 = vmatmul.mubr.msk.bf16.vlgmr.msra.gmra.mrb[12].mxu0 %vm856_vm5, %v12228_v56 }
 0x803   : > { %11275 = vmatpush3.bf16.msra.mxu0 %v12229_v57  ;;  %11276 = vmatprep.mubr.msk.bf16.mxu0 %vm12466_vm0, %v12465_v0  ;;  %v12252_v57 = vld [vmem:[%s14475_s4 + $0x98] sm:$0xff]  }
 0x80a   : > { %11277 = vmatmul.mubr.msk.bf16.vlgmr.msra.gmra.mrb[36].mxu0 %vm856_vm5, %v12686_v18 }
 0x80b   : > { %11282 = vmatprep.mubr.msk.bf16.mxu0 %vm856_vm5, %v12230_v60  ;;  %v12253_v60 = vld [vmem:[%s14474_s3 + $0x5d0] sm:$0xff]  }
 0x8dd   : > { %v3190_v63 = vpop.f32.mrb[36].mxu0 }
 0x8de   : > { %v3191_v62 = vadd.f32 %v13281_v7, %v3190_v63  ;;  %v11278_v1 = vpop.f32.mrb[37].mxu0  ;;  %v12233_v7 = vld [vmem:[%s14475_s4 + $0x80] sm:$0xff]  }
 0x8df   : > { %v3193_v3 = vpop.f32.mrb[38].mxu0 }
 0x8e0   : > { %v3194_v30 = vadd.f32 %v13283_v50, %v3193_v3  ;;  %v11279_v35 = vpop.f32.mrb[39].mxu0 }
 0x8e2   : > { %v3197_v4 = vpack.c.bf16 %v3194_v30, %v3191_v62 }
 0x8e4   : > { %11280 = vmatprep.subr.bf16.mxu0 %v3197_v4 }
 0x8e5   : > { %11281 = vmatpush3.bf16.msra.mxu0 %v3197_v4  ;;  %v12255_v4 = vld [vmem:[%s14475_s4 + $0xa8] sm:$0xff]  }
 0x8e6   : > { %11286 = vmatprep.subr.bf16.mxu0 %v12465_v0 }
 0x8e8   : > { %11283 = vmatmul.mubr.msk.bf16.vlgmr.msra.gmra.mrb[12].mxu0 %vm856_vm5, %v12231_v6  ;;  %v12256_v6 = vld [vmem:[%s14474_s3 + $0x658] sm:$0xff]  }
 0x8e9   : > { %11287 = vmatpush3.bf16.msra.mxu0 %v12232_v8  ;;  %11288 = vmatprep.mubr.msk.bf16.mxu0 %vm12466_vm0, %v12465_v0 }
 0x8f0   : > { %11289 = vmatmul.mubr.msk.bf16.vlgmr.msra.gmra.mrb[40].mxu0 %vm856_vm5, %v12686_v18 }
 0x8f1   : > { %11294 = vmatprep.mubr.msk.bf16.mxu0 %vm856_vm5, %v12233_v7 }
 0x9c3   : > { %v3484_v50 = vpop.f32.mrb[40].mxu0 }
 0x9c4   : > { %v3485_v9 = vadd.f32 %v13285_v2, %v3484_v50  ;;  %v11290_v61 = vpop.f32.mrb[41].mxu0  ;;  %v12236_v2 = vld [vmem:[%s14474_s3 + $0x4c8] sm:$0xff]  }
 0x9c5   : > { %v3487_v11 = vpop.f32.mrb[42].mxu0 }
 0x9c6   : > { %v3488_v55 = vadd.f32 %v13287_v13, %v3487_v11  ;;  %v11291_v16 = vpop.f32.mrb[43].mxu0  ;;  %v12237_v13 = vld [vmem:[%s14474_s3 + $0x510] sm:$0xff]  }
 0x9c7   : > { %v12258_v16 = vld [vmem:[%s14475_s4 + $0xb8] sm:$0xff]  }
 0x9c8   : > { %v3491_v52 = vpack.c.bf16 %v3488_v55, %v3485_v9  ;;  %v12259_v55 = vld [vmem:[%s14474_s3 + $0x6a0] sm:$0xff]  }
 0x9ca   : > { %11292 = vmatprep.subr.bf16.mxu0 %v3491_v52 }
 0x9cb   : > { %11293 = vmatpush3.bf16.msra.mxu0 %v3491_v52  ;;  %v12262_v52 = vld [vmem:[%s14474_s3 + $0x668] sm:$0xff]  }
 0x9cc   : > { %10777 = vmatprep.subr.bf16.mxu0 %v12235_v59  ;;  %v12263_v59 = vld [vmem:[%s14474_s3 + $0x6b0] sm:$0xff]  }
 0x9ce   : > { %11295 = vmatmul.mubr.msk.bf16.vlgmr.msra.gmra.mrb[12].mxu0 %vm856_vm5, %v12234_v21  ;;  %v12264_v21 = vld [vmem:[%s14474_s3 + $0x670] sm:$0xff]  }
 0x9cf   : > { %10778 = vmatpush3.bf16.msra.mxu0 %v12236_v2  ;;  %3735 = vmatprep.mubr.bf16.mxu0 %v12684_v17  ;;  %v12265_v2 = vld [vmem:[%s14474_s3 + $0x6b8] sm:$0xff]  }
 0x9d0   : > { %10779 = vmatprep.subr.bf16.mxu0 %v12237_v13  ;;  %v12266_v13 = vld [vmem:[%s14474_s3 + $0x678] sm:$0xff]  }
 0x9d3   : > { %10780 = vmatpush3.bf16.msra.mxu0 %v12238_v22  ;;  %v12267_v22 = vld [vmem:[%s14474_s3 + $0x6c0] sm:$0xff]  }
 0x9d4   : > { %10781 = vmatprep.subr.bf16.mxu0 %v12239_v25  ;;  %v12268_v25 = vld [vmem:[%s14474_s3 + $0x680] sm:$0xff]  }
 0x9d7   : > { %10782 = vmatpush3.bf16.msra.mxu0 %v12240_v27  ;;  %v12269_v27 = vld [vmem:[%s14474_s3 + $0x6c8] sm:$0xff]  }
 0x9d8   : > { %10783 = vmatprep.subr.bf16.mxu0 %v12241_v31  ;;  %v12270_v31 = vld [vmem:[%s14474_s3 + $0x688] sm:$0xff]  }
 0x9db   : > { %10784 = vmatpush3.bf16.msra.mxu0 %v12242_v33  ;;  %v12271_v33 = vld [vmem:[%s14474_s3 + $0x6d0] sm:$0xff]  }
 0x9dc   : > { %10785 = vmatprep.subr.bf16.mxu0 %v12243_v34  ;;  %v12272_v34 = vld [vmem:[%s14474_s3 + $0x690] sm:$0xff]  }
 0x9df   : > { %10786 = vmatpush3.bf16.msra.mxu0 %v12244_v36  ;;  %v12273_v36 = vld [vmem:[%s14474_s3 + $0x6d8] sm:$0xff]  }
 0x9e0   : > { %10787 = vmatprep.subr.bf16.mxu0 %v12245_v38  ;;  %v12274_v38 = vld [vmem:[%s14474_s3 + $0x698] sm:$0xff]  }
 0x9e3   : > { %10788 = vmatpush3.bf16.msra.mxu0 %v12246_v39  ;;  %v12275_v39 = vld [vmem:[%s14475_s4 + $0xc0] sm:$0xff]  }
 0x9e4   : > { %10789 = vmatprep.subr.bf16.mxu0 %v12247_v40 }
 0x9e7   : > { %10790 = vmatpush3.bf16.msra.mxu0 %v12248_v41 }
 0x9e8   : > { %10791 = vmatprep.subr.bf16.mxu0 %v12249_v5 }
 0x9eb   : > { %10792 = vmatpush3.bf16.msra.mxu0 %v12250_v54 }
 0x9ee   : > { %3736 = vmatmul.mubr.bf16.vlgmr.msra.gmra.mrb[44].mxu0 %v12679_v15 }
 0x9ef   : > { %11306 = vmatprep.mubr.msk.bf16.mxu0 %vm856_vm5, %v12251_v43 }
 0xac1   : > { %v10793_v45 = vpop.f32.mrb[44].mxu0 }
 0xac2   : > { %v10794_v46 = vpop.f32.mrb[45].mxu0 }
 0xac3   : > { %v10795_v48 = vadd.f32 %v10794_v46, %v10793_v45  ;;  %v10796_v58 = vpop.f32.mrb[46].mxu0 }
 0xac4   : > { %v10797_v10 = vpop.f32.mrb[47].mxu0 }
 0xac5   : > { %v3779_v49 = vadd.f32 %v10795_v48, %v13289_v14  ;;  %v10798_v51 = vadd.f32 %v10797_v10, %v10796_v58  ;;  %v12254_v14 = vld [vmem:[%s14475_s4 + $0xa0] sm:$0xff]   ;;  %v12276_v10 = vld [vmem:[%s14475_s4 + $0xc8] sm:$0xff]  }
 0xac7   : > { %v3782_v53 = vadd.f32 %v10798_v51, %v13291_v19 }
 0xac9   : > { %v3785_v56 = vpack.c.bf16 %v3782_v53, %v3779_v49  ;;  %v12277_v49 = vld [vmem:[%s14474_s3 + $0x768] sm:$0xff]  }
 0xacb   : > { %11304 = vmatprep.subr.bf16.mxu0 %v3785_v56 }
 0xacc   : > { %11305 = vmatpush3.bf16.msra.mxu0 %v3785_v56 }
 0xacd   : > { %11310 = vmatprep.subr.bf16.mxu0 %v12465_v0 }
 0xacf   : > { %11307 = vmatmul.mubr.msk.bf16.vlgmr.msra.gmra.mrb[12].mxu0 %vm856_vm5, %v12252_v57 }
 0xad0   : > { %11311 = vmatpush3.bf16.msra.mxu0 %v12253_v60  ;;  %11312 = vmatprep.mubr.msk.bf16.mxu0 %vm12466_vm0, %v12465_v0 }
 0xad7   : > { %11313 = vmatmul.mubr.msk.bf16.vlgmr.msra.gmra.mrb[48].mxu0 %vm856_vm5, %v12686_v18 }
 0xad8   : > { %11318 = vmatprep.mubr.msk.bf16.mxu0 %vm856_vm5, %v12254_v14 }
 0xbaa   : > { %v4072_v19 = vpop.f32.mrb[48].mxu0 }
 0xbab   : > { %v4073_v63 = vadd.f32 %v13293_v23, %v4072_v19  ;;  %v11314_v62 = vpop.f32.mrb[49].mxu0  ;;  %v12257_v23 = vld [vmem:[%s14475_s4 + $0xb0] sm:$0xff]   ;;  %v12279_v19 = vld [vmem:[%s14475_s4 + $0xd8] sm:$0xff]  }
 0xbac   : > { %v4075_v1 = vpop.f32.mrb[50].mxu0 }
 0xbad   : > { %v4076_v3 = vadd.f32 %v13295_v26, %v4075_v1  ;;  %v11315_v30 = vpop.f32.mrb[51].mxu0 }
 0xbaf   : > { %v4079_v35 = vpack.c.bf16 %v4076_v3, %v4073_v63  ;;  %v12280_v63 = vld [vmem:[%s14474_s3 + $0x7f0] sm:$0xff]  }
 0xbb1   : > { %11316 = vmatprep.subr.bf16.mxu0 %v4079_v35 }
 0xbb2   : > { %11317 = vmatpush3.bf16.msra.mxu0 %v4079_v35 }
 0xbb3   : > { %11322 = vmatprep.subr.bf16.mxu0 %v12465_v0 }
 0xbb5   : > { %11319 = vmatmul.mubr.msk.bf16.vlgmr.msra.gmra.mrb[12].mxu0 %vm856_vm5, %v12255_v4 }
 0xbb6   : > { %11323 = vmatpush3.bf16.msra.mxu0 %v12256_v6  ;;  %11324 = vmatprep.mubr.msk.bf16.mxu0 %vm12466_vm0, %v12465_v0  ;;  %v12286_v6 = vld [vmem:[%s14474_s3 + $0x800] sm:$0xff]  }
 0xbbd   : > { %11325 = vmatmul.mubr.msk.bf16.vlgmr.msra.gmra.mrb[52].mxu0 %vm856_vm5, %v12686_v18 }
 0xbbe   : > { %11330 = vmatprep.mubr.msk.bf16.mxu0 %vm856_vm5, %v12257_v23  ;;  %v12287_v23 = vld [vmem:[%s14474_s3 + $0x848] sm:$0xff]  }
 0xc90   : > { %v4366_v26 = vpop.f32.mrb[52].mxu0 }
 0xc91   : > { %v4367_v8 = vadd.f32 %v13299_v37, %v4366_v26  ;;  %v11326_v7 = vpop.f32.mrb[53].mxu0  ;;  %v12260_v37 = vld [vmem:[%s14474_s3 + $0x660] sm:$0xff]   ;;  %v12288_v26 = vld [vmem:[%s14474_s3 + $0x808] sm:$0xff]  }
 0xc92   : > { %v4369_v50 = vpop.f32.mrb[54].mxu0  ;;  %v12291_v7 = vld [vmem:[%s14474_s3 + $0x858] sm:$0xff]  }
 0xc93   : > { %v4370_v9 = vadd.f32 %v13304_v42, %v4369_v50  ;;  %v11327_v61 = vpop.f32.mrb[55].mxu0  ;;  %v12261_v42 = vld [vmem:[%s14474_s3 + $0x6a8] sm:$0xff]   ;;  %v12292_v50 = vld [vmem:[%s14474_s3 + $0x818] sm:$0xff]  }
 0xc94   : > { %v12294_v61 = vld [vmem:[%s14474_s3 + $0x820] sm:$0xff]  }
 0xc95   : > { %v4373_v11 = vpack.c.bf16 %v4370_v9, %v4367_v8  ;;  %v12289_v8 = vld [vmem:[%s14474_s3 + $0x850] sm:$0xff]   ;;  %v12293_v9 = vld [vmem:[%s14474_s3 + $0x860] sm:$0xff]  }
 0xc97   : > { %11328 = vmatprep.subr.bf16.mxu0 %v4373_v11 }
 0xc98   : > { %11329 = vmatpush3.bf16.msra.mxu0 %v4373_v11  ;;  %v12295_v11 = vld [vmem:[%s14474_s3 + $0x868] sm:$0xff]  }
 0xc99   : > { %10858 = vmatprep.subr.bf16.mxu0 %v12259_v55  ;;  %v12296_v55 = vld [vmem:[%s14474_s3 + $0x828] sm:$0xff]  }
 0xc9b   : > { %11331 = vmatmul.mubr.msk.bf16.vlgmr.msra.gmra.mrb[12].mxu0 %vm856_vm5, %v12258_v16  ;;  %v12297_v16 = vld [vmem:[%s14474_s3 + $0x870] sm:$0xff]  }
 0xc9c   : > { %10859 = vmatpush3.bf16.msra.mxu0 %v12260_v37  ;;  %4617 = vmatprep.mubr.bf16.mxu0 %v12684_v17  ;;  %v12298_v37 = vld [vmem:[%s14474_s3 + $0x830] sm:$0xff]  }
 0xc9d   : > { %10860 = vmatprep.subr.bf16.mxu0 %v12261_v42  ;;  %v12299_v42 = vld [vmem:[%s14475_s4 + $0xf0] sm:$0xff]  }
 0xca0   : > { %10861 = vmatpush3.bf16.msra.mxu0 %v12262_v52 }
 0xca1   : > { %10862 = vmatprep.subr.bf16.mxu0 %v12263_v59 }
 0xca4   : > { %10863 = vmatpush3.bf16.msra.mxu0 %v12264_v21 }
 0xca5   : > { %10864 = vmatprep.subr.bf16.mxu0 %v12265_v2 }
 0xca8   : > { %10865 = vmatpush3.bf16.msra.mxu0 %v12266_v13 }
 0xca9   : > { %10866 = vmatprep.subr.bf16.mxu0 %v12267_v22 }
 0xcac   : > { %10867 = vmatpush3.bf16.msra.mxu0 %v12268_v25 }
 0xcad   : > { %10868 = vmatprep.subr.bf16.mxu0 %v12269_v27 }
 0xcb0   : > { %10869 = vmatpush3.bf16.msra.mxu0 %v12270_v31 }
 0xcb1   : > { %10870 = vmatprep.subr.bf16.mxu0 %v12271_v33 }
 0xcb4   : > { %10871 = vmatpush3.bf16.msra.mxu0 %v12272_v34 }
 0xcb5   : > { %10872 = vmatprep.subr.bf16.mxu0 %v12273_v36 }
 0xcb8   : > { %10873 = vmatpush3.bf16.msra.mxu0 %v12274_v38 }
 0xcbb   : > { %4618 = vmatmul.mubr.bf16.vlgmr.msra.gmra.mrb[56].mxu0 %v12679_v15 }
 0xcbc   : > { %11342 = vmatprep.mubr.msk.bf16.mxu0 %vm856_vm5, %v12275_v39 }
 0xd8e   : > { %v10874_v40 = vpop.f32.mrb[56].mxu0 }
 0xd8f   : > { %v10875_v41 = vpop.f32.mrb[57].mxu0 }
 0xd90   : > { %v10876_v5 = vadd.f32 %v10875_v41, %v10874_v40  ;;  %v10877_v54 = vpop.f32.mrb[58].mxu0 }
 0xd91   : > { %v10878_v43 = vpop.f32.mrb[59].mxu0 }
 0xd92   : > { %v4661_v45 = vadd.f32 %v10876_v5, %v13315_v44  ;;  %v10879_v46 = vadd.f32 %v10878_v43, %v10877_v54  ;;  %v12278_v44 = vld [vmem:[%s14475_s4 + $0xd0] sm:$0xff]  }
 0xd94   : > { %v4664_v48 = vadd.f32 %v10879_v46, %v13322_v47 }
 0xd96   : > { %v4667_v58 = vpack.c.bf16 %v4664_v48, %v4661_v45 }
 0xd98   : > { %11340 = vmatprep.subr.bf16.mxu0 %v4667_v58 }
 0xd99   : > { %11341 = vmatpush3.bf16.msra.mxu0 %v4667_v58 }
 0xd9a   : > { %11346 = vmatprep.subr.bf16.mxu0 %v12465_v0 }
 0xd9c   : > { %11343 = vmatmul.mubr.msk.bf16.vlgmr.msra.gmra.mrb[12].mxu0 %vm856_vm5, %v12276_v10  ;;  %v12301_v10 = vld [vmem:[%s14476_s5] sm:$0xff]  }
 0xd9d   : > { %11347 = vmatpush3.bf16.msra.mxu0 %v12277_v49  ;;  %11348 = vmatprep.mubr.msk.bf16.mxu0 %vm12466_vm0, %v12465_v0  ;;  %v12302_v49 = vld [vmem:[%s14476_s5 + $0x8] sm:$0xff]  }
 0xd9e   : > { %11382 = vmatprep.subr.bf16.mxu1 %v12301_v10 }
 0xd9f   : > { %11383 = vmatpush3.bf16.msra.mxu1 %v12301_v10 }
 0xda0   : > { %11384 = vmatprep.subr.bf16.mxu1 %v12302_v49 }
 0xda3   : > { %11385 = vmatpush3.bf16.msra.mxu1 %v12302_v49 }
 0xda4   : > { %11349 = vmatmul.mubr.msk.bf16.vlgmr.msra.gmra.mrb[60].mxu0 %vm856_vm5, %v12686_v18 }
 0xda5   : > { %11354 = vmatprep.mubr.msk.bf16.mxu0 %vm856_vm5, %v12278_v44  ;;  %v12303_v44 = vld [vmem:[%s14476_s5 + $0x10] sm:$0xff]  }
 0xda6   : > { %11386 = vmatprep.subr.bf16.mxu1 %v12303_v44 }
 0xda7   : > { %11387 = vmatpush3.bf16.msra.mxu1 %v12303_v44 }
 0xe77   : > { %v4954_v47 = vpop.f32.mrb[60].mxu0 }
 0xe78   : > { %v4955_v51 = vadd.f32 %v13361_v12, %v4954_v47  ;;  %v11350_v53 = vpop.f32.mrb[61].mxu0  ;;  %v12281_v12 = vld [vmem:[%s14475_s4 + $0xe0] sm:$0xff]   ;;  %v12304_v47 = vld [vmem:[%s14476_s5 + $0x18] sm:$0xff]  }
 0xe79   : > { %v4957_v56 = vpop.f32.mrb[62].mxu0  ;;  %11388 = vmatprep.subr.bf16.mxu1 %v12304_v47 }
 0xe7a   : > { %v4958_v57 = vadd.f32 %v13363_v20, %v4957_v56  ;;  %v11351_v60 = vpop.f32.mrb[63].mxu0  ;;  %11389 = vmatpush3.bf16.msra.mxu1 %v12304_v47 }
 0xe7c   : > { %v4961_v14 = vpack.c.bf16 %v4958_v57, %v4955_v51  ;;  %v13810_v51 = vld [vmem:[%s14476_s5 + $0x20] sm:$0xff]  }
 0xe7d   : > { %11394 = vmatprep.subr.bf16.mxu1 %v13810_v51 }
 0xe7e   : > { %11352 = vmatprep.subr.bf16.mxu0 %v4961_v14 }
 0xe7f   : > { %11353 = vmatpush3.bf16.msra.mxu0 %v4961_v14 }
 0xe80   : > { %11358 = vmatprep.subr.bf16.mxu0 %v12465_v0 }
 0xe82   : > { %11355 = vmatmul.mubr.msk.bf16.vlgmr.msra.gmra.mrb[12].mxu0 %vm856_vm5, %v12279_v19 }
 0xe83   : > { %11359 = vmatpush3.bf16.msra.mxu0 %v12280_v63  ;;  %11360 = vmatprep.mubr.msk.bf16.mxu0 %vm12466_vm0, %v12465_v0  ;;  %v12283_v0 = vld [vmem:[%s14474_s3 + $0x838] sm:$0xff]  }
 0xe8a   : > { %11361 = vmatmul.mubr.msk.bf16.vlgmr.msra.gmra.mrb[64].mxu0 %vm856_vm5, %v12686_v18  ;;  %v12282_v18 = vld [vmem:[%s14475_s4 + $0xe8] sm:$0xff]  }
 0xe8b   : > { %11366 = vmatprep.mubr.msk.bf16.mxu0 %vm856_vm5, %v12281_v12 }
 0xf5d   : > { %v5248_v20 = vpop.f32.mrb[64].mxu0 }
 0xf5e   : > { %v5249_v62 = vadd.f32 %v13365_v24, %v5248_v20  ;;  %v11362_v1 = vpop.f32.mrb[65].mxu0  ;;  %v12284_v24 = vld [vmem:[%s14474_s3 + $0x7f8] sm:$0xff]  }
 0xf5f   : > { %v5251_v3 = vpop.f32.mrb[66].mxu0 }
 0xf60   : > { %v5252_v30 = vadd.f32 %v13367_v28, %v5251_v3  ;;  %v11363_v35 = vpop.f32.mrb[67].mxu0  ;;  %v12285_v28 = vld [vmem:[%s14474_s3 + $0x840] sm:$0xff]  }
 0xf62   : > { %v5255_v4 = vpack.c.bf16 %v5252_v30, %v5249_v62 }
 0xf64   : > { %11364 = vmatprep.subr.bf16.mxu0 %v5255_v4 }
 0xf65   : > { %11365 = vmatpush3.bf16.msra.mxu0 %v5255_v4 }
 0xf66   : > { %10939 = vmatprep.subr.bf16.mxu0 %v12283_v0 }
 0xf68   : > { %11367 = vmatmul.mubr.msk.bf16.vlgmr.msra.gmra.mrb[12].mxu0 %vm856_vm5, %v12282_v18 }
 0xf69   : > { %10940 = vmatpush3.bf16.msra.mxu0 %v12284_v24  ;;  %5499 = vmatprep.mubr.bf16.mxu0 %v12684_v17  ;;  %v12290_v17 = vld [vmem:[%s14474_s3 + $0x810] sm:$0xff]  }
 0xf6a   : > { %10941 = vmatprep.subr.bf16.mxu0 %v12285_v28 }
 0xf6d   : > { %10942 = vmatpush3.bf16.msra.mxu0 %v12286_v6 }
 0xf6e   : > { %10943 = vmatprep.subr.bf16.mxu0 %v12287_v23 }
 0xf71   : > { %10944 = vmatpush3.bf16.msra.mxu0 %v12288_v26 }
 0xf72   : > { %10945 = vmatprep.subr.bf16.mxu0 %v12289_v8 }
 0xf75   : > { %10946 = vmatpush3.bf16.msra.mxu0 %v12290_v17 }
 0xf76   : > { %10947 = vmatprep.subr.bf16.mxu0 %v12291_v7 }
 0xf79   : > { %10948 = vmatpush3.bf16.msra.mxu0 %v12292_v50 }
 0xf7a   : > { %10949 = vmatprep.subr.bf16.mxu0 %v12293_v9 }
 0xf7d   : > { %10950 = vmatpush3.bf16.msra.mxu0 %v12294_v61 }
 0xf7e   : > { %10951 = vmatprep.subr.bf16.mxu0 %v12295_v11 }
 0xf81   : > { %10952 = vmatpush3.bf16.msra.mxu0 %v12296_v55 }
 0xf82   : > { %10953 = vmatprep.subr.bf16.mxu0 %v12297_v16 }
 0xf85   : > { %10954 = vmatpush3.bf16.msra.mxu0 %v12298_v37 }
 0xf88   : > { %5500 = vmatmul.mubr.bf16.vlgmr.msra.gmra.mrb[68].mxu0 %v12679_v15  ;;  %v12300_v15 = vld [vmem:[%s14475_s4 + $0xf8] sm:$0xff]  }
 0xf89   : > { %11378 = vmatprep.mubr.msk.bf16.mxu0 %vm856_vm5, %v12299_v42 }
0x105b   : > { %v10955_v52 = vpop.f32.mrb[68].mxu0 }
0x105c   : > { %v10956_v59 = vpop.f32.mrb[69].mxu0 }
0x105d   : > { %v10957_v21 = vadd.f32 %v10956_v59, %v10955_v52  ;;  %v10958_v2 = vpop.f32.mrb[70].mxu0 }
0x105e   : > { %v10959_v13 = vpop.f32.mrb[71].mxu0 }
0x105f   : > { %v5543_v22 = vadd.f32 %v10957_v21, %v13369_v29  ;;  %v10960_v25 = vadd.f32 %v10959_v13, %v10958_v2 }
0x1061   : > { %v5546_v27 = vadd.f32 %v10960_v25, %v13371_v32 }
0x1063   : > { %v5549_v31 = vpack.c.bf16 %v5546_v27, %v5543_v22 }
0x1065   : > { %11376 = vmatprep.subr.bf16.mxu0 %v5549_v31 }
0x1066   : > { %11377 = vmatpush3.bf16.msra.mxu0 %v5549_v31 }
0x1069   : > { %11379 = vmatmul.mubr.msk.bf16.vlgmr.msra.gmra.mrb[12].mxu0 %vm856_vm5, %v12300_v15 }
0x113c   : > { %v13767_v33 = vpop.f32.mrb[12].mxu0 }
0x113d   : > { %v13769_v34 = vpop.f32.mrb[13].mxu0  ;;  %v5631_v29 = vsel %vm5624_vm12, %v13767_v33, 0.0  ;;  %v5639_v43 = vmul.f32 %v13767_v33, %v13767_v33 }
0x113e   : > { %5632 = vadd.xlane.f32.xlu1 %v5631_v29  ;;  %v13773_v36 = vpop.f32.mrb[14].mxu0  ;;  %v5625_v39 = vsel %vm5624_vm12, %v13769_v34, 0.0  ;;  %v5637_v40 = vmul.f32 %v13769_v34, %v13769_v34 }
0x113f   : > { %v13775_v32 = vpop.f32.mrb[15].mxu0  ;;  %v5634_v38 = vsel %vm5624_vm12, %v13773_v36, 0.0  ;;  %v5640_v46 = vmul.f32 %v13773_v36, %v13773_v36  ;;  %v5647_v48 = vsel %vm5624_vm12, %v5639_v43, 0.0 }
0x1140   : > { %5635 = vadd.xlane.f32.xlu0 %v5634_v38  ;;  %v5628_v41 = vsel %vm5624_vm12, %v13775_v32, 0.0  ;;  %v5638_v5 = vmul.f32 %v13775_v32, %v13775_v32  ;;  %v5641_v54 = vsel %vm5624_vm12, %v5637_v40, 0.0 }
0x1141   : > { %v5650_v58 = vsel %vm5624_vm12, %v5640_v46, 0.0 }
0x1142   : > { %5626 = vadd.xlane.f32.xlu1 %v5625_v39  ;;  %v5644_v45 = vsel %vm5624_vm12, %v5638_v5, 0.0  ;;  %v12308_v5 = vld [vmem:[%s14476_s5 + $0x38] sm:$0xff]  }
0x1144   : > { %5629 = vadd.xlane.f32.xlu0 %v5628_v41  ;;  %v12307_v41 = vld [vmem:[%s14476_s5 + $0x30] sm:$0xff]  }
0x1146   : > { %5642 = vadd.xlane.f32.xlu1 %v5641_v54  ;;  %v12309_v54 = vld [vmem:[%s14477_s6 + $0x20] sm:$0xff]  }
0x1148   : > { %5645 = vadd.xlane.f32.xlu0 %v5644_v45 }
0x114a   : > { %5648 = vadd.xlane.f32.xlu1 %v5647_v48 }
0x114c   : > { %5651 = vadd.xlane.f32.xlu0 %v5650_v58 }
0x11cb   : > { %v5633_v53 = vpop.xlane.xlu1 %5632 }
0x11cc   : > { %v5655_v12 = vmul.f32 0.015625, %v5633_v53 }
0x11cd   : > { %v5636_v56 = vpop.xlane.xlu0 %5635 }
0x11ce   : > { %v5656_v1 = vmul.f32 0.015625, %v5636_v56  ;;  %v5663_v18 = vmul.f32 %v5655_v12, %v5655_v12  ;;  %v5671_v52 = vsub.f32 %v13767_v33, %v5655_v12  ;;  %v12314_v12 = vld [vmem:[%s14477_s6 + $0x38] sm:$0xff]  }
0x11cf   : > { %v5627_v57 = vpop.xlane.xlu1 %5626 }
0x11d0   : > { %v5653_v60 = vmul.f32 0.015625, %v5627_v57  ;;  %v5664_v23 = vmul.f32 %v5656_v1, %v5656_v1  ;;  %v5672_v13 = vsub.f32 %v13773_v36, %v5656_v1  ;;  %v12306_v36 = vld [vmem:[%s14476_s5 + $0x28] sm:$0xff]   ;;  %v12311_v57 = vld [vmem:[%s14476_s5 + $0x40] sm:$0xff]  }
0x11d1   : > { %v5630_v14 = vpop.xlane.xlu0 %5629  ;;  %v12318_v1 = vld [vmem:[%s14476_s5 + $0x68] sm:$0xff]  }
0x11d2   : > { %v5654_v19 = vmul.f32 0.015625, %v5630_v14  ;;  %v5661_v20 = vmul.f32 %v5653_v60, %v5653_v60  ;;  %v5669_v11 = vsub.f32 %v13769_v34, %v5653_v60  ;;  %v12310_v60 = vld [vmem:[%s14477_s6 + $0x28] sm:$0xff]   ;;  %v12313_v14 = vld [vmem:[%s14477_s6 + $0x30] sm:$0xff]  }
0x11d3   : > { %v5643_v63 = vpop.xlane.xlu1 %5642 }
0x11d4   : > { %v5657_v62 = vmul.f32 0.015625, %v5643_v63  ;;  %v5662_v30 = vmul.f32 %v5654_v19, %v5654_v19  ;;  %v5670_v16 = vsub.f32 %v13775_v32, %v5654_v19  ;;  %v12312_v19 = vld [vmem:[%s14476_s5 + $0x48] sm:$0xff]   ;;  %v12315_v63 = vld [vmem:[%s14476_s5 + $0x50] sm:$0xff]  }
0x11d5   : > { %v5646_v3 = vpop.xlane.xlu0 %5645 }
0x11d6   : > { %v5665_v35 = vsub.f32 %v5657_v62, %v5661_v20  ;;  %v5658_v4 = vmul.f32 0.015625, %v5646_v3  ;;  %v12316_v20 = vld [vmem:[%s14476_s5 + $0x58] sm:$0xff]   ;;  %v12317_v62 = vld [vmem:[%s14476_s5 + $0x60] sm:$0xff]   ;;  %v12319_v3 = vld [vmem:[%s14476_s5 + $0x70] sm:$0xff]  }
0x11d7   : > { %v5649_v0 = vpop.xlane.xlu1 %5648 }
0x11d8   : > { %v5673_v24 = vadd.f32 1e-05, %v5665_v35  ;;  %v5666_v28 = vsub.f32 %v5658_v4, %v5662_v30  ;;  %v5659_v6 = vmul.f32 0.015625, %v5649_v0  ;;  %v12320_v30 = vld [vmem:[%s14476_s5 + $0x78] sm:$0xff]   ;;  %v12321_v35 = vld [vmem:[%s14476_s5 + $0x80] sm:$0xff]   ;;  %v12322_v4 = vld [vmem:[%s14476_s5 + $0x88] sm:$0xff]  }
0x11d9   : > { %v5652_v26 = vpop.xlane.xlu0 %5651  ;;  %v12323_v0 = vld [vmem:[%s14476_s5 + $0x90] sm:$0xff]  }
0x11da   : > { %12433 = vrsqrt.f32 %v5673_v24  ;;  %v5674_v8 = vadd.f32 1e-05, %v5666_v28  ;;  %v5667_v17 = vsub.f32 %v5659_v6, %v5663_v18  ;;  %v5660_v7 = vmul.f32 0.015625, %v5652_v26  ;;  %v12324_v18 = vld [vmem:[%s14476_s5 + $0x98] sm:$0xff]   ;;  %v12325_v24 = vld [vmem:[%s14476_s5 + $0xa0] sm:$0xff]   ;;  %v12326_v28 = vld [vmem:[%s14476_s5 + $0xa8] sm:$0xff]  }
0x11db   : > { %v12327_v6 = vld [vmem:[%s14476_s5 + $0xb0] sm:$0xff]   ;;  %v12329_v26 = vld [vmem:[%s14476_s5 + $0xc0] sm:$0xff]  }
0x11dc   : > { %12435 = vrsqrt.f32 %v5674_v8  ;;  %v5675_v50 = vadd.f32 1e-05, %v5667_v17  ;;  %v5668_v9 = vsub.f32 %v5660_v7, %v5664_v23  ;;  %v12328_v23 = vld [vmem:[%s14476_s5 + $0xb8] sm:$0xff]   ;;  %v12330_v8 = vld [vmem:[%s14476_s5 + $0xc8] sm:$0xff]   ;;  %v12331_v17 = vld [vmem:[%s14476_s5 + $0xd0] sm:$0xff]  }
0x11dd   : > { %v12332_v7 = vld [vmem:[%s14476_s5 + $0xd8] sm:$0xff]  }
0x11de   : > { %12437 = vrsqrt.f32 %v5675_v50  ;;  %v5676_v61 = vadd.f32 1e-05, %v5668_v9  ;;  %v12333_v50 = vld [vmem:[%s14476_s5 + $0xe0] sm:$0xff]   ;;  %v12334_v9 = vld [vmem:[%s14476_s5 + $0xe8] sm:$0xff]  }
0x11e0   : > { %12439 = vrsqrt.f32 %v5676_v61  ;;  %v12335_v61 = vld [vmem:[%s14476_s5 + $0xf0] sm:$0xff]  }
0x11e4   : > { %v12434_v55 = vpop.eup %12433 }
0x11e5   : > { %v5681_v37 = vmul.f32 %v12434_v55, %v5669_v11  ;;  %v12336_v11 = vld [vmem:[%s14476_s5 + $0xf8] sm:$0xff]   ;;  %v12337_v55 = vld [vmem:[%s14476_s5 + $0x100] sm:$0xff]  }
0x11e6   : > { %v12436_v42 = vpop.eup %12435 }
0x11e7   : > { %v5689_v59 = vmul.f32 0.2, %v5681_v37  ;;  %v5682_v21 = vmul.f32 %v12436_v42, %v5670_v16  ;;  %vm5685_vm13 = vcmp.ge.f32.partialorder %v5681_v37, 0.0  ;;  %v12338_v16 = vld [vmem:[%s14476_s5 + $0x108] sm:$0xff]  }
0x11e8   : > { %v12438_v2 = vpop.eup %12437  ;;  %v12370_v42 = vld [vmem:[%s14477_s6 + $0x8] sm:$0xff]  }
0x11e9   : > { %vm5686_vm14 = vcmp.ge.f32.partialorder %v5682_v21, 0.0  ;;  %v5690_v22 = vmul.f32 0.2, %v5682_v21  ;;  %v5683_v25 = vmul.f32 %v12438_v2, %v5671_v52  ;;  %v5693_v31 = vsel %vm5685_vm13, %v5681_v37, %v5689_v59  ;;  %v12369_v37 = vld [vmem:[%s14477_s6] sm:$0xff]   ;;  %v12339_v52 = vld [vmem:[%s14476_s5 + $0x110] sm:$0xff]   ;;  %v12340_v59 = vld [vmem:[%s14476_s5 + $0x118] sm:$0xff]  }
0x11ea   : > { %v12440_v27 = vpop.eup %12439  ;;  %11422 = vmatprep.mubr.msk.bf16.mxu0 %vm398_vm2, %v12369_v37  ;;  %v12372_v2 = vld [vmem:[%s14477_s6 + $0x18] sm:$0xff]  }
0x11eb   : > { %v5694_v15 = vsel %vm5686_vm14, %v5682_v21, %v5690_v22  ;;  %v5691_v34 = vmul.f32 0.2, %v5683_v25  ;;  %v5684_v29 = vmul.f32 %v12440_v27, %v5672_v13  ;;  %vm5687_vm15 = vcmp.ge.f32.partialorder %v5683_v25, 0.0  ;;  %v12371_v21 = vld [vmem:[%s14477_s6 + $0x10] sm:$0xff]   ;;  %v12341_v13 = vld [vmem:[%s14476_s5 + $0x120] sm:$0xff]   ;;  %v12342_v22 = vld [vmem:[%s14476_s5 + $0x128] sm:$0xff]  }
0x11ec   : > { %v13817_v38 = vpack.c.bf16 %v5694_v15, %v5693_v31  ;;  %v12343_v27 = vld [vmem:[%s14476_s5 + $0x130] sm:$0xff]   ;;  %v12344_v31 = vld [vmem:[%s14476_s5 + $0x138] sm:$0xff]   ;;  %v12345_v15 = vld [vmem:[%s14476_s5 + $0x140] sm:$0xff]  }
0x11ed   : > { %vm5688_vm0 = vcmp.ge.f32.partialorder %v5684_v29, 0.0  ;;  %v5692_v32 = vmul.f32 0.2, %v5684_v29  ;;  %v5695_v33 = vsel %vm5687_vm15, %v5683_v25, %v5691_v34  ;;  %v12373_v25 = vld [vmem:[%s14477_s6 + $0x40] sm:$0xff]   ;;  %v12346_v34 = vld [vmem:[%s14476_s5 + $0x148] sm:$0xff]   ;;  %v12380_v37 = vld [vmem:[%s14477_s6 + $0x78] sm:$0xff]  }
0x11ee   : > { %11390 = vmatprep.mubr.msk.bf16.mxu1 %vm5624_vm12, %v13817_v38 }
0x11ef   : > { %v5696_v39 = vsel %vm5688_vm0, %v5684_v29, %v5692_v32  ;;  %v12347_v29 = vld [vmem:[%s14476_s5 + $0x150] sm:$0xff]   ;;  %v12348_v32 = vld [vmem:[%s14476_s5 + $0x158] sm:$0xff]  }
0x11f0   : > { %v13821_v40 = vpack.c.bf16 %v5696_v39, %v5695_v33  ;;  %v12349_v33 = vld [vmem:[%s14476_s5 + $0x160] sm:$0xff]   ;;  %v12350_v39 = vld [vmem:[%s14476_s5 + $0x168] sm:$0xff]  }
0x11f2   : > { %11391 = vmatmul.mubr.msk.bf16.vlgmr.msra.gmra.mrb[68].mxu1 %vm5624_vm12, %v13821_v40 }
0x11f3   : > { %11395 = vmatpush3.bf16.msra.mxu1 %v13810_v51  ;;  %11402 = vmatprep.mubr.msk.bf16.mxu1 %vm5624_vm12, %v13817_v38 }
0x11f4   : > { %11396 = vmatprep.subr.bf16.mxu1 %v12306_v36 }
0x11f7   : > { %11397 = vmatpush3.bf16.msra.mxu1 %v12306_v36  ;;  %v12351_v36 = vld [vmem:[%s14476_s5 + $0x170] sm:$0xff]  }
0x11f8   : > { %11398 = vmatprep.subr.bf16.mxu1 %v12307_v41 }
0x11fb   : > { %11399 = vmatpush3.bf16.msra.mxu1 %v12307_v41  ;;  %v12352_v41 = vld [vmem:[%s14476_s5 + $0x178] sm:$0xff]  }
0x11fc   : > { %11400 = vmatprep.subr.bf16.mxu1 %v12308_v5 }
0x11ff   : > { %11401 = vmatpush3.bf16.msra.mxu1 %v12308_v5  ;;  %v12353_v5 = vld [vmem:[%s14476_s5 + $0x180] sm:$0xff]  }
0x1202   : > { %11403 = vmatmul.mubr.msk.bf16.vlgmr.msra.gmra.mrb[72].mxu1 %vm5624_vm12, %v13821_v40 }
0x1203   : > { %11410 = vmatprep.mubr.msk.bf16.mxu1 %vm398_vm2, %v12309_v54  ;;  %v12354_v54 = vld [vmem:[%s14476_s5 + $0x188] sm:$0xff]  }
0x12c5   : > { %v11392_v43 = vpop.f32.mrb[68].mxu1 }
0x12c6   : > { %v5771_v45 = vpop.f32.mrb[69].mxu1 }
0x12c7   : > { %v11393_v46 = vpop.f32.mrb[70].mxu1 }
0x12c8   : > { %v5787_v48 = vpack.c.bf16 %v11393_v46, %v11392_v43  ;;  %v5774_v58 = vpop.f32.mrb[71].mxu1  ;;  %v12355_v43 = vld [vmem:[%s14476_s5 + $0x190] sm:$0xff]   ;;  %v12357_v46 = vld [vmem:[%s14476_s5 + $0x1a0] sm:$0xff]  }
0x12c9   : > { %v5786_v10 = vpack.c.bf16 %v5774_v58, %v5771_v45  ;;  %v12356_v45 = vld [vmem:[%s14476_s5 + $0x198] sm:$0xff]   ;;  %v12359_v58 = vld [vmem:[%s14476_s5 + $0x1b0] sm:$0xff]  }
0x12cb   : > { %11418 = vmatprep.subr.bf16.mxu0 %v5786_v10 }
0x12cc   : > { %11419 = vmatpush3.bf16.msra.mxu0 %v5786_v10  ;;  %v12360_v10 = vld [vmem:[%s14476_s5 + $0x1b8] sm:$0xff]  }
0x12cd   : > { %11420 = vmatprep.subr.bf16.mxu0 %v5787_v48 }
0x12d0   : > { %11421 = vmatpush3.bf16.msra.mxu0 %v5787_v48  ;;  %v12358_v48 = vld [vmem:[%s14476_s5 + $0x1a8] sm:$0xff]  }
0x12d3   : > { %11423 = vmatmul.mubr.msk.bf16.vlgmr.msra.gmra.mrb[72].mxu0 %vm398_vm2, %v12370_v42 }
0x12d4   : > { %11426 = vmatprep.mubr.msk.bf16.mxu0 %vm398_vm2, %v12371_v21 }
0x12d5   : > { %v11404_v49 = vpop.f32.mrb[72].mxu1 }
0x12d6   : > { %v5863_v44 = vpop.f32.mrb[73].mxu1 }
0x12d7   : > { %v11405_v47 = vpop.f32.mrb[74].mxu1 }
0x12d8   : > { %v5879_v51 = vpack.c.bf16 %v11405_v47, %v11404_v49  ;;  %v5866_v53 = vpop.f32.mrb[75].mxu1  ;;  %v12361_v49 = vld [vmem:[%s14476_s5 + $0x1c0] sm:$0xff]   ;;  %v12363_v47 = vld [vmem:[%s14476_s5 + $0x1d0] sm:$0xff]  }
0x12d9   : > { %v5878_v56 = vpack.c.bf16 %v5866_v53, %v5863_v44  ;;  %v12362_v44 = vld [vmem:[%s14476_s5 + $0x1c8] sm:$0xff]   ;;  %v12365_v53 = vld [vmem:[%s14476_s5 + $0x1e0] sm:$0xff]  }
0x12db   : > { %11406 = vmatprep.subr.bf16.mxu1 %v5878_v56  ;;  %11427 = vmatmul.mubr.msk.bf16.gmra.mrb[76].mxu0 %vm398_vm2, %v12372_v2  ;;  %v12382_v2 = vld [vmem:[%s14477_s6 + $0x88] sm:$0xff]  }
0x12dc   : > { %11407 = vmatpush3.bf16.msra.mxu1 %v5878_v56  ;;  %11446 = vmatprep.mubr.msk.bf16.mxu0 %vm398_vm2, %v12373_v25  ;;  %v12366_v56 = vld [vmem:[%s14476_s5 + $0x1e8] sm:$0xff]  }
0x12dd   : > { %11408 = vmatprep.subr.bf16.mxu1 %v5879_v51 }
0x12e0   : > { %11409 = vmatpush3.bf16.msra.mxu1 %v5879_v51  ;;  %v12364_v51 = vld [vmem:[%s14476_s5 + $0x1d8] sm:$0xff]  }
0x12e1   : > { %11430 = vmatprep.subr.bf16.mxu1 %v12311_v57 }
0x12e3   : > { %11411 = vmatmul.mubr.msk.bf16.vlgmr.msra.gmra.mrb[76].mxu1 %vm398_vm2, %v12310_v60 }
0x12e4   : > { %11431 = vmatpush3.bf16.msra.mxu1 %v12311_v57  ;;  %11414 = vmatprep.mubr.msk.bf16.mxu1 %vm398_vm2, %v12313_v14  ;;  %v12367_v57 = vld [vmem:[%s14476_s5 + $0x1f0] sm:$0xff]  }
0x12e5   : > { %11432 = vmatprep.subr.bf16.mxu1 %v12312_v19 }
0x12e8   : > { %11433 = vmatpush3.bf16.msra.mxu1 %v12312_v19 }
0x12e9   : > { %11434 = vmatprep.subr.bf16.mxu1 %v12315_v63 }
0x12eb   : > { %11415 = vmatmul.mubr.msk.bf16.gmra.mrb[80].mxu1 %vm398_vm2, %v12314_v12  ;;  %v12368_v12 = vld [vmem:[%s14476_s5 + $0x1f8] sm:$0xff]  }
0x12ec   : > { %11435 = vmatpush3.bf16.msra.mxu1 %v12315_v63  ;;  %11438 = vmatprep.mubr.msk.bf16.mxu1 %vm5624_vm12, %v13817_v38 }
0x12ed   : > { %11436 = vmatprep.subr.bf16.mxu1 %v12316_v20 }
0x12f0   : > { %11437 = vmatpush3.bf16.msra.mxu1 %v12316_v20 }
0x12f1   : > { %11454 = vmatprep.subr.bf16.mxu1 %v12317_v62 }
0x12f3   : > { %11439 = vmatmul.mubr.msk.bf16.vlgmr.msra.gmra.mrb[84].mxu1 %vm5624_vm12, %v13821_v40 }
0x12f4   : > { %11455 = vmatpush3.bf16.msra.mxu1 %v12317_v62  ;;  %11462 = vmatprep.mubr.msk.bf16.mxu1 %vm5624_vm12, %v13817_v38 }
0x12f5   : > { %11456 = vmatprep.subr.bf16.mxu1 %v12318_v1 }
0x12f8   : > { %11457 = vmatpush3.bf16.msra.mxu1 %v12318_v1 }
0x12f9   : > { %11458 = vmatprep.subr.bf16.mxu1 %v12319_v3 }
0x12fc   : > { %11459 = vmatpush3.bf16.msra.mxu1 %v12319_v3 }
0x12fd   : > { %11460 = vmatprep.subr.bf16.mxu1 %v12320_v30 }
0x1300   : > { %11461 = vmatpush3.bf16.msra.mxu1 %v12320_v30 }
0x1301   : > { %11478 = vmatprep.subr.bf16.mxu1 %v12321_v35 }
0x1303   : > { %11463 = vmatmul.mubr.msk.bf16.vlgmr.msra.gmra.mrb[88].mxu1 %vm5624_vm12, %v13821_v40 }
0x1304   : > { %11479 = vmatpush3.bf16.msra.mxu1 %v12321_v35  ;;  %11486 = vmatprep.mubr.msk.bf16.mxu1 %vm5624_vm12, %v13817_v38 }
0x1305   : > { %11480 = vmatprep.subr.bf16.mxu1 %v12322_v4 }
0x1308   : > { %11481 = vmatpush3.bf16.msra.mxu1 %v12322_v4 }
0x1309   : > { %11482 = vmatprep.subr.bf16.mxu1 %v12323_v0 }
0x130c   : > { %11483 = vmatpush3.bf16.msra.mxu1 %v12323_v0 }
0x130d   : > { %11484 = vmatprep.subr.bf16.mxu1 %v12324_v18 }
0x1310   : > { %11485 = vmatpush3.bf16.msra.mxu1 %v12324_v18 }
0x1311   : > { %11502 = vmatprep.subr.bf16.mxu1 %v12325_v24 }
0x1313   : > { %11487 = vmatmul.mubr.msk.bf16.vlgmr.msra.gmra.mrb[92].mxu1 %vm5624_vm12, %v13821_v40 }
0x1314   : > { %11503 = vmatpush3.bf16.msra.mxu1 %v12325_v24  ;;  %11510 = vmatprep.mubr.msk.bf16.mxu1 %vm5624_vm12, %v13817_v38  ;;  %v12374_v24 = vld [vmem:[%s14477_s6 + $0x48] sm:$0xff]  }
0x1315   : > { %11504 = vmatprep.subr.bf16.mxu1 %v12326_v28 }
0x1318   : > { %11505 = vmatpush3.bf16.msra.mxu1 %v12326_v28  ;;  %v12375_v28 = vld [vmem:[%s14477_s6 + $0x50] sm:$0xff]  }
0x1319   : > { %11506 = vmatprep.subr.bf16.mxu1 %v12327_v6 }
0x131c   : > { %11507 = vmatpush3.bf16.msra.mxu1 %v12327_v6 }
0x131d   : > { %11508 = vmatprep.subr.bf16.mxu1 %v12328_v23 }
0x1320   : > { %11509 = vmatpush3.bf16.msra.mxu1 %v12328_v23 }
0x1321   : > { %11526 = vmatprep.subr.bf16.mxu1 %v12329_v26 }
0x1323   : > { %11511 = vmatmul.mubr.msk.bf16.vlgmr.msra.gmra.mrb[96].mxu1 %vm5624_vm12, %v13821_v40 }
0x1324   : > { %11527 = vmatpush3.bf16.msra.mxu1 %v12329_v26  ;;  %11534 = vmatprep.mubr.msk.bf16.mxu1 %vm5624_vm12, %v13817_v38  ;;  %v12376_v26 = vld [vmem:[%s14477_s6 + $0x58] sm:$0xff]  }
0x1325   : > { %11528 = vmatprep.subr.bf16.mxu1 %v12330_v8 }
0x1328   : > { %11529 = vmatpush3.bf16.msra.mxu1 %v12330_v8 }
0x1329   : > { %11530 = vmatprep.subr.bf16.mxu1 %v12331_v17 }
0x132c   : > { %11531 = vmatpush3.bf16.msra.mxu1 %v12331_v17 }
0x132d   : > { %11532 = vmatprep.subr.bf16.mxu1 %v12332_v7 }
0x1330   : > { %11533 = vmatpush3.bf16.msra.mxu1 %v12332_v7  ;;  %v12377_v7 = vld [vmem:[%s14477_s6 + $0x60] sm:$0xff]  }
0x1331   : > { %11550 = vmatprep.subr.bf16.mxu1 %v12333_v50 }
0x1333   : > { %11535 = vmatmul.mubr.msk.bf16.vlgmr.msra.gmra.mrb[100].mxu1 %vm5624_vm12, %v13821_v40 }
0x1334   : > { %11551 = vmatpush3.bf16.msra.mxu1 %v12333_v50  ;;  %11558 = vmatprep.mubr.msk.bf16.mxu1 %vm5624_vm12, %v13817_v38 }
0x1335   : > { %11552 = vmatprep.subr.bf16.mxu1 %v12334_v9 }
0x1338   : > { %11553 = vmatpush3.bf16.msra.mxu1 %v12334_v9  ;;  %v12378_v9 = vld [vmem:[%s14477_s6 + $0x68] sm:$0xff]  }
0x1339   : > { %11554 = vmatprep.subr.bf16.mxu1 %v12335_v61 }
0x133c   : > { %11555 = vmatpush3.bf16.msra.mxu1 %v12335_v61  ;;  %v12379_v61 = vld [vmem:[%s14477_s6 + $0x70] sm:$0xff]  }
0x133d   : > { %11556 = vmatprep.subr.bf16.mxu1 %v12336_v11 }
0x1340   : > { %11557 = vmatpush3.bf16.msra.mxu1 %v12336_v11 }
0x1341   : > { %11574 = vmatprep.subr.bf16.mxu1 %v12337_v55 }
0x1343   : > { %11559 = vmatmul.mubr.msk.bf16.vlgmr.msra.gmra.mrb[104].mxu1 %vm5624_vm12, %v13821_v40 }
0x1344   : > { %11575 = vmatpush3.bf16.msra.mxu1 %v12337_v55  ;;  %11582 = vmatprep.mubr.msk.bf16.mxu1 %vm5624_vm12, %v13817_v38 }
0x1345   : > { %11576 = vmatprep.subr.bf16.mxu1 %v12338_v16 }
0x1348   : > { %11577 = vmatpush3.bf16.msra.mxu1 %v12338_v16 }
0x1349   : > { %11578 = vmatprep.subr.bf16.mxu1 %v12339_v52 }
0x134c   : > { %11579 = vmatpush3.bf16.msra.mxu1 %v12339_v52 }
0x134d   : > { %11580 = vmatprep.subr.bf16.mxu1 %v12340_v59 }
0x1350   : > { %11581 = vmatpush3.bf16.msra.mxu1 %v12340_v59  ;;  %v12381_v59 = vld [vmem:[%s14477_s6 + $0x80] sm:$0xff]  }
0x1351   : > { %11598 = vmatprep.subr.bf16.mxu1 %v12341_v13 }
0x1353   : > { %11583 = vmatmul.mubr.msk.bf16.vlgmr.msra.gmra.mrb[108].mxu1 %vm5624_vm12, %v13821_v40 }
0x1354   : > { %11599 = vmatpush3.bf16.msra.mxu1 %v12341_v13  ;;  %11606 = vmatprep.mubr.msk.bf16.mxu1 %vm5624_vm12, %v13817_v38  ;;  %v12383_v13 = vld [vmem:[%s14477_s6 + $0x90] sm:$0xff]  }
0x1355   : > { %11600 = vmatprep.subr.bf16.mxu1 %v12342_v22 }
0x1358   : > { %11601 = vmatpush3.bf16.msra.mxu1 %v12342_v22 }
0x1359   : > { %11602 = vmatprep.subr.bf16.mxu1 %v12343_v27 }
0x135c   : > { %11603 = vmatpush3.bf16.msra.mxu1 %v12343_v27 }
0x135d   : > { %11604 = vmatprep.subr.bf16.mxu1 %v12344_v31 }
0x1360   : > { %11605 = vmatpush3.bf16.msra.mxu1 %v12344_v31  ;;  %v12384_v31 = vld [vmem:[%s14477_s6 + $0x98] sm:$0xff]  }
0x1361   : > { %11622 = vmatprep.subr.bf16.mxu1 %v12345_v15 }
0x1363   : > { %11607 = vmatmul.mubr.msk.bf16.vlgmr.msra.gmra.mrb[112].mxu1 %vm5624_vm12, %v13821_v40 }
0x1364   : > { %11623 = vmatpush3.bf16.msra.mxu1 %v12345_v15  ;;  %11630 = vmatprep.mubr.msk.bf16.mxu1 %vm5624_vm12, %v13817_v38 }
0x1365   : > { %11624 = vmatprep.subr.bf16.mxu1 %v12346_v34 }
0x1368   : > { %11625 = vmatpush3.bf16.msra.mxu1 %v12346_v34 }
0x1369   : > { %11626 = vmatprep.subr.bf16.mxu1 %v12347_v29 }
0x136c   : > { %11627 = vmatpush3.bf16.msra.mxu1 %v12347_v29  ;;  %v12385_v29 = vld [vmem:[%s14477_s6 + $0xa0] sm:$0xff]  }
0x136d   : > { %11628 = vmatprep.subr.bf16.mxu1 %v12348_v32 }
0x1370   : > { %11629 = vmatpush3.bf16.msra.mxu1 %v12348_v32 }
0x1371   : > { %11646 = vmatprep.subr.bf16.mxu1 %v12349_v33 }
0x1373   : > { %11631 = vmatmul.mubr.msk.bf16.vlgmr.msra.gmra.mrb[116].mxu1 %vm5624_vm12, %v13821_v40 }
0x1374   : > { %11647 = vmatpush3.bf16.msra.mxu1 %v12349_v33  ;;  %11654 = vmatprep.mubr.msk.bf16.mxu1 %vm5624_vm12, %v13817_v38  ;;  %v12386_v33 = vld [vmem:[%s14477_s6 + $0xa8] sm:$0xff]  }
0x1375   : > { %11648 = vmatprep.subr.bf16.mxu1 %v12350_v39 }
0x1378   : > { %11649 = vmatpush3.bf16.msra.mxu1 %v12350_v39  ;;  %v12387_v39 = vld [vmem:[%s14477_s6 + $0xb0] sm:$0xff]  }
0x1379   : > { %11650 = vmatprep.subr.bf16.mxu1 %v12351_v36 }
0x137c   : > { %11651 = vmatpush3.bf16.msra.mxu1 %v12351_v36 }
0x137d   : > { %11652 = vmatprep.subr.bf16.mxu1 %v12352_v41 }
0x1380   : > { %11653 = vmatpush3.bf16.msra.mxu1 %v12352_v41 }
0x1381   : > { %11670 = vmatprep.subr.bf16.mxu1 %v12353_v5 }
0x1383   : > { %11655 = vmatmul.mubr.msk.bf16.vlgmr.msra.gmra.mrb[120].mxu1 %vm5624_vm12, %v13821_v40 }
0x1384   : > { %11671 = vmatpush3.bf16.msra.mxu1 %v12353_v5  ;;  %11678 = vmatprep.mubr.msk.bf16.mxu1 %vm5624_vm12, %v13817_v38 }
0x1385   : > { %11672 = vmatprep.subr.bf16.mxu1 %v12354_v54 }
0x1388   : > { %11673 = vmatpush3.bf16.msra.mxu1 %v12354_v54  ;;  %v12388_v54 = vld [vmem:[%s14477_s6 + $0xb8] sm:$0xff]  }
0x1389   : > { %11674 = vmatprep.subr.bf16.mxu1 %v12355_v43 }
0x138c   : > { %11675 = vmatpush3.bf16.msra.mxu1 %v12355_v43 }
0x138d   : > { %11676 = vmatprep.subr.bf16.mxu1 %v12356_v45 }
0x1390   : > { %11677 = vmatpush3.bf16.msra.mxu1 %v12356_v45 }
0x1391   : > { %11694 = vmatprep.subr.bf16.mxu1 %v12357_v46 }
0x1393   : > { %11679 = vmatmul.mubr.msk.bf16.vlgmr.msra.gmra.mrb[124].mxu1 %vm5624_vm12, %v13821_v40 }
0x1394   : > { %11695 = vmatpush3.bf16.msra.mxu1 %v12357_v46  ;;  %11702 = vmatprep.mubr.msk.bf16.mxu1 %vm5624_vm12, %v13817_v38  ;;  %v12389_v46 = vld [vmem:[%s14477_s6 + $0xc0] sm:$0xff]  }
0x1395   : > { %11696 = vmatprep.subr.bf16.mxu1 %v12358_v48 }
0x1398   : > { %11697 = vmatpush3.bf16.msra.mxu1 %v12358_v48 }
0x1399   : > { %11698 = vmatprep.subr.bf16.mxu1 %v12359_v58 }
0x139c   : > { %11699 = vmatpush3.bf16.msra.mxu1 %v12359_v58  ;;  %v12390_v58 = vld [vmem:[%s14477_s6 + $0xc8] sm:$0xff]  }
0x139d   : > { %11700 = vmatprep.subr.bf16.mxu1 %v12360_v10 }
0x13a0   : > { %11701 = vmatpush3.bf16.msra.mxu1 %v12360_v10  ;;  %v12391_v10 = vld [vmem:[%s14477_s6 + $0xd0] sm:$0xff]  }
0x13a1   : > { %11718 = vmatprep.subr.bf16.mxu1 %v12361_v49 }
0x13a3   : > { %11703 = vmatmul.mubr.msk.bf16.vlgmr.msra.gmra.mrb[128].mxu1 %vm5624_vm12, %v13821_v40 }
0x13a4   : > { %11719 = vmatpush3.bf16.msra.mxu1 %v12361_v49  ;;  %11726 = vmatprep.mubr.msk.bf16.mxu1 %vm5624_vm12, %v13817_v38 }
0x13a5   : > { %11720 = vmatprep.subr.bf16.mxu1 %v12362_v44 }
0x13a8   : > { %11721 = vmatpush3.bf16.msra.mxu1 %v12362_v44 }
0x13a9   : > { %11722 = vmatprep.subr.bf16.mxu1 %v12363_v47 }
0x13ac   : > { %11723 = vmatpush3.bf16.msra.mxu1 %v12363_v47 }
0x13ad   : > { %11724 = vmatprep.subr.bf16.mxu1 %v12364_v51 }
0x13b0   : > { %11725 = vmatpush3.bf16.msra.mxu1 %v12364_v51  ;;  %v12392_v51 = vld [vmem:[%s14477_s6 + $0xd8] sm:$0xff]  }
0x13b1   : > { %11742 = vmatprep.subr.bf16.mxu1 %v12365_v53 }
0x13b3   : > { %11727 = vmatmul.mubr.msk.bf16.vlgmr.msra.gmra.mrb[132].mxu1 %vm5624_vm12, %v13821_v40 }
0x13b4   : > { %11743 = vmatpush3.bf16.msra.mxu1 %v12365_v53  ;;  %11750 = vmatprep.mubr.msk.bf16.mxu1 %vm5624_vm12, %v13817_v38 }
0x13b5   : > { %11744 = vmatprep.subr.bf16.mxu1 %v12366_v56 }
0x13b6   : > { %v14094_v60 = vpop.f32.mrb[76].mxu1 }
0x13b7   : > { %v14096_v14 = vpop.f32.mrb[77].mxu1 }
0x13b8   : > { %v14098_v19 = vpop.f32.mrb[78].mxu1  ;;  %11745 = vmatpush3.bf16.msra.mxu1 %v12366_v56 }
0x13b9   : > { %v14100_v63 = vpop.f32.mrb[79].mxu1  ;;  %11746 = vmatprep.subr.bf16.mxu1 %v12367_v57 }
0x13bc   : > { %11747 = vmatpush3.bf16.msra.mxu1 %v12367_v57  ;;  %v12393_v57 = vld [vmem:[%s14477_s6 + $0xe0] sm:$0xff]  }
0x13bd   : > { %11748 = vmatprep.subr.bf16.mxu1 %v12368_v12 }
0x13be   : > { %v14105_v38 = vpop.f32.mrb[80].mxu1 }
0x13bf   : > { %v14107_v20 = vpop.f32.mrb[81].mxu1 }
0x13c0   : > { %v14109_v62 = vpop.f32.mrb[82].mxu1  ;;  %11749 = vmatpush3.bf16.msra.mxu1 %v12368_v12 }
0x13c1   : > { %v14111_v1 = vpop.f32.mrb[83].mxu1 }
0x13c3   : > { %11751 = vmatmul.mubr.msk.bf16.vlgmr.msra.gmra.mrb[136].mxu1 %vm5624_vm12, %v13821_v40 }
0x13c6   : > { %v11440_v3 = vpop.f32.mrb[84].mxu1 }
0x13c7   : > { %v6150_v30 = vpop.f32.mrb[85].mxu1 }
0x13c8   : > { %v11441_v35 = vpop.f32.mrb[86].mxu1 }
0x13c9   : > { %v6166_v4 = vpack.c.bf16 %v11441_v35, %v11440_v3  ;;  %v6153_v0 = vpop.f32.mrb[87].mxu1  ;;  %v12394_v3 = vld [vmem:[%s14477_s6 + $0xe8] sm:$0xff]  }
0x13ca   : > { %v6165_v18 = vpack.c.bf16 %v6153_v0, %v6150_v30  ;;  %v12395_v30 = vld [vmem:[%s14477_s6 + $0xf0] sm:$0xff]  }
0x13cc   : > { %11442 = vmatprep.subr.bf16.mxu0 %v6165_v18 }
0x13cd   : > { %11443 = vmatpush3.bf16.msra.mxu0 %v6165_v18  ;;  %v12396_v18 = vld [vmem:[%s14477_s6 + $0xf8] sm:$0xff]  }
0x13ce   : > { %11444 = vmatprep.subr.bf16.mxu0 %v6166_v4 }
0x13d1   : > { %11445 = vmatpush3.bf16.msra.mxu0 %v6166_v4 }
0x13d4   : > { %11447 = vmatmul.mubr.msk.bf16.vlgmr.msra.gmra.mrb[72].mxu0 %vm398_vm2, %v12374_v24 }
0x13d5   : > { %11450 = vmatprep.mubr.msk.bf16.mxu0 %vm398_vm2, %v12375_v28 }
0x13d6   : > { %v11464_v40 = vpop.f32.mrb[88].mxu1 }
0x13d7   : > { %v6348_v6 = vpop.f32.mrb[89].mxu1 }
0x13d8   : > { %v11465_v23 = vpop.f32.mrb[90].mxu1 }
0x13d9   : > { %v6364_v8 = vpack.c.bf16 %v11465_v23, %v11464_v40  ;;  %v6351_v17 = vpop.f32.mrb[91].mxu1  ;;  %v12397_v40 = vld [vmem:[%s14477_s6 + $0x100] sm:$0xff]   ;;  %v12398_v23 = vld [vmem:[%s14477_s6 + $0x108] sm:$0xff]  }
0x13da   : > { %v6363_v50 = vpack.c.bf16 %v6351_v17, %v6348_v6 }
0x13dc   : > { %11451 = vmatmul.mubr.msk.bf16.gmra.mrb[76].mxu0 %vm398_vm2, %v12376_v26  ;;  %11466 = vmatprep.subr.bf16.mxu0 %v6363_v50  ;;  %v12399_v26 = vld [vmem:[%s14477_s6 + $0x110] sm:$0xff]  }
0x13dd   : > { %11467 = vmatpush3.bf16.msra.mxu0 %v6363_v50  ;;  %11470 = vmatprep.mubr.msk.bf16.mxu0 %vm398_vm2, %v12377_v7  ;;  %v12400_v50 = vld [vmem:[%s14477_s6 + $0x118] sm:$0xff]  }
0x13de   : > { %11468 = vmatprep.subr.bf16.mxu0 %v6364_v8 }
0x13e1   : > { %11469 = vmatpush3.bf16.msra.mxu0 %v6364_v8 }
0x13e4   : > { %11471 = vmatmul.mubr.msk.bf16.vlgmr.msra.gmra.mrb[72].mxu0 %vm398_vm2, %v12378_v9 }
0x13e5   : > { %11474 = vmatprep.mubr.msk.bf16.mxu0 %vm398_vm2, %v12379_v61 }
0x13e6   : > { %v11488_v11 = vpop.f32.mrb[92].mxu1 }
0x13e7   : > { %v6546_v55 = vpop.f32.mrb[93].mxu1 }
0x13e8   : > { %v11489_v16 = vpop.f32.mrb[94].mxu1 }
0x13e9   : > { %v6562_v42 = vpack.c.bf16 %v11489_v16, %v11488_v11  ;;  %v6549_v52 = vpop.f32.mrb[95].mxu1  ;;  %v12401_v11 = vld [vmem:[%s14477_s6 + $0x120] sm:$0xff]   ;;  %v12402_v16 = vld [vmem:[%s14477_s6 + $0x128] sm:$0xff]  }
0x13ea   : > { %v6561_v21 = vpack.c.bf16 %v6549_v52, %v6546_v55 }
0x13ec   : > { %11475 = vmatmul.mubr.msk.bf16.gmra.mrb[76].mxu0 %vm398_vm2, %v12380_v37  ;;  %11490 = vmatprep.subr.bf16.mxu0 %v6561_v21  ;;  %v12403_v37 = vld [vmem:[%s14477_s6 + $0x130] sm:$0xff]  }
0x13ed   : > { %11491 = vmatpush3.bf16.msra.mxu0 %v6561_v21  ;;  %11494 = vmatprep.mubr.msk.bf16.mxu0 %vm398_vm2, %v12381_v59  ;;  %v12404_v21 = vld [vmem:[%s14477_s6 + $0x138] sm:$0xff]  }
0x13ee   : > { %11492 = vmatprep.subr.bf16.mxu0 %v6562_v42 }
0x13f1   : > { %11493 = vmatpush3.bf16.msra.mxu0 %v6562_v42 }
0x13f4   : > { %11495 = vmatmul.mubr.msk.bf16.vlgmr.msra.gmra.mrb[72].mxu0 %vm398_vm2, %v12382_v2 }
0x13f5   : > { %11498 = vmatprep.mubr.msk.bf16.mxu0 %vm398_vm2, %v12383_v13 }
0x13f6   : > { %v11512_v22 = vpop.f32.mrb[96].mxu1 }
0x13f7   : > { %v6744_v25 = vpop.f32.mrb[97].mxu1 }
0x13f8   : > { %v11513_v27 = vpop.f32.mrb[98].mxu1 }
0x13f9   : > { %v6760_v15 = vpack.c.bf16 %v11513_v27, %v11512_v22  ;;  %v6747_v34 = vpop.f32.mrb[99].mxu1  ;;  %v12405_v22 = vld [vmem:[%s14477_s6 + $0x140] sm:$0xff]   ;;  %v12406_v27 = vld [vmem:[%s14477_s6 + $0x148] sm:$0xff]  }
0x13fa   : > { %v6759_v32 = vpack.c.bf16 %v6747_v34, %v6744_v25 }
0x13fc   : > { %11499 = vmatmul.mubr.msk.bf16.gmra.mrb[76].mxu0 %vm398_vm2, %v12384_v31  ;;  %11514 = vmatprep.subr.bf16.mxu0 %v6759_v32  ;;  %v12407_v31 = vld [vmem:[%s14477_s6 + $0x150] sm:$0xff]  }
0x13fd   : > { %11515 = vmatpush3.bf16.msra.mxu0 %v6759_v32  ;;  %11518 = vmatprep.mubr.msk.bf16.mxu0 %vm398_vm2, %v12385_v29  ;;  %v12408_v32 = vld [vmem:[%s14477_s6 + $0x158] sm:$0xff]  }
0x13fe   : > { %11516 = vmatprep.subr.bf16.mxu0 %v6760_v15 }
0x1401   : > { %11517 = vmatpush3.bf16.msra.mxu0 %v6760_v15 }
0x1404   : > { %11519 = vmatmul.mubr.msk.bf16.vlgmr.msra.gmra.mrb[72].mxu0 %vm398_vm2, %v12386_v33 }
0x1405   : > { %11522 = vmatprep.mubr.msk.bf16.mxu0 %vm398_vm2, %v12387_v39 }
0x1406   : > { %v11536_v36 = vpop.f32.mrb[100].mxu1 }
0x1407   : > { %v6942_v41 = vpop.f32.mrb[101].mxu1 }
0x1408   : > { %v11537_v5 = vpop.f32.mrb[102].mxu1 }
0x1409   : > { %v6958_v43 = vpack.c.bf16 %v11537_v5, %v11536_v36  ;;  %v6945_v45 = vpop.f32.mrb[103].mxu1  ;;  %v12409_v36 = vld [vmem:[%s14477_s6 + $0x160] sm:$0xff]   ;;  %v12410_v5 = vld [vmem:[%s14477_s6 + $0x168] sm:$0xff]  }
0x140a   : > { %v6957_v48 = vpack.c.bf16 %v6945_v45, %v6942_v41 }
0x140c   : > { %11523 = vmatmul.mubr.msk.bf16.gmra.mrb[76].mxu0 %vm398_vm2, %v12388_v54  ;;  %11538 = vmatprep.subr.bf16.mxu0 %v6957_v48  ;;  %v12411_v54 = vld [vmem:[%s14477_s6 + $0x170] sm:$0xff]  }
0x140d   : > { %11539 = vmatpush3.bf16.msra.mxu0 %v6957_v48  ;;  %11542 = vmatprep.mubr.msk.bf16.mxu0 %vm398_vm2, %v12389_v46  ;;  %v12412_v48 = vld [vmem:[%s14477_s6 + $0x178] sm:$0xff]  }
0x140e   : > { %11540 = vmatprep.subr.bf16.mxu0 %v6958_v43 }
0x1411   : > { %11541 = vmatpush3.bf16.msra.mxu0 %v6958_v43 }
0x1414   : > { %11543 = vmatmul.mubr.msk.bf16.vlgmr.msra.gmra.mrb[72].mxu0 %vm398_vm2, %v12390_v58 }
0x1415   : > { %11546 = vmatprep.mubr.msk.bf16.mxu0 %vm398_vm2, %v12391_v10 }
0x1416   : > { %v11560_v49 = vpop.f32.mrb[104].mxu1 }
0x1417   : > { %v7140_v44 = vpop.f32.mrb[105].mxu1 }
0x1418   : > { %v11561_v47 = vpop.f32.mrb[106].mxu1 }
0x1419   : > { %v7156_v53 = vpack.c.bf16 %v11561_v47, %v11560_v49  ;;  %v7143_v56 = vpop.f32.mrb[107].mxu1  ;;  %v12413_v49 = vld [vmem:[%s14477_s6 + $0x180] sm:$0xff]   ;;  %v12414_v47 = vld [vmem:[%s14477_s6 + $0x188] sm:$0xff]  }
0x141a   : > { %v7155_v12 = vpack.c.bf16 %v7143_v56, %v7140_v44 }
0x141c   : > { %11547 = vmatmul.mubr.msk.bf16.gmra.mrb[76].mxu0 %vm398_vm2, %v12392_v51  ;;  %11562 = vmatprep.subr.bf16.mxu0 %v7155_v12  ;;  %v12415_v51 = vld [vmem:[%s14477_s6 + $0x190] sm:$0xff]  }
0x141d   : > { %11563 = vmatpush3.bf16.msra.mxu0 %v7155_v12  ;;  %11566 = vmatprep.mubr.msk.bf16.mxu0 %vm398_vm2, %v12393_v57  ;;  %v12416_v12 = vld [vmem:[%s14477_s6 + $0x198] sm:$0xff]  }
0x141e   : > { %11564 = vmatprep.subr.bf16.mxu0 %v7156_v53 }
0x1421   : > { %11565 = vmatpush3.bf16.msra.mxu0 %v7156_v53 }
0x1424   : > { %11567 = vmatmul.mubr.msk.bf16.vlgmr.msra.gmra.mrb[72].mxu0 %vm398_vm2, %v12394_v3 }
0x1425   : > { %11570 = vmatprep.mubr.msk.bf16.mxu0 %vm398_vm2, %v12395_v30 }
0x1426   : > { %v11584_v35 = vpop.f32.mrb[108].mxu1 }
0x1427   : > { %v7338_v4 = vpop.f32.mrb[109].mxu1 }
0x1428   : > { %v11585_v0 = vpop.f32.mrb[110].mxu1 }
0x1429   : > { %v7354_v24 = vpack.c.bf16 %v11585_v0, %v11584_v35  ;;  %v7341_v28 = vpop.f32.mrb[111].mxu1  ;;  %v12417_v35 = vld [vmem:[%s14477_s6 + $0x1a0] sm:$0xff]   ;;  %v12418_v0 = vld [vmem:[%s14477_s6 + $0x1a8] sm:$0xff]  }
0x142a   : > { %v7353_v6 = vpack.c.bf16 %v7341_v28, %v7338_v4 }
0x142c   : > { %11571 = vmatmul.mubr.msk.bf16.gmra.mrb[76].mxu0 %vm398_vm2, %v12396_v18  ;;  %11586 = vmatprep.subr.bf16.mxu0 %v7353_v6  ;;  %v12419_v18 = vld [vmem:[%s14477_s6 + $0x1b0] sm:$0xff]  }
0x142d   : > { %11587 = vmatpush3.bf16.msra.mxu0 %v7353_v6  ;;  %11590 = vmatprep.mubr.msk.bf16.mxu0 %vm398_vm2, %v12397_v40  ;;  %v12420_v6 = vld [vmem:[%s14477_s6 + $0x1b8] sm:$0xff]  }
0x142e   : > { %11588 = vmatprep.subr.bf16.mxu0 %v7354_v24 }
0x1431   : > { %11589 = vmatpush3.bf16.msra.mxu0 %v7354_v24 }
0x1434   : > { %11591 = vmatmul.mubr.msk.bf16.vlgmr.msra.gmra.mrb[72].mxu0 %vm398_vm2, %v12398_v23 }
0x1435   : > { %11594 = vmatprep.mubr.msk.bf16.mxu0 %vm398_vm2, %v12399_v26 }
0x1436   : > { %v11608_v8 = vpop.f32.mrb[112].mxu1 }
0x1437   : > { %v7536_v17 = vpop.f32.mrb[113].mxu1 }
0x1438   : > { %v11609_v7 = vpop.f32.mrb[114].mxu1 }
0x1439   : > { %v7552_v9 = vpack.c.bf16 %v11609_v7, %v11608_v8  ;;  %v7539_v61 = vpop.f32.mrb[115].mxu1  ;;  %v12421_v8 = vld [vmem:[%s14477_s6 + $0x1c0] sm:$0xff]   ;;  %v12422_v7 = vld [vmem:[%s14477_s6 + $0x1c8] sm:$0xff]  }
0x143a   : > { %v7551_v55 = vpack.c.bf16 %v7539_v61, %v7536_v17 }
0x143c   : > { %11595 = vmatmul.mubr.msk.bf16.gmra.mrb[76].mxu0 %vm398_vm2, %v12400_v50  ;;  %11610 = vmatprep.subr.bf16.mxu0 %v7551_v55  ;;  %v12423_v50 = vld [vmem:[%s14477_s6 + $0x1d0] sm:$0xff]  }
0x143d   : > { %11611 = vmatpush3.bf16.msra.mxu0 %v7551_v55  ;;  %11614 = vmatprep.mubr.msk.bf16.mxu0 %vm398_vm2, %v12401_v11  ;;  %v12424_v55 = vld [vmem:[%s14477_s6 + $0x1d8] sm:$0xff]  }
0x143e   : > { %11612 = vmatprep.subr.bf16.mxu0 %v7552_v9 }
0x1441   : > { %11613 = vmatpush3.bf16.msra.mxu0 %v7552_v9 }
0x1444   : > { %11615 = vmatmul.mubr.msk.bf16.vlgmr.msra.gmra.mrb[72].mxu0 %vm398_vm2, %v12402_v16 }
0x1445   : > { %11618 = vmatprep.mubr.msk.bf16.mxu0 %vm398_vm2, %v12403_v37 }
0x1446   : > { %v11632_v42 = vpop.f32.mrb[116].mxu1 }
0x1447   : > { %v7734_v52 = vpop.f32.mrb[117].mxu1 }
0x1448   : > { %v11633_v59 = vpop.f32.mrb[118].mxu1 }
0x1449   : > { %v7750_v2 = vpack.c.bf16 %v11633_v59, %v11632_v42  ;;  %v7737_v13 = vpop.f32.mrb[119].mxu1  ;;  %v12425_v42 = vld [vmem:[%s14477_s6 + $0x1e0] sm:$0xff]   ;;  %v12426_v59 = vld [vmem:[%s14477_s6 + $0x1e8] sm:$0xff]  }
0x144a   : > { %v7749_v25 = vpack.c.bf16 %v7737_v13, %v7734_v52 }
0x144c   : > { %11619 = vmatmul.mubr.msk.bf16.gmra.mrb[76].mxu0 %vm398_vm2, %v12404_v21  ;;  %11634 = vmatprep.subr.bf16.mxu0 %v7749_v25  ;;  %v12427_v21 = vld [vmem:[%s14477_s6 + $0x1f0] sm:$0xff]  }
0x144d   : > { %11635 = vmatpush3.bf16.msra.mxu0 %v7749_v25  ;;  %11638 = vmatprep.mubr.msk.bf16.mxu0 %vm398_vm2, %v12405_v22 }
0x144e   : > { %11636 = vmatprep.subr.bf16.mxu0 %v7750_v2 }
0x1451   : > { %11637 = vmatpush3.bf16.msra.mxu0 %v7750_v2  ;;  %v12428_v2 = vld [vmem:[%s14477_s6 + $0x1f8] sm:$0xff]  }
0x1454   : > { %11639 = vmatmul.mubr.msk.bf16.vlgmr.msra.gmra.mrb[72].mxu0 %vm398_vm2, %v12406_v27 }
0x1455   : > { %11642 = vmatprep.mubr.msk.bf16.mxu0 %vm398_vm2, %v12407_v31 }
0x1456   : > { %v11656_v15 = vpop.f32.mrb[120].mxu1 }
0x1457   : > { %v7932_v34 = vpop.f32.mrb[121].mxu1 }
0x1458   : > { %v11657_v29 = vpop.f32.mrb[122].mxu1 }
0x1459   : > { %v7948_v33 = vpack.c.bf16 %v11657_v29, %v11656_v15  ;;  %v7935_v39 = vpop.f32.mrb[123].mxu1 }
0x145a   : > { %v7947_v41 = vpack.c.bf16 %v7935_v39, %v7932_v34 }
0x145c   : > { %11643 = vmatmul.mubr.msk.bf16.gmra.mrb[76].mxu0 %vm398_vm2, %v12408_v32  ;;  %11658 = vmatprep.subr.bf16.mxu0 %v7947_v41 }
0x145d   : > { %11659 = vmatpush3.bf16.msra.mxu0 %v7947_v41  ;;  %11662 = vmatprep.mubr.msk.bf16.mxu0 %vm398_vm2, %v12409_v36 }
0x145e   : > { %11660 = vmatprep.subr.bf16.mxu0 %v7948_v33 }
0x1461   : > { %11661 = vmatpush3.bf16.msra.mxu0 %v7948_v33 }
0x1464   : > { %11663 = vmatmul.mubr.msk.bf16.vlgmr.msra.gmra.mrb[72].mxu0 %vm398_vm2, %v12410_v5 }
0x1465   : > { %11666 = vmatprep.mubr.msk.bf16.mxu0 %vm398_vm2, %v12411_v54 }
0x1466   : > { %v11680_v43 = vpop.f32.mrb[124].mxu1 }
0x1467   : > { %v8130_v45 = vpop.f32.mrb[125].mxu1 }
0x1468   : > { %v11681_v46 = vpop.f32.mrb[126].mxu1 }
0x1469   : > { %v8146_v58 = vpack.c.bf16 %v11681_v46, %v11680_v43  ;;  %v8133_v10 = vpop.f32.mrb[127].mxu1 }
0x146a   : > { %v8145_v44 = vpack.c.bf16 %v8133_v10, %v8130_v45 }
0x146c   : > { %11667 = vmatmul.mubr.msk.bf16.gmra.mrb[76].mxu0 %vm398_vm2, %v12412_v48  ;;  %11682 = vmatprep.subr.bf16.mxu0 %v8145_v44 }
0x146d   : > { %11683 = vmatpush3.bf16.msra.mxu0 %v8145_v44  ;;  %11686 = vmatprep.mubr.msk.bf16.mxu0 %vm398_vm2, %v12413_v49 }
0x146e   : > { %11684 = vmatprep.subr.bf16.mxu0 %v8146_v58 }
0x1471   : > { %11685 = vmatpush3.bf16.msra.mxu0 %v8146_v58 }
0x1474   : > { %11687 = vmatmul.mubr.msk.bf16.vlgmr.msra.gmra.mrb[72].mxu0 %vm398_vm2, %v12414_v47 }
0x1475   : > { %11690 = vmatprep.mubr.msk.bf16.mxu0 %vm398_vm2, %v12415_v51 }
0x1476   : > { %v11704_v53 = vpop.f32.mrb[128].mxu1 }
0x1477   : > { %v8328_v56 = vpop.f32.mrb[129].mxu1 }
0x1478   : > { %v11705_v57 = vpop.f32.mrb[130].mxu1 }
0x1479   : > { %v8344_v3 = vpack.c.bf16 %v11705_v57, %v11704_v53  ;;  %v8331_v30 = vpop.f32.mrb[131].mxu1 }
0x147a   : > { %v8343_v4 = vpack.c.bf16 %v8331_v30, %v8328_v56 }
0x147c   : > { %11691 = vmatmul.mubr.msk.bf16.gmra.mrb[76].mxu0 %vm398_vm2, %v12416_v12  ;;  %11706 = vmatprep.subr.bf16.mxu0 %v8343_v4 }
0x147d   : > { %11707 = vmatpush3.bf16.msra.mxu0 %v8343_v4  ;;  %11710 = vmatprep.mubr.msk.bf16.mxu0 %vm398_vm2, %v12417_v35 }
0x147e   : > { %11708 = vmatprep.subr.bf16.mxu0 %v8344_v3 }
0x1481   : > { %11709 = vmatpush3.bf16.msra.mxu0 %v8344_v3 }
0x1484   : > { %11711 = vmatmul.mubr.msk.bf16.vlgmr.msra.gmra.mrb[72].mxu0 %vm398_vm2, %v12418_v0 }
0x1485   : > { %11714 = vmatprep.mubr.msk.bf16.mxu0 %vm398_vm2, %v12419_v18 }
0x1486   : > { %v11728_v24 = vpop.f32.mrb[132].mxu1 }
0x1487   : > { %v8526_v28 = vpop.f32.mrb[133].mxu1 }
0x1488   : > { %v11729_v40 = vpop.f32.mrb[134].mxu1 }
0x1489   : > { %v8542_v23 = vpack.c.bf16 %v11729_v40, %v11728_v24  ;;  %v8529_v26 = vpop.f32.mrb[135].mxu1 }
0x148a   : > { %v8541_v17 = vpack.c.bf16 %v8529_v26, %v8526_v28 }
0x148c   : > { %11715 = vmatmul.mubr.msk.bf16.gmra.mrb[76].mxu0 %vm398_vm2, %v12420_v6  ;;  %11730 = vmatprep.subr.bf16.mxu0 %v8541_v17 }
0x148d   : > { %11731 = vmatpush3.bf16.msra.mxu0 %v8541_v17  ;;  %11734 = vmatprep.mubr.msk.bf16.mxu0 %vm398_vm2, %v12421_v8 }
0x148e   : > { %11732 = vmatprep.subr.bf16.mxu0 %v8542_v23 }
0x1491   : > { %11733 = vmatpush3.bf16.msra.mxu0 %v8542_v23 }
0x1494   : > { %11735 = vmatmul.mubr.msk.bf16.vlgmr.msra.gmra.mrb[72].mxu0 %vm398_vm2, %v12422_v7 }
0x1495   : > { %11738 = vmatprep.mubr.msk.bf16.mxu0 %vm398_vm2, %v12423_v50 }
0x1496   : > { %v11752_v9 = vpop.f32.mrb[136].mxu1 }
0x1497   : > { %v8724_v61 = vpop.f32.mrb[137].mxu1 }
0x1498   : > { %v11753_v11 = vpop.f32.mrb[138].mxu1 }
0x1499   : > { %v8740_v16 = vpack.c.bf16 %v11753_v11, %v11752_v9  ;;  %v8727_v37 = vpop.f32.mrb[139].mxu1 }
0x149a   : > { %v8739_v52 = vpack.c.bf16 %v8727_v37, %v8724_v61 }
0x149c   : > { %11739 = vmatmul.mubr.msk.bf16.gmra.mrb[76].mxu0 %vm398_vm2, %v12424_v55  ;;  %11754 = vmatprep.subr.bf16.mxu0 %v8739_v52 }
0x149d   : > { %11755 = vmatpush3.bf16.msra.mxu0 %v8739_v52  ;;  %11758 = vmatprep.mubr.msk.bf16.mxu0 %vm398_vm2, %v12425_v42 }
0x149e   : > { %11756 = vmatprep.subr.bf16.mxu0 %v8740_v16 }
0x14a1   : > { %11757 = vmatpush3.bf16.msra.mxu0 %v8740_v16 }
0x14a4   : > { %11759 = vmatmul.mubr.msk.bf16.vlgmr.msra.gmra.mrb[72].mxu0 %vm398_vm2, %v12426_v59 }
0x14a5   : > { %11762 = vmatprep.mubr.msk.bf16.mxu0 %vm398_vm2, %v12427_v21 }
0x14ac   : > { %11763 = vmatmul.mubr.msk.bf16.gmra.mrb[76].mxu0 %vm398_vm2, %v12428_v2 }
0x1577   : > { %v11760_v13 = vpop.f32.mrb[72].mxu0 }
0x1578   : > { %v14336_v22 = vadd.f32 %v11760_v13, %v14094_v60  ;;  %v8816_v25 = vpop.f32.mrb[73].mxu0 }
0x1579   : > { %v14339_v27 = vadd.f32 %v8816_v25, %v14096_v14  ;;  %v11761_v31 = vpop.f32.mrb[74].mxu0 }
0x157a   : > { %v14342_v15 = vadd.f32 %v11761_v31, %v14098_v19  ;;  %v8819_v34 = vpop.f32.mrb[75].mxu0  ;;  %v8861_v29 = vsel %vm856_vm5, %v14336_v22, 0.0  ;;  %v8881_v33 = vmul.f32 %v14336_v22, %v14336_v22 }
0x157b   : > { %v14347_v32 = vadd.f32 %v8819_v34, %v14100_v63  ;;  %8862 = vadd.xlane.f32.xlu1 %v8861_v29  ;;  %v8855_v14 = vsel %vm856_vm5, %v14339_v27, 0.0  ;;  %v8879_v41 = vmul.f32 %v14339_v27, %v14339_v27 }
0x157c   : > { %v8864_v60 = vsel %vm856_vm5, %v14342_v15, 0.0  ;;  %v8893_v46 = vsel %vm856_vm5, %v8881_v33, 0.0 }
0x157d   : > { %8865 = vadd.xlane.f32.xlu0 %v8864_v60  ;;  %v8858_v63 = vsel %vm856_vm5, %v14347_v32, 0.0  ;;  %v8887_v58 = vsel %vm856_vm5, %v8879_v41, 0.0  ;;  %v8880_v10 = vmul.f32 %v14347_v32, %v14347_v32 }
0x157f   : > { %8856 = vadd.xlane.f32.xlu1 %v8855_v14  ;;  %v11764_v19 = vpop.f32.mrb[76].mxu0  ;;  %v8890_v49 = vsel %vm856_vm5, %v8880_v10, 0.0 }
0x1580   : > { %v14356_v39 = vadd.f32 %v11764_v19, %v14105_v38  ;;  %v8832_v36 = vpop.f32.mrb[77].mxu0  ;;  %v8882_v38 = vmul.f32 %v14342_v15, %v14342_v15 }
0x1581   : > { %v14363_v5 = vadd.f32 %v8832_v36, %v14107_v20  ;;  %8859 = vadd.xlane.f32.xlu0 %v8858_v63  ;;  %v11765_v54 = vpop.f32.mrb[78].mxu0 }
0x1582   : > { %v14366_v43 = vadd.f32 %v11765_v54, %v14109_v62  ;;  %v8835_v45 = vpop.f32.mrb[79].mxu0  ;;  %v8896_v20 = vsel %vm856_vm5, %v8882_v38, 0.0  ;;  %v8873_v62 = vsel %vm856_vm5, %v14356_v39, 0.0  ;;  %v8885_v57 = vmul.f32 %v14356_v39, %v14356_v39 }
0x1583   : > { %v14372_v48 = vadd.f32 %v8835_v45, %v14111_v1  ;;  %8894 = vadd.xlane.f32.xlu1 %v8893_v46  ;;  %v8883_v1 = vmul.f32 %v14363_v5, %v14363_v5  ;;  %v8867_v44 = vsel %vm856_vm5, %v14363_v5, 0.0 }
0x1584   : > { %v8876_v12 = vsel %vm856_vm5, %v14366_v43, 0.0  ;;  %v8886_v3 = vmul.f32 %v14366_v43, %v14366_v43  ;;  %v8905_v30 = vsel %vm856_vm5, %v8885_v57, 0.0 }
0x1585   : > { %8888 = vadd.xlane.f32.xlu0 %v8887_v58  ;;  %v8899_v47 = vsel %vm856_vm5, %v8883_v1, 0.0  ;;  %v8884_v51 = vmul.f32 %v14372_v48, %v14372_v48  ;;  %v8870_v53 = vsel %vm856_vm5, %v14372_v48, 0.0 }
0x1586   : > { %v8908_v35 = vsel %vm856_vm5, %v8886_v3, 0.0 }
0x1587   : > { %8897 = vadd.xlane.f32.xlu1 %v8896_v20  ;;  %v8902_v56 = vsel %vm856_vm5, %v8884_v51, 0.0 }
0x1589   : > { %8874 = vadd.xlane.f32.xlu0 %v8873_v62 }
0x158b   : > { %8891 = vadd.xlane.f32.xlu1 %v8890_v49 }
0x158d   : > { %8868 = vadd.xlane.f32.xlu0 %v8867_v44 }
0x158f   : > { %8900 = vadd.xlane.f32.xlu1 %v8899_v47 }
0x1591   : > { %8871 = vadd.xlane.f32.xlu0 %v8870_v53 }
0x1593   : > { %8903 = vadd.xlane.f32.xlu1 %v8902_v56 }
0x1595   : > { %8877 = vadd.xlane.f32.xlu0 %v8876_v12 }
0x1597   : > { %8906 = vadd.xlane.f32.xlu1 %v8905_v30 }
0x1599   : > { %8909 = vadd.xlane.f32.xlu0 %v8908_v35 }
0x1608   : > { %v8863_v4 = vpop.xlane.xlu1 %8862 }
0x1609   : > { %v8913_v24 = vmul.f32 0.0625, %v8863_v4 }
0x160a   : > { %v8866_v0 = vpop.xlane.xlu0 %8865 }
0x160b   : > { %v8929_v23 = vmul.f32 %v8913_v24, %v8913_v24  ;;  %v8914_v26 = vmul.f32 0.0625, %v8866_v0  ;;  %v8945_v45 = vsub.f32 %v14336_v22, %v8913_v24 }
0x160c   : > { %v8857_v18 = vpop.xlane.xlu1 %8856 }
0x160d   : > { %v8911_v40 = vmul.f32 0.0625, %v8857_v18  ;;  %v8930_v11 = vmul.f32 %v8914_v26, %v8914_v26  ;;  %v8946_v22 = vsub.f32 %v14342_v15, %v8914_v26  ;;  %v8999_v15 = vld [vmem:[%s14478_s7] sm:$0xff] }
0x160e   : > { %v8860_v28 = vpop.xlane.xlu0 %8859 }
0x160f   : > { %v8927_v7 = vmul.f32 %v8911_v40, %v8911_v40  ;;  %v14399_v42 = vmul.f32 0.0625, %v8860_v28  ;;  %v8943_v49 = vsub.f32 %v14339_v27, %v8911_v40 }
0x1610   : > { %v8895_v6 = vpop.xlane.xlu1 %8894 }
0x1611   : > { %v8921_v8 = vmul.f32 0.0625, %v8895_v6  ;;  %v8928_v25 = vmul.f32 %v14399_v42, %v14399_v42 }
0x1612   : > { %v8889_v17 = vpop.xlane.xlu0 %8888 }
0x1613   : > { %v8937_v50 = vsub.f32 %v8921_v8, %v8929_v23  ;;  %v8919_v9 = vmul.f32 0.0625, %v8889_v17  ;;  %v9001_v23 = vld [vmem:[%s14478_s7 + $0x10] sm:$0xff]  ;;  %v8944_v8 = vsub.f32 %v14347_v32, %v14399_v42  ;;  %v9000_v42 = vld [vmem:[%s14478_s7 + $0x8] sm:$0xff] }
0x1614   : > { %v8898_v61 = vpop.xlane.xlu1 %8897 }
0x1615   : > { %v8953_v55 = vadd.f32 1e-05, %v8937_v50  ;;  %v8935_v16 = vsub.f32 %v8919_v9, %v8927_v7  ;;  %v8922_v37 = vmul.f32 0.0625, %v8898_v61 }
0x1616   : > { %v8875_v52 = vpop.xlane.xlu0 %8874 }
0x1617   : > { %12441 = vrsqrt.f32 %v8953_v55  ;;  %v8951_v59 = vadd.f32 1e-05, %v8935_v16  ;;  %v8938_v21 = vsub.f32 %v8922_v37, %v8930_v11  ;;  %v14410_v58 = vmul.f32 0.0625, %v8875_v52 }
0x1618   : > { %v8892_v2 = vpop.xlane.xlu1 %8891 }
0x1619   : > { %12443 = vrsqrt.f32 %v8951_v59  ;;  %v8954_v13 = vadd.f32 1e-05, %v8938_v21  ;;  %v8920_v31 = vmul.f32 0.0625, %v8892_v2  ;;  %v8933_v30 = vmul.f32 %v14410_v58, %v14410_v58 }
0x161a   : > { %v8869_v34 = vpop.xlane.xlu0 %8868 }
0x161b   : > { %12445 = vrsqrt.f32 %v8954_v13  ;;  %v14403_v29 = vmul.f32 0.0625, %v8869_v34  ;;  %v8936_v60 = vsub.f32 %v8920_v31, %v8928_v25  ;;  %v9002_v31 = vld [vmem:[%s14478_s7 + $0x18] sm:$0xff] }
0x161c   : > { %v8901_v14 = vpop.xlane.xlu1 %8900 }
0x161d   : > { %v8931_v33 = vmul.f32 %v14403_v29, %v14403_v29  ;;  %v8923_v19 = vmul.f32 0.0625, %v8901_v14  ;;  %v8952_v36 = vadd.f32 1e-05, %v8936_v60  ;;  %v8947_v52 = vsub.f32 %v14363_v5, %v14403_v29  ;;  %v9003_v60 = vld [vmem:[%s14478_s7 + $0x20] sm:$0xff] }
0x161e   : > { %v8872_v63 = vpop.xlane.xlu0 %8871 }
0x161f   : > { %v8939_v41 = vsub.f32 %v8923_v19, %v8931_v33  ;;  %v14407_v54 = vmul.f32 0.0625, %v8872_v63  ;;  %12447 = vrsqrt.f32 %v8952_v36 }
0x1620   : > { %v8904_v46 = vpop.xlane.xlu1 %8903 }
0x1621   : > { %v12442_v38 = vpop.eup %12441  ;;  %v8955_v20 = vadd.f32 1e-05, %v8939_v41  ;;  %v8932_v10 = vmul.f32 %v14407_v54, %v14407_v54  ;;  %v8924_v62 = vmul.f32 0.0625, %v8904_v46  ;;  %v8948_v5 = vsub.f32 %v14372_v48, %v14407_v54  ;;  %v9004_v54 = vld [vmem:[%s14478_s7 + $0x28] sm:$0xff] }
0x1622   : > { %v8878_v1 = vpop.xlane.xlu0 %8877  ;;  %v8969_v44 = vmul.f32 %v12442_v38, %v8945_v45  ;;  %v8949_v45 = vsub.f32 %v14356_v39, %v14410_v58 }
0x1623   : > { %v12444_v47 = vpop.eup %12443  ;;  %12449 = vrsqrt.f32 %v8955_v20  ;;  %v8940_v51 = vsub.f32 %v8924_v62, %v8932_v10  ;;  %v14415_v53 = vmul.f32 0.0625, %v8878_v1 }
0x1624   : > { %v8907_v56 = vpop.xlane.xlu1 %8906  ;;  %v8967_v57 = vmul.f32 %v12444_v47, %v8943_v49  ;;  %vm8977_vm1 = vcmp.ge.f32.partialorder %v8969_v44, 0.0  ;;  %v8985_v12 = vmul.f32 0.2, %v8969_v44 }
0x1625   : > { %v12446_v3 = vpop.eup %12445  ;;  %v8956_v35 = vadd.f32 1e-05, %v8940_v51  ;;  %v8925_v4 = vmul.f32 0.0625, %v8907_v56  ;;  %v8934_v27 = vmul.f32 %v14415_v53, %v14415_v53  ;;  %v8950_v20 = vsub.f32 %v14366_v43, %v14415_v53  ;;  %v9006_v53 = vld [vmem:[%s14478_s7 + $0x38] sm:$0xff] }
0x1626   : > { %v8910_v0 = vpop.xlane.xlu0 %8909  ;;  %vm8975_vm2 = vcmp.ge.f32.partialorder %v8967_v57, 0.0  ;;  %v8983_v18 = vmul.f32 0.2, %v8967_v57  ;;  %v8970_v24 = vmul.f32 %v12446_v3, %v8946_v22  ;;  %v8993_v6 = vsel %vm8977_vm1, %v8969_v44, %v8985_v12  ;;  %v9005_v44 = vld [vmem:[%s14478_s7 + $0x30] sm:$0xff] }
0x1627   : > { %12451 = vrsqrt.f32 %v8956_v35  ;;  %v8941_v28 = vsub.f32 %v8925_v4, %v8933_v30  ;;  %v8926_v40 = vmul.f32 0.0625, %v8910_v0  ;;  %v9009_v61 = vmul.f32 %v9001_v23, %v8993_v6 }
0x1628   : > { %v8991_v26 = vsel %vm8975_vm2, %v8967_v57, %v8983_v18  ;;  %v8986_v11 = vmul.f32 0.2, %v8970_v24  ;;  %vm8978_vm3 = vcmp.ge.f32.partialorder %v8970_v24, 0.0 }
0x1629   : > { %v8957_v17 = vadd.f32 1e-05, %v8941_v28  ;;  %v8942_v7 = vsub.f32 %v8926_v40, %v8934_v27  ;;  %v9007_v50 = vmul.f32 %v8999_v15, %v8991_v26  ;;  %v12448_v9 = vpop.eup %12447  ;;  %v9021_v2 = vsel %vm856_vm5, %v9009_v61, 0.0 }
0x162a   : > { %v8968_v37 = vmul.f32 %v12448_v9, %v8944_v8  ;;  %v8994_v25 = vsel %vm8978_vm3, %v8970_v24, %v8986_v11 }
0x162b   : > { %12453 = vrsqrt.f32 %v8957_v17  ;;  %v8958_v55 = vadd.f32 1e-05, %v8942_v7  ;;  %v9015_v16 = vsel %vm856_vm5, %v9007_v50, 0.0  ;;  %v9010_v36 = vmul.f32 %v9002_v31, %v8994_v25 }
0x162c   : > { %9016 = vadd.xlane.f32.xlu1 %v9015_v16  ;;  %vm8976_vm4 = vcmp.ge.f32.partialorder %v8968_v37, 0.0  ;;  %v8984_v32 = vmul.f32 0.2, %v8968_v37  ;;  %v9053_v16 = vstv %s9052_s29 }
0x162d   : > { %v12450_v59 = vpop.eup %12449  ;;  %12455 = vrsqrt.f32 %v8958_v55  ;;  %v9024_v10 = vsel %vm856_vm5, %v9010_v36, 0.0 }
0x162e   : > { %v8971_v21 = vmul.f32 %v12450_v59, %v8947_v52  ;;  %v8992_v13 = vsel %vm8976_vm4, %v8968_v37, %v8984_v32 }
0x162f   : > { %v9008_v34 = vmul.f32 %v9000_v42, %v8992_v13 }
0x1630   : > { %9022 = vadd.xlane.f32.xlu1 %v9021_v2  ;;  %vm8979_vm6 = vcmp.ge.f32.partialorder %v8971_v21, 0.0  ;;  %v8987_v29 = vmul.f32 0.2, %v8971_v21 }
0x1631   : > { %v12452_v14 = vpop.eup %12451  ;;  %v9018_v33 = vsel %vm856_vm5, %v9008_v34, 0.0 }
0x1632   : > { %v8995_v19 = vsel %vm8979_vm6, %v8971_v21, %v8987_v29  ;;  %v8972_v63 = vmul.f32 %v12452_v14, %v8948_v5  ;;  %9019 = vadd.xlane.f32.xlu0 %v9018_v33 }
0x1633   : > { %v9011_v41 = vmul.f32 %v9003_v60, %v8995_v19 }
0x1634   : > { %vm8980_vm7 = vcmp.ge.f32.partialorder %v8972_v63, 0.0  ;;  %v8988_v48 = vmul.f32 0.2, %v8972_v63 }
0x1635   : > { %v12454_v46 = vpop.eup %12453  ;;  %v9027_v38 = vsel %vm856_vm5, %v9011_v41, 0.0 }
0x1636   : > { %9028 = vadd.xlane.f32.xlu1 %v9027_v38  ;;  %v8996_v62 = vsel %vm8980_vm7, %v8972_v63, %v8988_v48  ;;  %v8973_v49 = vmul.f32 %v12454_v46, %v8949_v45  ;;  %9025 = vadd.xlane.f32.xlu0 %v9024_v10 }
0x1637   : > { %v12456_v1 = vpop.eup %12455  ;;  %v9012_v39 = vmul.f32 %v9004_v54, %v8996_v62 }
0x1638   : > { %vm8981_vm8 = vcmp.ge.f32.partialorder %v8973_v49, 0.0  ;;  %v8989_v58 = vmul.f32 0.2, %v8973_v49  ;;  %v8974_v47 = vmul.f32 %v12456_v1, %v8950_v20 }
0x1639   : > { %v9030_v51 = vsel %vm856_vm5, %v9012_v39, 0.0 }
0x163a   : > { %v8997_v22 = vsel %vm8981_vm8, %v8973_v49, %v8989_v58  ;;  %vm8982_vm9 = vcmp.ge.f32.partialorder %v8974_v47, 0.0  ;;  %v8990_v43 = vmul.f32 0.2, %v8974_v47  ;;  %9031 = vadd.xlane.f32.xlu0 %v9030_v51 }
0x163b   : > { %v9013_v56 = vmul.f32 %v9005_v44, %v8997_v22 }
0x163c   : > { %v8998_v57 = vsel %vm8982_vm9, %v8974_v47, %v8990_v43 }
0x163d   : > { %v9033_v12 = vsel %vm856_vm5, %v9013_v56, 0.0  ;;  %v9014_v3 = vmul.f32 %v9006_v53, %v8998_v57 }
0x163e   : > { %9034 = vadd.xlane.f32.xlu1 %v9033_v12 }
0x163f   : > { %v9036_v30 = vsel %vm856_vm5, %v9014_v3, 0.0  ;;  %vm9055_vm5 = vcmask 0  }
0x1640   : > { %9037 = vadd.xlane.f32.xlu0 %v9036_v30 }
0x16b9   : > { %v9017_v35 = vpop.xlane.xlu1 %9016 }
0x16bd   : > { %v9023_v0 = vpop.xlane.xlu1 %9022 }
0x16bf   : > { %v9020_v4 = vpop.xlane.xlu0 %9019 }
0x16c0   : > { %v9039_v27 = vadd.f32 %v9020_v4, %v9017_v35 }
0x16c2   : > { %v9040_v18 = vadd.f32 %v9039_v27, %v9023_v0 }
0x16c3   : > { %v9026_v15 = vpop.xlane.xlu0 %9025  ;;  %v9029_v28 = vpop.xlane.xlu1 %9028 }
0x16c4   : > { %v9041_v24 = vadd.f32 %v9040_v18, %v9026_v15 }
0x16c6   : > { %v9042_v40 = vadd.f32 %v9041_v24, %v9029_v28 }
0x16c7   : > { %v9032_v6 = vpop.xlane.xlu0 %9031 }
0x16c8   : > { %v9043_v23 = vadd.f32 %v9042_v40, %v9032_v6 }
0x16cb   : > { %v9035_v26 = vpop.xlane.xlu1 %9034 }
0x16cc   : > { %v9044_v8 = vadd.f32 %v9043_v23, %v9035_v26 }
0x16cd   : > { %v9038_v17 = vpop.xlane.xlu0 %9037 }
0x16ce   : > { %v9045_v7 = vadd.f32 %v9044_v8, %v9038_v17 }
0x16d0   : > { %v9046_v50 = vrot.slane %v9045_v7, 4 }
0x16d2   : > { %v9047_v9 = vadd.f32 %v9046_v50, %v9045_v7 }
0x16d4   : > { %v9048_v61 = vrot.slane %v9047_v9, 2 }
0x16d6   : > { %v9049_v11 = vadd.f32 %v9048_v61, %v9047_v9 }
0x16d8   : > { %v9050_v55 = vrot.slane %v9049_v11, 1 }
0x16da   : > { %v9051_v37 = vadd.f32 %v9050_v55, %v9049_v11 }
0x16dc   : > { %v9054_v52 = vadd.f32 %v9053_v16, %v9051_v37 }
0x16de   : > { %9056 = vst.msk [vmem:[%s329_s8] sm:$0x1] %vm9055_vm5, %v9054_v52 }
0x16df PF: > { %s20_s11 = sadd.s32 1, %s12463_s11  }
0x16e0   : > { %p17_p4 = scmp.ge.s32.totalorder %s20_s11, 4  }
0x16e2   :  { %19 = sbr.rel (!%p17_p4) target bundleno = 2 (0x2), region = 149 }

</bundles_post_ra>
